<compile_context>
chip_gen: v7x
topology: tpu7x:2x2x1
jax: 0.10.0
libtpu: 0.0.40
codegen_flags: <defaults>
</compile_context>

<pallas_src>
import jax
import jax.numpy as jnp
from jax import lax
from jax.experimental import pallas as pl
from jax.experimental.pallas import tpu as pltpu


# ----------------------------------------------------------------------------- kernel helpers
def _dense(x, w_ref, b_ref):
    return jnp.dot(x, w_ref[...], preferred_element_type=jnp.float32) + b_ref[...]


def _dense_tiny_k(x, w_ref, b_ref):
    # x: (tb, k) with k in {2, 3}: k rank-1 VPU updates beat a K=k MXU push.
    w = w_ref[...]
    out = b_ref[...]
    for j in range(x.shape[1]):
        out = out + x[:, j:j + 1] * w[j:j + 1, :]
    return out


def extra_obs_kernel(*refs):
    (biome_ref, compass_ref, gps_ref, vox_ref,
     btab_ref, vtab_ref,
     wc1, bc1, wc2, bc2, wc3, bc3,
     wg1, bg1, wg2, bg2, wg3, bg3,
     wv1, bv1, wv2, bv2, wv3, bv3,
     wf1, bf1, wf2, bf2, wf3, bf3,
     o_ref) = refs
    f32 = jnp.float32
    relu = lambda v: jnp.maximum(v, 0.0)

    # ---- biome embedding: one-hot @ table on the MXU (gather-free) -------------------------
    biome = biome_ref[...]                                            # (tb, 1) int32
    iota_b = lax.broadcasted_iota(jnp.int32, (1, btab_ref.shape[0]), 1)
    onehot_b = (biome == iota_b).astype(f32)                          # (tb, 256 padded)
    feat_b = jnp.dot(onehot_b, btab_ref[...], preferred_element_type=f32)

    # ---- compass MLP: 2 -> Hc -> Hc -> Hc ---------------------------------------------------
    c = compass_ref[...].astype(f32)
    h = relu(_dense_tiny_k(c, wc1, bc1))
    h = relu(_dense(h, wc2, bc2))
    feat_c = _dense(h, wc3, bc3)

    # ---- gps MLP: 3 -> Hg -> Hg -> Hg -------------------------------------------------------
    g = gps_ref[...].astype(f32)
    h = relu(_dense_tiny_k(g, wg1, bg1))
    h = relu(_dense(h, wg2, bg2))
    feat_g = _dense(h, wg3, bg3)

    # ---- voxels: Embedding(32, Hv/4) + flatten + Linear(12*Hv/4, Hv) fused ------------------
    vox = vox_ref[...]                                                # (tb, 12) int32
    vtab = vtab_ref[...]                                              # (32, Hv/4)
    hv4 = vtab.shape[1]
    iota_v = lax.broadcasted_iota(jnp.int32, (1, vtab_ref.shape[0]), 1)
    acc = None
    for j in range(vox.shape[1]):                                     # 12 slots, unrolled
        onehot_j = (vox[:, j:j + 1] == iota_v).astype(f32)            # (tb, 32)
        emb_j = jnp.dot(onehot_j, vtab, preferred_element_type=f32)   # (tb, Hv/4)
        contrib = jnp.dot(emb_j, wv1[j * hv4:(j + 1) * hv4, :],
                          preferred_element_type=f32)                 # (tb, Hv)
        acc = contrib if acc is None else acc + contrib
    h = relu(acc + bv1[...])
    h = relu(_dense(h, wv2, bv2))
    feat_v = _dense(h, wv3, bv3)

    # ---- fusion MLP; concat fused into the first layer via W_f1 row blocks ------------------
    hb, hc = feat_b.shape[1], feat_c.shape[1]
    hg, hv = feat_g.shape[1], feat_v.shape[1]
    o1, o2, o3, o4 = hb, hb + hc, hb + hc + hg, hb + hc + hg + hv
    h = (jnp.dot(feat_b, wf1[0:o1, :], preferred_element_type=f32)
         + jnp.dot(feat_c, wf1[o1:o2, :], preferred_element_type=f32)
         + jnp.dot(feat_g, wf1[o2:o3, :], preferred_element_type=f32)
         + jnp.dot(feat_v, wf1[o3:o4, :], preferred_element_type=f32)
         + bf1[...])
    h = relu(h)
    h = relu(_dense(h, wf2, bf2))
    out = _dense(h, wf3, bf3)
    o_ref[...] = out.astype(o_ref.dtype)


# ----------------------------------------------------------------------------- host wrapper
def _round_up(x, m):
    return (x + m - 1) // m * m


def extra_obs_embedding_forward(params, obs, *, tb=256):
    biome, compass, gps, voxels = obs['biome'], obs['compass'], obs['gps'], obs['voxels']

    with_time = biome.ndim == 2
    if with_time:
        B0, T0 = biome.shape
        biome = biome.reshape(B0 * T0)
        compass = compass.reshape(B0 * T0, compass.shape[-1])
        gps = gps.reshape(B0 * T0, gps.shape[-1])
        voxels = voxels.reshape(B0 * T0, voxels.shape[-1])

    n = biome.shape[0]
    biome = biome.reshape(n, 1).astype(jnp.int32)
    voxels = voxels.astype(jnp.int32)
    compass = compass.astype(jnp.float32)
    gps = gps.astype(jnp.float32)

    # Large batch tile (rounded to the 8-row sublane tile); pad batch to a tile multiple.
    tb_eff = min(_round_up(tb, 8), _round_up(n, 8))
    n_pad = _round_up(n, tb_eff)
    if n_pad != n:
        pad = n_pad - n
        biome = jnp.pad(biome, ((0, pad), (0, 0)))
        compass = jnp.pad(compass, ((0, pad), (0, 0)))
        gps = jnp.pad(gps, ((0, pad), (0, 0)))
        voxels = jnp.pad(voxels, ((0, pad), (0, 0)))

    # Pad the biome table rows 168 -> 256 so the one-hot contraction dim is MXU-tile aligned
    # (padded rows are never selected by valid indices).
    btab = params['biome_table']
    n_biomes = btab.shape[0]
    btab = jnp.pad(btab, ((0, _round_up(n_biomes, 128) - n_biomes), (0, 0)))

    weight_args = (
        btab, params['vox_table'],
        *params['compass'], *params['gps'], *params['vox_mlp'], *params['fusion'],
    )

    hb = params['biome_table'].shape[1]
    hc = params['compass'][-2].shape[1]
    hg = params['gps'][-2].shape[1]
    hv = params['vox_mlp'][-2].shape[1]
    hv4 = params['vox_table'].shape[1]
    s2 = params['fusion'][0].shape[1]
    out_dim = params['fusion'][-2].shape[1]
    for d in (hb, hc, hg):
        assert d % 8 == 0, "hidden dims must be multiples of 8 (sublane tile)"
    assert hv % 32 == 0, "voxels_hiddim must be a multiple of 32"

    grid = (n_pad // tb_eff,)

    def row_spec(arr):
        return pl.BlockSpec((tb_eff, arr.shape[1]), lambda i: (i, 0))

    data_specs = [row_spec(biome), row_spec(compass), row_spec(gps), row_spec(voxels)]
    # Constant index_map => each weight is DMA'd once and stays resident in VMEM across the grid.
    weight_specs = [pl.BlockSpec(w.shape, lambda i: (0, 0)) for w in weight_args]
    out_spec = pl.BlockSpec((tb_eff, out_dim), lambda i: (i, 0))

    sum_dims = hb + hc + hg + hv
    flops = 2 * n_pad * (
        btab.shape[0] * hb
        + 2 * hc + 2 * hc * hc
        + 3 * hg + 2 * hg * hg
        + voxels.shape[1] * (32 * hv4 + hv4 * hv) + 2 * hv * hv
        + sum_dims * s2 + s2 * s2 + s2 * out_dim
    )
    bytes_accessed = 4 * (
        n_pad * (1 + compass.shape[1] + gps.shape[1] + voxels.shape[1] + out_dim)
        + sum(int(w.size) for w in weight_args)
    )

    out = pl.pallas_call(
        extra_obs_kernel,
        out_shape=jax.ShapeDtypeStruct((n_pad, out_dim), jnp.float32),
        grid_spec=pltpu.PrefetchScalarGridSpec(
            num_scalar_prefetch=0,
            grid=grid,
            in_specs=data_specs + weight_specs,
            out_specs=out_spec,
        ),
        compiler_params=pltpu.CompilerParams(
            dimension_semantics=("parallel",),       # batch tiles shard across TCs on v7x
            vmem_limit_bytes=48 * 1024 * 1024,       # explicit; leaves headroom on v7x (64 MiB)
        ),
        cost_estimate=pl.CostEstimate(
            flops=flops, transcendentals=0, bytes_accessed=bytes_accessed),
    )(biome, compass, gps, voxels, *weight_args)

    out = out[:n]
    if with_time:
        out = out.reshape(B0, T0, out_dim)
    return out


# ----------------------------------------------------------------------------- params / reference
def init_params(key, embed_dims, output_dim):
    hb, hc = embed_dims['biome_hiddim'], embed_dims['compass_hiddim']
    hg, hv = embed_dims['gps_hiddim'], embed_dims['voxels_hiddim']
    sum_dims = hb + hc + hg + hv

    def linear(k, fan_in, fan_out):
        kw, kb = jax.random.split(k)
        bound = 1.0 / (fan_in ** 0.5)
        w = jax.random.uniform(kw, (fan_in, fan_out), jnp.float32, -bound, bound)
        b = jax.random.uniform(kb, (1, fan_out), jnp.float32, -bound, bound)
        return w, b

    def mlp(k, d_in, d_hidden, d_out):
        k1, k2, k3 = jax.random.split(k, 3)
        w1, b1 = linear(k1, d_in, d_hidden)
        w2, b2 = linear(k2, d_hidden, d_hidden)
        w3, b3 = linear(k3, d_hidden, d_out)
        return (w1, b1, w2, b2, w3, b3)

    keys = jax.random.split(key, 6)
    return {
        'biome_table': jax.random.normal(keys[0], (168, hb), jnp.float32),
        'vox_table': jax.random.normal(keys[1], (32, hv // 4), jnp.float32),
        'compass': mlp(keys[2], 2, hc, hc),
        'gps': mlp(keys[3], 3, hg, hg),
        'vox_mlp': mlp(keys[4], 12 * (hv // 4), hv, hv),
        'fusion': mlp(keys[5], sum_dims, sum_dims // 2, output_dim),
    }


def extra_obs_embedding_ref(params, obs):
    hi = lax.Precision.HIGHEST

    def mlp(x, ws):
        w1, b1, w2, b2, w3, b3 = ws
        h = jnp.maximum(jnp.dot(x, w1, precision=hi) + b1, 0.0)
        h = jnp.maximum(jnp.dot(h, w2, precision=hi) + b2, 0.0)
        return jnp.dot(h, w3, precision=hi) + b3

    biome = params['biome_table'][obs['biome']]
    compass = mlp(obs['compass'], params['compass'])
    gps = mlp(obs['gps'], params['gps'])
    v = params['vox_table'][obs['voxels']]
    v = v.reshape(v.shape[0], -1)
    v = mlp(v, params['vox_mlp'])
    fused = jnp.concatenate([biome, compass, gps, v], axis=-1)
    return mlp(fused, params['fusion'])


# ----------------------------------------------------------------------------- demo / check
if __name__ == "__main__":
    embed_dims = dict(biome_hiddim=32, compass_hiddim=32, gps_hiddim=32, voxels_hiddim=32)
    output_dim = 128          # lane-dense (multiple of 128) output -> unmasked stores
    B = 512                   # 2 batch tiles of 256 -> grid can shard across both TCs on v7x

    key = jax.random.PRNGKey(0)
    kp, kb, kc, kg, kv = jax.random.split(key, 5)
    params = init_params(kp, embed_dims, output_dim)
    obs = {
        'biome': jax.random.randint(kb, (B,), 0, 168, dtype=jnp.int32),
        'compass': jax.random.normal(kc, (B, 2), jnp.float32),
        'gps': jax.random.normal(kg, (B, 3), jnp.float32),
        'voxels': jax.random.randint(kv, (B, 12), 0, 32, dtype=jnp.int32),
    }

    out = extra_obs_embedding_forward(params, obs, tb=256)
    out = jax.block_until_ready(out)

    ref = extra_obs_embedding_ref(params, obs)
    assert out.shape == (B, output_dim)
    assert jnp.allclose(out, ref, atol=2e-2, rtol=2e-2), float(jnp.max(jnp.abs(out - ref)))

    print("KERNEL_OK")
</pallas_src>

<mosaic_0001>
module attributes {stable_mosaic.version = 11 : i64} {
  func.func @extra_obs_kernel(%arg0: i32, %arg1: memref<256x1xi32, #tpu.memory_space<vmem>>, %arg2: memref<256x2xf32, #tpu.memory_space<vmem>>, %arg3: memref<256x3xf32, #tpu.memory_space<vmem>>, %arg4: memref<256x12xi32, #tpu.memory_space<vmem>>, %arg5: memref<256x32xf32, #tpu.memory_space<vmem>>, %arg6: memref<32x8xf32, #tpu.memory_space<vmem>>, %arg7: memref<2x32xf32, #tpu.memory_space<vmem>>, %arg8: memref<1x32xf32, #tpu.memory_space<vmem>>, %arg9: memref<32x32xf32, #tpu.memory_space<vmem>>, %arg10: memref<1x32xf32, #tpu.memory_space<vmem>>, %arg11: memref<32x32xf32, #tpu.memory_space<vmem>>, %arg12: memref<1x32xf32, #tpu.memory_space<vmem>>, %arg13: memref<3x32xf32, #tpu.memory_space<vmem>>, %arg14: memref<1x32xf32, #tpu.memory_space<vmem>>, %arg15: memref<32x32xf32, #tpu.memory_space<vmem>>, %arg16: memref<1x32xf32, #tpu.memory_space<vmem>>, %arg17: memref<32x32xf32, #tpu.memory_space<vmem>>, %arg18: memref<1x32xf32, #tpu.memory_space<vmem>>, %arg19: memref<96x32xf32, #tpu.memory_space<vmem>>, %arg20: memref<1x32xf32, #tpu.memory_space<vmem>>, %arg21: memref<32x32xf32, #tpu.memory_space<vmem>>, %arg22: memref<1x32xf32, #tpu.memory_space<vmem>>, %arg23: memref<32x32xf32, #tpu.memory_space<vmem>>, %arg24: memref<1x32xf32, #tpu.memory_space<vmem>>, %arg25: memref<128x64xf32, #tpu.memory_space<vmem>>, %arg26: memref<1x64xf32, #tpu.memory_space<vmem>>, %arg27: memref<64x64xf32, #tpu.memory_space<vmem>>, %arg28: memref<1x64xf32, #tpu.memory_space<vmem>>, %arg29: memref<64x128xf32, #tpu.memory_space<vmem>>, %arg30: memref<1x128xf32, #tpu.memory_space<vmem>>, %arg31: memref<256x128xf32, #tpu.memory_space<vmem>>) attributes {dimension_semantics = [#tpu.dimension_semantics<parallel>], iteration_bounds = array<i64: 2>, scalar_prefetch = 0 : i64, scratch_operands = 0 : i64, tpu.core_type = #tpu.core_type<tc>, window_params = [{transform_indices = @transform_0, window_bounds = array<i64: 256, 1>}, {transform_indices = @transform_1, window_bounds = array<i64: 256, 2>}, {transform_indices = @transform_2, window_bounds = array<i64: 256, 3>}, {transform_indices = @transform_3, window_bounds = array<i64: 256, 12>}, {pipeline_mode = #tpu.pipeline_mode<synchronous>, transform_indices = @transform_4, window_bounds = array<i64: 256, 32>}, {pipeline_mode = #tpu.pipeline_mode<synchronous>, transform_indices = @transform_5, window_bounds = array<i64: 32, 8>}, {pipeline_mode = #tpu.pipeline_mode<synchronous>, transform_indices = @transform_6, window_bounds = array<i64: 2, 32>}, {pipeline_mode = #tpu.pipeline_mode<synchronous>, transform_indices = @transform_7, window_bounds = array<i64: 1, 32>}, {pipeline_mode = #tpu.pipeline_mode<synchronous>, transform_indices = @transform_8, window_bounds = array<i64: 32, 32>}, {pipeline_mode = #tpu.pipeline_mode<synchronous>, transform_indices = @transform_9, window_bounds = array<i64: 1, 32>}, {pipeline_mode = #tpu.pipeline_mode<synchronous>, transform_indices = @transform_10, window_bounds = array<i64: 32, 32>}, {pipeline_mode = #tpu.pipeline_mode<synchronous>, transform_indices = @transform_11, window_bounds = array<i64: 1, 32>}, {pipeline_mode = #tpu.pipeline_mode<synchronous>, transform_indices = @transform_12, window_bounds = array<i64: 3, 32>}, {pipeline_mode = #tpu.pipeline_mode<synchronous>, transform_indices = @transform_13, window_bounds = array<i64: 1, 32>}, {pipeline_mode = #tpu.pipeline_mode<synchronous>, transform_indices = @transform_14, window_bounds = array<i64: 32, 32>}, {pipeline_mode = #tpu.pipeline_mode<synchronous>, transform_indices = @transform_15, window_bounds = array<i64: 1, 32>}, {pipeline_mode = #tpu.pipeline_mode<synchronous>, transform_indices = @transform_16, window_bounds = array<i64: 32, 32>}, {pipeline_mode = #tpu.pipeline_mode<synchronous>, transform_indices = @transform_17, window_bounds = array<i64: 1, 32>}, {pipeline_mode = #tpu.pipeline_mode<synchronous>, transform_indices = @transform_18, window_bounds = array<i64: 96, 32>}, {pipeline_mode = #tpu.pipeline_mode<synchronous>, transform_indices = @transform_19, window_bounds = array<i64: 1, 32>}, {pipeline_mode = #tpu.pipeline_mode<synchronous>, transform_indices = @transform_20, window_bounds = array<i64: 32, 32>}, {pipeline_mode = #tpu.pipeline_mode<synchronous>, transform_indices = @transform_21, window_bounds = array<i64: 1, 32>}, {pipeline_mode = #tpu.pipeline_mode<synchronous>, transform_indices = @transform_22, window_bounds = array<i64: 32, 32>}, {pipeline_mode = #tpu.pipeline_mode<synchronous>, transform_indices = @transform_23, window_bounds = array<i64: 1, 32>}, {pipeline_mode = #tpu.pipeline_mode<synchronous>, transform_indices = @transform_24, window_bounds = array<i64: 128, 64>}, {pipeline_mode = #tpu.pipeline_mode<synchronous>, transform_indices = @transform_25, window_bounds = array<i64: 1, 64>}, {pipeline_mode = #tpu.pipeline_mode<synchronous>, transform_indices = @transform_26, window_bounds = array<i64: 64, 64>}, {pipeline_mode = #tpu.pipeline_mode<synchronous>, transform_indices = @transform_27, window_bounds = array<i64: 1, 64>}, {pipeline_mode = #tpu.pipeline_mode<synchronous>, transform_indices = @transform_28, window_bounds = array<i64: 64, 128>}, {pipeline_mode = #tpu.pipeline_mode<synchronous>, transform_indices = @transform_29, window_bounds = array<i64: 1, 128>}, {transform_indices = @transform_30, window_bounds = array<i64: 256, 128>}]} {
    %c0 = arith.constant 0 : index
    %c0_0 = arith.constant 0 : index
    %0 = vector.load %arg1[%c0, %c0_0] : memref<256x1xi32, #tpu.memory_space<vmem>>, vector<256x1xi32>
    %1 = tpu.iota {dimensions = array<i32: 1>} : vector<1x256xi32>
    %2 = vector.broadcast %0 : vector<256x1xi32> to vector<256x256xi32>
    %3 = vector.broadcast %1 : vector<1x256xi32> to vector<256x256xi32>
    %4 = arith.cmpi eq, %2, %3 : vector<256x256xi32>
    %5 = arith.extui %4 : vector<256x256xi1> to vector<256x256xi32>
    %6 = arith.sitofp %5 : vector<256x256xi32> to vector<256x256xf32>
    %c0_1 = arith.constant 0 : index
    %c0_2 = arith.constant 0 : index
    %7 = vector.load %arg5[%c0_1, %c0_2] : memref<256x32xf32, #tpu.memory_space<vmem>>, vector<256x32xf32>
    %cst = arith.constant dense<0.000000e+00> : vector<256x32xf32>
    %8 = tpu.matmul %6, %7, %cst {dimension_numbers = #tpu.dot_dimension_numbers<[1], [0], [0], [1], [0, 0, 1, 1], [], []>} : vector<256x256xf32>, vector<256x32xf32>, vector<256x32xf32> -> vector<256x32xf32>
    %c0_3 = arith.constant 0 : index
    %c0_4 = arith.constant 0 : index
    %9 = vector.load %arg2[%c0_3, %c0_4] : memref<256x2xf32, #tpu.memory_space<vmem>>, vector<256x2xf32>
    %c0_5 = arith.constant 0 : index
    %c0_6 = arith.constant 0 : index
    %10 = vector.load %arg7[%c0_5, %c0_6] : memref<2x32xf32, #tpu.memory_space<vmem>>, vector<2x32xf32>
    %c0_7 = arith.constant 0 : index
    %c0_8 = arith.constant 0 : index
    %11 = vector.load %arg8[%c0_7, %c0_8] : memref<1x32xf32, #tpu.memory_space<vmem>>, vector<1x32xf32>
    %12 = vector.extract_strided_slice %9 {offsets = [0, 0], sizes = [256, 1], strides = [1, 1]} : vector<256x2xf32> to vector<256x1xf32>
    %13 = vector.extract_strided_slice %10 {offsets = [0, 0], sizes = [1, 32], strides = [1, 1]} : vector<2x32xf32> to vector<1x32xf32>
    %14 = vector.broadcast %12 : vector<256x1xf32> to vector<256x32xf32>
    %15 = vector.broadcast %13 : vector<1x32xf32> to vector<256x32xf32>
    %16 = arith.mulf %14, %15 : vector<256x32xf32>
    %17 = vector.broadcast %11 : vector<1x32xf32> to vector<256x32xf32>
    %18 = arith.addf %17, %16 : vector<256x32xf32>
    %19 = vector.extract_strided_slice %9 {offsets = [0, 1], sizes = [256, 1], strides = [1, 1]} : vector<256x2xf32> to vector<256x1xf32>
    %20 = vector.extract_strided_slice %10 {offsets = [1, 0], sizes = [1, 32], strides = [1, 1]} : vector<2x32xf32> to vector<1x32xf32>
    %21 = vector.broadcast %19 : vector<256x1xf32> to vector<256x32xf32>
    %22 = vector.broadcast %20 : vector<1x32xf32> to vector<256x32xf32>
    %23 = arith.mulf %21, %22 : vector<256x32xf32>
    %24 = arith.addf %18, %23 : vector<256x32xf32>
    %cst_9 = arith.constant 0.000000e+00 : f32
    %25 = vector.broadcast %cst_9 : f32 to vector<256x32xf32>
    %26 = arith.maximumf %24, %25 : vector<256x32xf32>
    %c0_10 = arith.constant 0 : index
    %c0_11 = arith.constant 0 : index
    %27 = vector.load %arg9[%c0_10, %c0_11] : memref<32x32xf32, #tpu.memory_space<vmem>>, vector<32x32xf32>
    %cst_12 = arith.constant dense<0.000000e+00> : vector<256x32xf32>
    %28 = tpu.matmul %26, %27, %cst_12 {dimension_numbers = #tpu.dot_dimension_numbers<[1], [0], [0], [1], [0, 0, 1, 1], [], []>} : vector<256x32xf32>, vector<32x32xf32>, vector<256x32xf32> -> vector<256x32xf32>
    %c0_13 = arith.constant 0 : index
    %c0_14 = arith.constant 0 : index
    %29 = vector.load %arg10[%c0_13, %c0_14] : memref<1x32xf32, #tpu.memory_space<vmem>>, vector<1x32xf32>
    %30 = vector.broadcast %29 : vector<1x32xf32> to vector<256x32xf32>
    %31 = arith.addf %28, %30 : vector<256x32xf32>
    %cst_15 = arith.constant 0.000000e+00 : f32
    %32 = vector.broadcast %cst_15 : f32 to vector<256x32xf32>
    %33 = arith.maximumf %31, %32 : vector<256x32xf32>
    %c0_16 = arith.constant 0 : index
    %c0_17 = arith.constant 0 : index
    %34 = vector.load %arg11[%c0_16, %c0_17] : memref<32x32xf32, #tpu.memory_space<vmem>>, vector<32x32xf32>
    %cst_18 = arith.constant dense<0.000000e+00> : vector<256x32xf32>
    %35 = tpu.matmul %33, %34, %cst_18 {dimension_numbers = #tpu.dot_dimension_numbers<[1], [0], [0], [1], [0, 0, 1, 1], [], []>} : vector<256x32xf32>, vector<32x32xf32>, vector<256x32xf32> -> vector<256x32xf32>
    %c0_19 = arith.constant 0 : index
    %c0_20 = arith.constant 0 : index
    %36 = vector.load %arg12[%c0_19, %c0_20] : memref<1x32xf32, #tpu.memory_space<vmem>>, vector<1x32xf32>
    %37 = vector.broadcast %36 : vector<1x32xf32> to vector<256x32xf32>
    %38 = arith.addf %35, %37 : vector<256x32xf32>
    %c0_21 = arith.constant 0 : index
    %c0_22 = arith.constant 0 : index
    %39 = vector.load %arg3[%c0_21, %c0_22] : memref<256x3xf32, #tpu.memory_space<vmem>>, vector<256x3xf32>
    %c0_23 = arith.constant 0 : index
    %c0_24 = arith.constant 0 : index
    %40 = vector.load %arg13[%c0_23, %c0_24] : memref<3x32xf32, #tpu.memory_space<vmem>>, vector<3x32xf32>
    %c0_25 = arith.constant 0 : index
    %c0_26 = arith.constant 0 : index
    %41 = vector.load %arg14[%c0_25, %c0_26] : memref<1x32xf32, #tpu.memory_space<vmem>>, vector<1x32xf32>
    %42 = vector.extract_strided_slice %39 {offsets = [0, 0], sizes = [256, 1], strides = [1, 1]} : vector<256x3xf32> to vector<256x1xf32>
    %43 = vector.extract_strided_slice %40 {offsets = [0, 0], sizes = [1, 32], strides = [1, 1]} : vector<3x32xf32> to vector<1x32xf32>
    %44 = vector.broadcast %42 : vector<256x1xf32> to vector<256x32xf32>
    %45 = vector.broadcast %43 : vector<1x32xf32> to vector<256x32xf32>
    %46 = arith.mulf %44, %45 : vector<256x32xf32>
    %47 = vector.broadcast %41 : vector<1x32xf32> to vector<256x32xf32>
    %48 = arith.addf %47, %46 : vector<256x32xf32>
    %49 = vector.extract_strided_slice %39 {offsets = [0, 1], sizes = [256, 1], strides = [1, 1]} : vector<256x3xf32> to vector<256x1xf32>
    %50 = vector.extract_strided_slice %40 {offsets = [1, 0], sizes = [1, 32], strides = [1, 1]} : vector<3x32xf32> to vector<1x32xf32>
    %51 = vector.broadcast %49 : vector<256x1xf32> to vector<256x32xf32>
    %52 = vector.broadcast %50 : vector<1x32xf32> to vector<256x32xf32>
    %53 = arith.mulf %51, %52 : vector<256x32xf32>
    %54 = arith.addf %48, %53 : vector<256x32xf32>
    %55 = vector.extract_strided_slice %39 {offsets = [0, 2], sizes = [256, 1], strides = [1, 1]} : vector<256x3xf32> to vector<256x1xf32>
    %56 = vector.extract_strided_slice %40 {offsets = [2, 0], sizes = [1, 32], strides = [1, 1]} : vector<3x32xf32> to vector<1x32xf32>
    %57 = vector.broadcast %55 : vector<256x1xf32> to vector<256x32xf32>
    %58 = vector.broadcast %56 : vector<1x32xf32> to vector<256x32xf32>
    %59 = arith.mulf %57, %58 : vector<256x32xf32>
    %60 = arith.addf %54, %59 : vector<256x32xf32>
    %cst_27 = arith.constant 0.000000e+00 : f32
    %61 = vector.broadcast %cst_27 : f32 to vector<256x32xf32>
    %62 = arith.maximumf %60, %61 : vector<256x32xf32>
    %c0_28 = arith.constant 0 : index
    %c0_29 = arith.constant 0 : index
    %63 = vector.load %arg15[%c0_28, %c0_29] : memref<32x32xf32, #tpu.memory_space<vmem>>, vector<32x32xf32>
    %cst_30 = arith.constant dense<0.000000e+00> : vector<256x32xf32>
    %64 = tpu.matmul %62, %63, %cst_30 {dimension_numbers = #tpu.dot_dimension_numbers<[1], [0], [0], [1], [0, 0, 1, 1], [], []>} : vector<256x32xf32>, vector<32x32xf32>, vector<256x32xf32> -> vector<256x32xf32>
    %c0_31 = arith.constant 0 : index
    %c0_32 = arith.constant 0 : index
    %65 = vector.load %arg16[%c0_31, %c0_32] : memref<1x32xf32, #tpu.memory_space<vmem>>, vector<1x32xf32>
    %66 = vector.broadcast %65 : vector<1x32xf32> to vector<256x32xf32>
    %67 = arith.addf %64, %66 : vector<256x32xf32>
    %cst_33 = arith.constant 0.000000e+00 : f32
    %68 = vector.broadcast %cst_33 : f32 to vector<256x32xf32>
    %69 = arith.maximumf %67, %68 : vector<256x32xf32>
    %c0_34 = arith.constant 0 : index
    %c0_35 = arith.constant 0 : index
    %70 = vector.load %arg17[%c0_34, %c0_35] : memref<32x32xf32, #tpu.memory_space<vmem>>, vector<32x32xf32>
    %cst_36 = arith.constant dense<0.000000e+00> : vector<256x32xf32>
    %71 = tpu.matmul %69, %70, %cst_36 {dimension_numbers = #tpu.dot_dimension_numbers<[1], [0], [0], [1], [0, 0, 1, 1], [], []>} : vector<256x32xf32>, vector<32x32xf32>, vector<256x32xf32> -> vector<256x32xf32>
    %c0_37 = arith.constant 0 : index
    %c0_38 = arith.constant 0 : index
    %72 = vector.load %arg18[%c0_37, %c0_38] : memref<1x32xf32, #tpu.memory_space<vmem>>, vector<1x32xf32>
    %73 = vector.broadcast %72 : vector<1x32xf32> to vector<256x32xf32>
    %74 = arith.addf %71, %73 : vector<256x32xf32>
    %c0_39 = arith.constant 0 : index
    %c0_40 = arith.constant 0 : index
    %75 = vector.load %arg4[%c0_39, %c0_40] : memref<256x12xi32, #tpu.memory_space<vmem>>, vector<256x12xi32>
    %c0_41 = arith.constant 0 : index
    %c0_42 = arith.constant 0 : index
    %76 = vector.load %arg6[%c0_41, %c0_42] : memref<32x8xf32, #tpu.memory_space<vmem>>, vector<32x8xf32>
    %77 = tpu.iota {dimensions = array<i32: 1>} : vector<1x32xi32>
    %78 = vector.extract_strided_slice %75 {offsets = [0, 0], sizes = [256, 1], strides = [1, 1]} : vector<256x12xi32> to vector<256x1xi32>
    %79 = vector.broadcast %78 : vector<256x1xi32> to vector<256x32xi32>
    %80 = vector.broadcast %77 : vector<1x32xi32> to vector<256x32xi32>
    %81 = arith.cmpi eq, %79, %80 : vector<256x32xi32>
    %82 = arith.extui %81 : vector<256x32xi1> to vector<256x32xi32>
    %83 = arith.sitofp %82 : vector<256x32xi32> to vector<256x32xf32>
    %cst_43 = arith.constant dense<0.000000e+00> : vector<256x8xf32>
    %84 = tpu.matmul %83, %76, %cst_43 {dimension_numbers = #tpu.dot_dimension_numbers<[1], [0], [0], [1], [0, 0, 1, 1], [], []>} : vector<256x32xf32>, vector<32x8xf32>, vector<256x8xf32> -> vector<256x8xf32>
    %c0_44 = arith.constant 0 : index
    %c0_45 = arith.constant 0 : index
    %85 = vector.load %arg19[%c0_44, %c0_45] : memref<96x32xf32, #tpu.memory_space<vmem>>, vector<8x32xf32>
    %cst_46 = arith.constant dense<0.000000e+00> : vector<256x32xf32>
    %86 = tpu.matmul %84, %85, %cst_46 {dimension_numbers = #tpu.dot_dimension_numbers<[1], [0], [0], [1], [0, 0, 1, 1], [], []>} : vector<256x8xf32>, vector<8x32xf32>, vector<256x32xf32> -> vector<256x32xf32>
    %87 = vector.extract_strided_slice %75 {offsets = [0, 1], sizes = [256, 1], strides = [1, 1]} : vector<256x12xi32> to vector<256x1xi32>
    %88 = vector.broadcast %87 : vector<256x1xi32> to vector<256x32xi32>
    %89 = vector.broadcast %77 : vector<1x32xi32> to vector<256x32xi32>
    %90 = arith.cmpi eq, %88, %89 : vector<256x32xi32>
    %91 = arith.extui %90 : vector<256x32xi1> to vector<256x32xi32>
    %92 = arith.sitofp %91 : vector<256x32xi32> to vector<256x32xf32>
    %cst_47 = arith.constant dense<0.000000e+00> : vector<256x8xf32>
    %93 = tpu.matmul %92, %76, %cst_47 {dimension_numbers = #tpu.dot_dimension_numbers<[1], [0], [0], [1], [0, 0, 1, 1], [], []>} : vector<256x32xf32>, vector<32x8xf32>, vector<256x8xf32> -> vector<256x8xf32>
    %c8 = arith.constant 8 : index
    %c0_48 = arith.constant 0 : index
    %94 = vector.load %arg19[%c8, %c0_48] : memref<96x32xf32, #tpu.memory_space<vmem>>, vector<8x32xf32>
    %cst_49 = arith.constant dense<0.000000e+00> : vector<256x32xf32>
    %95 = tpu.matmul %93, %94, %cst_49 {dimension_numbers = #tpu.dot_dimension_numbers<[1], [0], [0], [1], [0, 0, 1, 1], [], []>} : vector<256x8xf32>, vector<8x32xf32>, vector<256x32xf32> -> vector<256x32xf32>
    %96 = arith.addf %86, %95 : vector<256x32xf32>
    %97 = vector.extract_strided_slice %75 {offsets = [0, 2], sizes = [256, 1], strides = [1, 1]} : vector<256x12xi32> to vector<256x1xi32>
    %98 = vector.broadcast %97 : vector<256x1xi32> to vector<256x32xi32>
    %99 = vector.broadcast %77 : vector<1x32xi32> to vector<256x32xi32>
    %100 = arith.cmpi eq, %98, %99 : vector<256x32xi32>
    %101 = arith.extui %100 : vector<256x32xi1> to vector<256x32xi32>
    %102 = arith.sitofp %101 : vector<256x32xi32> to vector<256x32xf32>
    %cst_50 = arith.constant dense<0.000000e+00> : vector<256x8xf32>
    %103 = tpu.matmul %102, %76, %cst_50 {dimension_numbers = #tpu.dot_dimension_numbers<[1], [0], [0], [1], [0, 0, 1, 1], [], []>} : vector<256x32xf32>, vector<32x8xf32>, vector<256x8xf32> -> vector<256x8xf32>
    %c16 = arith.constant 16 : index
    %c0_51 = arith.constant 0 : index
    %104 = vector.load %arg19[%c16, %c0_51] : memref<96x32xf32, #tpu.memory_space<vmem>>, vector<8x32xf32>
    %cst_52 = arith.constant dense<0.000000e+00> : vector<256x32xf32>
    %105 = tpu.matmul %103, %104, %cst_52 {dimension_numbers = #tpu.dot_dimension_numbers<[1], [0], [0], [1], [0, 0, 1, 1], [], []>} : vector<256x8xf32>, vector<8x32xf32>, vector<256x32xf32> -> vector<256x32xf32>
    %106 = arith.addf %96, %105 : vector<256x32xf32>
    %107 = vector.extract_strided_slice %75 {offsets = [0, 3], sizes = [256, 1], strides = [1, 1]} : vector<256x12xi32> to vector<256x1xi32>
    %108 = vector.broadcast %107 : vector<256x1xi32> to vector<256x32xi32>
    %109 = vector.broadcast %77 : vector<1x32xi32> to vector<256x32xi32>
    %110 = arith.cmpi eq, %108, %109 : vector<256x32xi32>
    %111 = arith.extui %110 : vector<256x32xi1> to vector<256x32xi32>
    %112 = arith.sitofp %111 : vector<256x32xi32> to vector<256x32xf32>
    %cst_53 = arith.constant dense<0.000000e+00> : vector<256x8xf32>
    %113 = tpu.matmul %112, %76, %cst_53 {dimension_numbers = #tpu.dot_dimension_numbers<[1], [0], [0], [1], [0, 0, 1, 1], [], []>} : vector<256x32xf32>, vector<32x8xf32>, vector<256x8xf32> -> vector<256x8xf32>
    %c24 = arith.constant 24 : index
    %c0_54 = arith.constant 0 : index
    %114 = vector.load %arg19[%c24, %c0_54] : memref<96x32xf32, #tpu.memory_space<vmem>>, vector<8x32xf32>
    %cst_55 = arith.constant dense<0.000000e+00> : vector<256x32xf32>
    %115 = tpu.matmul %113, %114, %cst_55 {dimension_numbers = #tpu.dot_dimension_numbers<[1], [0], [0], [1], [0, 0, 1, 1], [], []>} : vector<256x8xf32>, vector<8x32xf32>, vector<256x32xf32> -> vector<256x32xf32>
    %116 = arith.addf %106, %115 : vector<256x32xf32>
    %117 = vector.extract_strided_slice %75 {offsets = [0, 4], sizes = [256, 1], strides = [1, 1]} : vector<256x12xi32> to vector<256x1xi32>
    %118 = vector.broadcast %117 : vector<256x1xi32> to vector<256x32xi32>
    %119 = vector.broadcast %77 : vector<1x32xi32> to vector<256x32xi32>
    %120 = arith.cmpi eq, %118, %119 : vector<256x32xi32>
    %121 = arith.extui %120 : vector<256x32xi1> to vector<256x32xi32>
    %122 = arith.sitofp %121 : vector<256x32xi32> to vector<256x32xf32>
    %cst_56 = arith.constant dense<0.000000e+00> : vector<256x8xf32>
    %123 = tpu.matmul %122, %76, %cst_56 {dimension_numbers = #tpu.dot_dimension_numbers<[1], [0], [0], [1], [0, 0, 1, 1], [], []>} : vector<256x32xf32>, vector<32x8xf32>, vector<256x8xf32> -> vector<256x8xf32>
    %c32 = arith.constant 32 : index
    %c0_57 = arith.constant 0 : index
    %124 = vector.load %arg19[%c32, %c0_57] : memref<96x32xf32, #tpu.memory_space<vmem>>, vector<8x32xf32>
    %cst_58 = arith.constant dense<0.000000e+00> : vector<256x32xf32>
    %125 = tpu.matmul %123, %124, %cst_58 {dimension_numbers = #tpu.dot_dimension_numbers<[1], [0], [0], [1], [0, 0, 1, 1], [], []>} : vector<256x8xf32>, vector<8x32xf32>, vector<256x32xf32> -> vector<256x32xf32>
    %126 = arith.addf %116, %125 : vector<256x32xf32>
    %127 = vector.extract_strided_slice %75 {offsets = [0, 5], sizes = [256, 1], strides = [1, 1]} : vector<256x12xi32> to vector<256x1xi32>
    %128 = vector.broadcast %127 : vector<256x1xi32> to vector<256x32xi32>
    %129 = vector.broadcast %77 : vector<1x32xi32> to vector<256x32xi32>
    %130 = arith.cmpi eq, %128, %129 : vector<256x32xi32>
    %131 = arith.extui %130 : vector<256x32xi1> to vector<256x32xi32>
    %132 = arith.sitofp %131 : vector<256x32xi32> to vector<256x32xf32>
    %cst_59 = arith.constant dense<0.000000e+00> : vector<256x8xf32>
    %133 = tpu.matmul %132, %76, %cst_59 {dimension_numbers = #tpu.dot_dimension_numbers<[1], [0], [0], [1], [0, 0, 1, 1], [], []>} : vector<256x32xf32>, vector<32x8xf32>, vector<256x8xf32> -> vector<256x8xf32>
    %c40 = arith.constant 40 : index
    %c0_60 = arith.constant 0 : index
    %134 = vector.load %arg19[%c40, %c0_60] : memref<96x32xf32, #tpu.memory_space<vmem>>, vector<8x32xf32>
    %cst_61 = arith.constant dense<0.000000e+00> : vector<256x32xf32>
    %135 = tpu.matmul %133, %134, %cst_61 {dimension_numbers = #tpu.dot_dimension_numbers<[1], [0], [0], [1], [0, 0, 1, 1], [], []>} : vector<256x8xf32>, vector<8x32xf32>, vector<256x32xf32> -> vector<256x32xf32>
    %136 = arith.addf %126, %135 : vector<256x32xf32>
    %137 = vector.extract_strided_slice %75 {offsets = [0, 6], sizes = [256, 1], strides = [1, 1]} : vector<256x12xi32> to vector<256x1xi32>
    %138 = vector.broadcast %137 : vector<256x1xi32> to vector<256x32xi32>
    %139 = vector.broadcast %77 : vector<1x32xi32> to vector<256x32xi32>
    %140 = arith.cmpi eq, %138, %139 : vector<256x32xi32>
    %141 = arith.extui %140 : vector<256x32xi1> to vector<256x32xi32>
    %142 = arith.sitofp %141 : vector<256x32xi32> to vector<256x32xf32>
    %cst_62 = arith.constant dense<0.000000e+00> : vector<256x8xf32>
    %143 = tpu.matmul %142, %76, %cst_62 {dimension_numbers = #tpu.dot_dimension_numbers<[1], [0], [0], [1], [0, 0, 1, 1], [], []>} : vector<256x32xf32>, vector<32x8xf32>, vector<256x8xf32> -> vector<256x8xf32>
    %c48 = arith.constant 48 : index
    %c0_63 = arith.constant 0 : index
    %144 = vector.load %arg19[%c48, %c0_63] : memref<96x32xf32, #tpu.memory_space<vmem>>, vector<8x32xf32>
    %cst_64 = arith.constant dense<0.000000e+00> : vector<256x32xf32>
    %145 = tpu.matmul %143, %144, %cst_64 {dimension_numbers = #tpu.dot_dimension_numbers<[1], [0], [0], [1], [0, 0, 1, 1], [], []>} : vector<256x8xf32>, vector<8x32xf32>, vector<256x32xf32> -> vector<256x32xf32>
    %146 = arith.addf %136, %145 : vector<256x32xf32>
    %147 = vector.extract_strided_slice %75 {offsets = [0, 7], sizes = [256, 1], strides = [1, 1]} : vector<256x12xi32> to vector<256x1xi32>
    %148 = vector.broadcast %147 : vector<256x1xi32> to vector<256x32xi32>
    %149 = vector.broadcast %77 : vector<1x32xi32> to vector<256x32xi32>
    %150 = arith.cmpi eq, %148, %149 : vector<256x32xi32>
    %151 = arith.extui %150 : vector<256x32xi1> to vector<256x32xi32>
    %152 = arith.sitofp %151 : vector<256x32xi32> to vector<256x32xf32>
    %cst_65 = arith.constant dense<0.000000e+00> : vector<256x8xf32>
    %153 = tpu.matmul %152, %76, %cst_65 {dimension_numbers = #tpu.dot_dimension_numbers<[1], [0], [0], [1], [0, 0, 1, 1], [], []>} : vector<256x32xf32>, vector<32x8xf32>, vector<256x8xf32> -> vector<256x8xf32>
    %c56 = arith.constant 56 : index
    %c0_66 = arith.constant 0 : index
    %154 = vector.load %arg19[%c56, %c0_66] : memref<96x32xf32, #tpu.memory_space<vmem>>, vector<8x32xf32>
    %cst_67 = arith.constant dense<0.000000e+00> : vector<256x32xf32>
    %155 = tpu.matmul %153, %154, %cst_67 {dimension_numbers = #tpu.dot_dimension_numbers<[1], [0], [0], [1], [0, 0, 1, 1], [], []>} : vector<256x8xf32>, vector<8x32xf32>, vector<256x32xf32> -> vector<256x32xf32>
    %156 = arith.addf %146, %155 : vector<256x32xf32>
    %157 = vector.extract_strided_slice %75 {offsets = [0, 8], sizes = [256, 1], strides = [1, 1]} : vector<256x12xi32> to vector<256x1xi32>
    %158 = vector.broadcast %157 : vector<256x1xi32> to vector<256x32xi32>
    %159 = vector.broadcast %77 : vector<1x32xi32> to vector<256x32xi32>
    %160 = arith.cmpi eq, %158, %159 : vector<256x32xi32>
    %161 = arith.extui %160 : vector<256x32xi1> to vector<256x32xi32>
    %162 = arith.sitofp %161 : vector<256x32xi32> to vector<256x32xf32>
    %cst_68 = arith.constant dense<0.000000e+00> : vector<256x8xf32>
    %163 = tpu.matmul %162, %76, %cst_68 {dimension_numbers = #tpu.dot_dimension_numbers<[1], [0], [0], [1], [0, 0, 1, 1], [], []>} : vector<256x32xf32>, vector<32x8xf32>, vector<256x8xf32> -> vector<256x8xf32>
    %c64 = arith.constant 64 : index
    %c0_69 = arith.constant 0 : index
    %164 = vector.load %arg19[%c64, %c0_69] : memref<96x32xf32, #tpu.memory_space<vmem>>, vector<8x32xf32>
    %cst_70 = arith.constant dense<0.000000e+00> : vector<256x32xf32>
    %165 = tpu.matmul %163, %164, %cst_70 {dimension_numbers = #tpu.dot_dimension_numbers<[1], [0], [0], [1], [0, 0, 1, 1], [], []>} : vector<256x8xf32>, vector<8x32xf32>, vector<256x32xf32> -> vector<256x32xf32>
    %166 = arith.addf %156, %165 : vector<256x32xf32>
    %167 = vector.extract_strided_slice %75 {offsets = [0, 9], sizes = [256, 1], strides = [1, 1]} : vector<256x12xi32> to vector<256x1xi32>
    %168 = vector.broadcast %167 : vector<256x1xi32> to vector<256x32xi32>
    %169 = vector.broadcast %77 : vector<1x32xi32> to vector<256x32xi32>
    %170 = arith.cmpi eq, %168, %169 : vector<256x32xi32>
    %171 = arith.extui %170 : vector<256x32xi1> to vector<256x32xi32>
    %172 = arith.sitofp %171 : vector<256x32xi32> to vector<256x32xf32>
    %cst_71 = arith.constant dense<0.000000e+00> : vector<256x8xf32>
    %173 = tpu.matmul %172, %76, %cst_71 {dimension_numbers = #tpu.dot_dimension_numbers<[1], [0], [0], [1], [0, 0, 1, 1], [], []>} : vector<256x32xf32>, vector<32x8xf32>, vector<256x8xf32> -> vector<256x8xf32>
    %c72 = arith.constant 72 : index
    %c0_72 = arith.constant 0 : index
    %174 = vector.load %arg19[%c72, %c0_72] : memref<96x32xf32, #tpu.memory_space<vmem>>, vector<8x32xf32>
    %cst_73 = arith.constant dense<0.000000e+00> : vector<256x32xf32>
    %175 = tpu.matmul %173, %174, %cst_73 {dimension_numbers = #tpu.dot_dimension_numbers<[1], [0], [0], [1], [0, 0, 1, 1], [], []>} : vector<256x8xf32>, vector<8x32xf32>, vector<256x32xf32> -> vector<256x32xf32>
    %176 = arith.addf %166, %175 : vector<256x32xf32>
    %177 = vector.extract_strided_slice %75 {offsets = [0, 10], sizes = [256, 1], strides = [1, 1]} : vector<256x12xi32> to vector<256x1xi32>
    %178 = vector.broadcast %177 : vector<256x1xi32> to vector<256x32xi32>
    %179 = vector.broadcast %77 : vector<1x32xi32> to vector<256x32xi32>
    %180 = arith.cmpi eq, %178, %179 : vector<256x32xi32>
    %181 = arith.extui %180 : vector<256x32xi1> to vector<256x32xi32>
    %182 = arith.sitofp %181 : vector<256x32xi32> to vector<256x32xf32>
    %cst_74 = arith.constant dense<0.000000e+00> : vector<256x8xf32>
    %183 = tpu.matmul %182, %76, %cst_74 {dimension_numbers = #tpu.dot_dimension_numbers<[1], [0], [0], [1], [0, 0, 1, 1], [], []>} : vector<256x32xf32>, vector<32x8xf32>, vector<256x8xf32> -> vector<256x8xf32>
    %c80 = arith.constant 80 : index
    %c0_75 = arith.constant 0 : index
    %184 = vector.load %arg19[%c80, %c0_75] : memref<96x32xf32, #tpu.memory_space<vmem>>, vector<8x32xf32>
    %cst_76 = arith.constant dense<0.000000e+00> : vector<256x32xf32>
    %185 = tpu.matmul %183, %184, %cst_76 {dimension_numbers = #tpu.dot_dimension_numbers<[1], [0], [0], [1], [0, 0, 1, 1], [], []>} : vector<256x8xf32>, vector<8x32xf32>, vector<256x32xf32> -> vector<256x32xf32>
    %186 = arith.addf %176, %185 : vector<256x32xf32>
    %187 = vector.extract_strided_slice %75 {offsets = [0, 11], sizes = [256, 1], strides = [1, 1]} : vector<256x12xi32> to vector<256x1xi32>
    %188 = vector.broadcast %187 : vector<256x1xi32> to vector<256x32xi32>
    %189 = vector.broadcast %77 : vector<1x32xi32> to vector<256x32xi32>
    %190 = arith.cmpi eq, %188, %189 : vector<256x32xi32>
    %191 = arith.extui %190 : vector<256x32xi1> to vector<256x32xi32>
    %192 = arith.sitofp %191 : vector<256x32xi32> to vector<256x32xf32>
    %cst_77 = arith.constant dense<0.000000e+00> : vector<256x8xf32>
    %193 = tpu.matmul %192, %76, %cst_77 {dimension_numbers = #tpu.dot_dimension_numbers<[1], [0], [0], [1], [0, 0, 1, 1], [], []>} : vector<256x32xf32>, vector<32x8xf32>, vector<256x8xf32> -> vector<256x8xf32>
    %c88 = arith.constant 88 : index
    %c0_78 = arith.constant 0 : index
    %194 = vector.load %arg19[%c88, %c0_78] : memref<96x32xf32, #tpu.memory_space<vmem>>, vector<8x32xf32>
    %cst_79 = arith.constant dense<0.000000e+00> : vector<256x32xf32>
    %195 = tpu.matmul %193, %194, %cst_79 {dimension_numbers = #tpu.dot_dimension_numbers<[1], [0], [0], [1], [0, 0, 1, 1], [], []>} : vector<256x8xf32>, vector<8x32xf32>, vector<256x32xf32> -> vector<256x32xf32>
    %196 = arith.addf %186, %195 : vector<256x32xf32>
    %c0_80 = arith.constant 0 : index
    %c0_81 = arith.constant 0 : index
    %197 = vector.load %arg20[%c0_80, %c0_81] : memref<1x32xf32, #tpu.memory_space<vmem>>, vector<1x32xf32>
    %198 = vector.broadcast %197 : vector<1x32xf32> to vector<256x32xf32>
    %199 = arith.addf %196, %198 : vector<256x32xf32>
    %cst_82 = arith.constant 0.000000e+00 : f32
    %200 = vector.broadcast %cst_82 : f32 to vector<256x32xf32>
    %201 = arith.maximumf %199, %200 : vector<256x32xf32>
    %c0_83 = arith.constant 0 : index
    %c0_84 = arith.constant 0 : index
    %202 = vector.load %arg21[%c0_83, %c0_84] : memref<32x32xf32, #tpu.memory_space<vmem>>, vector<32x32xf32>
    %cst_85 = arith.constant dense<0.000000e+00> : vector<256x32xf32>
    %203 = tpu.matmul %201, %202, %cst_85 {dimension_numbers = #tpu.dot_dimension_numbers<[1], [0], [0], [1], [0, 0, 1, 1], [], []>} : vector<256x32xf32>, vector<32x32xf32>, vector<256x32xf32> -> vector<256x32xf32>
    %c0_86 = arith.constant 0 : index
    %c0_87 = arith.constant 0 : index
    %204 = vector.load %arg22[%c0_86, %c0_87] : memref<1x32xf32, #tpu.memory_space<vmem>>, vector<1x32xf32>
    %205 = vector.broadcast %204 : vector<1x32xf32> to vector<256x32xf32>
    %206 = arith.addf %203, %205 : vector<256x32xf32>
    %cst_88 = arith.constant 0.000000e+00 : f32
    %207 = vector.broadcast %cst_88 : f32 to vector<256x32xf32>
    %208 = arith.maximumf %206, %207 : vector<256x32xf32>
    %c0_89 = arith.constant 0 : index
    %c0_90 = arith.constant 0 : index
    %209 = vector.load %arg23[%c0_89, %c0_90] : memref<32x32xf32, #tpu.memory_space<vmem>>, vector<32x32xf32>
    %cst_91 = arith.constant dense<0.000000e+00> : vector<256x32xf32>
    %210 = tpu.matmul %208, %209, %cst_91 {dimension_numbers = #tpu.dot_dimension_numbers<[1], [0], [0], [1], [0, 0, 1, 1], [], []>} : vector<256x32xf32>, vector<32x32xf32>, vector<256x32xf32> -> vector<256x32xf32>
    %c0_92 = arith.constant 0 : index
    %c0_93 = arith.constant 0 : index
    %211 = vector.load %arg24[%c0_92, %c0_93] : memref<1x32xf32, #tpu.memory_space<vmem>>, vector<1x32xf32>
    %212 = vector.broadcast %211 : vector<1x32xf32> to vector<256x32xf32>
    %213 = arith.addf %210, %212 : vector<256x32xf32>
    %c0_94 = arith.constant 0 : index
    %c0_95 = arith.constant 0 : index
    %214 = vector.load %arg25[%c0_94, %c0_95] : memref<128x64xf32, #tpu.memory_space<vmem>>, vector<32x64xf32>
    %cst_96 = arith.constant dense<0.000000e+00> : vector<256x64xf32>
    %215 = tpu.matmul %8, %214, %cst_96 {dimension_numbers = #tpu.dot_dimension_numbers<[1], [0], [0], [1], [0, 0, 1, 1], [], []>} : vector<256x32xf32>, vector<32x64xf32>, vector<256x64xf32> -> vector<256x64xf32>
    %c32_97 = arith.constant 32 : index
    %c0_98 = arith.constant 0 : index
    %216 = vector.load %arg25[%c32_97, %c0_98] : memref<128x64xf32, #tpu.memory_space<vmem>>, vector<32x64xf32>
    %cst_99 = arith.constant dense<0.000000e+00> : vector<256x64xf32>
    %217 = tpu.matmul %38, %216, %cst_99 {dimension_numbers = #tpu.dot_dimension_numbers<[1], [0], [0], [1], [0, 0, 1, 1], [], []>} : vector<256x32xf32>, vector<32x64xf32>, vector<256x64xf32> -> vector<256x64xf32>
    %218 = arith.addf %215, %217 : vector<256x64xf32>
    %c64_100 = arith.constant 64 : index
    %c0_101 = arith.constant 0 : index
    %219 = vector.load %arg25[%c64_100, %c0_101] : memref<128x64xf32, #tpu.memory_space<vmem>>, vector<32x64xf32>
    %cst_102 = arith.constant dense<0.000000e+00> : vector<256x64xf32>
    %220 = tpu.matmul %74, %219, %cst_102 {dimension_numbers = #tpu.dot_dimension_numbers<[1], [0], [0], [1], [0, 0, 1, 1], [], []>} : vector<256x32xf32>, vector<32x64xf32>, vector<256x64xf32> -> vector<256x64xf32>
    %221 = arith.addf %218, %220 : vector<256x64xf32>
    %c96 = arith.constant 96 : index
    %c0_103 = arith.constant 0 : index
    %222 = vector.load %arg25[%c96, %c0_103] : memref<128x64xf32, #tpu.memory_space<vmem>>, vector<32x64xf32>
    %cst_104 = arith.constant dense<0.000000e+00> : vector<256x64xf32>
    %223 = tpu.matmul %213, %222, %cst_104 {dimension_numbers = #tpu.dot_dimension_numbers<[1], [0], [0], [1], [0, 0, 1, 1], [], []>} : vector<256x32xf32>, vector<32x64xf32>, vector<256x64xf32> -> vector<256x64xf32>
    %224 = arith.addf %221, %223 : vector<256x64xf32>
    %c0_105 = arith.constant 0 : index
    %c0_106 = arith.constant 0 : index
    %225 = vector.load %arg26[%c0_105, %c0_106] : memref<1x64xf32, #tpu.memory_space<vmem>>, vector<1x64xf32>
    %226 = vector.broadcast %225 : vector<1x64xf32> to vector<256x64xf32>
    %227 = arith.addf %224, %226 : vector<256x64xf32>
    %cst_107 = arith.constant 0.000000e+00 : f32
    %228 = vector.broadcast %cst_107 : f32 to vector<256x64xf32>
    %229 = arith.maximumf %227, %228 : vector<256x64xf32>
    %c0_108 = arith.constant 0 : index
    %c0_109 = arith.constant 0 : index
    %230 = vector.load %arg27[%c0_108, %c0_109] : memref<64x64xf32, #tpu.memory_space<vmem>>, vector<64x64xf32>
    %cst_110 = arith.constant dense<0.000000e+00> : vector<256x64xf32>
    %231 = tpu.matmul %229, %230, %cst_110 {dimension_numbers = #tpu.dot_dimension_numbers<[1], [0], [0], [1], [0, 0, 1, 1], [], []>} : vector<256x64xf32>, vector<64x64xf32>, vector<256x64xf32> -> vector<256x64xf32>
    %c0_111 = arith.constant 0 : index
    %c0_112 = arith.constant 0 : index
    %232 = vector.load %arg28[%c0_111, %c0_112] : memref<1x64xf32, #tpu.memory_space<vmem>>, vector<1x64xf32>
    %233 = vector.broadcast %232 : vector<1x64xf32> to vector<256x64xf32>
    %234 = arith.addf %231, %233 : vector<256x64xf32>
    %cst_113 = arith.constant 0.000000e+00 : f32
    %235 = vector.broadcast %cst_113 : f32 to vector<256x64xf32>
    %236 = arith.maximumf %234, %235 : vector<256x64xf32>
    %c0_114 = arith.constant 0 : index
    %c0_115 = arith.constant 0 : index
    %237 = vector.load %arg29[%c0_114, %c0_115] : memref<64x128xf32, #tpu.memory_space<vmem>>, vector<64x128xf32>
    %cst_116 = arith.constant dense<0.000000e+00> : vector<256x128xf32>
    %238 = tpu.matmul %236, %237, %cst_116 {dimension_numbers = #tpu.dot_dimension_numbers<[1], [0], [0], [1], [0, 0, 1, 1], [], []>} : vector<256x64xf32>, vector<64x128xf32>, vector<256x128xf32> -> vector<256x128xf32>
    %c0_117 = arith.constant 0 : index
    %c0_118 = arith.constant 0 : index
    %239 = vector.load %arg30[%c0_117, %c0_118] : memref<1x128xf32, #tpu.memory_space<vmem>>, vector<1x128xf32>
    %240 = vector.broadcast %239 : vector<1x128xf32> to vector<256x128xf32>
    %241 = arith.addf %238, %240 : vector<256x128xf32>
    %c0_119 = arith.constant 0 : index
    %c0_120 = arith.constant 0 : index
    %242 = vector.load %arg31[%c0_119, %c0_120] : memref<256x128xf32, #tpu.memory_space<vmem>>, vector<256x128xf32>
    tpu.vector_store %arg31[%c0_119, %c0_120], %241 {strides = array<i32>} : memref<256x128xf32, #tpu.memory_space<vmem>>, vector<256x128xf32>,
    return
  }
  func.func @transform_0(%arg0: i32) -> (i32, i32) {
    %c0_i32 = arith.constant 0 : i32
    %c0_i32_0 = arith.constant 0 : i32
    return %arg0, %c0_i32 : i32, i32
  }
  func.func @transform_1(%arg0: i32) -> (i32, i32) {
    %c0_i32 = arith.constant 0 : i32
    %c0_i32_0 = arith.constant 0 : i32
    return %arg0, %c0_i32 : i32, i32
  }
  func.func @transform_2(%arg0: i32) -> (i32, i32) {
    %c0_i32 = arith.constant 0 : i32
    %c0_i32_0 = arith.constant 0 : i32
    return %arg0, %c0_i32 : i32, i32
  }
  func.func @transform_3(%arg0: i32) -> (i32, i32) {
    %c0_i32 = arith.constant 0 : i32
    %c0_i32_0 = arith.constant 0 : i32
    return %arg0, %c0_i32 : i32, i32
  }
  func.func @transform_4(%arg0: i32) -> (i32, i32) {
    %c0_i32 = arith.constant 0 : i32
    %c0_i32_0 = arith.constant 0 : i32
    %c0_i32_1 = arith.constant 0 : i32
    return %c0_i32, %c0_i32_0 : i32, i32
  }
  func.func @transform_5(%arg0: i32) -> (i32, i32) {
    %c0_i32 = arith.constant 0 : i32
    %c0_i32_0 = arith.constant 0 : i32
    %c0_i32_1 = arith.constant 0 : i32
    return %c0_i32, %c0_i32_0 : i32, i32
  }
  func.func @transform_6(%arg0: i32) -> (i32, i32) {
    %c0_i32 = arith.constant 0 : i32
    %c0_i32_0 = arith.constant 0 : i32
    %c0_i32_1 = arith.constant 0 : i32
    return %c0_i32, %c0_i32_0 : i32, i32
  }
  func.func @transform_7(%arg0: i32) -> (i32, i32) {
    %c0_i32 = arith.constant 0 : i32
    %c0_i32_0 = arith.constant 0 : i32
    %c0_i32_1 = arith.constant 0 : i32
    return %c0_i32, %c0_i32_0 : i32, i32
  }
  func.func @transform_8(%arg0: i32) -> (i32, i32) {
    %c0_i32 = arith.constant 0 : i32
    %c0_i32_0 = arith.constant 0 : i32
    %c0_i32_1 = arith.constant 0 : i32
    return %c0_i32, %c0_i32_0 : i32, i32
  }
  func.func @transform_9(%arg0: i32) -> (i32, i32) {
    %c0_i32 = arith.constant 0 : i32
    %c0_i32_0 = arith.constant 0 : i32
    %c0_i32_1 = arith.constant 0 : i32
    return %c0_i32, %c0_i32_0 : i32, i32
  }
  func.func @transform_10(%arg0: i32) -> (i32, i32) {
    %c0_i32 = arith.constant 0 : i32
    %c0_i32_0 = arith.constant 0 : i32
    %c0_i32_1 = arith.constant 0 : i32
    return %c0_i32, %c0_i32_0 : i32, i32
  }
  func.func @transform_11(%arg0: i32) -> (i32, i32) {
    %c0_i32 = arith.constant 0 : i32
    %c0_i32_0 = arith.constant 0 : i32
    %c0_i32_1 = arith.constant 0 : i32
    return %c0_i32, %c0_i32_0 : i32, i32
  }
  func.func @transform_12(%arg0: i32) -> (i32, i32) {
    %c0_i32 = arith.constant 0 : i32
    %c0_i32_0 = arith.constant 0 : i32
    %c0_i32_1 = arith.constant 0 : i32
    return %c0_i32, %c0_i32_0 : i32, i32
  }
  func.func @transform_13(%arg0: i32) -> (i32, i32) {
    %c0_i32 = arith.constant 0 : i32
    %c0_i32_0 = arith.constant 0 : i32
    %c0_i32_1 = arith.constant 0 : i32
    return %c0_i32, %c0_i32_0 : i32, i32
  }
  func.func @transform_14(%arg0: i32) -> (i32, i32) {
    %c0_i32 = arith.constant 0 : i32
    %c0_i32_0 = arith.constant 0 : i32
    %c0_i32_1 = arith.constant 0 : i32
    return %c0_i32, %c0_i32_0 : i32, i32
  }
  func.func @transform_15(%arg0: i32) -> (i32, i32) {
    %c0_i32 = arith.constant 0 : i32
    %c0_i32_0 = arith.constant 0 : i32
    %c0_i32_1 = arith.constant 0 : i32
    return %c0_i32, %c0_i32_0 : i32, i32
  }
  func.func @transform_16(%arg0: i32) -> (i32, i32) {
    %c0_i32 = arith.constant 0 : i32
    %c0_i32_0 = arith.constant 0 : i32
    %c0_i32_1 = arith.constant 0 : i32
    return %c0_i32, %c0_i32_0 : i32, i32
  }
  func.func @transform_17(%arg0: i32) -> (i32, i32) {
    %c0_i32 = arith.constant 0 : i32
    %c0_i32_0 = arith.constant 0 : i32
    %c0_i32_1 = arith.constant 0 : i32
    return %c0_i32, %c0_i32_0 : i32, i32
  }
  func.func @transform_18(%arg0: i32) -> (i32, i32) {
    %c0_i32 = arith.constant 0 : i32
    %c0_i32_0 = arith.constant 0 : i32
    %c0_i32_1 = arith.constant 0 : i32
    return %c0_i32, %c0_i32_0 : i32, i32
  }
  func.func @transform_19(%arg0: i32) -> (i32, i32) {
    %c0_i32 = arith.constant 0 : i32
    %c0_i32_0 = arith.constant 0 : i32
    %c0_i32_1 = arith.constant 0 : i32
    return %c0_i32, %c0_i32_0 : i32, i32
  }
  func.func @transform_20(%arg0: i32) -> (i32, i32) {
    %c0_i32 = arith.constant 0 : i32
    %c0_i32_0 = arith.constant 0 : i32
    %c0_i32_1 = arith.constant 0 : i32
    return %c0_i32, %c0_i32_0 : i32, i32
  }
  func.func @transform_21(%arg0: i32) -> (i32, i32) {
    %c0_i32 = arith.constant 0 : i32
    %c0_i32_0 = arith.constant 0 : i32
    %c0_i32_1 = arith.constant 0 : i32
    return %c0_i32, %c0_i32_0 : i32, i32
  }
  func.func @transform_22(%arg0: i32) -> (i32, i32) {
    %c0_i32 = arith.constant 0 : i32
    %c0_i32_0 = arith.constant 0 : i32
    %c0_i32_1 = arith.constant 0 : i32
    return %c0_i32, %c0_i32_0 : i32, i32
  }
  func.func @transform_23(%arg0: i32) -> (i32, i32) {
    %c0_i32 = arith.constant 0 : i32
    %c0_i32_0 = arith.constant 0 : i32
    %c0_i32_1 = arith.constant 0 : i32
    return %c0_i32, %c0_i32_0 : i32, i32
  }
  func.func @transform_24(%arg0: i32) -> (i32, i32) {
    %c0_i32 = arith.constant 0 : i32
    %c0_i32_0 = arith.constant 0 : i32
    %c0_i32_1 = arith.constant 0 : i32
    return %c0_i32, %c0_i32_0 : i32, i32
  }
  func.func @transform_25(%arg0: i32) -> (i32, i32) {
    %c0_i32 = arith.constant 0 : i32
    %c0_i32_0 = arith.constant 0 : i32
    %c0_i32_1 = arith.constant 0 : i32
    return %c0_i32, %c0_i32_0 : i32, i32
  }
  func.func @transform_26(%arg0: i32) -> (i32, i32) {
    %c0_i32 = arith.constant 0 : i32
    %c0_i32_0 = arith.constant 0 : i32
    %c0_i32_1 = arith.constant 0 : i32
    return %c0_i32, %c0_i32_0 : i32, i32
  }
  func.func @transform_27(%arg0: i32) -> (i32, i32) {
    %c0_i32 = arith.constant 0 : i32
    %c0_i32_0 = arith.constant 0 : i32
    %c0_i32_1 = arith.constant 0 : i32
    return %c0_i32, %c0_i32_0 : i32, i32
  }
  func.func @transform_28(%arg0: i32) -> (i32, i32) {
    %c0_i32 = arith.constant 0 : i32
    %c0_i32_0 = arith.constant 0 : i32
    %c0_i32_1 = arith.constant 0 : i32
    return %c0_i32, %c0_i32_0 : i32, i32
  }
  func.func @transform_29(%arg0: i32) -> (i32, i32) {
    %c0_i32 = arith.constant 0 : i32
    %c0_i32_0 = arith.constant 0 : i32
    %c0_i32_1 = arith.constant 0 : i32
    return %c0_i32, %c0_i32_0 : i32, i32
  }
  func.func @transform_30(%arg0: i32) -> (i32, i32) {
    %c0_i32 = arith.constant 0 : i32
    %c0_i32_0 = arith.constant 0 : i32
    return %arg0, %c0_i32 : i32, i32
  }
}

</mosaic_0001>

<bundles_post_ra>
// kernel: tpu_custom_call.1
= control target key start
LH: loop header
LB: loop body
LE: loop exit
PB: predicated region body
PF: predicated region fallthrough
CT: control target
= control target key end

     0   :  { %s23607_s6 = smov 1   ;;  %s23608_s10 = smov 2   ;;  %s30625_s0 = inlined_call_operand.smem [shape: u32[31], index: -1, kind: input, shape index: {}] }
   0x1   :  { %s23663_s5 = sld [smem:[%s30625_s0]]   ;;  %s23609_s14 = smov 3  }
   0x2   :  { %s23668_s9 = sld [smem:[%s30625_s0 + %s23607_s6]]   ;;  %s23610_s18 = smov 4  }
   0x3   :  { %s23673_s13 = sld [smem:[%s30625_s0 + %s23608_s10]]   ;;  %s23611_s22 = smov 5  }
   0x4   :  { %s23678_s17 = sld [smem:[%s30625_s0 + %s23609_s14]]   ;;  %s23612_s26 = smov 6  }
   0x5   :  { %s23683_s21 = sld [smem:[%s30625_s0 + %s23610_s18]]   ;;  %s23613_s30 = smov 7  }
   0x6   :  { %s23688_s25 = sld [smem:[%s30625_s0 + %s23611_s22]]   ;;  %s23614_s4 = smov 8  }
   0x7   :  { %30703 = sst [smem:[#allocation5_spill]] %s23663_s5  ;;  %s23615_s10 = smov 9  }
   0x8   :  { %30704 = sst [smem:[#allocation6_spill]] %s23668_s9  ;;  %s23616_s15 = smov 10  }
   0x9   :  { %s23693_s29 = sld [smem:[%s30625_s0 + %s23612_s26]]   ;;  %s23617_s20 = smov 11  }
   0xa   :  { %s23698_s3 = sld [smem:[%s30625_s0 + %s23613_s30]]   ;;  %s23618_s26 = smov 12  }
   0xb   :  { %s23703_s8 = sld [smem:[%s30625_s0 + %s23614_s4]]   ;;  %s23619_s1 = smov 13  }
   0xc   :  { %30705 = sst [smem:[#allocation7_spill]] %s23688_s25  ;;  %s23620_s7 = smov 14  }
   0xd   :  { %s23708_s14 = sld [smem:[%s30625_s0 + %s23615_s10]]   ;;  %s23622_s22 = smov 16  }
   0xe   :  { %s23713_s19 = sld [smem:[%s30625_s0 + %s23616_s15]]   ;;  %s23621_s15 = smov 15  }
   0xf   :  { %s23718_s24 = sld [smem:[%s30625_s0 + %s23617_s20]]   ;;  %s23623_s28 = smov 17  }
  0x10   :  { %30706 = sst [smem:[#allocation8_spill]] %s23698_s3 }
  0x11   :  { %30707 = sst [smem:[#allocation9_spill]] %s23703_s8 }
  0x12   :  { %s23723_s30 = sld [smem:[%s30625_s0 + %s23618_s26]]  }
  0x13   :  { %s23728_s6 = sld [smem:[%s30625_s0 + %s23619_s1]]  }
  0x14   :  { %s23733_s12 = sld [smem:[%s30625_s0 + %s23620_s7]]   ;;  %s23624_s7 = smov 18  }
  0x15   :  { %30708 = sst [smem:[#allocation10_spill]] %s23718_s24 }
  0x16   :  { %s23738_s20 = sld [smem:[%s30625_s0 + %s23621_s15]]   ;;  %s23625_s15 = smov 19  }
  0x17   :  { %s23743_s27 = sld [smem:[%s30625_s0 + %s23622_s22]]   ;;  %s23626_s22 = smov 20  }
  0x18   :  { %s23748_s4 = sld [smem:[%s30625_s0 + %s23623_s28]]   ;;  %s23627_s28 = smov 21  }
  0x19   :  { %30709 = sst [smem:[#allocation11_spill]] %s23728_s6 }
  0x1a   :  { %s23753_s24 = sld [smem:[%s30625_s0 + %s23624_s7]]   ;;  %s23628_s7 = smov 22  }
  0x1b   :  { %s23763_s25 = sld [smem:[%s30625_s0 + %s23626_s22]]   ;;  %s23630_s22 = smov 24  }
  0x1c   :  { %30710 = sst [smem:[#allocation12_spill]] %s23738_s20 }
  0x1d   :  { %s23758_s20 = sld [smem:[%s30625_s0 + %s23625_s15]]   ;;  %s23629_s15 = smov 23  }
  0x1e   :  { %30711 = sst [smem:[#allocation13_spill]] %s23748_s4 }
  0x1f   :  { %s23768_s4 = sld [smem:[%s30625_s0 + %s23627_s28]]   ;;  %s23631_s28 = smov 25  }
  0x20   :  { %30712 = sst [smem:[#allocation14_spill]] %s23753_s24 }
  0x21   :  { %30714 = sst [smem:[#allocation16_spill]] %s23763_s25 }
  0x22   :  { %s23773_s24 = sld [smem:[%s30625_s0 + %s23628_s7]]   ;;  %s23632_s7 = smov 26  }
  0x23   :  { %30713 = sst [smem:[#allocation15_spill]] %s23758_s20 }
  0x24   :  { %s23778_s20 = sld [smem:[%s30625_s0 + %s23629_s15]]   ;;  %s23633_s15 = smov 27  }
  0x25   :  { %30715 = sst [smem:[#allocation17_spill]] %s23768_s4 }
  0x26   :  { %s23783_s25 = sld [smem:[%s30625_s0 + %s23630_s22]]   ;;  %s23634_s22 = smov 28  }
  0x27   :  { %s23788_s4 = sld [smem:[%s30625_s0 + %s23631_s28]]   ;;  %s23635_s28 = smov 29  }
  0x28   :  { %30716 = sst [smem:[#allocation18_spill]] %s23773_s24 }
  0x29   :  { %s23793_s24 = sld [smem:[%s30625_s0 + %s23632_s7]]   ;;  %s23636_s7 = smov 30  }
  0x2a   :  { %30717 = sst [smem:[#allocation19_spill]] %s23778_s20 }
  0x2b   :  { %s23798_s20 = sld [smem:[%s30625_s0 + %s23633_s15]]  }
  0x2c   :  { %30718 = sst [smem:[#allocation20_spill]] %s23783_s25 }
  0x2d   :  { %30719 = sst [smem:[#allocation21_spill]] %s23788_s4 }
  0x2e   :  { %s23803_s25 = sld [smem:[%s30625_s0 + %s23634_s22]]  }
  0x2f   :  { %30720 = sst [smem:[#allocation22_spill]] %s23793_s24 }
  0x30   :  { %s23808_s4 = sld [smem:[%s30625_s0 + %s23635_s28]]  }
  0x31   :  { %s23813_s24 = sld [smem:[%s30625_s0 + %s23636_s7]]  }
  0x36   :  { %30721 = sst [smem:[#allocation23_spill]] %s23808_s4 }
  0x37   :  { %66 = vsyncpa [#allocation3], 0 }
  0x38   :  { %68 = vsyncpa [#allocation3 + $0x1], 0  ;;  %s23815_s15 = smov 0   ;;  %s23817_s16 = smov 0  }
  0x39   :  { %s23819_s18 = smov 0   ;;  %s23821_s22 = smov 0  }
  0x3a LB: > { %s30722_s8 = sld [smem:[#allocation9_spill]]  ;;  %s23836_s0 = sadd.s32 4294967295, %s23605_s22   ;;  %s23593_s15 = sphi %s23815_s15, %s31485_s15   ;;  %s23605_s22 = sphi %s23821_s22, %s31488_s22   ;;  %s23601_s18 = sphi %s23819_s18, %s31487_s18   ;;  %s23597_s16 = sphi %s23817_s16, %s31486_s16  }
  0x3b   : > { %s17617_s23 = sadd.s32 4294967294, %s23605_s22   ;;  %s23840_s26 = sadd.s32 1, %s23605_s22  }
  0x3c   : > { %s731_s28 = sadd.s32 1, %s23601_s18  ;;  %s728_s1 = ssub.s32 %s23605_s22, %s23840_s26 }
  0x3d   : > { %p741_p0 = scmp.ne.s32.totalorder %s23601_s18, %s23597_s16  ;;  %p729_p1 = scmp.eq.s32.totalorder %s728_s1, 0 }
  0x3e   : > { %p742_p2 = scmp.eq.s32.totalorder %s23836_s0, 1  ;;  %p747_p3 = scmp.ne.s32.totalorder %s23597_s16, %s23593_s15 }
  0x3f   : > { %p748_p4 = scmp.eq.s32.totalorder %s17617_s23, 1  ;;  %p17620_p7 = scmp.ge.s32.totalorder %s23605_s22, 1 }
  0x40   : > { %s23851_s2 = scalar_select %p729_p1, %s23601_s18, %s731_s28  }
  0x41   : > { %p23853_p5 = por %p742_p2, %p741_p0  ;;  %p23857_p6 = por %p748_p4, %p747_p3 }
  0x42   : > { %p880_p8 = scmp.lt.s32.totalorder %s23605_s22, 3 }
  0x44   : > { %p881_p9 = pnand %p17620_p7, %p880_p8 }
  0x46   : > { %884 = sbr.rel (%p881_p9) target bundleno = 3284 (0xcd4), region = 140 }
  0x4d   : > { %s17622_s11 = sshll.u32 %s23836_s0, 5  ;;  %v1321_v0 = vld [vmem:[%s23683_s21] sm:$0xff]  ;;  %v1322_v1 = vld [vmem:[%s23683_s21 + $0x8] sm:$0xff]  ;;  %v30634_v2 = vmov 0   ;;  %s30725_s5 = sld [smem:[#allocation5_spill]]  ;;  %v1323_v4 = vld [vmem:[%s23683_s21 + $0x10] sm:$0xff] }
  0x4e   : > { %23335 = vset.pattern.permute.xlu1 %v30634_v2  ;;  %23334 = vset.pattern.permute.xlu0 %v30634_v2  ;;  %p974_p10 = scmp.lt.s32.totalorder %s17622_s11, 63  ;;  %v22541_v3 = vpack.c.bf16 %v1322_v1, %v1321_v0  ;;  %v1324_v5 = vld [vmem:[%s23683_s21 + $0x18] sm:$0xff]  ;;  %v23638_v6 = vmov 0.0|0.0   ;;  %v1325_v8 = vld [vmem:[%s23683_s21 + $0x20] sm:$0xff]  ;;  %v1326_v9 = vld [vmem:[%s23683_s21 + $0x28] sm:$0xff]  ;;  %s30726_s9 = sld [smem:[#allocation6_spill]] }
  0x4f   : > { %22540 = vmatprep.subr.bf16.mxu0 %v23638_v6  ;;  %v22544_v7 = vpack.c.bf16 %v1324_v5, %v1323_v4  ;;  %v22547_v12 = vpack.c.bf16 %v1326_v9, %v1325_v8  ;;  %v1327_v13 = vld [vmem:[%s23683_s21 + $0x30] sm:$0xff]  ;;  %v1328_v14 = vld [vmem:[%s23683_s21 + $0x38] sm:$0xff]  ;;  %v1329_v18 = vld [vmem:[%s23683_s21 + $0x40] sm:$0xff]  ;;  %s30728_s3 = sld [smem:[#allocation8_spill]]  ;;  %s30798_s6 = sld [smem:[#allocation11_spill]] }
  0x50   : > { %s31490_s11 = smov (!%p974_p10, %s17622_s11), 63  ;;  %22542 = vmatpush1.bf16.msra.mxu0 %v22541_v3  ;;  %v22550_v17 = vpack.c.bf16 %v1328_v14, %v1327_v13  ;;  %v1330_v19 = vld [vmem:[%s23683_s21 + $0x48] sm:$0xff]  ;;  %v1331_v23 = vld [vmem:[%s23683_s21 + $0x50] sm:$0xff]  ;;  %v1332_v24 = vld [vmem:[%s23683_s21 + $0x58] sm:$0xff]  ;;  %s31483_s4 = sld [smem:[#allocation23_spill]] }
  0x51   : > { %22543 = vmatprep.subr.bf16.mxu0 %v23638_v6  ;;  %s23874_s23 = sshll.u32 %s31490_s11, 3  ;;  %v22553_v22 = vpack.c.bf16 %v1330_v19, %v1329_v18  ;;  %v22556_v27 = vpack.c.bf16 %v1332_v24, %v1331_v23  ;;  %v1333_v28 = vld [vmem:[%s23683_s21 + $0x60] sm:$0xff]  ;;  %v1334_v29 = vld [vmem:[%s23683_s21 + $0x68] sm:$0xff]  ;;  %v1335_v33 = vld [vmem:[%s23683_s21 + $0x70] sm:$0xff] }
  0x52   : > { %v22559_v32 = vpack.c.bf16 %v1334_v29, %v1333_v28  ;;  %v1336_v34 = vld [vmem:[%s23683_s21 + $0x78] sm:$0xff]  ;;  %v1337_v38 = vld [vmem:[%s23683_s21 + $0x80] sm:$0xff]  ;;  %v1338_v39 = vld [vmem:[%s23683_s21 + $0x88] sm:$0xff]  ;;  %s24102_s11 = scalar_lea.vmem %s23673_s13, %s23874_s23 }
  0x53   : > { %s23878_s28 = scalar_lea.vmem %s30725_s5, %s23874_s23  ;;  %v22562_v37 = vpack.c.bf16 %v1336_v34, %v1335_v33  ;;  %v22565_v42 = vpack.c.bf16 %v1338_v39, %v1337_v38  ;;  %v1339_v43 = vld [vmem:[%s23683_s21 + $0x90] sm:$0xff]  ;;  %v1340_v44 = vld [vmem:[%s23683_s21 + $0x98] sm:$0xff]  ;;  %v1341_v48 = vld [vmem:[%s23683_s21 + $0xa0] sm:$0xff]  ;;  %v1030_v38 = vlaneseq }
  0x54   : > { %v1000_v10 = vld [vmem:[%s23878_s28 + $0x10] sm:$0xff]  ;;  %v998_v11 = vld [vmem:[%s23878_s28] sm:$0xff]  ;;  %22545 = vmatpush1.bf16.msra.mxu0 %v22544_v7  ;;  %v1001_v15 = vld [vmem:[%s23878_s28 + $0x18] sm:$0xff]  ;;  %v22568_v47 = vpack.c.bf16 %v1340_v44, %v1339_v43  ;;  %s23939_s1 = scalar_lea.vmem %s30726_s9, %s23874_s23  ;;  %s23652_s9 = smov [#allocation2]  }
  0x55   : > { %1040 = vperm.xlu1 %23335, %v1000_v10   ;;  %1034 = vperm.xlu0 %23334, %v998_v11   ;;  %v999_v16 = vld [vmem:[%s23878_s28 + $0x8] sm:$0xff]  ;;  %v1002_v21 = vld [vmem:[%s23878_s28 + $0x20] sm:$0xff]  ;;  %v1005_v25 = vld [vmem:[%s23878_s28 + $0x38] sm:$0xff]  ;;  %v30638_v11 = vmov 1  }
  0x56   : > { %22546 = vmatprep.subr.bf16.mxu0 %v23638_v6  ;;  %v1003_v20 = vld [vmem:[%s23878_s28 + $0x28] sm:$0xff]  ;;  %v1004_v26 = vld [vmem:[%s23878_s28 + $0x30] sm:$0xff]  ;;  %v1006_v31 = vld [vmem:[%s23878_s28 + $0x40] sm:$0xff] }
  0x57   : > { %v1007_v30 = vld [vmem:[%s23878_s28 + $0x48] sm:$0xff]  ;;  %v1009_v35 = vld [vmem:[%s23878_s28 + $0x58] sm:$0xff]  ;;  %v1008_v36 = vld [vmem:[%s23878_s28 + $0x50] sm:$0xff] }
  0x58   : > { %22548 = vmatpush1.bf16.msra.mxu0 %v22547_v12  ;;  %v1011_v40 = vld [vmem:[%s23878_s28 + $0x68] sm:$0xff]  ;;  %v1010_v41 = vld [vmem:[%s23878_s28 + $0x60] sm:$0xff]  ;;  %v1013_v45 = vld [vmem:[%s23878_s28 + $0x78] sm:$0xff] }
  0x59   : > { %1043 = vperm.xlu1 %23335, %v1001_v15   ;;  %1037 = vperm.xlu0 %23334, %v999_v16   ;;  %v1012_v46 = vld [vmem:[%s23878_s28 + $0x70] sm:$0xff]  ;;  %v1342_v49 = vld [vmem:[%s23683_s21 + $0xa8] sm:$0xff]  ;;  %v1014_v51 = vld [vmem:[%s23878_s28 + $0x80] sm:$0xff] }
  0x5a   : > { %22549 = vmatprep.subr.bf16.mxu0 %v23638_v6  ;;  %v1015_v50 = vld [vmem:[%s23878_s28 + $0x88] sm:$0xff]  ;;  %v22571_v52 = vpack.c.bf16 %v1342_v49, %v1341_v48  ;;  %v1343_v53 = vld [vmem:[%s23683_s21 + $0xb0] sm:$0xff]  ;;  %v1344_v54 = vld [vmem:[%s23683_s21 + $0xb8] sm:$0xff]  ;;  %v23640_v49 = vmov 1.0  }
  0x5b   : > { %v1017_v55 = vld [vmem:[%s23878_s28 + $0x98] sm:$0xff]  ;;  %v1016_v56 = vld [vmem:[%s23878_s28 + $0x90] sm:$0xff]  ;;  %v22574_v57 = vpack.c.bf16 %v1344_v54, %v1343_v53  ;;  %v1345_v58 = vld [vmem:[%s23683_s21 + $0xc0] sm:$0xff] }
  0x5c   : > { %22551 = vmatpush1.bf16.msra.mxu0 %v22550_v17  ;;  %v1346_v59 = vld [vmem:[%s23683_s21 + $0xc8] sm:$0xff]  ;;  %v1018_v61 = vld [vmem:[%s23878_s28 + $0xa0] sm:$0xff]  ;;  %v1347_v63 = vld [vmem:[%s23683_s21 + $0xd0] sm:$0xff] }
  0x5d   : > { %1049 = vperm.xlu1 %23335, %v1003_v20   ;;  %1046 = vperm.xlu0 %23334, %v1002_v21   ;;  %v1019_v60 = vld [vmem:[%s23878_s28 + $0xa8] sm:$0xff]  ;;  %v22577_v62 = vpack.c.bf16 %v1346_v59, %v1345_v58  ;;  %v1348_v0 = vld [vmem:[%s23683_s21 + $0xd8] sm:$0xff]  ;;  %v1020_v3 = vld [vmem:[%s23878_s28 + $0xb0] sm:$0xff] }
  0x5e   : > { %22552 = vmatprep.subr.bf16.mxu0 %v23638_v6  ;;  %v1021_v1 = vld [vmem:[%s23878_s28 + $0xb8] sm:$0xff]  ;;  %v22580_v4 = vpack.c.bf16 %v1348_v0, %v1347_v63  ;;  %v1349_v5 = vld [vmem:[%s23683_s21 + $0xe0] sm:$0xff]  ;;  %v1350_v7 = vld [vmem:[%s23683_s21 + $0xe8] sm:$0xff] }
  0x5f   : > { %v1023_v8 = vld [vmem:[%s23878_s28 + $0xc8] sm:$0xff]  ;;  %v23946_v9 = vld [vmem:[%s23939_s1 + $0x10] sm:$0xff]  ;;  %v22583_v10 = vpack.c.bf16 %v1350_v7, %v1349_v5  ;;  %v1352_v13 = vld [vmem:[%s23683_s21 + $0xf8] sm:$0xff] }
  0x60   : > { %22554 = vmatpush1.bf16.msra.mxu0 %v22553_v22  ;;  %v1351_v12 = vld [vmem:[%s23683_s21 + $0xf0] sm:$0xff]  ;;  %v1025_v14 = vld [vmem:[%s23878_s28 + $0xd8] sm:$0xff]  ;;  %v1027_v17 = vld [vmem:[%s23878_s28 + $0xe8] sm:$0xff] }
  0x61   : > { %1055 = vperm.xlu1 %23335, %v1005_v25   ;;  %1052 = vperm.xlu0 %23334, %v1004_v26   ;;  %v23955_v15 = vld [vmem:[%s23939_s1 + $0x30] sm:$0xff]  ;;  %v22586_v16 = vpack.c.bf16 %v1352_v13, %v1351_v12  ;;  %v1578_v19 = vld [vmem:[%s23939_s1] sm:$0xff]  ;;  %v1579_v21 = vld [vmem:[%s23939_s1 + $0x8] sm:$0xff] }
  0x62   : > { %22555 = vmatprep.subr.bf16.mxu0 %v23638_v6  ;;  %v23961_v18 = vld [vmem:[%s23939_s1 + $0x50] sm:$0xff]  ;;  %v1581_v24 = vld [vmem:[%s23939_s1 + $0x18] sm:$0xff]  ;;  %v1022_v25 = vld [vmem:[%s23878_s28 + $0xc0] sm:$0xff] }
  0x63   : > { %v23966_v20 = vld [vmem:[%s23939_s1 + $0x70] sm:$0xff]  ;;  %v1026_v28 = vld [vmem:[%s23878_s28 + $0xe0] sm:$0xff]  ;;  %v1583_v33 = vld [vmem:[%s23939_s1 + $0x28] sm:$0xff] }
  0x64   : > { %22557 = vmatpush1.bf16.msra.mxu0 %v22556_v27  ;;  %v23976_v22 = vld [vmem:[%s23939_s1 + $0xb0] sm:$0xff]  ;;  %v1582_v27 = vld [vmem:[%s23939_s1 + $0x20] sm:$0xff]  ;;  %v1585_v34 = vld [vmem:[%s23939_s1 + $0x38] sm:$0xff] }
  0x65   : > { %1061 = vperm.xlu1 %23335, %v1007_v30   ;;  %1058 = vperm.xlu0 %23334, %v1006_v31   ;;  %v23980_v23 = vld [vmem:[%s23939_s1 + $0xd0] sm:$0xff]  ;;  %v2074_v29 = vld [vmem:[%s30722_s8] sm:$0xff]  ;;  %v2075_v30 = vld [vmem:[%s30722_s8 + $0x8] sm:$0xff] }
  0x66   : > { %22558 = vmatprep.subr.bf16.mxu0 %v23638_v6  ;;  %v1024_v26 = vld [vmem:[%s23878_s28 + $0xd0] sm:$0xff]  ;;  %v22588_v31 = vpack.c.bf16 %v2075_v30, %v2074_v29  ;;  %v1589_v39 = vld [vmem:[%s23939_s1 + $0x58] sm:$0xff]  ;;  %v24022_v48 = vld [vmem:[%s23939_s1 + $0x88] sm:$0xff] }
  0x67   : > { %v2076_v43 = vld [vmem:[%s30722_s8 + $0x10] sm:$0xff]  ;;  %v2077_v44 = vld [vmem:[%s30722_s8 + $0x18] sm:$0xff] }
  0x68   : > { %22560 = vmatpush1.bf16.msra.mxu0 %v22559_v32  ;;  %v1028_v32 = vld [vmem:[%s23878_s28 + $0xf0] sm:$0xff]  ;;  %22796 = vmatprep.subr.bf16.mxu1 %v22588_v31 }
  0x69   : > { %1067 = vperm.xlu1 %23335, %v1009_v35   ;;  %1064 = vperm.xlu0 %23334, %v1008_v36   ;;  %v1029_v35 = vld [vmem:[%s23878_s28 + $0xf8] sm:$0xff]  ;;  %v1586_v36 = vld [vmem:[%s23939_s1 + $0x40] sm:$0xff]  ;;  %s24916_s28 = scalar_lea.vmem %s23678_s17, %s23874_s23  ;;  %s30856_s23 = sld [smem:[#allocation7_spill]] }
  0x6a   : > { %22561 = vmatprep.subr.bf16.mxu0 %v23638_v6  ;;  %22798 = vmatpush3.bf16.msra.mxu1 %v22588_v31 }
  0x6c   : > { %22563 = vmatpush1.bf16.msra.mxu0 %v22562_v37  ;;  %v1587_v37 = vld [vmem:[%s23939_s1 + $0x48] sm:$0xff] }
  0x6d   : > { %1073 = vperm.xlu1 %23335, %v1011_v40   ;;  %1070 = vperm.xlu0 %23334, %v1010_v41   ;;  %v1591_v40 = vld [vmem:[%s23939_s1 + $0x68] sm:$0xff]  ;;  %v24011_v41 = vand.u32 127, %v1030_v38 }
  0x6e   : > { %22564 = vmatprep.subr.bf16.mxu0 %v23638_v6 }
  0x6f   : > { %30727 = vst [vmem:[#allocation24_spill] sm:$0xff] %v24011_v41 }
  0x70   : > { %22566 = vmatpush1.bf16.msra.mxu0 %v22565_v42  ;;  %v24015_v42 = vadd.s32 128, %v24011_v41 }
  0x71   : > { %1079 = vperm.xlu1 %23335, %v1013_v45   ;;  %1076 = vperm.xlu0 %23334, %v1012_v46   ;;  %v22592_v45 = vpack.c.bf16 %v2077_v44, %v2076_v43  ;;  %v24236_v43 = vld [vmem:[%s24102_s11 + $0x60] sm:$0xff] }
  0x72   : > { %22567 = vmatprep.subr.bf16.mxu0 %v23638_v6 }
  0x73   : > { %22797 = vmatprep.subr.bf16.mxu1 %v22592_v45 }
  0x74   : > { %22569 = vmatpush1.bf16.msra.mxu0 %v22568_v47  ;;  %22799 = vmatpush3.bf16.msra.mxu1 %v22592_v45 }
  0x75   : > { %1085 = vperm.xlu1 %23335, %v1015_v50   ;;  %1082 = vperm.xlu0 %23334, %v1014_v51   ;;  %v1590_v50 = vld [vmem:[%s23939_s1 + $0x60] sm:$0xff] }
  0x76   : > { %22570 = vmatprep.subr.bf16.mxu0 %v23638_v6 }
  0x78   : > { %22572 = vmatpush1.bf16.msra.mxu0 %v22571_v52 }
  0x79   : > { %1091 = vperm.xlu1 %23335, %v1017_v55   ;;  %1088 = vperm.xlu0 %23334, %v1016_v56   ;;  %v24039_v55 = vld [vmem:[%s23939_s1 + $0xa8] sm:$0xff] }
  0x7a   : > { %22573 = vmatprep.subr.bf16.mxu0 %v23638_v6 }
  0x7c   : > { %22575 = vmatpush1.bf16.msra.mxu0 %v22574_v57 }
  0x7d   : > { %1097 = vperm.xlu1 %23335, %v1019_v60   ;;  %1094 = vperm.xlu0 %23334, %v1018_v61   ;;  %v1593_v60 = vld [vmem:[%s23939_s1 + $0x78] sm:$0xff]  ;;  %v24054_v61 = vld [vmem:[%s23939_s1 + $0xc8] sm:$0xff] }
  0x7e   : > { %22576 = vmatprep.subr.bf16.mxu0 %v23638_v6 }
  0x80   : > { %22578 = vmatpush1.bf16.msra.mxu0 %v22577_v62 }
  0x81   : > { %1103 = vperm.xlu1 %23335, %v1021_v1   ;;  %1100 = vperm.xlu0 %23334, %v1020_v3   ;;  %v24074_v3 = vld [vmem:[%s23939_s1 + $0xe8] sm:$0xff] }
  0x82   : > { %22579 = vmatprep.subr.bf16.mxu0 %v23638_v6 }
  0x84   : > { %22581 = vmatpush1.bf16.msra.mxu0 %v22580_v4  ;;  %v1594_v4 = vld [vmem:[%s23939_s1 + $0x80] sm:$0xff] }
  0x85   : > { %1109 = vperm.xlu1 %23335, %v1023_v8   ;;  %23338 = vset.pattern.permute.xlu0 %v30638_v11  ;;  %v1608_v8 = vld [vmem:[%s23939_s1 + $0xf0] sm:$0xff] }
  0x86   : > { %1855 = vperm.xlu0 %23338, %v23946_v9   ;;  %22582 = vmatprep.subr.bf16.mxu0 %v23638_v6 }
  0x88   : > { %22584 = vmatpush1.bf16.msra.mxu0 %v22583_v10 }
  0x89   : > { %1115 = vperm.xlu1 %23335, %v1025_v14   ;;  %22585 = vmatprep.subr.bf16.mxu0 %v23638_v6  ;;  %v23970_v6 = vld [vmem:[%s23939_s1 + $0x90] sm:$0xff]  ;;  %v24114_v14 = vld [vmem:[%s24102_s11 + $0x8] sm:$0xff] }
  0x8a   : > { %1871 = vperm.xlu0 %23338, %v23955_v15  }
  0x8c   : > { %22587 = vmatpush1.bf16.msra.mxu0 %v22586_v16 }
  0x8d   : > { %1121 = vperm.xlu1 %23335, %v1027_v17   ;;  %22589 = vmatprep.subr.bf16.mxu0 %v22588_v31  ;;  %v1597_v17 = vld [vmem:[%s23939_s1 + $0x98] sm:$0xff] }
  0x8e   : > { %1887 = vperm.xlu0 %23338, %v23961_v18  }
  0x91   : > { %1614 = vperm.xlu1 %23335, %v1578_v19  }
  0x92   : > { %1903 = vperm.xlu0 %23338, %v23966_v20  }
  0x95   : > { %23336 = vset.pattern.permute.xlu1 %v30638_v11 }
  0x96   : > { %1847 = vperm.xlu1 %23336, %v1578_v19   ;;  %1919 = vperm.xlu0 %23338, %v23970_v6  }
  0x9a   : > { %1851 = vperm.xlu1 %23336, %v1579_v21   ;;  %1935 = vperm.xlu0 %23338, %v23976_v22  }
  0x9e   : > { %23337 = vset.pattern.permute.xlu1 %v30634_v2  ;;  %1951 = vperm.xlu0 %23338, %v23980_v23  }
  0x9f   : > { %1629 = vperm.xlu1 %23337, %v1581_v24  }
  0xa2   : > { %23363 = vset.pattern.permute.xlu0 %v30634_v2 }
  0xa3   : > { %23339 = vset.pattern.permute.xlu1 %v30638_v11  ;;  %1106 = vperm.xlu0 %23363, %v1022_v25  }
  0xa4   : > { %1859 = vperm.xlu1 %23339, %v1581_v24  }
  0xa7   : > { %1112 = vperm.xlu0 %23363, %v1024_v26   ;;  %v30636_v26 = vmov 2  }
  0xa8   : > { %23340 = vset.pattern.permute.xlu1 %v30634_v2 }
  0xa9   : > { %1634 = vperm.xlu1 %23340, %v1582_v27  }
  0xab   : > { %1118 = vperm.xlu0 %23363, %v1026_v28   ;;  %v24177_v28 = vld [vmem:[%s24102_s11 + $0x20] sm:$0xff] }
  0xad   : > { %23341 = vset.pattern.permute.xlu1 %v30638_v11 }
  0xae   : > { %1863 = vperm.xlu1 %23341, %v1582_v27  }
  0xaf   : > { %1124 = vperm.xlu0 %23363, %v1028_v32  }
  0xb2   : > { %1867 = vperm.xlu1 %23341, %v1583_v33  }
  0xb3   : > { %1619 = vperm.xlu0 %23363, %v1579_v21  }
  0xb6   : > { %23342 = vset.pattern.permute.xlu1 %v30634_v2 }
  0xb7   : > { %1649 = vperm.xlu1 %23342, %v1585_v34   ;;  %1127 = vperm.xlu0 %23363, %v1029_v35  }
  0xbb   : > { %23343 = vset.pattern.permute.xlu1 %v30638_v11  ;;  %1624 = vperm.xlu0 %23363, %v23946_v9  }
  0xbc   : > { %1875 = vperm.xlu1 %23343, %v1585_v34   ;;  %v24206_v34 = vld [vmem:[%s24102_s11 + $0x40] sm:$0xff] }
  0xbf   : > { %1639 = vperm.xlu0 %23363, %v1583_v33   ;;  %v1601_v33 = vld [vmem:[%s23939_s1 + $0xb8] sm:$0xff] }
  0xc0   : > { %23344 = vset.pattern.permute.xlu1 %v30634_v2 }
  0xc1   : > { %1654 = vperm.xlu1 %23344, %v1586_v36  }
  0xc3   : > { %1644 = vperm.xlu0 %23363, %v23955_v15  }
  0xc5   : > { %23345 = vset.pattern.permute.xlu1 %v30638_v11 }
  0xc6   : > { %1879 = vperm.xlu1 %23345, %v1586_v36  }
  0xc7   : > { %1659 = vperm.xlu0 %23363, %v1587_v37  }
  0xca   : > { %1883 = vperm.xlu1 %23345, %v1587_v37   ;;  %v24221_v37 = vld [vmem:[%s24102_s11 + $0x50] sm:$0xff] }
  0xcb   : > { %1664 = vperm.xlu0 %23363, %v23961_v18   ;;  %v24129_v18 = vld [vmem:[%s24102_s11 + $0x10] sm:$0xff] }
  0xce   : > { %23346 = vset.pattern.permute.xlu1 %v30634_v2 }
  0xcf   : > { %1669 = vperm.xlu1 %23346, %v1589_v39   ;;  %1679 = vperm.xlu0 %23363, %v1591_v40  }
  0xd3   : > { %23347 = vset.pattern.permute.xlu1 %v30638_v11  ;;  %1684 = vperm.xlu0 %23363, %v23966_v20  }
  0xd4   : > { %1891 = vperm.xlu1 %23347, %v1589_v39   ;;  %v1041_v46 = vpop.permute.xlu1 %1040  ;;  %v1035_v47 = vpop.permute.xlu0 %1034 }
  0xd5   : > { %vm1130_vm0 = vcmp.eq.s32.totalorder %v1035_v47, %v24015_v42  ;;  %vm1129_vm1 = vcmp.eq.s32.totalorder %v1035_v47, %v24011_v41  ;;  %vm1134_vm4 = vcmp.eq.s32.totalorder %v1041_v46, %v24015_v42  ;;  %vm1133_vm5 = vcmp.eq.s32.totalorder %v1041_v46, %v24011_v41  ;;  %v1602_v46 = vld [vmem:[%s23939_s1 + $0xc0] sm:$0xff]  ;;  %v24252_v47 = vld [vmem:[%s24102_s11 + $0x70] sm:$0xff] }
  0xd6   : > { %17694 = vmatprep.mubr.msk.f32.mxu0 %vm1130_vm0, %v23640_v49 }
  0xd7   : > { %1699 = vperm.xlu0 %23363, %v24022_v48   ;;  %17695 = vmatmul.mubr.msk.f32.vlgmr.msra.gmra.mrb[0].mxu0 %vm1129_vm1, %v23640_v49 }
  0xd8   : > { %23348 = vset.pattern.permute.xlu1 %v30634_v2  ;;  %v1044_v51 = vpop.permute.xlu1 %1043  ;;  %v1038_v52 = vpop.permute.xlu0 %1037  ;;  %22591 = vmatpush3.bf16.msra.mxu0 %v22588_v31  ;;  %v24192_v31 = vld [vmem:[%s24102_s11 + $0x30] sm:$0xff] }
  0xd9   : > { %1674 = vperm.xlu1 %23348, %v1590_v50   ;;  %vm1132_vm2 = vcmp.eq.s32.totalorder %v1038_v52, %v24015_v42  ;;  %vm1131_vm3 = vcmp.eq.s32.totalorder %v1038_v52, %v24011_v41  ;;  %22593 = vmatprep.subr.bf16.mxu0 %v22592_v45  ;;  %vm1136_vm6 = vcmp.eq.s32.totalorder %v1044_v51, %v24015_v42 }
  0xda   : > { %17696 = vmatprep.mubr.msk.f32.mxu0 %vm1132_vm2, %v23640_v49  ;;  %vm1135_vm8 = vcmp.eq.s32.totalorder %v1044_v51, %v24011_v41  ;;  %v24264_v51 = vld [vmem:[%s24102_s11 + $0x80] sm:$0xff] }
  0xdb   : > { %1704 = vperm.xlu0 %23363, %v23970_v6   ;;  %17697 = vmatmul.mubr.msk.f32.gmra.mrb[2].mxu0 %vm1131_vm3, %v23640_v49  ;;  %v24143_v6 = vld [vmem:[%s24102_s11 + $0x18] sm:$0xff] }
  0xdc   : > { %v1050_v53 = vpop.permute.xlu1 %1049  ;;  %17698 = vmatprep.mubr.msk.f32.mxu0 %vm1134_vm4, %v23640_v49  ;;  %v1047_v54 = vpop.permute.xlu0 %1046  ;;  %22595 = vmatpush3.bf16.msra.mxu0 %v22592_v45 }
  0xdd   : > { %23349 = vset.pattern.permute.xlu1 %v30638_v11  ;;  %vm1138_vm7 = vcmp.eq.s32.totalorder %v1047_v54, %v24015_v42  ;;  %vm1137_vm9 = vcmp.eq.s32.totalorder %v1047_v54, %v24011_v41  ;;  %vm1140_vm10 = vcmp.eq.s32.totalorder %v1050_v53, %v24015_v42  ;;  %vm1139_vm12 = vcmp.eq.s32.totalorder %v1050_v53, %v24011_v41  ;;  %v24277_v54 = vld [vmem:[%s24102_s11 + $0x90] sm:$0xff] }
  0xde   : > { %1895 = vperm.xlu1 %23349, %v1590_v50  }
  0xdf   : > { %1719 = vperm.xlu0 %23363, %v24039_v55   ;;  %17699 = vmatmul.mubr.msk.f32.gmra.mrb[4].mxu0 %vm1133_vm5, %v23640_v49 }
  0xe0   : > { %v1056_v56 = vpop.permute.xlu1 %1055  ;;  %17700 = vmatprep.mubr.msk.f32.mxu0 %vm1136_vm6, %v23640_v49  ;;  %v1053_v57 = vpop.permute.xlu0 %1052 }
  0xe1   : > { %vm1142_vm11 = vcmp.eq.s32.totalorder %v1053_v57, %v24015_v42  ;;  %vm1141_vm13 = vcmp.eq.s32.totalorder %v1053_v57, %v24011_v41  ;;  %vm1144_vm14 = vcmp.eq.s32.totalorder %v1056_v56, %v24015_v42  ;;  %vm1143_vm0 = vcmp.eq.s32.totalorder %v1056_v56, %v24011_v41  ;;  %v1605_v56 = vld [vmem:[%s23939_s1 + $0xd8] sm:$0xff]  ;;  %v24291_v57 = vld [vmem:[%s24102_s11 + $0xa0] sm:$0xff] }
  0xe2   : > { %1899 = vperm.xlu1 %23349, %v1591_v40  }
  0xe3   : > { %1724 = vperm.xlu0 %23363, %v23976_v22   ;;  %17701 = vmatmul.mubr.msk.f32.gmra.mrb[6].mxu0 %vm1135_vm8, %v23640_v49 }
  0xe4   : > { %v1062_v58 = vpop.permute.xlu1 %1061  ;;  %17702 = vmatprep.mubr.msk.f32.mxu0 %vm1138_vm7, %v23640_v49  ;;  %v1059_v59 = vpop.permute.xlu0 %1058 }
  0xe5   : > { %vm1146_vm15 = vcmp.eq.s32.totalorder %v1059_v59, %v24015_v42  ;;  %vm1145_vm1 = vcmp.eq.s32.totalorder %v1059_v59, %v24011_v41  ;;  %vm1148_vm2 = vcmp.eq.s32.totalorder %v1062_v58, %v24015_v42  ;;  %vm1147_vm4 = vcmp.eq.s32.totalorder %v1062_v58, %v24011_v41 }
  0xe6   : > { %23350 = vset.pattern.permute.xlu1 %v30634_v2 }
  0xe7   : > { %1689 = vperm.xlu1 %23350, %v1593_v60   ;;  %1739 = vperm.xlu0 %23363, %v24054_v61  }
  0xe8   : > { %17703 = vmatmul.mubr.msk.f32.gmra.mrb[8].mxu0 %vm1137_vm9, %v23640_v49  ;;  %v24060_v62 = vpop.permute.xlu1 %1067  ;;  %v1065_v63 = vpop.permute.xlu0 %1064 }
  0xe9   : > { %17704 = vmatprep.mubr.msk.f32.mxu0 %vm1140_vm10, %v23640_v49  ;;  %vm1150_vm3 = vcmp.eq.s32.totalorder %v1065_v63, %v24015_v42  ;;  %vm1149_vm5 = vcmp.eq.s32.totalorder %v1065_v63, %v24011_v41  ;;  %vm1152_vm6 = vcmp.eq.s32.totalorder %v24060_v62, %v24015_v42  ;;  %vm1151_vm8 = vcmp.eq.s32.totalorder %v24060_v62, %v24011_v41  ;;  %v24320_v63 = vld [vmem:[%s24102_s11 + $0xc0] sm:$0xff] }
  0xeb   : > { %23351 = vset.pattern.permute.xlu1 %v30638_v11  ;;  %1744 = vperm.xlu0 %23363, %v23980_v23   ;;  %v1598_v23 = vld [vmem:[%s23939_s1 + $0xa0] sm:$0xff] }
  0xec   : > { %17705 = vmatmul.mubr.msk.f32.gmra.mrb[10].mxu0 %vm1139_vm12, %v23640_v49  ;;  %1907 = vperm.xlu1 %23351, %v1593_v60   ;;  %v24069_v0 = vpop.permute.xlu1 %1073  ;;  %v24071_v1 = vpop.permute.xlu0 %1070  ;;  %v24306_v60 = vld [vmem:[%s24102_s11 + $0xb0] sm:$0xff] }
  0xed   : > { %17706 = vmatprep.mubr.msk.f32.mxu0 %vm1142_vm11, %v23640_v49  ;;  %vm1154_vm7 = vcmp.eq.s32.totalorder %v24071_v1, %v24015_v42  ;;  %vm1153_vm9 = vcmp.eq.s32.totalorder %v24071_v1, %v24011_v41  ;;  %vm1156_vm10 = vcmp.eq.s32.totalorder %v24069_v0, %v24015_v42  ;;  %vm1155_vm12 = vcmp.eq.s32.totalorder %v24069_v0, %v24011_v41 }
  0xef   : > { %1759 = vperm.xlu0 %23363, %v24074_v3  }
  0xf0   : > { %17707 = vmatmul.mubr.msk.f32.gmra.mrb[12].mxu0 %vm1141_vm13, %v23640_v49  ;;  %23352 = vset.pattern.permute.xlu1 %v30634_v2  ;;  %v24082_v5 = vpop.permute.xlu1 %1079  ;;  %v24085_v7 = vpop.permute.xlu0 %1076 }
  0xf1   : > { %17708 = vmatprep.mubr.msk.f32.mxu0 %vm1144_vm14, %v23640_v49  ;;  %1694 = vperm.xlu1 %23352, %v1594_v4   ;;  %vm1158_vm11 = vcmp.eq.s32.totalorder %v24085_v7, %v24015_v42  ;;  %vm1157_vm13 = vcmp.eq.s32.totalorder %v24085_v7, %v24011_v41  ;;  %vm1160_vm14 = vcmp.eq.s32.totalorder %v24082_v5, %v24015_v42 }
  0xf3   : > { %1764 = vperm.xlu0 %23363, %v1608_v8  }
  0xf4   : > { %17709 = vmatmul.mubr.msk.f32.gmra.mrb[14].mxu0 %vm1143_vm0, %v23640_v49  ;;  %v24092_v9 = vpop.permute.xlu1 %1085  ;;  %v24094_v10 = vpop.permute.xlu0 %1082  ;;  %vm1159_vm0 = vcmp.eq.s32.totalorder %v24082_v5, %v24011_v41  ;;  %v24335_v5 = vld [vmem:[%s24102_s11 + $0xd0] sm:$0xff] }
  0xf5   : > { %23353 = vset.pattern.permute.xlu1 %v30638_v11  ;;  %17710 = vmatprep.mubr.msk.f32.mxu0 %vm1146_vm15, %v23640_v49  ;;  %vm1162_vm15 = vcmp.eq.s32.totalorder %v24094_v10, %v24015_v42 }
  0xf6   : > { %1911 = vperm.xlu1 %23353, %v1594_v4   ;;  %v1606_v4 = vld [vmem:[%s23939_s1 + $0xe0] sm:$0xff] }
  0xf7   : > { %23368 = vset.pattern.permute.xlu0 %v30638_v11 }
  0xf8   : > { %17711 = vmatmul.mubr.msk.f32.gmra.mrb[16].mxu0 %vm1145_vm1, %v23640_v49  ;;  %v24105_v12 = vpop.permute.xlu1 %1091  ;;  %v24108_v13 = vpop.permute.xlu0 %1088  ;;  %1967 = vperm.xlu0 %23368, %v1608_v8   ;;  %vm1161_vm1 = vcmp.eq.s32.totalorder %v24094_v10, %v24011_v41  ;;  %v24349_v10 = vshrl.u32 %v1030_v38, 7 }
  0xf9   : > { %17712 = vmatprep.mubr.msk.f32.mxu0 %vm1148_vm2, %v23640_v49  ;;  %vm1164_vm2 = vcmp.eq.s32.totalorder %v24092_v9, %v24015_v42 }
  0xfa   : > { %1915 = vperm.xlu1 %23353, %v24022_v48   ;;  %v30633_v38 = vsub.s32 0, %v24349_v10 }
  0xfc   : > { %17713 = vmatmul.mubr.msk.f32.gmra.mrb[18].mxu0 %vm1147_vm4, %v23640_v49  ;;  %v24118_v15 = vpop.permute.xlu1 %1097  ;;  %v24120_v16 = vpop.permute.xlu0 %1094  ;;  %23371 = vset.pattern.permute.xlu0 %v30634_v2  ;;  %vm1163_vm4 = vcmp.eq.s32.totalorder %v24092_v9, %v24011_v41  ;;  %v24346_v9 = vld [vmem:[%s24102_s11 + $0xe0] sm:$0xff] }
  0xfd   : > { %17714 = vmatprep.mubr.msk.f32.mxu0 %vm1150_vm3, %v23640_v49  ;;  %2812 = vperm.xlu0 %23371, %v24114_v14   ;;  %vm1166_vm3 = vcmp.eq.s32.totalorder %v24108_v13, %v24015_v42 }
  0xfe   : > { %23354 = vset.pattern.permute.xlu1 %v30634_v2 }
  0xff   : > { %1709 = vperm.xlu1 %23354, %v1597_v17  }
 0x100   : > { %17715 = vmatmul.mubr.msk.f32.gmra.mrb[20].mxu0 %vm1149_vm5, %v23640_v49  ;;  %v24132_v19 = vpop.permute.xlu1 %1103  ;;  %v24136_v20 = vpop.permute.xlu0 %1100  ;;  %vm1165_vm5 = vcmp.eq.s32.totalorder %v24108_v13, %v24011_v41 }
 0x101   : > { %17716 = vmatprep.mubr.msk.f32.mxu0 %vm1152_vm6, %v23640_v49  ;;  %2817 = vperm.xlu0 %23371, %v24129_v18   ;;  %vm1168_vm6 = vcmp.eq.s32.totalorder %v24105_v12, %v24015_v42 }
 0x103   : > { %23355 = vset.pattern.permute.xlu1 %v30638_v11 }
 0x104   : > { %17717 = vmatmul.mubr.msk.f32.gmra.mrb[22].mxu0 %vm1151_vm8, %v23640_v49  ;;  %1923 = vperm.xlu1 %23355, %v1597_v17   ;;  %v24149_v21 = vpop.permute.xlu1 %1109  ;;  %vm1167_vm8 = vcmp.eq.s32.totalorder %v24105_v12, %v24011_v41  ;;  %v30632_v17 = vsub.s32 1, %v24349_v10 }
 0x105   : > { %17718 = vmatprep.mubr.msk.f32.mxu0 %vm1154_vm7, %v23640_v49  ;;  %v24152_v22 = vpop.permute.xlu0 %1855  ;;  %2822 = vperm.xlu0 %23371, %v24143_v6   ;;  %vm1170_vm7 = vcmp.eq.s32.totalorder %v24120_v16, %v24015_v42 }
 0x108   : > { %17719 = vmatmul.mubr.msk.f32.gmra.mrb[24].mxu0 %vm1153_vm9, %v23640_v49  ;;  %23356 = vset.pattern.permute.xlu1 %v30634_v2  ;;  %v24160_v24 = vpop.permute.xlu1 %1115  ;;  %vm1169_vm9 = vcmp.eq.s32.totalorder %v24120_v16, %v24011_v41 }
 0x109   : > { %17720 = vmatprep.mubr.msk.f32.mxu0 %vm1156_vm10, %v23640_v49  ;;  %1714 = vperm.xlu1 %23356, %v1598_v23   ;;  %v24165_v25 = vpop.permute.xlu0 %1871  ;;  %vm1172_vm10 = vcmp.eq.s32.totalorder %v24118_v15, %v24015_v42 }
 0x10a   : > { %23376 = vset.pattern.permute.xlu0 %v30636_v26 }
 0x10b   : > { %3244 = vperm.xlu0 %23376, %v24129_v18  }
 0x10c   : > { %17721 = vmatmul.mubr.msk.f32.gmra.mrb[26].mxu0 %vm1155_vm12, %v23640_v49  ;;  %v24174_v27 = vpop.permute.xlu1 %1121  ;;  %vm1174_vm12 = vcmp.eq.s32.totalorder %v24136_v20, %v24015_v42 }
 0x10d   : > { %23357 = vset.pattern.permute.xlu1 %v30638_v11  ;;  %17722 = vmatprep.mubr.msk.f32.mxu0 %vm1158_vm11, %v23640_v49  ;;  %v24181_v29 = vpop.permute.xlu0 %1887  ;;  %vm1171_vm11 = vcmp.eq.s32.totalorder %v24118_v15, %v24011_v41  ;;  %v1610_v15 = vld [vmem:[%s23693_s29] sm:$0x3] }
 0x10e   : > { %1927 = vperm.xlu1 %23357, %v1598_v23   ;;  %v24389_v23 = vrot.slane %v1610_v15, %v30632_v17 }
 0x10f   : > { %3252 = vperm.xlu0 %23376, %v24177_v28  }
 0x110   : > { %17723 = vmatmul.mubr.msk.f32.gmra.mrb[28].mxu0 %vm1157_vm13, %v23640_v49  ;;  %v24187_v30 = vpop.permute.xlu1 %1614  ;;  %vm1173_vm13 = vcmp.eq.s32.totalorder %v24136_v20, %v24011_v41 }
 0x111   : > { %17724 = vmatprep.mubr.msk.f32.mxu0 %vm1160_vm14, %v23640_v49  ;;  %v24195_v32 = vpop.permute.xlu0 %1903  ;;  %vm1176_vm14 = vcmp.eq.s32.totalorder %v24132_v19, %v24015_v42 }
 0x112   : > { %1931 = vperm.xlu1 %23357, %v24039_v55  }
 0x113   : > { %3260 = vperm.xlu0 %23376, %v24192_v31  }
 0x114   : > { %17725 = vmatmul.mubr.msk.f32.gmra.mrb[30].mxu0 %vm1159_vm0, %v23640_v49  ;;  %vm1175_vm0 = vcmp.eq.s32.totalorder %v24132_v19, %v24011_v41  ;;  %v1609_v19 = vld [vmem:[%s23939_s1 + $0xf8] sm:$0xff]  ;;  %s30893_s1 = sld [smem:[#allocation12_spill]] }
 0x115   : > { %v24208_v35 = vpop.permute.xlu1 %1847  ;;  %17726 = vmatprep.mubr.msk.f32.mxu0 %vm1162_vm15, %v23640_v49  ;;  %v24211_v36 = vpop.permute.xlu0 %1919 }
 0x116   : > { %23358 = vset.pattern.permute.xlu1 %v30634_v2 }
 0x117   : > { %1729 = vperm.xlu1 %23358, %v1601_v33   ;;  %3268 = vperm.xlu0 %23376, %v24206_v34  }
 0x118   : > { %17727 = vmatmul.mubr.msk.f32.gmra.mrb[32].mxu0 %vm1161_vm1, %v23640_v49 }
 0x119   : > { %17728 = vmatprep.mubr.msk.f32.mxu0 %vm1164_vm2, %v23640_v49  ;;  %v24224_v39 = vpop.permute.xlu1 %1851  ;;  %v24226_v40 = vpop.permute.xlu0 %1935  ;;  %vm1180_vm2 = vcmp.eq.s32.totalorder %v24149_v21, %v24015_v42 }
 0x11b   : > { %23359 = vset.pattern.permute.xlu1 %v30638_v11  ;;  %3276 = vperm.xlu0 %23376, %v24221_v37  }
 0x11c   : > { %17729 = vmatmul.mubr.msk.f32.gmra.mrb[34].mxu0 %vm1163_vm4, %v23640_v49  ;;  %1939 = vperm.xlu1 %23359, %v1601_v33   ;;  %vm1179_vm4 = vcmp.eq.s32.totalorder %v24149_v21, %v24011_v41 }
 0x11d   : > { %17730 = vmatprep.mubr.msk.f32.mxu0 %vm1166_vm3, %v23640_v49  ;;  %v24239_v44 = vpop.permute.xlu0 %1951 }
 0x11e   : > { %v24243_v45 = vpop.permute.xlu1 %1629 }
 0x11f   : > { %3284 = vperm.xlu0 %23376, %v24236_v43  }
 0x120   : > { %17731 = vmatmul.mubr.msk.f32.gmra.mrb[36].mxu0 %vm1165_vm5, %v23640_v49  ;;  %23360 = vset.pattern.permute.xlu1 %v30634_v2 }
 0x121   : > { %17732 = vmatprep.mubr.msk.f32.mxu0 %vm1168_vm6, %v23640_v49  ;;  %1734 = vperm.xlu1 %23360, %v1602_v46   ;;  %vm1184_vm6 = vcmp.eq.s32.totalorder %v24160_v24, %v24015_v42 }
 0x122   : > { %v1107_v48 = vpop.permute.xlu0 %1106 }
 0x123   : > { %v24257_v50 = vpop.permute.xlu1 %1859  ;;  %3292 = vperm.xlu0 %23376, %v24252_v47   ;;  %vm1178_vm15 = vcmp.eq.s32.totalorder %v1107_v48, %v24015_v42  ;;  %vm1177_vm1 = vcmp.eq.s32.totalorder %v1107_v48, %v24011_v41 }
 0x124   : > { %17733 = vmatmul.mubr.msk.f32.gmra.mrb[38].mxu0 %vm1167_vm8, %v23640_v49  ;;  %vm1183_vm8 = vcmp.eq.s32.totalorder %v24160_v24, %v24011_v41 }
 0x125   : > { %23361 = vset.pattern.permute.xlu1 %v30638_v11  ;;  %17734 = vmatprep.mubr.msk.f32.mxu0 %vm1170_vm7, %v23640_v49 }
 0x126   : > { %1943 = vperm.xlu1 %23361, %v1602_v46   ;;  %v1113_v52 = vpop.permute.xlu0 %1112  ;;  %v24402_v46 = vld [vmem:[%s30728_s3] ss:$0 sm:$0xff]  ;;  %s31379_s3 = sld [smem:[#allocation10_spill]] }
 0x127   : > { %3300 = vperm.xlu0 %23376, %v24264_v51   ;;  %vm1182_vm3 = vcmp.eq.s32.totalorder %v1113_v52, %v24015_v42  ;;  %vm1181_vm5 = vcmp.eq.s32.totalorder %v1113_v52, %v24011_v41 }
 0x128   : > { %17735 = vmatmul.mubr.msk.f32.gmra.mrb[40].mxu0 %vm1169_vm9, %v23640_v49  ;;  %v24272_v53 = vpop.permute.xlu1 %1634 }
 0x129   : > { %17736 = vmatprep.mubr.msk.f32.mxu0 %vm1172_vm10, %v23640_v49  ;;  %vm1188_vm10 = vcmp.eq.s32.totalorder %v24174_v27, %v24015_v42 }
 0x12a   : > { %1947 = vperm.xlu1 %23361, %v24054_v61   ;;  %v24281_v55 = vpop.permute.xlu0 %1118 }
 0x12b   : > { %3308 = vperm.xlu0 %23376, %v24277_v54   ;;  %vm1186_vm7 = vcmp.eq.s32.totalorder %v24281_v55, %v24015_v42  ;;  %vm1185_vm9 = vcmp.eq.s32.totalorder %v24281_v55, %v24011_v41  ;;  %v1978_v55 = vmul.f32 %v24389_v23, %v24208_v35 }
 0x12c   : > { %17737 = vmatmul.mubr.msk.f32.gmra.mrb[42].mxu0 %vm1171_vm11, %v23640_v49 }
 0x12d   : > { %17738 = vmatprep.mubr.msk.f32.mxu0 %vm1174_vm12, %v23640_v49  ;;  %v24294_v58 = vpop.permute.xlu1 %1863  ;;  %vm1187_vm12 = vcmp.eq.s32.totalorder %v24174_v27, %v24011_v41 }
 0x12e   : > { %23362 = vset.pattern.permute.xlu1 %v30634_v2  ;;  %v24297_v59 = vpop.permute.xlu0 %1124 }
 0x12f   : > { %1749 = vperm.xlu1 %23362, %v1605_v56   ;;  %3316 = vperm.xlu0 %23376, %v24291_v57   ;;  %vm1190_vm11 = vcmp.eq.s32.totalorder %v24297_v59, %v24015_v42 }
 0x130   : > { %17739 = vmatmul.mubr.msk.f32.gmra.mrb[44].mxu0 %vm1173_vm13, %v23640_v49  ;;  %vm1189_vm13 = vcmp.eq.s32.totalorder %v24297_v59, %v24011_v41 }
 0x131   : > { %17740 = vmatprep.mubr.msk.f32.mxu0 %vm1176_vm14, %v23640_v49  ;;  %v24309_v61 = vpop.permute.xlu1 %1867 }
 0x132   : > { %v24311_v62 = vpop.permute.xlu0 %1619 }
 0x133   : > { %23364 = vset.pattern.permute.xlu1 %v30638_v11  ;;  %3324 = vperm.xlu0 %23376, %v24306_v60  }
 0x134   : > { %17741 = vmatmul.mubr.msk.f32.gmra.mrb[46].mxu0 %vm1175_vm0, %v23640_v49  ;;  %1955 = vperm.xlu1 %23364, %v1605_v56   ;;  %vm2085_vm0 = vcmask 261120  }
 0x135   : > { %17742 = vmatprep.mubr.msk.f32.mxu0 %vm1178_vm15, %v23640_v49 }
 0x136   : > { %v24324_v0 = vpop.permute.xlu1 %1649  ;;  %v24326_v1 = vpop.permute.xlu0 %1127 }
 0x137   : > { %3332 = vperm.xlu0 %23376, %v24320_v63   ;;  %vm1192_vm14 = vcmp.eq.s32.totalorder %v24326_v1, %v24015_v42  ;;  %vm1191_vm15 = vcmp.eq.s32.totalorder %v24326_v1, %v24011_v41  ;;  %v1981_v42 = vmul.f32 %v24389_v23, %v24257_v50  ;;  %v1984_v50 = vmul.f32 %v24389_v23, %v24165_v25 }
 0x138   : > { %17743 = vmatmul.mubr.msk.f32.gmra.mrb[48].mxu0 %vm1177_vm1, %v23640_v49  ;;  %23365 = vset.pattern.permute.xlu1 %v30634_v2  ;;  %v1983_v25 = vmul.f32 %v24389_v23, %v24309_v61 }
 0x139   : > { %17744 = vmatprep.mubr.msk.f32.mxu0 %vm1180_vm2, %v23640_v49  ;;  %1754 = vperm.xlu1 %23365, %v1606_v4  }
 0x13a   : > { %v1625_v7 = vpop.permute.xlu0 %1624 }
 0x13b   : > { %v24339_v8 = vpop.permute.xlu1 %1875  ;;  %3340 = vperm.xlu0 %23376, %v24335_v5  }
 0x13c   : > { %17745 = vmatmul.mubr.msk.f32.gmra.mrb[50].mxu0 %vm1179_vm4, %v23640_v49 }
 0x13d   : > { %23366 = vset.pattern.permute.xlu1 %v30638_v11  ;;  %17746 = vmatprep.mubr.msk.f32.mxu0 %vm1182_vm3, %v23640_v49 }
 0x13e   : > { %1959 = vperm.xlu1 %23366, %v1606_v4   ;;  %v24354_v12 = vpop.permute.xlu0 %1639 }
 0x13f   : > { %3348 = vperm.xlu0 %23376, %v24346_v9  }
 0x140   : > { %17747 = vmatmul.mubr.msk.f32.gmra.mrb[52].mxu0 %vm1181_vm5, %v23640_v49  ;;  %v24358_v13 = vpop.permute.xlu1 %1654 }
 0x141   : > { %17748 = vmatprep.mubr.msk.f32.mxu0 %vm1184_vm6, %v23640_v49 }
 0x142   : > { %1963 = vperm.xlu1 %23366, %v24074_v3   ;;  %v1645_v16 = vpop.permute.xlu0 %1644  ;;  %v24377_v3 = vrot.slane %v1610_v15, %v30633_v38  ;;  %v1979_v15 = vmul.f32 %v24389_v23, %v24224_v39 }
 0x143   : > { %23416 = vset.pattern.permute.xlu0 %v30638_v11 }
 0x144   : > { %17749 = vmatmul.mubr.msk.f32.gmra.mrb[54].mxu0 %vm1183_vm8, %v23640_v49  ;;  %3048 = vperm.xlu0 %23416, %v24129_v18   ;;  %v1776_v18 = vmul.f32 %v24377_v3, %v24187_v30  ;;  %v1778_v24 = vmul.f32 %v24377_v3, %v1625_v7  ;;  %v1777_v48 = vmul.f32 %v24377_v3, %v24311_v62 }
 0x145   : > { %v24379_v20 = vpop.permute.xlu1 %1879  ;;  %17750 = vmatprep.mubr.msk.f32.mxu0 %vm1186_vm7, %v23640_v49  ;;  %v1980_v30 = vmul.f32 %v24389_v23, %v24152_v22  ;;  %v24428_v22 = vld [vmem:[%s24102_s11] sm:$0xff]  ;;  %v1779_v59 = vmul.f32 %v24377_v3, %v24243_v45  ;;  %v1781_v45 = vmul.f32 %v24377_v3, %v24354_v12 }
 0x146   : > { %23367 = vset.pattern.permute.xlu1 %v30634_v2  ;;  %v24385_v21 = vpop.permute.xlu0 %1659  ;;  %v1814_v56 = vadd.f32 %v24402_v46, %v1776_v18  ;;  %v1816_v62 = vadd.f32 %v24402_v46, %v1778_v24  ;;  %v1815_v35 = vadd.f32 %v24402_v46, %v1777_v48  ;;  %v1782_v24 = vmul.f32 %v24377_v3, %v1645_v16 }
 0x147   : > { %1769 = vperm.xlu1 %23367, %v1609_v19   ;;  %v1982_v16 = vmul.f32 %v24389_v23, %v24294_v58  ;;  %v1785_v61 = vmul.f32 %v24377_v3, %v24385_v21 }
 0x148   : > { %17751 = vmatmul.mubr.msk.f32.gmra.mrb[56].mxu0 %vm1185_vm9, %v23640_v49  ;;  %3056 = vperm.xlu0 %23416, %v24177_v28   ;;  %v2010_v7 = vadd.f32 %v1978_v55, %v1814_v56  ;;  %v2012_v18 = vadd.f32 %v1980_v30, %v1816_v62  ;;  %v2011_v39 = vadd.f32 %v1979_v15, %v1815_v35 }
 0x149   : > { %17752 = vmatprep.mubr.msk.f32.mxu0 %vm1188_vm10, %v23640_v49  ;;  %v24399_v33 = vpop.permute.xlu1 %1883  ;;  %v1817_v30 = vadd.f32 %v24402_v46, %v1779_v59  ;;  %v1820_v56 = vadd.f32 %v24402_v46, %v1782_v24  ;;  %v1819_v35 = vadd.f32 %v24402_v46, %v1781_v45  ;;  %v1783_v15 = vmul.f32 %v24377_v3, %v24324_v0 }
 0x14a   : > { %v1665_v52 = vpop.permute.xlu0 %1664  ;;  %v2042_v48 = vmax.f32 %v2010_v7, 0.0  ;;  %v2044_v12 = vmax.f32 %v2012_v18, 0.0  ;;  %v2043_v58 = vmax.f32 %v2011_v39, 0.0  ;;  %v1985_v39 = vmul.f32 %v24389_v23, %v24339_v8 }
 0x14b   : > { %23369 = vset.pattern.permute.xlu1 %v30638_v11  ;;  %v2013_v62 = vadd.f32 %v1981_v42, %v1817_v30  ;;  %v2016_v18 = vadd.f32 %v1984_v50, %v1820_v56  ;;  %v1786_v24 = vmul.f32 %v24377_v3, %v1665_v52  ;;  %v2015_v45 = vadd.f32 %v1983_v25, %v1819_v35 }
 0x14c   : > { %17753 = vmatmul.mubr.msk.f32.gmra.mrb[58].mxu0 %vm1187_vm12, %v23640_v49  ;;  %1971 = vperm.xlu1 %23369, %v1609_v19   ;;  %v1780_v19 = vmul.f32 %v24377_v3, %v24272_v53  ;;  %v1986_v52 = vmul.f32 %v24389_v23, %v24379_v20  ;;  %v1988_v8 = vmul.f32 %v24389_v23, %v24181_v29 }
 0x14d   : > { %17754 = vmatprep.mubr.msk.f32.mxu0 %vm1190_vm11, %v23640_v49  ;;  %3064 = vperm.xlu0 %23416, %v24192_v31   ;;  %v2045_v42 = vmax.f32 %v2013_v62, 0.0  ;;  %v1821_v30 = vadd.f32 %v24402_v46, %v1783_v15  ;;  %v2048_v50 = vmax.f32 %v2016_v18, 0.0  ;;  %v2047_v56 = vmax.f32 %v2015_v45, 0.0 }
 0x14e   : > { %v24423_v27 = vpop.permute.xlu1 %1669  ;;  %v24425_v4 = vpop.permute.xlu0 %1679  ;;  %v1818_v1 = vadd.f32 %v24402_v46, %v1780_v19  ;;  %v1784_v19 = vmul.f32 %v24377_v3, %v24358_v13  ;;  %v1996_v13 = vmul.f32 %v24389_v23, %v24211_v36  ;;  %v1823_v62 = vadd.f32 %v24402_v46, %v1785_v61 }
 0x14f   : > { %v2017_v20 = vadd.f32 %v1985_v39, %v1821_v30  ;;  %v1987_v29 = vmul.f32 %v24389_v23, %v24399_v33 }
 0x150   : > { %17755 = vmatmul.mubr.msk.f32.gmra.mrb[60].mxu0 %vm1189_vm13, %v23640_v49  ;;  %23370 = vset.pattern.permute.xlu1 %v30634_v2  ;;  %v1822_v21 = vadd.f32 %v24402_v46, %v1784_v19 }
 0x151   : > { %2807 = vperm.xlu1 %23370, %v24428_v22   ;;  %17756 = vmatprep.mubr.msk.f32.mxu0 %vm1192_vm14, %v23640_v49 }
 0x152   : > { %v1685_v53 = vpop.permute.xlu0 %1684  ;;  %3072 = vperm.xlu0 %23416, %v24206_v34  }
 0x153   : > { %v24452_v55 = vpop.permute.xlu1 %1891  ;;  %v1790_v15 = vmul.f32 %v24377_v3, %v1685_v53 }
 0x154   : > { %17757 = vmatmul.mubr.msk.f32.gmra.mrb[62].mxu0 %vm1191_vm15, %v23640_v49  ;;  %v2014_v49 = vadd.f32 %v1982_v16, %v1818_v1  ;;  %v1824_v1 = vadd.f32 %v24402_v46, %v1786_v24  ;;  %v2049_v24 = vmax.f32 %v2017_v20, 0.0  ;;  %v1989_v39 = vmul.f32 %v24389_v23, %v24452_v55 }
 0x155   : > { %20588 = vmatprep.mubr.msk.f32.mxu0 %vm2085_vm0, %v2042_v48  ;;  %23372 = vset.pattern.permute.xlu1 %v30638_v11  ;;  %v1828_v61 = vadd.f32 %v24402_v46, %v1790_v15 }
 0x156   : > { %3040 = vperm.xlu1 %23372, %v24428_v22   ;;  %v24464_v7 = vpop.permute.xlu0 %1699  ;;  %3080 = vperm.xlu0 %23416, %v24221_v37   ;;  %v2046_v48 = vmax.f32 %v2014_v49, 0.0  ;;  %v1787_v49 = vmul.f32 %v24377_v3, %v24423_v27  ;;  %v2020_v25 = vadd.f32 %v1988_v8, %v1824_v1 }
 0x158   : > { %20589 = vmatmul.mubr.msk.f32.vlgmr.msra.gmra.mrb[64].mxu0 %vm2085_vm0, %v2043_v58  ;;  %v1675_v59 = vpop.permute.xlu1 %1674  ;;  %v2018_v58 = vadd.f32 %v1986_v52, %v1822_v21  ;;  %v1825_v53 = vadd.f32 %v24402_v46, %v1787_v49 }
 0x159   : > { %20591 = vmatprep.mubr.msk.f32.mxu0 %vm2085_vm0, %v2044_v12  ;;  %v1788_v19 = vmul.f32 %v24377_v3, %v1675_v59  ;;  %v1992_v59 = vmul.f32 %v24389_v23, %v24195_v32 }
 0x15a   : > { %3044 = vperm.xlu1 %23372, %v24114_v14   ;;  %v1705_v0 = vpop.permute.xlu0 %1704  ;;  %3088 = vperm.xlu0 %23416, %v24236_v43   ;;  %v2050_v27 = vmax.f32 %v2018_v58, 0.0 }
 0x15b   : > { %v1794_v16 = vmul.f32 %v24377_v3, %v1705_v0  ;;  %v1826_v55 = vadd.f32 %v24402_v46, %v1788_v19  ;;  %v2024_v8 = vadd.f32 %v1992_v59, %v1828_v61 }
 0x15c   : > { %20592 = vmatmul.mubr.msk.f32.gmra.mrb[66].mxu0 %vm2085_vm0, %v2045_v42  ;;  %v2019_v42 = vadd.f32 %v1987_v29, %v1823_v62  ;;  %v2776_v29 = vld [vmem:[%s24102_s11 + $0x28] sm:$0xff] }
 0x15d   : > { %v1832_v36 = vadd.f32 %v24402_v46, %v1794_v16  ;;  %20594 = vmatprep.mubr.msk.f32.mxu0 %vm2085_vm0, %v2046_v48  ;;  %v1896_v12 = vpop.permute.xlu1 %1895  ;;  %v2056_v20 = vmax.f32 %v2024_v8, 0.0 }
 0x15e   : > { %23373 = vset.pattern.permute.xlu1 %v30636_v26  ;;  %3096 = vperm.xlu0 %23416, %v24252_v47   ;;  %v1990_v45 = vmul.f32 %v24389_v23, %v1896_v12  ;;  %v2051_v0 = vmax.f32 %v2019_v42, 0.0 }
 0x15f   : > { %3236 = vperm.xlu1 %23373, %v24428_v22   ;;  %v2028_v35 = vadd.f32 %v1996_v13, %v1832_v36  ;;  %v1789_v22 = vmul.f32 %v24377_v3, %v24425_v4  ;;  %v2052_v4 = vmax.f32 %v2020_v25, 0.0  ;;  %v1793_v25 = vmul.f32 %v24377_v3, %v24464_v7 }
 0x160   : > { %20595 = vmatmul.mubr.msk.f32.gmra.mrb[68].mxu0 %vm2085_vm0, %v2047_v56  ;;  %v2022_v16 = vadd.f32 %v1990_v45, %v1826_v55 }
 0x161   : > { %v1900_v18 = vpop.permute.xlu1 %1899  ;;  %20597 = vmatprep.mubr.msk.f32.mxu0 %vm2085_vm0, %v2048_v50  ;;  %v2060_v33 = vmax.f32 %v2028_v35, 0.0  ;;  %v1827_v13 = vadd.f32 %v24402_v46, %v1789_v22 }
 0x162   : > { %3104 = vperm.xlu0 %23416, %v24264_v51   ;;  %v1991_v48 = vmul.f32 %v24389_v23, %v1900_v18  ;;  %v2054_v50 = vmax.f32 %v2022_v16, 0.0  ;;  %v1831_v18 = vadd.f32 %v24402_v46, %v1793_v25 }
 0x163   : > { %3240 = vperm.xlu1 %23373, %v24114_v14   ;;  %20615 = vmatprep.mubr.msk.f32.mxu1 %vm2085_vm0, %v2060_v33  ;;  %v2021_v14 = vadd.f32 %v1989_v39, %v1825_v53  ;;  %v1720_v53 = vpop.permute.xlu0 %1719 }
 0x164   : > { %20598 = vmatmul.mubr.msk.f32.gmra.mrb[70].mxu0 %vm2085_vm0, %v2049_v24  ;;  %v2023_v21 = vadd.f32 %v1991_v48, %v1827_v13  ;;  %v1797_v48 = vmul.f32 %v24377_v3, %v1720_v53 }
 0x165   : > { %20600 = vmatprep.mubr.msk.f32.mxu0 %vm2085_vm0, %v2050_v27  ;;  %v2053_v30 = vmax.f32 %v2021_v14, 0.0  ;;  %v2778_v27 = vld [vmem:[%s24102_s11 + $0x38] sm:$0xff] }
 0x166   : > { %v1690_v52 = vpop.permute.xlu1 %1689  ;;  %3112 = vperm.xlu0 %23416, %v24277_v54   ;;  %v2055_v56 = vmax.f32 %v2023_v21, 0.0 }
 0x167   : > { %23374 = vset.pattern.permute.xlu1 %v30638_v11  ;;  %v1791_v32 = vmul.f32 %v24377_v3, %v1690_v52 }
 0x168   : > { %20601 = vmatmul.mubr.msk.f32.gmra.mrb[72].mxu0 %vm2085_vm0, %v2051_v0  ;;  %3052 = vperm.xlu1 %23374, %v24143_v6   ;;  %v1725_v0 = vpop.permute.xlu0 %1724 }
 0x169   : > { %20603 = vmatprep.mubr.msk.f32.mxu0 %vm2085_vm0, %v2052_v4  ;;  %v1829_v36 = vadd.f32 %v24402_v46, %v1791_v32  ;;  %v2000_v32 = vmul.f32 %v24389_v23, %v24226_v40 }
 0x16a   : > { %3120 = vperm.xlu0 %23416, %v24291_v57  }
 0x16b   : > { %v1908_v1 = vpop.permute.xlu1 %1907 }
 0x16c   : > { %v1993_v12 = vmul.f32 %v24389_v23, %v1908_v1  ;;  %20604 = vmatmul.mubr.msk.f32.gmra.mrb[74].mxu0 %vm2085_vm0, %v2053_v30  ;;  %23375 = vset.pattern.permute.xlu1 %v30634_v2 }
 0x16d   : > { %20606 = vmatprep.mubr.msk.f32.mxu0 %vm2085_vm0, %v2054_v50  ;;  %2827 = vperm.xlu1 %23375, %v24177_v28   ;;  %v1835_v50 = vadd.f32 %v24402_v46, %v1797_v48  ;;  %v2442_v48 = vld [vmem:[%s23713_s19 + $0x18] sm:$0xff] }
 0x16e   : > { %v2025_v62 = vadd.f32 %v1993_v12, %v1829_v36  ;;  %3128 = vperm.xlu0 %23416, %v24306_v60  }
 0x170   : > { %v2057_v58 = vmax.f32 %v2025_v62, 0.0  ;;  %20607 = vmatmul.mubr.msk.f32.gmra.mrb[76].mxu0 %vm2085_vm0, %v2055_v56  ;;  %v1695_v35 = vpop.permute.xlu1 %1694  ;;  %v2780_v56 = vld [vmem:[%s24102_s11 + $0x48] sm:$0xff] }
 0x171   : > { %20609 = vmatprep.mubr.msk.f32.mxu0 %vm2085_vm0, %v2056_v20  ;;  %2832 = vperm.xlu1 %23375, %v2776_v29   ;;  %v1792_v49 = vmul.f32 %v24377_v3, %v1695_v35  ;;  %v1740_v35 = vpop.permute.xlu0 %1739 }
 0x172   : > { %3136 = vperm.xlu0 %23416, %v24320_v63  }
 0x173   : > { %v1830_v15 = vadd.f32 %v24402_v46, %v1792_v49 }
 0x174   : > { %20610 = vmatmul.mubr.msk.f32.gmra.mrb[78].mxu0 %vm2085_vm0, %v2057_v58 }
 0x175   : > { %23377 = vset.pattern.permute.xlu1 %v30636_v26  ;;  %v1912_v28 = vpop.permute.xlu1 %1911 }
 0x176   : > { %v1994_v19 = vmul.f32 %v24389_v23, %v1912_v28  ;;  %3248 = vperm.xlu1 %23377, %v24143_v6   ;;  %3144 = vperm.xlu0 %23416, %v24335_v5  }
 0x178   : > { %v2026_v33 = vadd.f32 %v1994_v19, %v1830_v15  ;;  %v1745_v15 = vpop.permute.xlu0 %1744 }
 0x179   : > { %v1916_v24 = vpop.permute.xlu1 %1915 }
 0x17a   : > { %v2058_v42 = vmax.f32 %v2026_v33, 0.0  ;;  %v1995_v7 = vmul.f32 %v24389_v23, %v1916_v24  ;;  %23378 = vset.pattern.permute.xlu1 %v30638_v11  ;;  %3152 = vperm.xlu0 %23416, %v24346_v9   ;;  %v1802_v24 = vmul.f32 %v24377_v3, %v1745_v15 }
 0x17b   : > { %3060 = vperm.xlu1 %23378, %v2776_v29  }
 0x17c   : > { %v2027_v22 = vadd.f32 %v1995_v7, %v1831_v18  ;;  %20612 = vmatprep.mubr.msk.f32.mxu0 %vm2085_vm0, %v2058_v42  ;;  %v1801_v7 = vmul.f32 %v24377_v3, %v1740_v35 }
 0x17e   : > { %v2059_v39 = vmax.f32 %v2027_v22, 0.0  ;;  %v1710_v6 = vpop.permute.xlu1 %1709 }
 0x17f   : > { %23379 = vset.pattern.permute.xlu1 %v30634_v2  ;;  %v1795_v5 = vmul.f32 %v24377_v3, %v1710_v6  ;;  %v1840_v6 = vadd.f32 %v24402_v46, %v1802_v24 }
 0x180   : > { %2837 = vperm.xlu1 %23379, %v24192_v31   ;;  %20613 = vmatmul.mubr.msk.f32.gmra.mrb[80].mxu0 %vm2085_vm0, %v2059_v39  ;;  %v1798_v31 = vmul.f32 %v24377_v3, %v1725_v0 }
 0x181   : > { %v1833_v59 = vadd.f32 %v24402_v46, %v1795_v5  ;;  %v24597_v5 = vld [vmem:[%s24102_s11 + $0x58] sm:$0xff] }
 0x182   : > { %v1836_v8 = vadd.f32 %v24402_v46, %v1798_v31 }
 0x183   : > { %v1924_v45 = vpop.permute.xlu1 %1923 }
 0x184   : > { %v1997_v9 = vmul.f32 %v24389_v23, %v1924_v45  ;;  %2842 = vperm.xlu1 %23379, %v2778_v27   ;;  %v2032_v12 = vadd.f32 %v2000_v32, %v1836_v8  ;;  %v2440_v45 = vld [vmem:[%s23713_s19 + $0x8] sm:$0xff] }
 0x186   : > { %v2029_v4 = vadd.f32 %v1997_v9, %v1833_v59  ;;  %v2004_v9 = vmul.f32 %v24389_v23, %v24239_v44 }
 0x188   : > { %v2061_v61 = vmax.f32 %v2029_v4, 0.0  ;;  %23380 = vset.pattern.permute.xlu1 %v30636_v26  ;;  %v1715_v55 = vpop.permute.xlu1 %1714 }
 0x189   : > { %3256 = vperm.xlu1 %23380, %v2776_v29   ;;  %v1796_v13 = vmul.f32 %v24377_v3, %v1715_v55  ;;  %v2064_v29 = vmax.f32 %v2032_v12, 0.0 }
 0x18a   : > { %20616 = vmatmul.mubr.msk.f32.vlgmr.msra.gmra.mrb[0].mxu1 %vm2085_vm0, %v2061_v61  ;;  %v1839_v61 = vadd.f32 %v24402_v46, %v1801_v7 }
 0x18b   : > { %v1834_v52 = vadd.f32 %v24402_v46, %v1796_v13  ;;  %v2036_v13 = vadd.f32 %v2004_v9, %v1840_v6 }
 0x18d   : > { %23381 = vset.pattern.permute.xlu1 %v30638_v11  ;;  %v1928_v14 = vpop.permute.xlu1 %1927 }
 0x18e   : > { %v1998_v16 = vmul.f32 %v24389_v23, %v1928_v14  ;;  %3068 = vperm.xlu1 %23381, %v2778_v27   ;;  %v2441_v14 = vld [vmem:[%s23713_s19 + $0x10] sm:$0xff] }
 0x18f   : > { %v22600_v44 = vpack.c.bf16 %v2442_v48, %v2441_v14 }
 0x190   : > { %v2030_v30 = vadd.f32 %v1998_v16, %v1834_v52 }
 0x191   : > { %v1932_v21 = vpop.permute.xlu1 %1931 }
 0x192   : > { %v2062_v1 = vmax.f32 %v2030_v30, 0.0  ;;  %v1999_v36 = vmul.f32 %v24389_v23, %v1932_v21  ;;  %23382 = vset.pattern.permute.xlu1 %v30634_v2  ;;  %v2068_v30 = vmax.f32 %v2036_v13, 0.0 }
 0x193   : > { %2847 = vperm.xlu1 %23382, %v24206_v34  }
 0x194   : > { %v2031_v20 = vadd.f32 %v1999_v36, %v1835_v50  ;;  %20618 = vmatprep.mubr.msk.f32.mxu1 %vm2085_vm0, %v2062_v1  ;;  %v1760_v50 = vpop.permute.xlu0 %1759 }
 0x195   : > { %v1805_v7 = vmul.f32 %v24377_v3, %v1760_v50 }
 0x196   : > { %v2063_v62 = vmax.f32 %v2031_v20, 0.0  ;;  %v1730_v40 = vpop.permute.xlu1 %1729 }
 0x197   : > { %2852 = vperm.xlu1 %23382, %v2780_v56   ;;  %v1799_v58 = vmul.f32 %v24377_v3, %v1730_v40  ;;  %v1843_v9 = vadd.f32 %v24402_v46, %v1805_v7 }
 0x198   : > { %20619 = vmatmul.mubr.msk.f32.gmra.mrb[2].mxu1 %vm2085_vm0, %v2063_v62  ;;  %v1765_v40 = vpop.permute.xlu0 %1764 }
 0x199   : > { %20621 = vmatprep.mubr.msk.f32.mxu1 %vm2085_vm0, %v2064_v29  ;;  %v1837_v34 = vadd.f32 %v24402_v46, %v1799_v58  ;;  %v1806_v15 = vmul.f32 %v24377_v3, %v1765_v40 }
 0x19b   : > { %23383 = vset.pattern.permute.xlu1 %v30636_v26  ;;  %v1940_v49 = vpop.permute.xlu1 %1939 }
 0x19c   : > { %v2001_v25 = vmul.f32 %v24389_v23, %v1940_v49  ;;  %3264 = vperm.xlu1 %23383, %v2778_v27   ;;  %v2439_v27 = vld [vmem:[%s23713_s19] sm:$0xff] }
 0x19d   : > { %v22596_v59 = vpack.c.bf16 %v2440_v45, %v2439_v27 }
 0x19e   : > { %v2033_v28 = vadd.f32 %v2001_v25, %v1837_v34 }
 0x19f   : > { %22597 = vmatprep.subr.bf16.mxu1 %v22596_v59 }
 0x1a0   : > { %v2065_v19 = vmax.f32 %v2033_v28, 0.0  ;;  %23384 = vset.pattern.permute.xlu1 %v30638_v11  ;;  %v1735_v18 = vpop.permute.xlu1 %1734  ;;  %22599 = vmatpush3.bf16.msra.mxu1 %v22596_v59  ;;  %v2784_v28 = vld [vmem:[%s24102_s11 + $0x68] sm:$0xff] }
 0x1a1   : > { %3076 = vperm.xlu1 %23384, %v2780_v56   ;;  %v1800_v33 = vmul.f32 %v24377_v3, %v1735_v18  ;;  %22601 = vmatprep.subr.bf16.mxu1 %v22600_v44  ;;  %v24634_v18 = vld [vmem:[%s24102_s11 + $0xf0] sm:$0xff] }
 0x1a2   : > { %20622 = vmatmul.mubr.msk.f32.gmra.mrb[4].mxu1 %vm2085_vm0, %v2065_v19  ;;  %3160 = vperm.xlu0 %23416, %v24634_v18  }
 0x1a3   : > { %v1838_v22 = vadd.f32 %v24402_v46, %v1800_v33  ;;  %v1968_v33 = vpop.permute.xlu0 %1967 }
 0x1a4   : > { %22603 = vmatpush3.bf16.msra.mxu1 %v22600_v44  ;;  %v2008_v6 = vmul.f32 %v24389_v23, %v1968_v33 }
 0x1a5   : > { %23385 = vset.pattern.permute.xlu1 %v30634_v2  ;;  %v1944_v42 = vpop.permute.xlu1 %1943 }
 0x1a6   : > { %v2002_v39 = vmul.f32 %v24389_v23, %v1944_v42  ;;  %2857 = vperm.xlu1 %23385, %v24221_v37   ;;  %23420 = vset.pattern.permute.xlu0 %v30636_v26 }
 0x1a8   : > { %v2034_v53 = vadd.f32 %v2002_v39, %v1838_v22  ;;  %v1844_v39 = vadd.f32 %v24402_v46, %v1806_v15 }
 0x1a9   : > { %v1948_v4 = vpop.permute.xlu1 %1947 }
 0x1aa   : > { %v2066_v55 = vmax.f32 %v2034_v53, 0.0  ;;  %v2003_v0 = vmul.f32 %v24389_v23, %v1948_v4  ;;  %2862 = vperm.xlu1 %23385, %v24597_v5   ;;  %v24606_v37 = vpop.f32.mrb[0].mxu0 }
 0x1ab   : > { %30729 = vst [vmem:[#allocation25_spill] sm:$0xff] %v24606_v37  ;;  %v1421_v31 = vpop.f32.mrb[1].mxu0 }
 0x1ac   : > { %v2035_v52 = vadd.f32 %v2003_v0, %v1839_v61  ;;  %20624 = vmatprep.mubr.msk.f32.mxu1 %vm2085_vm0, %v2066_v55  ;;  %v2040_v55 = vadd.f32 %v2008_v6, %v1844_v39 }
 0x1ae   : > { %v2067_v16 = vmax.f32 %v2035_v52, 0.0  ;;  %23386 = vset.pattern.permute.xlu1 %v30636_v26  ;;  %v1750_v32 = vpop.permute.xlu1 %1749  ;;  %v24612_v8 = vpop.f32.mrb[2].mxu0  ;;  %v2072_v52 = vmax.f32 %v2040_v55, 0.0 }
 0x1af   : > { %30730 = vst [vmem:[#allocation26_spill] sm:$0xff] %v24612_v8  ;;  %3272 = vperm.xlu1 %23386, %v2780_v56   ;;  %v1426_v21 = vpop.f32.mrb[3].mxu0  ;;  %v1803_v1 = vmul.f32 %v24377_v3, %v1750_v32 }
 0x1b0   : > { %20625 = vmatmul.mubr.msk.f32.gmra.mrb[6].mxu1 %vm2085_vm0, %v2067_v16 }
 0x1b1   : > { %20627 = vmatprep.mubr.msk.f32.mxu1 %vm2085_vm0, %v2068_v30  ;;  %v1841_v62 = vadd.f32 %v24402_v46, %v1803_v1 }
 0x1b2   : > { %v24617_v36 = vpop.f32.mrb[4].mxu0 }
 0x1b3   : > { %30731 = vst [vmem:[#allocation27_spill] sm:$0xff] %v24617_v36  ;;  %23387 = vset.pattern.permute.xlu1 %v30638_v11  ;;  %v1956_v12 = vpop.permute.xlu1 %1955  ;;  %v1431_v20 = vpop.f32.mrb[5].mxu0 }
 0x1b4   : > { %v2005_v56 = vmul.f32 %v24389_v23, %v1956_v12  ;;  %3084 = vperm.xlu1 %23387, %v24597_v5   ;;  %v2786_v12 = vld [vmem:[%s24102_s11 + $0x78] sm:$0xff] }
 0x1b6   : > { %v2037_v29 = vadd.f32 %v2005_v56, %v1841_v62  ;;  %v24623_v58 = vpop.f32.mrb[6].mxu0 }
 0x1b7   : > { %30732 = vst [vmem:[#allocation28_spill] sm:$0xff] %v24623_v58  ;;  %v1436_v35 = vpop.f32.mrb[7].mxu0 }
 0x1b8   : > { %v2069_v49 = vmax.f32 %v2037_v29, 0.0  ;;  %23388 = vset.pattern.permute.xlu1 %v30634_v2  ;;  %v1755_v34 = vpop.permute.xlu1 %1754 }
 0x1b9   : > { %2867 = vperm.xlu1 %23388, %v24236_v43   ;;  %v1804_v25 = vmul.f32 %v24377_v3, %v1755_v34 }
 0x1ba   : > { %20628 = vmatmul.mubr.msk.f32.gmra.mrb[8].mxu1 %vm2085_vm0, %v2069_v49 }
 0x1bb   : > { %v24631_v19 = vpop.f32.mrb[8].mxu0  ;;  %v1842_v43 = vadd.f32 %v24402_v46, %v1804_v25 }
 0x1bc   : > { %30733 = vst [vmem:[#allocation29_spill] sm:$0xff] %v24631_v19  ;;  %v1441_v24 = vpop.f32.mrb[9].mxu0 }
 0x1bd   : > { %2872 = vperm.xlu1 %23388, %v2784_v28   ;;  %v1960_v42 = vpop.permute.xlu1 %1959  ;;  %v2788_v24 = vld [vmem:[%s24102_s11 + $0x88] sm:$0xff] }
 0x1be   : > { %v2006_v22 = vmul.f32 %v24389_v23, %v1960_v42 }
 0x1bf   : > { %v24642_v27 = vpop.f32.mrb[10].mxu0 }
 0x1c0   : > { %30734 = vst [vmem:[#allocation30_spill] sm:$0xff] %v24642_v27  ;;  %v2038_v45 = vadd.f32 %v2006_v22, %v1842_v43  ;;  %v1446_v53 = vpop.f32.mrb[11].mxu0 }
 0x1c1   : > { %23389 = vset.pattern.permute.xlu1 %v30636_v26  ;;  %v1964_v59 = vpop.permute.xlu1 %1963 }
 0x1c2   : > { %v2070_v4 = vmax.f32 %v2038_v45, 0.0  ;;  %v2007_v61 = vmul.f32 %v24389_v23, %v1964_v59  ;;  %3280 = vperm.xlu1 %23389, %v24597_v5   ;;  %v24699_v45 = vld [vmem:[%s24102_s11 + $0xf8] sm:$0xff] }
 0x1c3   : > { %v24649_v0 = vpop.f32.mrb[12].mxu0  ;;  %3360 = vperm.xlu0 %23420, %v24699_v45  }
 0x1c4   : > { %30735 = vst [vmem:[#allocation31_spill] sm:$0xff] %v24649_v0  ;;  %v2039_v13 = vadd.f32 %v2007_v61, %v1843_v9  ;;  %20630 = vmatprep.mubr.msk.f32.mxu1 %vm2085_vm0, %v2070_v4  ;;  %v1451_v31 = vpop.f32.mrb[13].mxu0 }
 0x1c6   : > { %v2071_v14 = vmax.f32 %v2039_v13, 0.0  ;;  %23390 = vset.pattern.permute.xlu1 %v30638_v11  ;;  %v1770_v48 = vpop.permute.xlu1 %1769  ;;  %v2790_v13 = vld [vmem:[%s24102_s11 + $0x98] sm:$0xff] }
 0x1c7   : > { %v24653_v44 = vpop.f32.mrb[14].mxu0  ;;  %3092 = vperm.xlu1 %23390, %v2784_v28   ;;  %v1807_v16 = vmul.f32 %v24377_v3, %v1770_v48  ;;  %23422 = vset.pattern.permute.xlu0 %v30638_v11 }
 0x1c8   : > { %30736 = vst [vmem:[#allocation32_spill] sm:$0xff] %v24653_v44  ;;  %v1456_v32 = vpop.f32.mrb[15].mxu0  ;;  %20631 = vmatmul.mubr.msk.f32.gmra.mrb[10].mxu1 %vm2085_vm0, %v2071_v14 }
 0x1c9   : > { %20633 = vmatprep.mubr.msk.f32.mxu1 %vm2085_vm0, %v2072_v52  ;;  %v1845_v21 = vadd.f32 %v24402_v46, %v1807_v16 }
 0x1cb   : > { %23391 = vset.pattern.permute.xlu1 %v30634_v2  ;;  %v1972_v5 = vpop.permute.xlu1 %1971  ;;  %v24659_v30 = vpop.f32.mrb[16].mxu0 }
 0x1cc   : > { %30737 = vst [vmem:[#allocation33_spill] sm:$0xff] %v24659_v30  ;;  %v2009_v50 = vmul.f32 %v24389_v23, %v1972_v5  ;;  %2877 = vperm.xlu1 %23391, %v24252_v47   ;;  %v1461_v1 = vpop.f32.mrb[17].mxu0 }
 0x1cd   : > { %v3463_v1 = vld [vmem:[%s23733_s12] sm:$0xff] }
 0x1ce   : > { %v2041_v20 = vadd.f32 %v2009_v50, %v1845_v21 }
 0x1cf   : > { %v24665_v3 = vpop.f32.mrb[18].mxu0 }
 0x1d0   : > { %30738 = vst [vmem:[#allocation34_spill] sm:$0xff] %v24665_v3  ;;  %v2073_v62 = vmax.f32 %v2041_v20, 0.0  ;;  %v1466_v56 = vpop.f32.mrb[19].mxu0  ;;  %2882 = vperm.xlu1 %23391, %v2786_v12   ;;  %v24667_v40 = vpop.permute.xlu1 %2807 }
 0x1d2   : > { %20634 = vmatmul.mubr.msk.f32.gmra.mrb[12].mxu1 %vm2085_vm0, %v2073_v62 }
 0x1d3   : > { %v24670_v29 = vpop.f32.mrb[20].mxu0 }
 0x1d4   : > { %30739 = vst [vmem:[#allocation35_spill] sm:$0xff] %v24670_v29  ;;  %23392 = vset.pattern.permute.xlu1 %v30636_v26  ;;  %v1471_v23 = vpop.f32.mrb[21].mxu0 }
 0x1d5   : > { %3288 = vperm.xlu1 %23392, %v2784_v28   ;;  %v24673_v47 = vpop.permute.xlu1 %3040 }
 0x1d7   : > { %v24675_v46 = vpop.f32.mrb[22].mxu0 }
 0x1d8   : > { %30740 = vst [vmem:[#allocation36_spill] sm:$0xff] %v24675_v46  ;;  %v1476_v35 = vpop.f32.mrb[23].mxu0 }
 0x1d9   : > { %23393 = vset.pattern.permute.xlu1 %v30638_v11  ;;  %v24678_v49 = vpop.permute.xlu1 %3044  ;;  %v2792_v35 = vld [vmem:[%s24102_s11 + $0xa8] sm:$0xff] }
 0x1da   : > { %3100 = vperm.xlu1 %23393, %v2786_v12  }
 0x1db   : > { %v24680_v34 = vpop.f32.mrb[24].mxu0 }
 0x1dc   : > { %30741 = vst [vmem:[#allocation37_spill] sm:$0xff] %v24680_v34  ;;  %v1481_v25 = vpop.f32.mrb[25].mxu0 }
 0x1de   : > { %23394 = vset.pattern.permute.xlu1 %v30634_v2  ;;  %v24683_v15 = vpop.permute.xlu1 %3236 }
 0x1df   : > { %v24685_v33 = vpop.f32.mrb[26].mxu0  ;;  %2887 = vperm.xlu1 %23394, %v24264_v51  }
 0x1e0   : > { %30742 = vst [vmem:[#allocation38_spill] sm:$0xff] %v24685_v33  ;;  %v1486_v28 = vpop.f32.mrb[27].mxu0 }
 0x1e2   : > { %v24689_v42 = vpop.permute.xlu1 %3240 }
 0x1e3   : > { %2892 = vperm.xlu1 %23394, %v2788_v24   ;;  %v24691_v7 = vpop.f32.mrb[28].mxu0 }
 0x1e4   : > { %30743 = vst [vmem:[#allocation39_spill] sm:$0xff] %v24691_v7  ;;  %v1491_v43 = vpop.f32.mrb[29].mxu0 }
 0x1e7   : > { %v24693_v22 = vpop.f32.mrb[30].mxu0  ;;  %23395 = vset.pattern.permute.xlu1 %v30636_v26  ;;  %v24696_v39 = vpop.permute.xlu1 %3052 }
 0x1e8   : > { %30744 = vst [vmem:[#allocation40_spill] sm:$0xff] %v24693_v22  ;;  %v1496_v6 = vpop.f32.mrb[31].mxu0  ;;  %3296 = vperm.xlu1 %23395, %v2786_v12   ;;  %v3464_v12 = vld [vmem:[%s23733_s12 + $0x8] sm:$0xff] }
 0x1e9   : > { %v24737_v56 = vpack.c.bf16 %v3464_v12, %v3463_v1 }
 0x1eb   : > { %v24702_v51 = vpop.f32.mrb[32].mxu0  ;;  %22605 = vmatprep.subr.bf16.mxu1 %v24737_v56 }
 0x1ec   : > { %30745 = vst [vmem:[#allocation41_spill] sm:$0xff] %v24702_v51  ;;  %23396 = vset.pattern.permute.xlu1 %v30638_v11  ;;  %v24705_v53 = vpop.permute.xlu1 %2827  ;;  %v1501_v59 = vpop.f32.mrb[33].mxu0 }
 0x1ed   : > { %3108 = vperm.xlu1 %23396, %v2788_v24  }
 0x1ef   : > { %v24708_v9 = vpop.f32.mrb[34].mxu0 }
 0x1f0   : > { %30746 = vst [vmem:[#allocation42_spill] sm:$0xff] %v24708_v9  ;;  %v1506_v4 = vpop.f32.mrb[35].mxu0  ;;  %v24710_v61 = vpop.permute.xlu1 %2832 }
 0x1f1   : > { %23397 = vset.pattern.permute.xlu1 %v30634_v2 }
 0x1f2   : > { %2897 = vperm.xlu1 %23397, %v24277_v54  }
 0x1f3   : > { %v24714_v55 = vpop.f32.mrb[36].mxu0 }
 0x1f4   : > { %30747 = vst [vmem:[#allocation43_spill] sm:$0xff] %v24714_v55  ;;  %v1511_v31 = vpop.f32.mrb[37].mxu0 }
 0x1f5   : > { %v24717_v14 = vpop.permute.xlu1 %3248 }
 0x1f6   : > { %2902 = vperm.xlu1 %23397, %v2790_v13  }
 0x1f7   : > { %v24719_v48 = vpop.f32.mrb[38].mxu0 }
 0x1f8   : > { %30748 = vst [vmem:[#allocation44_spill] sm:$0xff] %v24719_v48  ;;  %v1516_v52 = vpop.f32.mrb[39].mxu0  ;;  %v30762_v48 = vmov 2  }
 0x1fa   : > { %23398 = vset.pattern.permute.xlu1 %v30636_v26  ;;  %v24722_v16 = vpop.permute.xlu1 %3060 }
 0x1fb   : > { %v24724_v32 = vpop.f32.mrb[40].mxu0  ;;  %3304 = vperm.xlu1 %23398, %v2788_v24  }
 0x1fc   : > { %30749 = vst [vmem:[#allocation45_spill] sm:$0xff] %v24724_v32  ;;  %v1521_v54 = vpop.f32.mrb[41].mxu0 }
 0x1ff   : > { %v24726_v5 = vpop.f32.mrb[42].mxu0  ;;  %23399 = vset.pattern.permute.xlu1 %v30638_v11  ;;  %v24729_v21 = vpop.permute.xlu1 %2837 }
 0x200   : > { %30750 = vst [vmem:[#allocation46_spill] sm:$0xff] %v24726_v5  ;;  %v1526_v50 = vpop.f32.mrb[43].mxu0  ;;  %3116 = vperm.xlu1 %23399, %v2790_v13   ;;  %v24802_v5 = vpop.permute.xlu0 %2812 }
 0x203   : > { %v24733_v20 = vpop.f32.mrb[44].mxu0  ;;  %v24735_v62 = vpop.permute.xlu1 %2842 }
 0x204   : > { %30751 = vst [vmem:[#allocation47_spill] sm:$0xff] %v24733_v20  ;;  %v1531_v23 = vpop.f32.mrb[45].mxu0  ;;  %23400 = vset.pattern.permute.xlu1 %v30634_v2 }
 0x205   : > { %2907 = vperm.xlu1 %23400, %v24291_v57  }
 0x207   : > { %v24743_v25 = vpop.f32.mrb[46].mxu0 }
 0x208   : > { %30752 = vst [vmem:[#allocation48_spill] sm:$0xff] %v24743_v25  ;;  %v1536_v28 = vpop.f32.mrb[47].mxu0  ;;  %v24745_v24 = vpop.permute.xlu1 %3256 }
 0x209   : > { %2912 = vperm.xlu1 %23400, %v2792_v35  }
 0x20b   : > { %v24747_v43 = vpop.f32.mrb[48].mxu0 }
 0x20c   : > { %30753 = vst [vmem:[#allocation49_spill] sm:$0xff] %v24747_v43  ;;  %v1541_v6 = vpop.f32.mrb[49].mxu0 }
 0x20d   : > { %23401 = vset.pattern.permute.xlu1 %v30636_v26  ;;  %v24750_v59 = vpop.permute.xlu1 %3068 }
 0x20e   : > { %3312 = vperm.xlu1 %23401, %v2790_v13   ;;  %v2794_v13 = vld [vmem:[%s24102_s11 + $0xb8] sm:$0xff] }
 0x20f   : > { %v24752_v4 = vpop.f32.mrb[50].mxu0 }
 0x210   : > { %30754 = vst [vmem:[#allocation50_spill] sm:$0xff] %v24752_v4  ;;  %v1546_v57 = vpop.f32.mrb[51].mxu0 }
 0x212   : > { %23402 = vset.pattern.permute.xlu1 %v30638_v11  ;;  %v24755_v31 = vpop.permute.xlu1 %2847 }
 0x213   : > { %3124 = vperm.xlu1 %23402, %v2792_v35   ;;  %v24757_v52 = vpop.f32.mrb[52].mxu0 }
 0x214   : > { %30755 = vst [vmem:[#allocation51_spill] sm:$0xff] %v24757_v52  ;;  %v1551_v54 = vpop.f32.mrb[53].mxu0  ;;  %v3466_v52 = vld [vmem:[%s23733_s12 + $0x18] sm:$0xff] }
 0x216   : > { %v24759_v50 = vpop.permute.xlu1 %2852 }
 0x217   : > { %v24761_v1 = vpop.f32.mrb[54].mxu0  ;;  %23403 = vset.pattern.permute.xlu1 %v30634_v2 }
 0x218   : > { %30756 = vst [vmem:[#allocation52_spill] sm:$0xff] %v24761_v1  ;;  %v1556_v12 = vpop.f32.mrb[55].mxu0  ;;  %2917 = vperm.xlu1 %23403, %v24306_v60   ;;  %v3465_v1 = vld [vmem:[%s23733_s12 + $0x10] sm:$0xff] }
 0x21b   : > { %v24766_v23 = vpop.permute.xlu1 %3264  ;;  %v24768_v28 = vpop.f32.mrb[56].mxu0 }
 0x21c   : > { %30757 = vst [vmem:[#allocation53_spill] sm:$0xff] %v24768_v28  ;;  %2922 = vperm.xlu1 %23403, %v2794_v13   ;;  %v1561_v6 = vpop.f32.mrb[57].mxu0  ;;  %v24791_v28 = vld [vmem:[%s24102_s11 + $0xc8] sm:$0xff] }
 0x21f   : > { %v24770_v57 = vpop.f32.mrb[58].mxu0 }
 0x220   : > { %30758 = vst [vmem:[#allocation54_spill] sm:$0xff] %v24770_v57  ;;  %v1566_v54 = vpop.f32.mrb[59].mxu0  ;;  %23404 = vset.pattern.permute.xlu1 %v30636_v26  ;;  %v24773_v17 = vpop.permute.xlu1 %3076  ;;  %v24785_v26 = vld [vmem:[%s23708_s14] ss:$0 sm:$0xff]  ;;  %v30761_v57 = vmov 0  }
 0x221   : > { %3320 = vperm.xlu1 %23404, %v2792_v35  }
 0x223   : > { %v24775_v12 = vpop.f32.mrb[60].mxu0 }
 0x224   : > { %30759 = vst [vmem:[#allocation55_spill] sm:$0xff] %v24775_v12  ;;  %v1571_v60 = vpop.f32.mrb[61].mxu0 }
 0x225   : > { %23405 = vset.pattern.permute.xlu1 %v30638_v11  ;;  %v24778_v38 = vpop.permute.xlu1 %2857 }
 0x226   : > { %3132 = vperm.xlu1 %23405, %v2794_v13  }
 0x227   : > { %v24780_v6 = vpop.f32.mrb[62].mxu0 }
 0x228   : > { %30760 = vst [vmem:[#allocation56_spill] sm:$0xff] %v24780_v6  ;;  %v1576_v2 = vpop.f32.mrb[63].mxu0 }
 0x229   : > { %v24782_v54 = vpop.permute.xlu1 %2862 }
 0x22a   : > { %23406 = vset.pattern.permute.xlu1 %v30761_v57 }
 0x22b   : > { %v20590_v35 = vpop.f32.mrb[64].mxu0  ;;  %2927 = vperm.xlu1 %23406, %v24320_v63   ;;  %v22608_v63 = vpack.c.bf16 %v3466_v52, %v3465_v1 }
 0x22c   : > { %v2254_v60 = vadd.f32 %v20590_v35, %v24785_v26  ;;  %v2248_v12 = vpop.f32.mrb[65].mxu0 }
 0x22d   : > { %v2249_v11 = vadd.f32 %v24785_v26, %v2248_v12 }
 0x22e   : > { %v24796_v6 = vpop.permute.xlu1 %3272  ;;  %v2408_v43 = vmax.f32 %v2254_v60, 0.0 }
 0x22f   : > { %v2407_v2 = vmax.f32 %v2249_v11, 0.0  ;;  %v20593_v4 = vpop.f32.mrb[66].mxu0  ;;  %2932 = vperm.xlu1 %23406, %v24791_v28  }
 0x230   : > { %v2264_v25 = vadd.f32 %v20593_v4, %v24785_v26  ;;  %v2258_v20 = vpop.f32.mrb[67].mxu0 }
 0x231   : > { %v2259_v35 = vadd.f32 %v24785_v26, %v2258_v20  ;;  %20644 = vmatprep.mubr.msk.f32.mxu1 %vm2085_vm0, %v2407_v2 }
 0x232   : > { %20645 = vmatmul.mubr.msk.f32.vlgmr.msra.gmra.mrb[14].mxu1 %vm2085_vm0, %v2408_v43  ;;  %v2410_v60 = vmax.f32 %v2264_v25, 0.0 }
 0x233   : > { %v2409_v12 = vmax.f32 %v2259_v35, 0.0  ;;  %v20596_v32 = vpop.f32.mrb[68].mxu0  ;;  %23407 = vset.pattern.permute.xlu1 %v30762_v48  ;;  %v24806_v11 = vpop.permute.xlu1 %3084  ;;  %22607 = vmatpush3.bf16.msra.mxu1 %v24737_v56  ;;  %v30763_v56 = vmov 1  }
 0x234   : > { %v2274_v4 = vadd.f32 %v20596_v32, %v24785_v26  ;;  %v2268_v52 = vpop.f32.mrb[69].mxu0  ;;  %3328 = vperm.xlu1 %23407, %v2794_v13   ;;  %22609 = vmatprep.subr.bf16.mxu1 %v22608_v63  ;;  %v24817_v32 = vpop.permute.xlu0 %2817 }
 0x235   : > { %v2269_v20 = vadd.f32 %v24785_v26, %v2268_v52  ;;  %20647 = vmatprep.mubr.msk.f32.mxu1 %vm2085_vm0, %v2409_v12 }
 0x236   : > { %20648 = vmatmul.mubr.msk.f32.gmra.mrb[16].mxu1 %vm2085_vm0, %v2410_v60  ;;  %v2412_v2 = vmax.f32 %v2274_v4, 0.0 }
 0x237   : > { %v2411_v43 = vmax.f32 %v2269_v20, 0.0  ;;  %v20599_v1 = vpop.f32.mrb[70].mxu0  ;;  %22611 = vmatpush3.bf16.msra.mxu1 %v22608_v63 }
 0x238   : > { %v2284_v35 = vadd.f32 %v20599_v1, %v24785_v26  ;;  %v2278_v55 = vpop.f32.mrb[71].mxu0  ;;  %23408 = vset.pattern.permute.xlu1 %v30763_v56  ;;  %v24815_v25 = vpop.permute.xlu1 %2867 }
 0x239   : > { %v2279_v13 = vadd.f32 %v24785_v26, %v2278_v55  ;;  %20650 = vmatprep.mubr.msk.f32.mxu1 %vm2085_vm0, %v2411_v43  ;;  %3140 = vperm.xlu1 %23408, %v24791_v28   ;;  %v23445_v55 = vld [vmem:[%s24102_s11 + $0xd0] sm:$0xff]  ;;  %v24831_v43 = vpop.permute.xlu0 %2822 }
 0x23a   : > { %20651 = vmatmul.mubr.msk.f32.gmra.mrb[18].mxu1 %vm2085_vm0, %v2412_v2  ;;  %v2414_v60 = vmax.f32 %v2284_v35, 0.0  ;;  %v2798_v35 = vld [vmem:[%s24102_s11 + $0xd8] sm:$0xff] }
 0x23b   : > { %v2413_v63 = vmax.f32 %v2279_v13, 0.0  ;;  %v20602_v12 = vpop.f32.mrb[72].mxu0 }
 0x23c   : > { %v2294_v4 = vadd.f32 %v20602_v12, %v24785_v26  ;;  %v2288_v52 = vpop.f32.mrb[73].mxu0  ;;  %v24824_v20 = vpop.permute.xlu1 %2872 }
 0x23d   : > { %v2289_v1 = vadd.f32 %v24785_v26, %v2288_v52  ;;  %20653 = vmatprep.mubr.msk.f32.mxu1 %vm2085_vm0, %v2413_v63  ;;  %23409 = vset.pattern.permute.xlu1 %v30761_v57  ;;  %v24841_v33 = vpop.permute.xlu0 %3244 }
 0x23e   : > { %20654 = vmatmul.mubr.msk.f32.gmra.mrb[20].mxu1 %vm2085_vm0, %v2414_v60  ;;  %2937 = vperm.xlu1 %23409, %v23445_v55   ;;  %v2416_v9 = vmax.f32 %v2294_v4, 0.0 }
 0x23f   : > { %v2415_v2 = vmax.f32 %v2289_v1, 0.0  ;;  %v20605_v13 = vpop.f32.mrb[74].mxu0 }
 0x240   : > { %v2304_v12 = vadd.f32 %v20605_v13, %v24785_v26  ;;  %v2298_v51 = vpop.f32.mrb[75].mxu0 }
 0x241   : > { %v2299_v22 = vadd.f32 %v24785_v26, %v2298_v51  ;;  %20656 = vmatprep.mubr.msk.f32.mxu1 %vm2085_vm0, %v2415_v2  ;;  %v24837_v63 = vpop.permute.xlu1 %3280 }
 0x242   : > { %20657 = vmatmul.mubr.msk.f32.gmra.mrb[22].mxu1 %vm2085_vm0, %v2416_v9  ;;  %2942 = vperm.xlu1 %23409, %v2798_v35   ;;  %v2418_v55 = vmax.f32 %v2304_v12, 0.0 }
 0x243   : > { %v2417_v60 = vmax.f32 %v2299_v22, 0.0  ;;  %v20608_v52 = vpop.f32.mrb[76].mxu0 }
 0x244   : > { %v2314_v1 = vadd.f32 %v20608_v52, %v24785_v26  ;;  %v2308_v7 = vpop.f32.mrb[77].mxu0 }
 0x245   : > { %v2309_v4 = vadd.f32 %v24785_v26, %v2308_v7  ;;  %20659 = vmatprep.mubr.msk.f32.mxu1 %vm2085_vm0, %v2417_v60  ;;  %v24854_v7 = vpop.permute.xlu0 %3252 }
 0x246   : > { %20660 = vmatmul.mubr.msk.f32.gmra.mrb[24].mxu1 %vm2085_vm0, %v2418_v55  ;;  %23410 = vset.pattern.permute.xlu1 %v30762_v48  ;;  %v24847_v51 = vpop.permute.xlu1 %3092  ;;  %v2420_v22 = vmax.f32 %v2314_v1, 0.0 }
 0x247   : > { %v2419_v9 = vmax.f32 %v2309_v4, 0.0  ;;  %v20611_v2 = vpop.f32.mrb[78].mxu0  ;;  %3336 = vperm.xlu1 %23410, %v24791_v28  }
 0x248   : > { %v2324_v13 = vadd.f32 %v20611_v2, %v24785_v26  ;;  %v2318_v12 = vpop.f32.mrb[79].mxu0  ;;  %v2800_v2 = vld [vmem:[%s24102_s11 + $0xe8] sm:$0xff] }
 0x249   : > { %v2319_v52 = vadd.f32 %v24785_v26, %v2318_v12  ;;  %20662 = vmatprep.mubr.msk.f32.mxu1 %vm2085_vm0, %v2419_v9  ;;  %v24864_v4 = vpop.permute.xlu0 %3260  ;;  %v23446_v9 = vld [vmem:[%s24102_s11 + $0xe0] sm:$0xff]  ;;  %s30927_s11 = sld [smem:[#allocation14_spill]] }
 0x24a   : > { %20663 = vmatmul.mubr.msk.f32.gmra.mrb[26].mxu1 %vm2085_vm0, %v2420_v22  ;;  %v2422_v28 = vmax.f32 %v2324_v13, 0.0 }
 0x24b   : > { %v2421_v60 = vmax.f32 %v2319_v52, 0.0  ;;  %23411 = vset.pattern.permute.xlu1 %v30763_v56  ;;  %v24857_v55 = vpop.permute.xlu1 %2877 }
 0x24c   : > { %3148 = vperm.xlu1 %23411, %v2798_v35  }
 0x24d   : > { %20665 = vmatprep.mubr.msk.f32.mxu1 %vm2085_vm0, %v2421_v60  ;;  %v24872_v60 = vpop.permute.xlu0 %3268 }
 0x24e   : > { %20666 = vmatmul.mubr.msk.f32.gmra.mrb[28].mxu1 %vm2085_vm0, %v2422_v28 }
 0x24f   : > { %v24861_v1 = vpop.permute.xlu1 %2882 }
 0x250   : > { %23412 = vset.pattern.permute.xlu1 %v30761_v57 }
 0x251   : > { %2947 = vperm.xlu1 %23412, %v23446_v9   ;;  %v24879_v9 = vpop.permute.xlu0 %3276 }
 0x253   : > { %v20614_v22 = vpop.f32.mrb[80].mxu0 }
 0x254   : > { %v2334_v12 = vadd.f32 %v20614_v22, %v24785_v26  ;;  %v24869_v52 = vpop.permute.xlu1 %3288  ;;  %v2328_v13 = vpop.f32.mrb[81].mxu0 }
 0x255   : > { %v2329_v34 = vadd.f32 %v24785_v26, %v2328_v13  ;;  %2952 = vperm.xlu1 %23412, %v2800_v2  }
 0x256   : > { %v2424_v46 = vmax.f32 %v2334_v12, 0.0 }
 0x257   : > { %v2423_v28 = vmax.f32 %v2329_v34, 0.0 }
 0x259   : > { %23413 = vset.pattern.permute.xlu1 %v30762_v48  ;;  %v24875_v29 = vpop.permute.xlu1 %3100  ;;  %20668 = vmatprep.mubr.msk.f32.mxu1 %vm2085_vm0, %v2423_v28 }
 0x25a   : > { %3344 = vperm.xlu1 %23413, %v2798_v35   ;;  %20669 = vmatmul.mubr.msk.f32.gmra.mrb[30].mxu1 %vm2085_vm0, %v2424_v46  ;;  %v24890_v46 = vpop.permute.xlu0 %3284 }
 0x25d   : > { %v20617_v22 = vpop.f32.mrb[0].mxu1 }
 0x25e   : > { %v2344_v3 = vadd.f32 %v20617_v22, %v24785_v26  ;;  %23414 = vset.pattern.permute.xlu1 %v30763_v56  ;;  %v24883_v13 = vpop.permute.xlu1 %2887  ;;  %v2338_v34 = vpop.f32.mrb[1].mxu1 }
 0x25f   : > { %v2339_v12 = vadd.f32 %v24785_v26, %v2338_v34  ;;  %3156 = vperm.xlu1 %23414, %v2800_v2   ;;  %v24897_v28 = vpop.permute.xlu0 %3292 }
 0x260   : > { %v2426_v44 = vmax.f32 %v2344_v3, 0.0 }
 0x261   : > { %v2425_v30 = vmax.f32 %v2339_v12, 0.0 }
 0x262   : > { %v24886_v0 = vpop.permute.xlu1 %2892 }
 0x263   : > { %30764 = vst [vmem:[#allocation57_spill] sm:$0xff] %v24886_v0  ;;  %23415 = vset.pattern.permute.xlu1 %v30761_v57  ;;  %20671 = vmatprep.mubr.msk.f32.mxu1 %vm2085_vm0, %v2425_v30  ;;  %v24904_v27 = vpop.permute.xlu0 %3300 }
 0x264   : > { %2957 = vperm.xlu1 %23415, %v24634_v18   ;;  %20672 = vmatmul.mubr.msk.f32.gmra.mrb[32].mxu1 %vm2085_vm0, %v2426_v44  ;;  %30767 = vst [vmem:[#allocation60_spill] sm:$0xff] %v24904_v27 }
 0x267   : > { %v24894_v35 = vpop.permute.xlu1 %3296 }
 0x268   : > { %30765 = vst [vmem:[#allocation58_spill] sm:$0xff] %v24894_v35  ;;  %2962 = vperm.xlu1 %23415, %v24699_v45  }
 0x26b   : > { %v20620_v22 = vpop.f32.mrb[2].mxu1 }
 0x26c   : > { %v2354_v3 = vadd.f32 %v20620_v22, %v24785_v26  ;;  %23417 = vset.pattern.permute.xlu1 %v30762_v48  ;;  %v24901_v30 = vpop.permute.xlu1 %3108  ;;  %v2348_v34 = vpop.f32.mrb[3].mxu1 }
 0x26d   : > { %30766 = vst [vmem:[#allocation59_spill] sm:$0xff] %v24901_v30  ;;  %v2349_v12 = vadd.f32 %v24785_v26, %v2348_v34  ;;  %3352 = vperm.xlu1 %23417, %v2800_v2   ;;  %v24918_v2 = vpop.permute.xlu0 %3308 }
 0x26e   : > { %v2428_v19 = vmax.f32 %v2354_v3, 0.0  ;;  %30769 = vst [vmem:[#allocation62_spill] sm:$0xff] %v24918_v2 }
 0x26f   : > { %v2427_v44 = vmax.f32 %v2349_v12, 0.0  ;;  %v24925_v12 = vld [vmem:[%s24916_s28] sm:$0xff] }
 0x270   : > { %30770 = vst [vmem:[#allocation63_spill] sm:$0xff] %v24925_v12 }
 0x271   : > { %23418 = vset.pattern.permute.xlu1 %v30763_v56  ;;  %v24907_v58 = vpop.permute.xlu1 %2897  ;;  %20674 = vmatprep.mubr.msk.f32.mxu1 %vm2085_vm0, %v2427_v44 }
 0x272   : > { %3164 = vperm.xlu1 %23418, %v24699_v45   ;;  %20675 = vmatmul.mubr.msk.f32.gmra.mrb[34].mxu1 %vm2085_vm0, %v2428_v19 }
 0x275   : > { %v24912_v22 = vpop.permute.xlu1 %2902  ;;  %v20623_v36 = vpop.f32.mrb[4].mxu1 }
 0x276   : > { %30768 = vst [vmem:[#allocation61_spill] sm:$0xff] %v24912_v22  ;;  %v2364_v3 = vadd.f32 %v20623_v36, %v24785_v26  ;;  %23419 = vset.pattern.permute.xlu1 %v30762_v48  ;;  %v2358_v34 = vpop.f32.mrb[5].mxu1  ;;  %v24931_v36 = vpop.permute.xlu0 %3316 }
 0x277   : > { %v2359_v45 = vadd.f32 %v24785_v26, %v2358_v34  ;;  %3356 = vperm.xlu1 %23419, %v24634_v18   ;;  %30772 = vst [vmem:[#allocation65_spill] sm:$0xff] %v24931_v36  ;;  %v24936_v34 = vld [vmem:[%s24916_s28 + $0x8] sm:$0xff]  ;;  %v24939_v18 = vld [vmem:[%s24916_s28 + $0x10] sm:$0xff]  ;;  %v24960_v36 = vld [vmem:[%s24916_s28 + $0x20] sm:$0xff] }
 0x278   : > { %v2430_v44 = vmax.f32 %v2364_v3, 0.0  ;;  %30773 = vst [vmem:[#allocation66_spill] sm:$0xff] %v24939_v18  ;;  %4716 = vperm.xlu0 %23422, %v24939_v18   ;;  %30779 = vst [vmem:[#allocation72_spill] sm:$0xff] %v24960_v36 }
 0x279   : > { %v2429_v19 = vmax.f32 %v2359_v45, 0.0  ;;  %v24945_v45 = vld [vmem:[%s24916_s28 + $0x28] sm:$0xff] }
 0x27a   : > { %v24927_v8 = vpop.permute.xlu1 %3304  ;;  %30775 = vst [vmem:[#allocation68_spill] sm:$0xff] %v24945_v45 }
 0x27b   : > { %30771 = vst [vmem:[#allocation64_spill] sm:$0xff] %v24927_v8  ;;  %20677 = vmatprep.mubr.msk.f32.mxu1 %vm2085_vm0, %v2429_v19  ;;  %23421 = vset.pattern.permute.xlu1 %v30763_v56  ;;  %v24949_v56 = vld [vmem:[%s24916_s28 + $0x18] sm:$0xff]  ;;  %v24951_v19 = vpop.permute.xlu0 %3324 }
 0x27c   : > { %20678 = vmatmul.mubr.msk.f32.gmra.mrb[36].mxu1 %vm2085_vm0, %v2430_v44  ;;  %4710 = vperm.xlu1 %23421, %v24925_v12   ;;  %30776 = vst [vmem:[#allocation69_spill] sm:$0xff] %v24949_v56  ;;  %30777 = vst [vmem:[#allocation70_spill] sm:$0xff] %v24951_v19  ;;  %v24963_v8 = vld [vmem:[%s24916_s28 + $0x38] sm:$0xff]  ;;  %v25044_v12 = vld [vmem:[%s24916_s28 + $0x80] sm:$0xff] }
 0x27d   : > { %4725 = vperm.xlu0 %23422, %v24945_v45   ;;  %30780 = vst [vmem:[#allocation73_spill] sm:$0xff] %v24963_v8  ;;  %30802 = vst [vmem:[#allocation92_spill] sm:$0xff] %v25044_v12 }
 0x27f   : > { %v24942_v3 = vpop.permute.xlu1 %3116  ;;  %v24966_v45 = vpop.permute.xlu0 %3332 }
 0x280   : > { %30774 = vst [vmem:[#allocation67_spill] sm:$0xff] %v24942_v3  ;;  %4713 = vperm.xlu1 %23421, %v24936_v34   ;;  %30781 = vst [vmem:[#allocation74_spill] sm:$0xff] %v24966_v45  ;;  %v24984_v45 = vld [vmem:[%s24916_s28 + $0x40] sm:$0xff] }
 0x281   : > { %4731 = vperm.xlu0 %23422, %v24963_v8   ;;  %30786 = vst [vmem:[#allocation79_spill] sm:$0xff] %v24984_v45 }
 0x283   : > { %v20626_v44 = vpop.f32.mrb[6].mxu1  ;;  %v24986_v8 = vpop.permute.xlu0 %3340 }
 0x284   : > { %v2374_v37 = vadd.f32 %v20626_v44, %v24785_v26  ;;  %v24955_v41 = vpop.permute.xlu1 %2907  ;;  %v2368_v48 = vpop.f32.mrb[7].mxu1  ;;  %4719 = vperm.xlu1 %23421, %v24949_v56   ;;  %v24973_v56 = vld [vmem:[%s24916_s28 + $0x30] sm:$0xff]  ;;  %30787 = vst [vmem:[#allocation80_spill] sm:$0xff] %v24986_v8 }
 0x285   : > { %30778 = vst [vmem:[#allocation71_spill] sm:$0xff] %v24955_v41  ;;  %v2369_v3 = vadd.f32 %v24785_v26, %v2368_v48  ;;  %30783 = vst [vmem:[#allocation76_spill] sm:$0xff] %v24973_v56  ;;  %v24977_v48 = vld [vmem:[%s24916_s28 + $0x48] sm:$0xff] }
 0x286   : > { %v2432_v44 = vmax.f32 %v2374_v37, 0.0  ;;  %30784 = vst [vmem:[#allocation77_spill] sm:$0xff] %v24977_v48  ;;  %4737 = vperm.xlu0 %23422, %v24977_v48  }
 0x287   : > { %v2431_v19 = vmax.f32 %v2369_v3, 0.0  ;;  %v25005_v30 = vpop.permute.xlu0 %3348 }
 0x288   : > { %v24968_v22 = vpop.permute.xlu1 %2912  ;;  %4722 = vperm.xlu1 %23421, %v24960_v36   ;;  %30792 = vst [vmem:[#allocation85_spill] sm:$0xff] %v25005_v30 }
 0x289   : > { %30782 = vst [vmem:[#allocation75_spill] sm:$0xff] %v24968_v22  ;;  %20680 = vmatprep.mubr.msk.f32.mxu1 %vm2085_vm0, %v2431_v19 }
 0x28a   : > { %20681 = vmatmul.mubr.msk.f32.gmra.mrb[38].mxu1 %vm2085_vm0, %v2432_v44  ;;  %v24990_v44 = vld [vmem:[%s24916_s28 + $0x58] sm:$0xff] }
 0x28b   : > { %30788 = vst [vmem:[#allocation81_spill] sm:$0xff] %v24990_v44  ;;  %4743 = vperm.xlu0 %23422, %v24990_v44   ;;  %v3049_v30 = vpop.permute.xlu0 %3048 }
 0x28c   : > { %4728 = vperm.xlu1 %23421, %v24973_v56   ;;  %v24996_v56 = vld [vmem:[%s24916_s28 + $0x50] sm:$0xff] }
 0x28d   : > { %v24981_v3 = vpop.permute.xlu1 %3312  ;;  %v20629_v37 = vpop.f32.mrb[8].mxu1  ;;  %30789 = vst [vmem:[#allocation82_spill] sm:$0xff] %v24996_v56 }
 0x28e   : > { %30785 = vst [vmem:[#allocation78_spill] sm:$0xff] %v24981_v3  ;;  %v2384_v19 = vadd.f32 %v20629_v37, %v24785_v26  ;;  %v2378_v22 = vpop.f32.mrb[9].mxu1  ;;  %v25001_v37 = vld [vmem:[%s24916_s28 + $0x68] sm:$0xff] }
 0x28f   : > { %v2379_v48 = vadd.f32 %v24785_v26, %v2378_v22  ;;  %30791 = vst [vmem:[#allocation84_spill] sm:$0xff] %v25001_v37  ;;  %4749 = vperm.xlu0 %23422, %v25001_v37   ;;  %v25010_v22 = vld [vmem:[%s24916_s28 + $0x60] sm:$0xff]  ;;  %v30797_v37 = vsub.s32 0, %v24349_v10  ;;  %v3057_v41 = vpop.permute.xlu0 %3056 }
 0x290   : > { %4734 = vperm.xlu1 %23421, %v24984_v45   ;;  %v2434_v18 = vmax.f32 %v2384_v19, 0.0  ;;  %30793 = vst [vmem:[#allocation86_spill] sm:$0xff] %v25010_v22  ;;  %v2803_v19 = vld [vmem:[%s23723_s30] sm:$0x7] }
 0x291   : > { %v2433_v3 = vmax.f32 %v2379_v48, 0.0  ;;  %v25013_v48 = vld [vmem:[%s24916_s28 + $0x78] sm:$0xff] }
 0x292   : > { %v24998_v8 = vpop.permute.xlu1 %3124  ;;  %30794 = vst [vmem:[#allocation87_spill] sm:$0xff] %v25013_v48 }
 0x293   : > { %30790 = vst [vmem:[#allocation83_spill] sm:$0xff] %v24998_v8  ;;  %20683 = vmatprep.mubr.msk.f32.mxu1 %vm2085_vm0, %v2433_v3  ;;  %4755 = vperm.xlu0 %23422, %v25013_v48   ;;  %v25021_v3 = vld [vmem:[%s24916_s28 + $0x70] sm:$0xff]  ;;  %v3365_v8 = vsub.s32 2, %v24349_v10 }
 0x294   : > { %20684 = vmatmul.mubr.msk.f32.gmra.mrb[40].mxu1 %vm2085_vm0, %v2434_v18  ;;  %4740 = vperm.xlu1 %23421, %v24996_v56   ;;  %30796 = vst [vmem:[#allocation89_spill] sm:$0xff] %v25021_v3  ;;  %v25025_v18 = vrot.slane %v2803_v19, %v30797_v37  ;;  %v25028_v56 = vld [vmem:[%s24916_s28 + $0x88] sm:$0xff]  ;;  %v30801_v37 = vsub.s32 1, %v24349_v10 }
 0x295   : > { %30799 = vst [vmem:[#allocation90_spill] sm:$0xff] %v25028_v56 }
 0x296   : > { %v2971_v48 = vmul.f32 %v25025_v18, %v24817_v32  ;;  %v25040_v36 = vrot.slane %v2803_v19, %v30801_v37  ;;  %v2970_v32 = vmul.f32 %v25025_v18, %v24802_v5  ;;  %v2969_v10 = vmul.f32 %v25025_v18, %v24667_v40  ;;  %v25068_v40 = vld [vmem:[%s24916_s28 + $0x90] sm:$0xff]  ;;  %v25074_v5 = vld [vmem:[%s24916_s28 + $0xa8] sm:$0xff] }
 0x297   : > { %v25016_v44 = vpop.permute.xlu1 %2917  ;;  %4761 = vperm.xlu0 %23422, %v25028_v56   ;;  %v25050_v56 = vld [vmem:[%s30798_s6] ss:$0 sm:$0xff]  ;;  %30804 = vst [vmem:[#allocation94_spill] sm:$0xff] %v25068_v40  ;;  %30805 = vst [vmem:[#allocation95_spill] sm:$0xff] %v25074_v5  ;;  %s31484_s6 = sand.u32 1, %s23597_s16  }
 0x298   : > { %30795 = vst [vmem:[#allocation88_spill] sm:$0xff] %v25016_v44  ;;  %4746 = vperm.xlu1 %23421, %v25010_v22  }
 0x29b   : > { %v25031_v45 = vpop.permute.xlu1 %2922  ;;  %v20632_v44 = vpop.f32.mrb[10].mxu1 }
 0x29c   : > { %30800 = vst [vmem:[#allocation91_spill] sm:$0xff] %v25031_v45  ;;  %v2394_v22 = vadd.f32 %v20632_v44, %v24785_v26  ;;  %v2388_v2 = vpop.f32.mrb[11].mxu1  ;;  %4752 = vperm.xlu1 %23421, %v25021_v3   ;;  %v25047_v45 = vld [vmem:[%s24916_s28 + $0x98] sm:$0xff]  ;;  %v25054_v44 = vrot.slane %v2803_v19, %v3365_v8  ;;  %v3173_v3 = vmul.f32 %v25040_v36, %v3049_v30 }
 0x29d   : > { %v2389_v0 = vadd.f32 %v24785_v26, %v2388_v2  ;;  %30803 = vst [vmem:[#allocation93_spill] sm:$0xff] %v25047_v45  ;;  %4767 = vperm.xlu0 %23422, %v25047_v45   ;;  %v3009_v2 = vadd.f32 %v25050_v56, %v2971_v48  ;;  %v3171_v8 = vmul.f32 %v25040_v36, %v24673_v47 }
 0x29e   : > { %v2436_v35 = vmax.f32 %v2394_v22, 0.0  ;;  %v3008_v30 = vadd.f32 %v25050_v56, %v2970_v32  ;;  %v3007_v22 = vadd.f32 %v25050_v56, %v2969_v10  ;;  %v3367_v47 = vmul.f32 %v25054_v44, %v24683_v15  ;;  %v25089_v32 = vld [vmem:[%s24916_s28 + $0xb8] sm:$0xff] }
 0x29f   : > { %v2435_v37 = vmax.f32 %v2389_v0, 0.0  ;;  %v2973_v0 = vmul.f32 %v25025_v18, %v24705_v53  ;;  %v2972_v48 = vmul.f32 %v25025_v18, %v24831_v43  ;;  %v3369_v53 = vmul.f32 %v25054_v44, %v24841_v33 }
 0x2a0   : > { %v25061_v27 = vpop.permute.xlu1 %3320  ;;  %4758 = vperm.xlu1 %23421, %v25044_v12   ;;  %v3205_v19 = vadd.f32 %v3173_v3, %v3009_v2  ;;  %v3203_v10 = vadd.f32 %v3171_v8, %v3007_v22  ;;  %v3368_v43 = vmul.f32 %v25054_v44, %v24689_v42  ;;  %v2975_v8 = vmul.f32 %v25025_v18, %v24729_v21 }
 0x2a1   : > { %20686 = vmatprep.mubr.msk.f32.mxu1 %vm2085_vm0, %v2435_v37  ;;  %4773 = vperm.xlu0 %23422, %v25074_v5   ;;  %v3065_v37 = vpop.permute.xlu0 %3064  ;;  %v25094_v5 = vld [vmem:[%s24916_s28 + $0xa0] sm:$0xff]  ;;  %v3011_v33 = vadd.f32 %v25050_v56, %v2973_v0  ;;  %v3010_v12 = vadd.f32 %v25050_v56, %v2972_v48  ;;  %v3174_v42 = vmul.f32 %v25040_v36, %v24696_v39  ;;  %v25118_v48 = vld [vmem:[%s24916_s28 + $0xb0] sm:$0xff] }
 0x2a2   : > { %20687 = vmatmul.mubr.msk.f32.gmra.mrb[42].mxu1 %vm2085_vm0, %v2436_v35  ;;  %v3172_v35 = vmul.f32 %v25040_v36, %v24678_v49  ;;  %v3175_v49 = vmul.f32 %v25040_v36, %v3057_v41  ;;  %v3401_v0 = vadd.f32 %v3369_v53, %v3205_v19  ;;  %v25110_v41 = vld [vmem:[%s24916_s28 + $0xc8] sm:$0xff]  ;;  %v2974_v21 = vmul.f32 %v25025_v18, %v24710_v61 }
 0x2a3   : > { %v3370_v39 = vmul.f32 %v25054_v44, %v24717_v14  ;;  %v3013_v61 = vadd.f32 %v25050_v56, %v2975_v8  ;;  %v3373_v14 = vmul.f32 %v25054_v44, %v24864_v4  ;;  %v25144_v4 = vld [vmem:[%s24916_s28 + $0xc0] sm:$0xff] }
 0x2a4   : > { %4764 = vperm.xlu1 %23421, %v25068_v40   ;;  %v3399_v40 = vadd.f32 %v3367_v47, %v3203_v10  ;;  %v3371_v47 = vmul.f32 %v25054_v44, %v24854_v7  ;;  %v3176_v7 = vmul.f32 %v25040_v36, %v24722_v16  ;;  %v3012_v16 = vadd.f32 %v25050_v56, %v2974_v21 }
 0x2a5   : > { %v25091_v45 = vpop.permute.xlu1 %3132  ;;  %v20635_v15 = vpop.f32.mrb[12].mxu1  ;;  %4779 = vperm.xlu0 %23422, %v25089_v32  }
 0x2a6   : > { %30806 = vst [vmem:[#allocation96_spill] sm:$0xff] %v25091_v45  ;;  %v2404_v3 = vadd.f32 %v20635_v15, %v24785_v26  ;;  %v2398_v2 = vpop.f32.mrb[13].mxu1  ;;  %v3204_v45 = vadd.f32 %v3172_v35, %v3008_v30  ;;  %v3073_v10 = vpop.permute.xlu0 %3072  ;;  %v3207_v35 = vadd.f32 %v3175_v49, %v3011_v33  ;;  %v2979_v33 = vmul.f32 %v25025_v18, %v24778_v38 }
 0x2a7   : > { %v2399_v22 = vadd.f32 %v24785_v26, %v2398_v2  ;;  %v3177_v26 = vmul.f32 %v25040_v36, %v3065_v37  ;;  %v3431_v2 = vmax.f32 %v3399_v40, 0.0  ;;  %v2977_v37 = vmul.f32 %v25025_v18, %v24755_v31 }
 0x2a8   : > { %4770 = vperm.xlu1 %23421, %v25094_v5   ;;  %v3400_v30 = vadd.f32 %v3368_v43, %v3204_v45  ;;  %v2438_v53 = vmax.f32 %v2404_v3, 0.0  ;;  %v3206_v45 = vadd.f32 %v3174_v42, %v3010_v12  ;;  %v3433_v43 = vmax.f32 %v3401_v0, 0.0 }
 0x2a9   : > { %v2437_v15 = vmax.f32 %v2399_v22, 0.0  ;;  %4785 = vperm.xlu0 %23422, %v25110_v41   ;;  %v2976_v40 = vmul.f32 %v25025_v18, %v24735_v62  ;;  %v3372_v31 = vmul.f32 %v25054_v44, %v24745_v24  ;;  %v3403_v3 = vadd.f32 %v3371_v47, %v3207_v35  ;;  %v25150_v62 = vld [vmem:[%s24916_s28 + $0xd8] sm:$0xff]  ;;  %v25160_v47 = vld [vmem:[%s24916_s28 + $0xe8] sm:$0xff] }
 0x2aa   : > { %v25122_v19 = vpop.permute.xlu1 %2927  ;;  %v3081_v49 = vpop.permute.xlu0 %3080  ;;  %v3432_v12 = vmax.f32 %v3400_v30, 0.0  ;;  %v3402_v8 = vadd.f32 %v3370_v39, %v3206_v45  ;;  %v3179_v22 = vmul.f32 %v25040_v36, %v3073_v10  ;;  %v3208_v24 = vadd.f32 %v3176_v7, %v3012_v16  ;;  %v25168_v39 = vld [vmem:[%s24916_s28 + $0xd0] sm:$0xff] }
 0x2ab   : > { %20689 = vmatprep.mubr.msk.f32.mxu1 %vm2085_vm0, %v2437_v15  ;;  %v3209_v0 = vadd.f32 %v3177_v26, %v3013_v61  ;;  %v3178_v38 = vmul.f32 %v25040_v36, %v24750_v59  ;;  %v3015_v21 = vadd.f32 %v25050_v56, %v2977_v37  ;;  %v3181_v15 = vmul.f32 %v25040_v36, %v3081_v49 }
 0x2ac   : > { %20690 = vmatmul.mubr.msk.f32.gmra.mrb[44].mxu1 %vm2085_vm0, %v2438_v53  ;;  %4776 = vperm.xlu1 %23421, %v25118_v48   ;;  %v3014_v10 = vadd.f32 %v25050_v56, %v2976_v40  ;;  %v3404_v30 = vadd.f32 %v3372_v31, %v3208_v24  ;;  %v3374_v26 = vmul.f32 %v25054_v44, %v24766_v23  ;;  %v3435_v37 = vmax.f32 %v3403_v3, 0.0 }
 0x2ad   : > { %20700 = vmatprep.mubr.msk.f32.mxu1 %vm2085_vm0, %v3431_v2  ;;  %4791 = vperm.xlu0 %23422, %v25150_v62   ;;  %v3017_v59 = vadd.f32 %v25050_v56, %v2979_v33  ;;  %v3375_v53 = vmul.f32 %v25054_v44, %v24872_v60  ;;  %v3434_v2 = vmax.f32 %v3402_v8, 0.0  ;;  %v2978_v7 = vmul.f32 %v25025_v18, %v24759_v50  ;;  %v25186_v50 = vld [vmem:[%s24916_s28 + $0xf8] sm:$0xff] }
 0x2ae   : > { %v25147_v42 = vpop.permute.xlu1 %2932  ;;  %v3089_v35 = vpop.permute.xlu0 %3088  ;;  %v2981_v61 = vmul.f32 %v25025_v18, %v24815_v25  ;;  %v3405_v23 = vadd.f32 %v3373_v14, %v3209_v0  ;;  %v3210_v45 = vadd.f32 %v3178_v38, %v3014_v10  ;;  %v3211_v16 = vadd.f32 %v3179_v22, %v3015_v21 }
 0x2af   : > { %v3180_v60 = vmul.f32 %v25040_v36, %v24773_v17  ;;  %v3436_v25 = vmax.f32 %v3404_v30, 0.0  ;;  %v3213_v31 = vadd.f32 %v3181_v15, %v3017_v59  ;;  %v3183_v33 = vmul.f32 %v25040_v36, %v3089_v35 }
 0x2b0   : > { %20701 = vmatmul.mubr.msk.f32.vlgmr.msra.gmra.mrb[46].mxu1 %vm2085_vm0, %v3432_v12  ;;  %4782 = vperm.xlu1 %23421, %v25144_v4   ;;  %v3406_v14 = vadd.f32 %v3374_v26, %v3210_v45  ;;  %v25191_v12 = vld [vmem:[%s24916_s28 + $0xe0] sm:$0xff]  ;;  %v2980_v17 = vmul.f32 %v25025_v18, %v24782_v54  ;;  %v3376_v3 = vmul.f32 %v25054_v44, %v24796_v6  ;;  %v3437_v22 = vmax.f32 %v3405_v23, 0.0 }
 0x2b1   : > { %20703 = vmatprep.mubr.msk.f32.mxu1 %vm2085_vm0, %v3433_v43  ;;  %4797 = vperm.xlu0 %23422, %v25160_v47   ;;  %v3377_v43 = vmul.f32 %v25054_v44, %v24879_v9  ;;  %v3016_v9 = vadd.f32 %v25050_v56, %v2978_v7  ;;  %v3019_v8 = vadd.f32 %v25050_v56, %v2981_v61 }
 0x2b2   : > { %v3097_v49 = vpop.permute.xlu0 %3096  ;;  %v3407_v24 = vadd.f32 %v3375_v53, %v3211_v16  ;;  %v2983_v0 = vmul.f32 %v25025_v18, %v24857_v55  ;;  %v3379_v38 = vmul.f32 %v25054_v44, %v24890_v46  ;;  %v3182_v54 = vmul.f32 %v25040_v36, %v24806_v11  ;;  %v25215_v46 = vld [vmem:[%s24916_s28 + $0xf0] sm:$0xff] }
 0x2b3   : > { %v25176_v40 = vpop.permute.xlu1 %3328  ;;  %v3212_v21 = vadd.f32 %v3180_v60, %v3016_v9  ;;  %v3438_v6 = vmax.f32 %v3406_v14, 0.0  ;;  %v3409_v10 = vadd.f32 %v3377_v43, %v3213_v31  ;;  %v2982_v55 = vmul.f32 %v25025_v18, %v24824_v20  ;;  %v30807_v9 = vld [vmem:[#allocation60_spill] sm:$0xff] }
 0x2b4   : > { %20704 = vmatmul.mubr.msk.f32.gmra.mrb[48].mxu1 %vm2085_vm0, %v3434_v2  ;;  %4788 = vperm.xlu1 %23421, %v25168_v39   ;;  %v3185_v30 = vmul.f32 %v25040_v36, %v3097_v49  ;;  %v3018_v11 = vadd.f32 %v25050_v56, %v2980_v17  ;;  %v3215_v35 = vadd.f32 %v3183_v33, %v3019_v8  ;;  %v3439_v2 = vmax.f32 %v3407_v24, 0.0  ;;  %v30809_v24 = vld [vmem:[#allocation71_spill] sm:$0xff] }
 0x2b5   : > { %20706 = vmatprep.mubr.msk.f32.mxu1 %vm2085_vm0, %v3435_v37  ;;  %4803 = vperm.xlu0 %23422, %v25186_v50   ;;  %v3408_v59 = vadd.f32 %v3376_v3, %v3212_v21  ;;  %v3378_v53 = vmul.f32 %v25054_v44, %v24837_v63  ;;  %v3184_v7 = vmul.f32 %v25040_v36, %v24847_v51  ;;  %v3441_v63 = vmax.f32 %v3409_v10, 0.0  ;;  %v30810_v21 = vld [vmem:[#allocation63_spill] sm:$0xff] }
 0x2b6   : > { %v3105_v26 = vpop.permute.xlu0 %3104  ;;  %v3021_v20 = vadd.f32 %v25050_v56, %v2983_v0  ;;  %v2985_v61 = vmul.f32 %v25025_v18, %v24883_v13  ;;  %v3381_v37 = vmul.f32 %v25054_v44, %v24897_v28  ;;  %v3214_v23 = vadd.f32 %v3182_v54, %v3018_v11 }
 0x2b7   : > { %v2984_v45 = vmul.f32 %v25025_v18, %v24861_v1  ;;  %v3020_v51 = vadd.f32 %v25050_v56, %v2982_v55  ;;  %v3380_v16 = vmul.f32 %v25054_v44, %v24869_v52  ;;  %v3187_v13 = vmul.f32 %v25040_v36, %v3105_v26 }
 0x2b8   : > { %v25206_v15 = vpop.permute.xlu1 %3140  ;;  %20707 = vmatmul.mubr.msk.f32.gmra.mrb[50].mxu1 %vm2085_vm0, %v3436_v25  ;;  %4794 = vperm.xlu1 %23421, %v25191_v12   ;;  %v3440_v1 = vmax.f32 %v3408_v59, 0.0  ;;  %v3411_v28 = vadd.f32 %v3379_v38, %v3215_v35  ;;  %v3410_v25 = vadd.f32 %v3378_v53, %v3214_v23  ;;  %v2987_v14 = vmul.f32 %v25025_v18, %v24907_v58  ;;  %v30813_v53 = vld [vmem:[#allocation62_spill] sm:$0xff] }
 0x2b9   : > { %20709 = vmatprep.mubr.msk.f32.mxu1 %vm2085_vm0, %v3437_v22  ;;  %23424 = vset.pattern.permute.xlu0 %v30761_v57  ;;  %v3216_v31 = vadd.f32 %v3184_v7, %v3020_v51  ;;  %v3217_v33 = vadd.f32 %v3185_v30, %v3021_v20  ;;  %v3186_v52 = vmul.f32 %v25040_v36, %v24875_v29  ;;  %v30808_v22 = vld [vmem:[#allocation58_spill] sm:$0xff]  ;;  %v30812_v30 = vld [vmem:[#allocation72_spill] sm:$0xff]  ;;  %v30814_v7 = vld [vmem:[#allocation59_spill] sm:$0xff] }
 0x2ba   : > { %v3113_v43 = vpop.permute.xlu0 %3112  ;;  %4199 = vperm.xlu0 %23424, %v24936_v34   ;;  %v3023_v49 = vadd.f32 %v25050_v56, %v2985_v61  ;;  %v3383_v17 = vmul.f32 %v25054_v44, %v30807_v9  ;;  %v3022_v3 = vadd.f32 %v25050_v56, %v2984_v45  ;;  %v3382_v58 = vmul.f32 %v25054_v44, %v30808_v22 }
 0x2bb   : > { %v3412_v8 = vadd.f32 %v3380_v16, %v3216_v31  ;;  %v2989_v0 = vmul.f32 %v25025_v18, %v30809_v24  ;;  %v3442_v54 = vmax.f32 %v3410_v25, 0.0  ;;  %v3189_v55 = vmul.f32 %v25040_v36, %v3113_v43  ;;  %v30816_v43 = vld [vmem:[#allocation61_spill] sm:$0xff]  ;;  %v30818_v31 = vld [vmem:[#allocation76_spill] sm:$0xff] }
 0x2bc   : > { %20710 = vmatmul.mubr.msk.f32.gmra.mrb[52].mxu1 %vm2085_vm0, %v3438_v6  ;;  %4800 = vperm.xlu1 %23421, %v25215_v46   ;;  %v30811_v6 = vld [vmem:[#allocation57_spill] sm:$0xff]  ;;  %v3443_v26 = vmax.f32 %v3411_v28, 0.0  ;;  %v3413_v11 = vadd.f32 %v3381_v37, %v3217_v33  ;;  %v3218_v59 = vadd.f32 %v3186_v52, %v3022_v3  ;;  %v3219_v35 = vadd.f32 %v3187_v13, %v3023_v49  ;;  %v30815_v37 = vld [vmem:[#allocation66_spill] sm:$0xff]  ;;  %v30817_v28 = vld [vmem:[#allocation64_spill] sm:$0xff] }
 0x2bd   : > { %v25236_v60 = vpop.permute.xlu1 %2937  ;;  %20712 = vmatprep.mubr.msk.f32.mxu1 %vm2085_vm0, %v3439_v2  ;;  %v2986_v10 = vmul.f32 %v25025_v18, %v30811_v6  ;;  %v3385_v2 = vmul.f32 %v25054_v44, %v30813_v53  ;;  %v3188_v20 = vmul.f32 %v25040_v36, %v30814_v7  ;;  %v3444_v61 = vmax.f32 %v3412_v8, 0.0  ;;  %v30819_v49 = vld [vmem:[#allocation88_spill] sm:$0xff]  ;;  %v30820_v3 = vld [vmem:[#allocation65_spill] sm:$0xff]  ;;  %v30825_v53 = vld [vmem:[#allocation79_spill] sm:$0xff] }
 0x2be   : > { %v3121_v38 = vpop.permute.xlu0 %3120  ;;  %4208 = vperm.xlu0 %23424, %v30812_v30   ;;  %v3414_v23 = vadd.f32 %v3382_v58, %v3218_v59  ;;  %v3027_v45 = vadd.f32 %v25050_v56, %v2989_v0  ;;  %v3384_v25 = vmul.f32 %v25054_v44, %v30817_v28  ;;  %v3445_v33 = vmax.f32 %v3413_v11, 0.0  ;;  %v30821_v58 = vld [vmem:[#allocation67_spill] sm:$0xff]  ;;  %v30824_v59 = vld [vmem:[#allocation78_spill] sm:$0xff] }
 0x2bf   : > { %v3024_v16 = vadd.f32 %v25050_v56, %v2986_v10  ;;  %v3415_v52 = vadd.f32 %v3383_v17, %v3219_v35  ;;  %v2991_v9 = vmul.f32 %v25025_v18, %v30819_v49  ;;  %v3387_v8 = vmul.f32 %v25054_v44, %v30820_v3  ;;  %v30829_v49 = vld [vmem:[#allocation82_spill] sm:$0xff] }
 0x2c0   : > { %20713 = vmatmul.mubr.msk.f32.gmra.mrb[54].mxu1 %vm2085_vm0, %v3440_v1  ;;  %23423 = vset.pattern.permute.xlu1 %v30761_v57  ;;  %v3025_v57 = vadd.f32 %v25050_v56, %v2987_v14  ;;  %v2988_v1 = vmul.f32 %v25025_v18, %v30816_v43  ;;  %v3190_v24 = vmul.f32 %v25040_v36, %v30821_v58  ;;  %v3446_v0 = vmax.f32 %v3414_v23, 0.0 }
 0x2c1   : > { %v25254_v29 = vpop.permute.xlu1 %2942  ;;  %20715 = vmatprep.mubr.msk.f32.mxu1 %vm2085_vm0, %v3441_v63  ;;  %4196 = vperm.xlu1 %23423, %v30810_v21   ;;  %v3191_v63 = vmul.f32 %v25040_v36, %v3121_v38  ;;  %v3220_v22 = vadd.f32 %v3188_v20, %v3024_v16  ;;  %v3386_v35 = vmul.f32 %v25054_v44, %v30824_v59  ;;  %v3447_v7 = vmax.f32 %v3415_v52, 0.0  ;;  %v30826_v20 = vld [vmem:[#allocation83_spill] sm:$0xff]  ;;  %v30833_v59 = vld [vmem:[#allocation86_spill] sm:$0xff] }
 0x2c2   : > { %v3129_v51 = vpop.permute.xlu0 %3128  ;;  %v3221_v13 = vadd.f32 %v3189_v55, %v3025_v57  ;;  %4214 = vperm.xlu0 %23424, %v30818_v31   ;;  %v30823_v57 = vld [vmem:[#allocation69_spill] sm:$0xff]  ;;  %v3029_v23 = vadd.f32 %v25050_v56, %v2991_v9  ;;  %v3388_v43 = vmul.f32 %v25054_v44, %v25061_v27  ;;  %v30830_v27 = vld [vmem:[#allocation96_spill] sm:$0xff] }
 0x2c3   : > { %v3223_v38 = vadd.f32 %v3191_v63, %v3027_v45  ;;  %v3193_v10 = vmul.f32 %v25040_v36, %v3129_v51  ;;  %v3416_v11 = vadd.f32 %v3384_v25, %v3220_v22  ;;  %v2993_v45 = vmul.f32 %v25025_v18, %v25122_v19  ;;  %v30828_v19 = vld [vmem:[#allocation91_spill] sm:$0xff] }
 0x2c4   : > { %20716 = vmatmul.mubr.msk.f32.gmra.mrb[56].mxu1 %vm2085_vm0, %v3442_v54  ;;  %v30822_v54 = vld [vmem:[#allocation75_spill] sm:$0xff]  ;;  %v3417_v55 = vadd.f32 %v3385_v2, %v3221_v13  ;;  %v2992_v52 = vmul.f32 %v25025_v18, %v30828_v19  ;;  %v2995_v22 = vmul.f32 %v25025_v18, %v25236_v60  ;;  %v3194_v58 = vmul.f32 %v25040_v36, %v30830_v27 }
 0x2c5   : > { %20718 = vmatprep.mubr.msk.f32.mxu1 %vm2085_vm0, %v3443_v26  ;;  %4202 = vperm.xlu1 %23423, %v30815_v37   ;;  %v2990_v6 = vmul.f32 %v25025_v18, %v30822_v54  ;;  %v3026_v26 = vadd.f32 %v25050_v56, %v2988_v1  ;;  %v3419_v16 = vadd.f32 %v3387_v8, %v3223_v38  ;;  %v30827_v1 = vld [vmem:[#allocation68_spill] sm:$0xff]  ;;  %v3448_v25 = vmax.f32 %v3416_v11, 0.0 }
 0x2c6   : > { %v25277_v14 = vpop.permute.xlu1 %3336  ;;  %v3137_v17 = vpop.permute.xlu0 %3136  ;;  %4220 = vperm.xlu0 %23424, %v30825_v53   ;;  %v3449_v28 = vmax.f32 %v3417_v55, 0.0  ;;  %v3225_v3 = vadd.f32 %v3193_v10, %v3029_v23  ;;  %v3031_v8 = vadd.f32 %v25050_v56, %v2993_v45  ;;  %v3030_v55 = vadd.f32 %v25050_v56, %v2992_v52 }
 0x2c7   : > { %v3222_v51 = vadd.f32 %v3190_v24, %v3026_v26  ;;  %v3195_v2 = vmul.f32 %v25040_v36, %v3137_v17  ;;  %v3028_v13 = vadd.f32 %v25050_v56, %v2990_v6  ;;  %v3451_v54 = vmax.f32 %v3419_v16, 0.0  ;;  %v30832_v17 = vld [vmem:[#allocation73_spill] sm:$0xff] }
 0x2c8   : > { %20719 = vmatmul.mubr.msk.f32.gmra.mrb[58].mxu1 %vm2085_vm0, %v3444_v61  ;;  %v3192_v61 = vmul.f32 %v25040_v36, %v30826_v20  ;;  %v2994_v60 = vmul.f32 %v25025_v18, %v25147_v42  ;;  %v3390_v11 = vmul.f32 %v25054_v44, %v25176_v40  ;;  %v3033_v20 = vadd.f32 %v25050_v56, %v2995_v22  ;;  %v30834_v42 = vld [vmem:[#allocation74_spill] sm:$0xff] }
 0x2c9   : > { %20721 = vmatprep.mubr.msk.f32.mxu1 %vm2085_vm0, %v3445_v33  ;;  %4205 = vperm.xlu1 %23423, %v30823_v57   ;;  %v3418_v33 = vadd.f32 %v3386_v35, %v3222_v51  ;;  %v3226_v23 = vadd.f32 %v3194_v58, %v3030_v55  ;;  %v3196_v45 = vmul.f32 %v25040_v36, %v25206_v15  ;;  %v30837_v58 = vld [vmem:[#allocation80_spill] sm:$0xff] }
 0x2ca   : > { %4226 = vperm.xlu0 %23424, %v30829_v49   ;;  %v3224_v9 = vadd.f32 %v3192_v61, %v3028_v13  ;;  %v3145_v26 = vpop.permute.xlu0 %3144  ;;  %v3391_v16 = vmul.f32 %v25054_v44, %v30834_v42  ;;  %v3392_v15 = vmul.f32 %v25054_v44, %v25277_v14  ;;  %v30838_v14 = vld [vmem:[#allocation81_spill] sm:$0xff]  ;;  %v30839_v55 = vld [vmem:[#allocation92_spill] sm:$0xff]  ;;  %v30842_v42 = vld [vmem:[#allocation94_spill] sm:$0xff] }
 0x2cb   : > { %v3149_v63 = vpop.permute.xlu1 %3148  ;;  %v3450_v10 = vmax.f32 %v3418_v33, 0.0  ;;  %v3197_v40 = vmul.f32 %v25040_v36, %v3145_v26  ;;  %v30836_v33 = vld [vmem:[#allocation89_spill] sm:$0xff] }
 0x2cc   : > { %20722 = vmatmul.mubr.msk.f32.gmra.mrb[60].mxu1 %vm2085_vm0, %v3446_v0  ;;  %v30831_v0 = vld [vmem:[#allocation70_spill] sm:$0xff]  ;;  %v3420_v6 = vadd.f32 %v3388_v43, %v3224_v9  ;;  %v3032_v43 = vadd.f32 %v25050_v56, %v2994_v60  ;;  %v3198_v27 = vmul.f32 %v25040_v36, %v3149_v63 }
 0x2cd   : > { %20724 = vmatprep.mubr.msk.f32.mxu1 %vm2085_vm0, %v3447_v7  ;;  %4211 = vperm.xlu1 %23423, %v30827_v1   ;;  %v3389_v38 = vmul.f32 %v25054_v44, %v30831_v0  ;;  %v3227_v7 = vadd.f32 %v3195_v2, %v3031_v8  ;;  %v30835_v2 = vld [vmem:[#allocation77_spill] sm:$0xff]  ;;  %v3229_v9 = vadd.f32 %v3197_v40, %v3033_v20  ;;  %v30841_v20 = vld [vmem:[#allocation84_spill] sm:$0xff]  ;;  %v30843_v40 = vld [vmem:[#allocation87_spill] sm:$0xff] }
 0x2ce   : > { %4232 = vperm.xlu0 %23424, %v30833_v59   ;;  %v3452_v13 = vmax.f32 %v3420_v6, 0.0  ;;  %v3153_v8 = vpop.permute.xlu0 %3152  ;;  %v3228_v22 = vadd.f32 %v3196_v45, %v3032_v43 }
 0x2cf   : > { %v3421_v35 = vadd.f32 %v3389_v38, %v3225_v3  ;;  %v3423_v52 = vadd.f32 %v3391_v16, %v3227_v7 }
 0x2d0   : > { %v2948_v24 = vpop.permute.xlu1 %2947  ;;  %20725 = vmatmul.mubr.msk.f32.gmra.mrb[62].mxu1 %vm2085_vm0, %v3448_v25  ;;  %v2996_v25 = vmul.f32 %v25025_v18, %v25254_v29  ;;  %v3199_v29 = vmul.f32 %v25040_v36, %v3153_v8  ;;  %v3424_v6 = vadd.f32 %v3392_v15, %v3228_v22  ;;  %v30844_v15 = vld [vmem:[#allocation90_spill] sm:$0xff] }
 0x2d1   : > { %20727 = vmatprep.mubr.msk.f32.mxu1 %vm2085_vm0, %v3449_v28  ;;  %4217 = vperm.xlu1 %23423, %v30832_v17   ;;  %v2997_v61 = vmul.f32 %v25025_v18, %v2948_v24  ;;  %v3422_v28 = vadd.f32 %v3390_v11, %v3226_v23  ;;  %v3453_v19 = vmax.f32 %v3421_v35, 0.0  ;;  %v3393_v24 = vmul.f32 %v25054_v44, %v30837_v58  ;;  %v30840_v35 = vld [vmem:[#allocation85_spill] sm:$0xff] }
 0x2d2   : > { %4238 = vperm.xlu0 %23424, %v30836_v33   ;;  %v3455_v63 = vmax.f32 %v3423_v52, 0.0  ;;  %v3395_v7 = vmul.f32 %v25054_v44, %v30840_v35 }
 0x2d3   : > { %v3035_v3 = vadd.f32 %v25050_v56, %v2997_v61  ;;  %v3454_v38 = vmax.f32 %v3422_v28, 0.0  ;;  %v3425_v60 = vadd.f32 %v3393_v24, %v3229_v9  ;;  %v3456_v61 = vmax.f32 %v3424_v6, 0.0 }
 0x2d4   : > { %v2953_v51 = vpop.permute.xlu1 %2952  ;;  %20728 = vmatmul.mubr.msk.f32.gmra.mrb[64].mxu1 %vm2085_vm0, %v3450_v10 }
 0x2d5   : > { %20730 = vmatprep.mubr.msk.f32.mxu1 %vm2085_vm0, %v3451_v54  ;;  %4223 = vperm.xlu1 %23423, %v30835_v2   ;;  %v3034_v54 = vadd.f32 %v25050_v56, %v2996_v25  ;;  %v3231_v26 = vadd.f32 %v3199_v29, %v3035_v3  ;;  %v30845_v3 = vld [vmem:[#allocation93_spill] sm:$0xff]  ;;  %v30846_v29 = vld [vmem:[#allocation95_spill] sm:$0xff] }
 0x2d6   : > { %4244 = vperm.xlu0 %23424, %v30839_v55  }
 0x2d7   : > { %v3230_v11 = vadd.f32 %v3198_v27, %v3034_v54  ;;  %v3427_v16 = vadd.f32 %v3395_v7, %v3231_v26  ;;  %v3161_v27 = vpop.permute.xlu0 %3160 }
 0x2d8   : > { %20731 = vmatmul.mubr.msk.f32.gmra.mrb[66].mxu1 %vm2085_vm0, %v3452_v13  ;;  %v3457_v13 = vmax.f32 %v3425_v60, 0.0  ;;  %v3201_v35 = vmul.f32 %v25040_v36, %v3161_v27 }
 0x2d9   : > { %v3345_v0 = vpop.permute.xlu1 %3344  ;;  %20733 = vmatprep.mubr.msk.f32.mxu1 %vm2085_vm0, %v3453_v19  ;;  %4229 = vperm.xlu1 %23423, %v30838_v14   ;;  %v3459_v25 = vmax.f32 %v3427_v16, 0.0  ;;  %v2998_v19 = vmul.f32 %v25025_v18, %v2953_v51  ;;  %v3828_v16 = vld [vmem:[%s23743_s27 + $0x8] sm:$0xff] }
 0x2da   : > { %v3394_v10 = vmul.f32 %v25054_v44, %v3345_v0  ;;  %4250 = vperm.xlu0 %23424, %v30842_v42  }
 0x2db   : > { %v3036_v8 = vadd.f32 %v25050_v56, %v2998_v19 }
 0x2dc   : > { %20734 = vmatmul.mubr.msk.f32.gmra.mrb[68].mxu1 %vm2085_vm0, %v3454_v38  ;;  %v3426_v23 = vadd.f32 %v3394_v10, %v3230_v11  ;;  %v3361_v10 = vpop.permute.xlu0 %3360 }
 0x2dd   : > { %20736 = vmatprep.mubr.msk.f32.mxu1 %vm2085_vm0, %v3455_v63  ;;  %4235 = vperm.xlu1 %23423, %v30841_v20  }
 0x2de   : > { %v3157_v45 = vpop.permute.xlu1 %3156  ;;  %v3458_v43 = vmax.f32 %v3426_v23, 0.0  ;;  %4256 = vperm.xlu0 %23424, %v25094_v5  }
 0x2df   : > { %v3200_v9 = vmul.f32 %v25040_v36, %v3157_v45  ;;  %v3827_v45 = vld [vmem:[%s23743_s27] sm:$0xff] }
 0x2e0   : > { %20737 = vmatmul.mubr.msk.f32.gmra.mrb[70].mxu1 %vm2085_vm0, %v3456_v61 }
 0x2e1   : > { %20739 = vmatprep.mubr.msk.f32.mxu1 %vm2085_vm0, %v3457_v13  ;;  %4241 = vperm.xlu1 %23423, %v30843_v40   ;;  %v3232_v58 = vadd.f32 %v3200_v9, %v3036_v8 }
 0x2e2   : > { %4262 = vperm.xlu0 %23424, %v25118_v48  }
 0x2e3   : > { %v2958_v28 = vpop.permute.xlu1 %2957 }
 0x2e4   : > { %20740 = vmatmul.mubr.msk.f32.gmra.mrb[72].mxu1 %vm2085_vm0, %v3458_v43  ;;  %v2999_v51 = vmul.f32 %v25025_v18, %v2958_v28  ;;  %v22612_v43 = vpack.c.bf16 %v3828_v16, %v3827_v45  ;;  %v30847_v28 = vmov 2  }
 0x2e5   : > { %20742 = vmatprep.mubr.msk.f32.mxu1 %vm2085_vm0, %v3459_v25  ;;  %4247 = vperm.xlu1 %23423, %v30844_v15  }
 0x2e6   : > { %4268 = vperm.xlu0 %23424, %v25144_v4   ;;  %v3037_v26 = vadd.f32 %v25050_v56, %v2999_v51  ;;  %22613 = vmatprep.subr.bf16.mxu0 %v22612_v43 }
 0x2e7   : > { %v2963_v52 = vpop.permute.xlu1 %2962  ;;  %22615 = vmatpush3.bf16.msra.mxu0 %v22612_v43 }
 0x2e8   : > { %v3000_v0 = vmul.f32 %v25025_v18, %v2963_v52  ;;  %v3398_v18 = vmul.f32 %v25054_v44, %v3361_v10  ;;  %v3233_v61 = vadd.f32 %v3201_v35, %v3037_v26 }
 0x2e9   : > { %4253 = vperm.xlu1 %23423, %v30845_v3  }
 0x2ea   : > { %4274 = vperm.xlu0 %23424, %v25168_v39   ;;  %v3038_v63 = vadd.f32 %v25050_v56, %v3000_v0 }
 0x2ec   : > { %v3353_v22 = vpop.permute.xlu1 %3352 }
 0x2ed   : > { %v3396_v24 = vmul.f32 %v25054_v44, %v3353_v22  ;;  %4259 = vperm.xlu1 %23423, %v30846_v29   ;;  %v3830_v22 = vld [vmem:[%s23743_s27 + $0x18] sm:$0xff] }
 0x2ee   : > { %4280 = vperm.xlu0 %23424, %v25191_v12  }
 0x2ef   : > { %v3428_v38 = vadd.f32 %v3396_v24, %v3232_v58 }
 0x2f1   : > { %v3460_v54 = vmax.f32 %v3428_v38, 0.0  ;;  %v3165_v6 = vpop.permute.xlu1 %3164  ;;  %4265 = vperm.xlu1 %23423, %v25089_v32  }
 0x2f2   : > { %v3202_v60 = vmul.f32 %v25040_v36, %v3165_v6  ;;  %4286 = vperm.xlu0 %23424, %v25215_v46  }
 0x2f3   : > { %20743 = vmatmul.mubr.msk.f32.gmra.mrb[74].mxu1 %vm2085_vm0, %v3460_v54 }
 0x2f4   : > { %v3234_v11 = vadd.f32 %v3202_v60, %v3038_v63 }
 0x2f5   : > { %4271 = vperm.xlu1 %23423, %v25110_v41  }
 0x2f6   : > { %v3357_v7 = vpop.permute.xlu1 %3356  ;;  %v3430_v13 = vadd.f32 %v3398_v18, %v3234_v11  ;;  %23425 = vset.pattern.permute.xlu0 %v30847_v28 }
 0x2f7   : > { %v3397_v23 = vmul.f32 %v25054_v44, %v3357_v7  ;;  %5867 = vperm.xlu0 %23425, %v30810_v21   ;;  %v25398_v44 = vpop.permute.xlu0 %4716  ;;  %v3829_v21 = vld [vmem:[%s23743_s27 + $0x10] sm:$0xff] }
 0x2f8   : > { %v3462_v19 = vmax.f32 %v3430_v13, 0.0  ;;  %v22616_v58 = vpack.c.bf16 %v3830_v22, %v3829_v21  ;;  %v4194_v21 = vld [vmem:[%s30856_s23 + $0x18] sm:$0xff] }
 0x2f9   : > { %v3429_v56 = vadd.f32 %v3397_v23, %v3233_v61  ;;  %4277 = vperm.xlu1 %23423, %v25150_v62   ;;  %v4191_v61 = vld [vmem:[%s30856_s23] sm:$0xff] }
 0x2fa   : > { %22617 = vmatprep.subr.bf16.mxu0 %v22616_v58 }
 0x2fb   : > { %v3461_v36 = vmax.f32 %v3429_v56, 0.0  ;;  %v25393_v25 = vpop.permute.xlu1 %4710  ;;  %5876 = vperm.xlu0 %23425, %v30823_v57   ;;  %22619 = vmatpush3.bf16.msra.mxu0 %v22616_v58 }
 0x2fc   : > { %v25405_v9 = vpop.permute.xlu0 %4725 }
 0x2fd   : > { %20745 = vmatprep.mubr.msk.f32.mxu1 %vm2085_vm0, %v3461_v36  ;;  %4283 = vperm.xlu1 %23423, %v25160_v47  }
 0x2fe   : > { %20746 = vmatmul.mubr.msk.f32.gmra.mrb[76].mxu1 %vm2085_vm0, %v3462_v19  ;;  %v4193_v19 = vld [vmem:[%s30856_s23 + $0x10] sm:$0xff] }
 0x2ff   : > { %v25401_v52 = vpop.permute.xlu1 %4713  ;;  %5882 = vperm.xlu0 %23425, %v30827_v1   ;;  %v25540_v22 = vpack.c.bf16 %v4194_v21, %v4193_v19  ;;  %v30683_v21 = vmov 0.0  }
 0x300   : > { %v25420_v0 = vpop.permute.xlu0 %4731 }
 0x301   : > { %4289 = vperm.xlu1 %23423, %v25186_v50  }
 0x303   : > { %v25407_v8 = vpop.permute.xlu1 %4719  ;;  %5888 = vperm.xlu0 %23425, %v30832_v17  }
 0x305   : > { %v25412_v27 = vpop.f32.mrb[14].mxu1  ;;  %23426 = vset.pattern.permute.xlu1 %v30847_v28  ;;  %v25430_v54 = vpop.permute.xlu0 %4737 }
 0x306   : > { %30848 = vst [vmem:[#allocation60_spill] sm:$0xff] %v25412_v27  ;;  %v25415_v24 = vpop.f32.mrb[15].mxu1  ;;  %5870 = vperm.xlu1 %23426, %v24936_v34  }
 0x307   : > { %30849 = vst [vmem:[#allocation58_spill] sm:$0xff] %v25415_v24  ;;  %v25418_v57 = vpop.permute.xlu1 %4722  ;;  %5894 = vperm.xlu0 %23425, %v30835_v2   ;;  %v25681_v24 = vld [vmem:[%s24916_s28 + $0x68] sm:$0xff] }
 0x309   : > { %v25423_v1 = vpop.f32.mrb[16].mxu1 }
 0x30a   : > { %30850 = vst [vmem:[#allocation71_spill] sm:$0xff] %v25423_v1  ;;  %v25425_v51 = vpop.f32.mrb[17].mxu1  ;;  %5873 = vperm.xlu1 %23426, %v30815_v37   ;;  %v25440_v10 = vpop.permute.xlu0 %4743 }
 0x30b   : > { %30851 = vst [vmem:[#allocation63_spill] sm:$0xff] %v25425_v51  ;;  %v25428_v38 = vpop.permute.xlu1 %4728  ;;  %5900 = vperm.xlu0 %23425, %v30838_v14   ;;  %v25658_v51 = vld [vmem:[%s24916_s28 + $0x90] sm:$0xff] }
 0x30d   : > { %v25433_v34 = vpop.f32.mrb[18].mxu1 }
 0x30e   : > { %30852 = vst [vmem:[#allocation57_spill] sm:$0xff] %v25433_v34  ;;  %v25435_v6 = vpop.f32.mrb[19].mxu1  ;;  %5879 = vperm.xlu1 %23426, %v30812_v30   ;;  %v25450_v2 = vpop.permute.xlu0 %4749  ;;  %v25642_v34 = vld [vmem:[%s24916_s28 + $0x80] sm:$0xff] }
 0x30f   : > { %30853 = vst [vmem:[#allocation72_spill] sm:$0xff] %v25435_v6  ;;  %v25438_v17 = vpop.permute.xlu1 %4734  ;;  %5906 = vperm.xlu0 %23425, %v30841_v20   ;;  %v25649_v6 = vld [vmem:[%s24916_s28 + $0x48] sm:$0xff] }
 0x311   : > { %v25443_v63 = vpop.f32.mrb[20].mxu1 }
 0x312   : > { %30854 = vst [vmem:[#allocation62_spill] sm:$0xff] %v25443_v63  ;;  %v25445_v37 = vpop.f32.mrb[21].mxu1  ;;  %5885 = vperm.xlu1 %23426, %v30818_v31   ;;  %v25460_v11 = vpop.permute.xlu0 %4755  ;;  %v25628_v63 = vld [vmem:[%s24916_s28 + $0x70] sm:$0xff] }
 0x313   : > { %30855 = vst [vmem:[#allocation59_spill] sm:$0xff] %v25445_v37  ;;  %v25448_v60 = vpop.permute.xlu1 %4740  ;;  %5912 = vperm.xlu0 %23425, %v30843_v40   ;;  %v4192_v40 = vld [vmem:[%s30856_s23 + $0x8] sm:$0xff]  ;;  %v25635_v37 = vld [vmem:[%s24916_s28 + $0x38] sm:$0xff] }
 0x314   : > { %v25482_v45 = vpack.c.bf16 %v4192_v40, %v4191_v61  ;;  %v23642_v61 = vmov 3   ;;  %v25548_v40 = vld [vmem:[%s24916_s28 + $0x8] sm:$0xff] }
 0x315   : > { %v25453_v30 = vpop.f32.mrb[22].mxu1 }
 0x316   : > { %30857 = vst [vmem:[#allocation66_spill] sm:$0xff] %v25453_v30  ;;  %v25455_v26 = vpop.f32.mrb[23].mxu1  ;;  %5891 = vperm.xlu1 %23426, %v30825_v53   ;;  %v25470_v35 = vpop.permute.xlu0 %4761  ;;  %22629 = vmatprep.subr.bf16.mxu0 %v25482_v45 }
 0x317   : > { %30858 = vst [vmem:[#allocation61_spill] sm:$0xff] %v25455_v26  ;;  %v25458_v14 = vpop.permute.xlu1 %4746  ;;  %5918 = vperm.xlu0 %23425, %v30844_v15   ;;  %22621 = vmatprep.subr.bf16.mxu1 %v25482_v45  ;;  %v25614_v26 = vld [vmem:[%s24916_s28 + $0x60] sm:$0xff] }
 0x318   : > { %22623 = vmatpush3.bf16.msra.mxu1 %v25482_v45 }
 0x319   : > { %v25463_v31 = vpop.f32.mrb[24].mxu1  ;;  %22625 = vmatprep.subr.bf16.mxu1 %v25540_v22 }
 0x31a   : > { %30859 = vst [vmem:[#allocation64_spill] sm:$0xff] %v25463_v31  ;;  %v25465_v18 = vpop.f32.mrb[25].mxu1  ;;  %5897 = vperm.xlu1 %23426, %v30829_v49   ;;  %v25596_v31 = vld [vmem:[%s24916_s28 + $0x50] sm:$0xff] }
 0x31b   : > { %30860 = vst [vmem:[#allocation76_spill] sm:$0xff] %v25465_v18  ;;  %v25468_v20 = vpop.permute.xlu1 %4752  ;;  %5924 = vperm.xlu0 %23425, %v30845_v3  }
 0x31c   : > { %v25484_v16 = vpop.permute.xlu0 %4767  ;;  %22627 = vmatpush3.bf16.msra.mxu1 %v25540_v22 }
 0x31d   : > { %v25473_v7 = vpop.f32.mrb[26].mxu1  ;;  %30863 = vst [vmem:[#allocation67_spill] sm:$0xff] %v25484_v16 }
 0x31e   : > { %30861 = vst [vmem:[#allocation88_spill] sm:$0xff] %v25473_v7  ;;  %v25475_v53 = vpop.f32.mrb[27].mxu1  ;;  %5903 = vperm.xlu1 %23426, %v30833_v59  }
 0x31f   : > { %30862 = vst [vmem:[#allocation65_spill] sm:$0xff] %v25475_v53  ;;  %v25480_v23 = vpop.permute.xlu1 %4758  ;;  %5930 = vperm.xlu0 %23425, %v30846_v29  }
 0x320   : > { %v25497_v13 = vpop.permute.xlu0 %4773 }
 0x321   : > { %v25487_v49 = vpop.f32.mrb[28].mxu1  ;;  %30866 = vst [vmem:[#allocation78_spill] sm:$0xff] %v25497_v13 }
 0x322   : > { %30864 = vst [vmem:[#allocation75_spill] sm:$0xff] %v25487_v49  ;;  %v25491_v15 = vpop.f32.mrb[29].mxu1  ;;  %5909 = vperm.xlu1 %23426, %v30836_v33  }
 0x323   : > { %30865 = vst [vmem:[#allocation69_spill] sm:$0xff] %v25491_v15  ;;  %v25495_v59 = vpop.permute.xlu1 %4764  ;;  %5936 = vperm.xlu0 %23425, %v25089_v32   ;;  %v25567_v15 = vld [vmem:[%s24916_s28 + $0x30] sm:$0xff] }
 0x324   : > { %v25503_v43 = vpop.permute.xlu0 %4779 }
 0x325   : > { %30868 = vst [vmem:[#allocation83_spill] sm:$0xff] %v25503_v43  ;;  %v25790_v43 = vld [vmem:[%s24916_s28 + $0xf8] sm:$0xff] }
 0x326   : > { %5915 = vperm.xlu1 %23426, %v30839_v55   ;;  %30897 = vst [vmem:[#allocation102_spill] sm:$0xff] %v25790_v43 }
 0x327   : > { %v25501_v3 = vpop.permute.xlu1 %4770  ;;  %5942 = vperm.xlu0 %23425, %v25110_v41  }
 0x328   : > { %30867 = vst [vmem:[#allocation79_spill] sm:$0xff] %v25501_v3  ;;  %v25509_v33 = vpop.permute.xlu0 %4785 }
 0x329   : > { %30870 = vst [vmem:[#allocation91_spill] sm:$0xff] %v25509_v33 }
 0x32a   : > { %5921 = vperm.xlu1 %23426, %v30842_v42  }
 0x32b   : > { %v25507_v56 = vpop.permute.xlu1 %4776  ;;  %5948 = vperm.xlu0 %23425, %v25150_v62  }
 0x32c   : > { %30869 = vst [vmem:[#allocation68_spill] sm:$0xff] %v25507_v56  ;;  %v25519_v36 = vpop.permute.xlu0 %4791 }
 0x32d   : > { %v25512_v28 = vpop.f32.mrb[30].mxu1  ;;  %30874 = vst [vmem:[#allocation73_spill] sm:$0xff] %v25519_v36 }
 0x32e   : > { %30871 = vst [vmem:[#allocation82_spill] sm:$0xff] %v25512_v28  ;;  %v25514_v29 = vpop.f32.mrb[31].mxu1  ;;  %5927 = vperm.xlu1 %23426, %v25094_v5   ;;  %v25556_v28 = vld [vmem:[%s24916_s28 + $0x20] sm:$0xff] }
 0x32f   : > { %30872 = vst [vmem:[#allocation96_spill] sm:$0xff] %v25514_v29  ;;  %v25517_v55 = vpop.permute.xlu1 %4782  ;;  %5954 = vperm.xlu0 %23425, %v25160_v47  }
 0x330   : > { %30873 = vst [vmem:[#allocation70_spill] sm:$0xff] %v25517_v55  ;;  %v25525_v42 = vpop.permute.xlu0 %4797 }
 0x331   : > { %30876 = vst [vmem:[#allocation74_spill] sm:$0xff] %v25525_v42  ;;  %v25697_v42 = vld [vmem:[%s24916_s28 + $0x78] sm:$0xff] }
 0x332   : > { %5933 = vperm.xlu1 %23426, %v25118_v48  }
 0x333   : > { %v25523_v32 = vpop.permute.xlu1 %4788  ;;  %5960 = vperm.xlu0 %23425, %v25186_v50   ;;  %v30882_v50 = vld [vmem:[#allocation24_spill] sm:$0xff] }
 0x334   : > { %30875 = vst [vmem:[#allocation86_spill] sm:$0xff] %v25523_v32  ;;  %v25538_v48 = vpop.permute.xlu0 %4803  ;;  %v23644_v32 = vmov 4  }
 0x335   : > { %30880 = vst [vmem:[#allocation81_spill] sm:$0xff] %v25538_v48  ;;  %v25688_v48 = vld [vmem:[%s24916_s28 + $0xb0] sm:$0xff] }
 0x336   : > { %5939 = vperm.xlu1 %23426, %v25144_v4  }
 0x337   : > { %v25529_v41 = vpop.f32.mrb[32].mxu1  ;;  %v25531_v5 = vpop.permute.xlu1 %4794  ;;  %23428 = vset.pattern.permute.xlu0 %v23642_v61 }
 0x338   : > { %30877 = vst [vmem:[#allocation77_spill] sm:$0xff] %v25529_v41  ;;  %30878 = vst [vmem:[#allocation89_spill] sm:$0xff] %v25531_v5  ;;  %v25536_v62 = vpop.f32.mrb[33].mxu1  ;;  %6737 = vperm.xlu0 %23428, %v25548_v40  }
 0x339   : > { %30879 = vst [vmem:[#allocation80_spill] sm:$0xff] %v25536_v62  ;;  %v4200_v58 = vpop.permute.xlu0 %4199 }
 0x33a   : > { %5945 = vperm.xlu1 %23426, %v25168_v39   ;;  %vm4292_vm1 = vcmp.eq.s32.totalorder %v4200_v58, %v30882_v50 }
 0x33b   : > { %v25544_v47 = vpop.permute.xlu1 %4800  ;;  %v17893_v41 = vsel %vm4292_vm1, 1.0, %v30683_v21 }
 0x33c   : > { %30881 = vst [vmem:[#allocation92_spill] sm:$0xff] %v25544_v47  ;;  %6746 = vperm.xlu0 %23428, %v25556_v28  }
 0x33d   : > { %v4209_v62 = vpop.permute.xlu0 %4208 }
 0x33e   : > { %5951 = vperm.xlu1 %23426, %v25191_v12   ;;  %vm4295_vm4 = vcmp.eq.s32.totalorder %v4209_v62, %v30882_v50 }
 0x340   : > { %v4197_v19 = vpop.permute.xlu1 %4196  ;;  %6752 = vperm.xlu0 %23428, %v25567_v15  }
 0x341   : > { %vm4291_vm2 = vcmp.eq.s32.totalorder %v4197_v19, %v30882_v50  ;;  %v4215_v49 = vpop.permute.xlu0 %4214 }
 0x342   : > { %v17892_v29 = vsel %vm4291_vm2, 1.0, %v30683_v21  ;;  %5957 = vperm.xlu1 %23426, %v25215_v46   ;;  %vm4297_vm6 = vcmp.eq.s32.totalorder %v4215_v49, %v30882_v50 }
 0x343   : > { %20812 = vmatprep.mubr.msk.f32.mxu1 %vm2085_vm0, %v17892_v29  ;;  %v25575_v29 = vld [vmem:[%s24916_s28] sm:$0xff] }
 0x344   : > { %v4203_v58 = vpop.permute.xlu1 %4202  ;;  %20813 = vmatmul.mubr.msk.f32.vlgmr.msra.gmra.mrb[78].mxu1 %vm2085_vm0, %v17893_v41 }
 0x345   : > { %v25563_v19 = vpop.f32.mrb[34].mxu1  ;;  %vm4293_vm3 = vcmp.eq.s32.totalorder %v4203_v58, %v30882_v50  ;;  %v17896_v58 = vsel %vm4295_vm4, 1.0, %v30683_v21  ;;  %v4221_v62 = vpop.permute.xlu0 %4220 }
 0x346   : > { %30883 = vst [vmem:[#allocation85_spill] sm:$0xff] %v25563_v19  ;;  %v25570_v7 = vpop.f32.mrb[35].mxu1  ;;  %v17894_v53 = vsel %vm4293_vm3, 1.0, %v30683_v21  ;;  %23427 = vset.pattern.permute.xlu1 %v23642_v61  ;;  %v25582_v19 = vld [vmem:[%s24916_s28 + $0x40] sm:$0xff]  ;;  %vm4299_vm8 = vcmp.eq.s32.totalorder %v4221_v62, %v30882_v50 }
 0x347   : > { %30884 = vst [vmem:[#allocation84_spill] sm:$0xff] %v25570_v7  ;;  %6734 = vperm.xlu1 %23427, %v25575_v29   ;;  %20815 = vmatprep.mubr.msk.f32.mxu1 %vm2085_vm0, %v17894_v53  ;;  %v25589_v7 = vld [vmem:[%s24916_s28 + $0x10] sm:$0xff]  ;;  %v17900_v62 = vsel %vm4299_vm8, 1.0, %v30683_v21 }
 0x348   : > { %v4206_v41 = vpop.permute.xlu1 %4205  ;;  %6758 = vperm.xlu0 %23428, %v25582_v19  }
 0x349   : > { %vm4294_vm5 = vcmp.eq.s32.totalorder %v4206_v41, %v30882_v50  ;;  %v17898_v41 = vsel %vm4297_vm6, 1.0, %v30683_v21 }
 0x34a   : > { %v17895_v61 = vsel %vm4294_vm5, 1.0, %v30683_v21 }
 0x34b   : > { %20816 = vmatmul.mubr.msk.f32.gmra.mrb[80].mxu1 %vm2085_vm0, %v17895_v61  ;;  %6740 = vperm.xlu1 %23427, %v25589_v7   ;;  %v4227_v61 = vpop.permute.xlu0 %4226 }
 0x34c   : > { %v4212_v53 = vpop.permute.xlu1 %4211  ;;  %20818 = vmatprep.mubr.msk.f32.mxu1 %vm2085_vm0, %v17896_v58  ;;  %6764 = vperm.xlu0 %23428, %v25596_v31   ;;  %v25605_v58 = vld [vmem:[%s24916_s28 + $0x18] sm:$0xff]  ;;  %vm4301_vm10 = vcmp.eq.s32.totalorder %v4227_v61, %v30882_v50 }
 0x34d   : > { %vm4296_vm7 = vcmp.eq.s32.totalorder %v4212_v53, %v30882_v50 }
 0x34e   : > { %v17897_v49 = vsel %vm4296_vm7, 1.0, %v30683_v21 }
 0x34f   : > { %v25601_v18 = vpop.f32.mrb[36].mxu1  ;;  %20819 = vmatmul.mubr.msk.f32.gmra.mrb[82].mxu1 %vm2085_vm0, %v17897_v49  ;;  %6743 = vperm.xlu1 %23427, %v25605_v58  }
 0x350   : > { %30885 = vst [vmem:[#allocation94_spill] sm:$0xff] %v25601_v18  ;;  %v25608_v53 = vpop.f32.mrb[37].mxu1  ;;  %v4218_v30 = vpop.permute.xlu1 %4217  ;;  %20821 = vmatprep.mubr.msk.f32.mxu1 %vm2085_vm0, %v17898_v41  ;;  %6770 = vperm.xlu0 %23428, %v25614_v26  }
 0x351   : > { %30886 = vst [vmem:[#allocation87_spill] sm:$0xff] %v25608_v53  ;;  %vm4298_vm9 = vcmp.eq.s32.totalorder %v4218_v30, %v30882_v50  ;;  %v4233_v18 = vpop.permute.xlu0 %4232  ;;  %v25621_v53 = vld [vmem:[%s24916_s28 + $0x28] sm:$0xff]  ;;  %v17902_v30 = vsel %vm4301_vm10, 1.0, %v30683_v21 }
 0x352   : > { %v17899_v49 = vsel %vm4298_vm9, 1.0, %v30683_v21  ;;  %vm4303_vm12 = vcmp.eq.s32.totalorder %v4233_v18, %v30882_v50 }
 0x353   : > { %20822 = vmatmul.mubr.msk.f32.gmra.mrb[84].mxu1 %vm2085_vm0, %v17899_v49  ;;  %6749 = vperm.xlu1 %23427, %v25621_v53  }
 0x354   : > { %v4224_v41 = vpop.permute.xlu1 %4223  ;;  %20824 = vmatprep.mubr.msk.f32.mxu1 %vm2085_vm0, %v17900_v62  ;;  %6776 = vperm.xlu0 %23428, %v25628_v63  }
 0x355   : > { %vm4300_vm11 = vcmp.eq.s32.totalorder %v4224_v41, %v30882_v50  ;;  %v4239_v49 = vpop.permute.xlu0 %4238  ;;  %v17904_v41 = vsel %vm4303_vm12, 1.0, %v30683_v21 }
 0x356   : > { %v17901_v61 = vsel %vm4300_vm11, 1.0, %v30683_v21  ;;  %vm4305_vm14 = vcmp.eq.s32.totalorder %v4239_v49, %v30882_v50 }
 0x357   : > { %20825 = vmatmul.mubr.msk.f32.gmra.mrb[86].mxu1 %vm2085_vm0, %v17901_v61  ;;  %6755 = vperm.xlu1 %23427, %v25635_v37   ;;  %v17906_v1 = vsel %vm4305_vm14, 1.0, %v30683_v21 }
 0x358   : > { %v4230_v62 = vpop.permute.xlu1 %4229  ;;  %20827 = vmatprep.mubr.msk.f32.mxu1 %vm2085_vm0, %v17902_v30  ;;  %6782 = vperm.xlu0 %23428, %v25642_v34  }
 0x359   : > { %vm4302_vm13 = vcmp.eq.s32.totalorder %v4230_v62, %v30882_v50  ;;  %v4245_v61 = vpop.permute.xlu0 %4244 }
 0x35a   : > { %v17903_v18 = vsel %vm4302_vm13, 1.0, %v30683_v21  ;;  %vm4307_vm1 = vcmp.eq.s32.totalorder %v4245_v61, %v30882_v50 }
 0x35b   : > { %20828 = vmatmul.mubr.msk.f32.gmra.mrb[88].mxu1 %vm2085_vm0, %v17903_v18  ;;  %6761 = vperm.xlu1 %23427, %v25649_v6  }
 0x35c   : > { %v4236_v30 = vpop.permute.xlu1 %4235  ;;  %20830 = vmatprep.mubr.msk.f32.mxu1 %vm2085_vm0, %v17904_v41  ;;  %6788 = vperm.xlu0 %23428, %v25658_v51   ;;  %v25667_v41 = vld [vmem:[%s24916_s28 + $0x58] sm:$0xff] }
 0x35d   : > { %v25653_v62 = vpop.f32.mrb[38].mxu1  ;;  %vm4304_vm15 = vcmp.eq.s32.totalorder %v4236_v30, %v30882_v50  ;;  %v4251_v27 = vpop.permute.xlu0 %4250 }
 0x35e   : > { %30887 = vst [vmem:[#allocation90_spill] sm:$0xff] %v25653_v62  ;;  %v25661_v49 = vpop.f32.mrb[39].mxu1  ;;  %v17905_v18 = vsel %vm4304_vm15, 1.0, %v30683_v21  ;;  %v17908_v62 = vsel %vm4307_vm1, 1.0, %v30683_v21  ;;  %vm4309_vm3 = vcmp.eq.s32.totalorder %v4251_v27, %v30882_v50 }
 0x35f   : > { %30888 = vst [vmem:[#allocation93_spill] sm:$0xff] %v25661_v49  ;;  %20831 = vmatmul.mubr.msk.f32.gmra.mrb[90].mxu1 %vm2085_vm0, %v17905_v18  ;;  %6767 = vperm.xlu1 %23427, %v25667_v41   ;;  %v25674_v49 = vld [vmem:[%s24916_s28 + $0xa0] sm:$0xff] }
 0x360   : > { %v4242_v30 = vpop.permute.xlu1 %4241  ;;  %20833 = vmatprep.mubr.msk.f32.mxu1 %vm2085_vm0, %v17906_v1  ;;  %6794 = vperm.xlu0 %23428, %v25674_v49  }
 0x361   : > { %vm4306_vm2 = vcmp.eq.s32.totalorder %v4242_v30, %v30882_v50  ;;  %v4257_v18 = vpop.permute.xlu0 %4256  ;;  %v17910_v30 = vsel %vm4309_vm3, 1.0, %v30683_v21  ;;  %vm4805_vm3 = vcmp.eq.s32.totalorder %v25393_v25, %v30882_v50 }
 0x362   : > { %v17907_v61 = vsel %vm4306_vm2, 1.0, %v30683_v21  ;;  %vm4311_vm5 = vcmp.eq.s32.totalorder %v4257_v18, %v30882_v50 }
 0x363   : > { %20834 = vmatmul.mubr.msk.f32.gmra.mrb[92].mxu1 %vm2085_vm0, %v17907_v61  ;;  %6773 = vperm.xlu1 %23427, %v25681_v24   ;;  %v17912_v5 = vsel %vm4311_vm5, 1.0, %v30683_v21  ;;  %vm4806_vm5 = vcmp.eq.s32.totalorder %v25401_v52, %v30882_v50 }
 0x364   : > { %v4248_v1 = vpop.permute.xlu1 %4247  ;;  %20836 = vmatprep.mubr.msk.f32.mxu1 %vm2085_vm0, %v17908_v62  ;;  %6800 = vperm.xlu0 %23428, %v25688_v48  }
 0x365   : > { %vm4308_vm4 = vcmp.eq.s32.totalorder %v4248_v1, %v30882_v50  ;;  %v4263_v61 = vpop.permute.xlu0 %4262 }
 0x366   : > { %v17909_v27 = vsel %vm4308_vm4, 1.0, %v30683_v21  ;;  %vm4313_vm7 = vcmp.eq.s32.totalorder %v4263_v61, %v30882_v50  ;;  %vm4807_vm4 = vcmp.eq.s32.totalorder %v25398_v44, %v30882_v50 }
 0x367   : > { %v25693_v47 = vpop.f32.mrb[40].mxu1  ;;  %20837 = vmatmul.mubr.msk.f32.gmra.mrb[94].mxu1 %vm2085_vm0, %v17909_v27  ;;  %6779 = vperm.xlu1 %23427, %v25697_v42  }
 0x368   : > { %30889 = vst [vmem:[#allocation95_spill] sm:$0xff] %v25693_v47  ;;  %v25700_v62 = vpop.f32.mrb[41].mxu1  ;;  %v4254_v1 = vpop.permute.xlu1 %4253  ;;  %20839 = vmatprep.mubr.msk.f32.mxu1 %vm2085_vm0, %v17910_v30  ;;  %6806 = vperm.xlu0 %23428, %v25144_v4   ;;  %v25710_v47 = vld [vmem:[%s24916_s28 + $0x88] sm:$0xff]  ;;  %v17914_v30 = vsel %vm4313_vm7, 1.0, %v30683_v21  ;;  %vm4809_vm7 = vcmp.eq.s32.totalorder %v25418_v57, %v30882_v50 }
 0x369   : > { %30890 = vst [vmem:[#allocation24_spill] sm:$0xff] %v25700_v62  ;;  %vm4310_vm6 = vcmp.eq.s32.totalorder %v4254_v1, %v30882_v50  ;;  %v4269_v27 = vpop.permute.xlu0 %4268  ;;  %v25721_v1 = vld [vmem:[%s24916_s28 + $0x98] sm:$0xff] }
 0x36a   : > { %v17911_v18 = vsel %vm4310_vm6, 1.0, %v30683_v21  ;;  %vm4315_vm9 = vcmp.eq.s32.totalorder %v4269_v27, %v30882_v50  ;;  %v25732_v27 = vld [vmem:[%s24916_s28 + $0xa8] sm:$0xff]  ;;  %vm4808_vm6 = vcmp.eq.s32.totalorder %v25407_v8, %v30882_v50 }
 0x36b   : > { %20840 = vmatmul.mubr.msk.f32.gmra.mrb[96].mxu1 %vm2085_vm0, %v17911_v18  ;;  %6785 = vperm.xlu1 %23427, %v25710_v47  }
 0x36c   : > { %v4260_v62 = vpop.permute.xlu1 %4259  ;;  %20842 = vmatprep.mubr.msk.f32.mxu1 %vm2085_vm0, %v17912_v5  ;;  %6812 = vperm.xlu0 %23428, %v25168_v39   ;;  %v17916_v5 = vsel %vm4315_vm9, 1.0, %v30683_v21  ;;  %vm4811_vm9 = vcmp.eq.s32.totalorder %v25428_v38, %v30882_v50 }
 0x36d   : > { %vm4312_vm8 = vcmp.eq.s32.totalorder %v4260_v62, %v30882_v50  ;;  %v4275_v61 = vpop.permute.xlu0 %4274 }
 0x36e   : > { %v17913_v4 = vsel %vm4312_vm8, 1.0, %v30683_v21  ;;  %vm4317_vm11 = vcmp.eq.s32.totalorder %v4275_v61, %v30882_v50  ;;  %vm4810_vm8 = vcmp.eq.s32.totalorder %v25405_v9, %v30882_v50 }
 0x36f   : > { %20843 = vmatmul.mubr.msk.f32.gmra.mrb[98].mxu1 %vm2085_vm0, %v17913_v4  ;;  %6791 = vperm.xlu1 %23427, %v25721_v1  }
 0x370   : > { %v4266_v18 = vpop.permute.xlu1 %4265  ;;  %20845 = vmatprep.mubr.msk.f32.mxu1 %vm2085_vm0, %v17914_v30  ;;  %6818 = vperm.xlu0 %23428, %v25191_v12   ;;  %v17918_v12 = vsel %vm4317_vm11, 1.0, %v30683_v21  ;;  %vm4813_vm11 = vcmp.eq.s32.totalorder %v25438_v17, %v30882_v50 }
 0x371   : > { %vm4314_vm10 = vcmp.eq.s32.totalorder %v4266_v18, %v30882_v50  ;;  %v4281_v62 = vpop.permute.xlu0 %4280 }
 0x372   : > { %v17915_v39 = vsel %vm4314_vm10, 1.0, %v30683_v21  ;;  %vm4319_vm13 = vcmp.eq.s32.totalorder %v4281_v62, %v30882_v50  ;;  %v25757_v62 = vld [vmem:[%s24916_s28 + $0xc8] sm:$0xff]  ;;  %vm4812_vm10 = vcmp.eq.s32.totalorder %v25420_v0, %v30882_v50 }
 0x373   : > { %20846 = vmatmul.mubr.msk.f32.gmra.mrb[100].mxu1 %vm2085_vm0, %v17915_v39  ;;  %6797 = vperm.xlu1 %23427, %v25732_v27   ;;  %v25747_v39 = vld [vmem:[%s24916_s28 + $0xb8] sm:$0xff] }
 0x374   : > { %v4272_v4 = vpop.permute.xlu1 %4271  ;;  %20848 = vmatprep.mubr.msk.f32.mxu1 %vm2085_vm0, %v17916_v5  ;;  %6824 = vperm.xlu0 %23428, %v25215_v46   ;;  %v17920_v46 = vsel %vm4319_vm13, 1.0, %v30683_v21  ;;  %vm4815_vm13 = vcmp.eq.s32.totalorder %v25448_v60, %v30882_v50 }
 0x375   : > { %v25736_v30 = vpop.f32.mrb[42].mxu1  ;;  %vm4316_vm12 = vcmp.eq.s32.totalorder %v4272_v4, %v30882_v50  ;;  %v4287_v5 = vpop.permute.xlu0 %4286 }
 0x376   : > { %30891 = vst [vmem:[#allocation97_spill] sm:$0xff] %v25736_v30  ;;  %v25741_v61 = vpop.f32.mrb[43].mxu1  ;;  %v17917_v18 = vsel %vm4316_vm12, 1.0, %v30683_v21  ;;  %vm4321_vm15 = vcmp.eq.s32.totalorder %v4287_v5, %v30882_v50  ;;  %v25768_v5 = vld [vmem:[%s24916_s28 + $0xd8] sm:$0xff]  ;;  %vm4814_vm12 = vcmp.eq.s32.totalorder %v25430_v54, %v30882_v50 }
 0x377   : > { %30892 = vst [vmem:[#allocation98_spill] sm:$0xff] %v25741_v61  ;;  %20849 = vmatmul.mubr.msk.f32.gmra.mrb[102].mxu1 %vm2085_vm0, %v17917_v18  ;;  %6803 = vperm.xlu1 %23427, %v25747_v39  }
 0x378   : > { %v4278_v30 = vpop.permute.xlu1 %4277  ;;  %20851 = vmatprep.mubr.msk.f32.mxu1 %vm2085_vm0, %v17918_v12  ;;  %23429 = vset.pattern.permute.xlu0 %v23644_v32 }
 0x379   : > { %vm4318_vm14 = vcmp.eq.s32.totalorder %v4278_v30, %v30882_v50  ;;  %v17922_v30 = vsel %vm4321_vm15, 1.0, %v30683_v21  ;;  %7601 = vperm.xlu0 %23429, %v25575_v29   ;;  %vm4817_vm15 = vcmp.eq.s32.totalorder %v25458_v14, %v30882_v50 }
 0x37a   : > { %v17919_v4 = vsel %vm4318_vm14, 1.0, %v30683_v21  ;;  %vm4816_vm14 = vcmp.eq.s32.totalorder %v25440_v10, %v30882_v50 }
 0x37b   : > { %20852 = vmatmul.mubr.msk.f32.gmra.mrb[104].mxu1 %vm2085_vm0, %v17919_v4  ;;  %6809 = vperm.xlu1 %23427, %v25757_v62  }
 0x37c   : > { %v4284_v18 = vpop.permute.xlu1 %4283  ;;  %20854 = vmatprep.mubr.msk.f32.mxu1 %vm2085_vm0, %v17920_v46  ;;  %v25775_v46 = vld [vmem:[%s30893_s1] ss:$0 sm:$0xff]  ;;  %s31378_s1 = sld [smem:[#allocation16_spill]] }
 0x37d   : > { %vm4320_vm1 = vcmp.eq.s32.totalorder %v4284_v18, %v30882_v50  ;;  %7610 = vperm.xlu0 %23429, %v25605_v58  }
 0x37e   : > { %v17921_v12 = vsel %vm4320_vm1, 1.0, %v30683_v21  ;;  %vm4818_vm1 = vcmp.eq.s32.totalorder %v25450_v2, %v30882_v50 }
 0x37f   : > { %v25764_v61 = vpop.f32.mrb[44].mxu1  ;;  %20855 = vmatmul.mubr.msk.f32.gmra.mrb[106].mxu1 %vm2085_vm0, %v17921_v12  ;;  %6815 = vperm.xlu1 %23427, %v25768_v5   ;;  %v25781_v12 = vld [vmem:[%s24916_s28 + $0xe8] sm:$0xff] }
 0x380   : > { %30894 = vst [vmem:[#allocation99_spill] sm:$0xff] %v25764_v61  ;;  %v25771_v4 = vpop.f32.mrb[45].mxu1  ;;  %v4290_v36 = vpop.permute.xlu1 %4289  ;;  %20857 = vmatprep.mubr.msk.f32.mxu1 %vm2085_vm0, %v17922_v30 }
 0x381   : > { %30895 = vst [vmem:[#allocation100_spill] sm:$0xff] %v25771_v4  ;;  %vm4322_vm2 = vcmp.eq.s32.totalorder %v4290_v36, %v30882_v50  ;;  %7616 = vperm.xlu0 %23429, %v25621_v53  }
 0x382   : > { %v17923_v18 = vsel %vm4322_vm2, 1.0, %v30683_v21  ;;  %vm4819_vm2 = vcmp.eq.s32.totalorder %v25468_v20, %v30882_v50 }
 0x383   : > { %v20702_v61 = vpop.f32.mrb[46].mxu1  ;;  %20858 = vmatmul.mubr.msk.f32.gmra.mrb[108].mxu1 %vm2085_vm0, %v17923_v18  ;;  %6821 = vperm.xlu1 %23427, %v25781_v12  }
 0x384   : > { %v3642_v4 = vadd.f32 %v20702_v61, %v25775_v46  ;;  %v3636_v33 = vpop.f32.mrb[47].mxu1 }
 0x385   : > { %v3637_v30 = vadd.f32 %v25775_v46, %v3636_v33  ;;  %v25787_v55 = vpop.permute.xlu1 %5870  ;;  %7622 = vperm.xlu0 %23429, %v25635_v37  }
 0x386   : > { %30896 = vst [vmem:[#allocation101_spill] sm:$0xff] %v25787_v55  ;;  %v3796_v18 = vmax.f32 %v3642_v4, 0.0 }
 0x387   : > { %v3795_v36 = vmax.f32 %v3637_v30, 0.0  ;;  %v20705_v21 = vpop.f32.mrb[48].mxu1  ;;  %6827 = vperm.xlu1 %23427, %v25790_v43  }
 0x388   : > { %v3652_v56 = vadd.f32 %v20705_v21, %v25775_v46  ;;  %v3646_v13 = vpop.f32.mrb[49].mxu1 }
 0x389   : > { %v3647_v61 = vadd.f32 %v25775_v46, %v3646_v13  ;;  %20756 = vmatprep.mubr.msk.f32.mxu0 %vm2085_vm0, %v3795_v36  ;;  %v25797_v3 = vpop.permute.xlu1 %5873  ;;  %7628 = vperm.xlu0 %23429, %v25649_v6  }
 0x38a   : > { %30898 = vst [vmem:[#allocation103_spill] sm:$0xff] %v25797_v3  ;;  %20757 = vmatmul.mubr.msk.f32.vlgmr.msra.gmra.mrb[82].mxu0 %vm2085_vm0, %v3796_v18  ;;  %v3798_v55 = vmax.f32 %v3652_v56, 0.0 }
 0x38b   : > { %v3797_v33 = vmax.f32 %v3647_v61, 0.0  ;;  %v20708_v30 = vpop.f32.mrb[50].mxu1  ;;  %22631 = vmatpush3.bf16.msra.mxu0 %v25482_v45  ;;  %23430 = vset.pattern.permute.xlu1 %v23644_v32 }
 0x38c   : > { %v3662_v4 = vadd.f32 %v20708_v30, %v25775_v46  ;;  %v3656_v21 = vpop.f32.mrb[51].mxu1  ;;  %22633 = vmatprep.subr.bf16.mxu0 %v25540_v22  ;;  %7604 = vperm.xlu1 %23430, %v25548_v40  }
 0x38d   : > { %v3657_v13 = vadd.f32 %v25775_v46, %v3656_v21  ;;  %20759 = vmatprep.mubr.msk.f32.mxu0 %vm2085_vm0, %v3797_v33  ;;  %v25806_v36 = vpop.permute.xlu1 %5879  ;;  %7634 = vperm.xlu0 %23429, %v25667_v41  }
 0x38e   : > { %30899 = vst [vmem:[#allocation104_spill] sm:$0xff] %v25806_v36  ;;  %20760 = vmatmul.mubr.msk.f32.gmra.mrb[84].mxu0 %vm2085_vm0, %v3798_v55  ;;  %v3800_v56 = vmax.f32 %v3662_v4, 0.0 }
 0x38f   : > { %v3799_v18 = vmax.f32 %v3657_v13, 0.0  ;;  %v20711_v32 = vpop.f32.mrb[52].mxu1  ;;  %22635 = vmatpush3.bf16.msra.mxu0 %v25540_v22 }
 0x390   : > { %v3672_v61 = vadd.f32 %v20711_v32, %v25775_v46  ;;  %v3666_v30 = vpop.f32.mrb[53].mxu1  ;;  %7607 = vperm.xlu1 %23430, %v25589_v7   ;;  %22637 = vmatprep.subr.bf16.mxu0 %v25482_v45 }
 0x391   : > { %v3667_v33 = vadd.f32 %v25775_v46, %v3666_v30  ;;  %20762 = vmatprep.mubr.msk.f32.mxu0 %vm2085_vm0, %v3799_v18  ;;  %v25816_v21 = vpop.permute.xlu1 %5885  ;;  %7640 = vperm.xlu0 %23429, %v25681_v24  }
 0x392   : > { %30900 = vst [vmem:[#allocation105_spill] sm:$0xff] %v25816_v21  ;;  %20763 = vmatmul.mubr.msk.f32.gmra.mrb[86].mxu0 %vm2085_vm0, %v3800_v56  ;;  %v3802_v4 = vmax.f32 %v3672_v61, 0.0 }
 0x393   : > { %v3801_v55 = vmax.f32 %v3667_v33, 0.0  ;;  %v20714_v13 = vpop.f32.mrb[54].mxu1 }
 0x394   : > { %v3682_v32 = vadd.f32 %v20714_v13, %v25775_v46  ;;  %v3676_v36 = vpop.f32.mrb[55].mxu1  ;;  %7613 = vperm.xlu1 %23430, %v25556_v28   ;;  %v25830_v13 = vpop.permute.xlu0 %5867 }
 0x395   : > { %v3677_v3 = vadd.f32 %v25775_v46, %v3676_v36  ;;  %20765 = vmatprep.mubr.msk.f32.mxu0 %vm2085_vm0, %v3801_v55  ;;  %v25824_v30 = vpop.permute.xlu1 %5891  ;;  %30902 = vst [vmem:[#allocation107_spill] sm:$0xff] %v25830_v13  ;;  %7646 = vperm.xlu0 %23429, %v25697_v42  }
 0x396   : > { %30901 = vst [vmem:[#allocation106_spill] sm:$0xff] %v25824_v30  ;;  %20766 = vmatmul.mubr.msk.f32.gmra.mrb[88].mxu0 %vm2085_vm0, %v3802_v4  ;;  %v3804_v33 = vmax.f32 %v3682_v32, 0.0 }
 0x397   : > { %v3803_v18 = vmax.f32 %v3677_v3, 0.0  ;;  %v20717_v56 = vpop.f32.mrb[56].mxu1 }
 0x398   : > { %v3692_v61 = vadd.f32 %v20717_v56, %v25775_v46  ;;  %v3686_v21 = vpop.f32.mrb[57].mxu1  ;;  %7619 = vperm.xlu1 %23430, %v25567_v15   ;;  %v25840_v16 = vpop.permute.xlu0 %5876 }
 0x399   : > { %v3687_v36 = vadd.f32 %v25775_v46, %v3686_v21  ;;  %20768 = vmatprep.mubr.msk.f32.mxu0 %vm2085_vm0, %v3803_v18  ;;  %v25834_v55 = vpop.permute.xlu1 %5897  ;;  %30904 = vst [vmem:[#allocation109_spill] sm:$0xff] %v25840_v16  ;;  %7652 = vperm.xlu0 %23429, %v25710_v47  }
 0x39a   : > { %30903 = vst [vmem:[#allocation108_spill] sm:$0xff] %v25834_v55  ;;  %20769 = vmatmul.mubr.msk.f32.gmra.mrb[90].mxu0 %vm2085_vm0, %v3804_v33  ;;  %v3806_v32 = vmax.f32 %v3692_v61, 0.0 }
 0x39b   : > { %v3805_v3 = vmax.f32 %v3687_v36, 0.0  ;;  %v20720_v4 = vpop.f32.mrb[58].mxu1 }
 0x39c   : > { %v3702_v56 = vadd.f32 %v20720_v4, %v25775_v46  ;;  %v3696_v30 = vpop.f32.mrb[59].mxu1  ;;  %7625 = vperm.xlu1 %23430, %v25582_v19   ;;  %v25850_v13 = vpop.permute.xlu0 %5882 }
 0x39d   : > { %v3697_v21 = vadd.f32 %v25775_v46, %v3696_v30  ;;  %20771 = vmatprep.mubr.msk.f32.mxu0 %vm2085_vm0, %v3805_v3  ;;  %v25844_v18 = vpop.permute.xlu1 %5903  ;;  %30906 = vst [vmem:[#allocation111_spill] sm:$0xff] %v25850_v13  ;;  %7658 = vperm.xlu0 %23429, %v25721_v1  }
 0x39e   : > { %30905 = vst [vmem:[#allocation110_spill] sm:$0xff] %v25844_v18  ;;  %20772 = vmatmul.mubr.msk.f32.gmra.mrb[92].mxu0 %vm2085_vm0, %v3806_v32  ;;  %v3808_v61 = vmax.f32 %v3702_v56, 0.0 }
 0x39f   : > { %v3807_v33 = vmax.f32 %v3697_v21, 0.0  ;;  %v20723_v36 = vpop.f32.mrb[60].mxu1 }
 0x3a0   : > { %v3712_v4 = vadd.f32 %v20723_v36, %v25775_v46  ;;  %v3706_v55 = vpop.f32.mrb[61].mxu1  ;;  %7631 = vperm.xlu1 %23430, %v25596_v31   ;;  %v25860_v16 = vpop.permute.xlu0 %5888 }
 0x3a1   : > { %v3707_v30 = vadd.f32 %v25775_v46, %v3706_v55  ;;  %20774 = vmatprep.mubr.msk.f32.mxu0 %vm2085_vm0, %v3807_v33  ;;  %v25854_v3 = vpop.permute.xlu1 %5909  ;;  %30908 = vst [vmem:[#allocation113_spill] sm:$0xff] %v25860_v16  ;;  %7664 = vperm.xlu0 %23429, %v25732_v27  }
 0x3a2   : > { %30907 = vst [vmem:[#allocation112_spill] sm:$0xff] %v25854_v3  ;;  %20775 = vmatmul.mubr.msk.f32.gmra.mrb[94].mxu0 %vm2085_vm0, %v3808_v61  ;;  %v3810_v56 = vmax.f32 %v3712_v4, 0.0 }
 0x3a3   : > { %v3809_v32 = vmax.f32 %v3707_v30, 0.0  ;;  %v20726_v21 = vpop.f32.mrb[62].mxu1 }
 0x3a4   : > { %v3722_v36 = vadd.f32 %v20726_v21, %v25775_v46  ;;  %v3716_v18 = vpop.f32.mrb[63].mxu1  ;;  %7637 = vperm.xlu1 %23430, %v25614_v26   ;;  %v25870_v13 = vpop.permute.xlu0 %5894 }
 0x3a5   : > { %v3717_v55 = vadd.f32 %v25775_v46, %v3716_v18  ;;  %20777 = vmatprep.mubr.msk.f32.mxu0 %vm2085_vm0, %v3809_v32  ;;  %v25864_v33 = vpop.permute.xlu1 %5915  ;;  %30910 = vst [vmem:[#allocation115_spill] sm:$0xff] %v25870_v13  ;;  %7670 = vperm.xlu0 %23429, %v25747_v39  }
 0x3a6   : > { %30909 = vst [vmem:[#allocation114_spill] sm:$0xff] %v25864_v33  ;;  %20778 = vmatmul.mubr.msk.f32.gmra.mrb[96].mxu0 %vm2085_vm0, %v3810_v56  ;;  %v3812_v4 = vmax.f32 %v3722_v36, 0.0 }
 0x3a7   : > { %v3811_v61 = vmax.f32 %v3717_v55, 0.0  ;;  %v20729_v30 = vpop.f32.mrb[64].mxu1 }
 0x3a8   : > { %v3732_v21 = vadd.f32 %v20729_v30, %v25775_v46  ;;  %v3726_v3 = vpop.f32.mrb[65].mxu1  ;;  %7643 = vperm.xlu1 %23430, %v25628_v63   ;;  %v25880_v16 = vpop.permute.xlu0 %5900 }
 0x3a9   : > { %v3727_v18 = vadd.f32 %v25775_v46, %v3726_v3  ;;  %20780 = vmatprep.mubr.msk.f32.mxu0 %vm2085_vm0, %v3811_v61  ;;  %v25874_v32 = vpop.permute.xlu1 %5921  ;;  %30912 = vst [vmem:[#allocation117_spill] sm:$0xff] %v25880_v16  ;;  %7676 = vperm.xlu0 %23429, %v25757_v62  }
 0x3aa   : > { %30911 = vst [vmem:[#allocation116_spill] sm:$0xff] %v25874_v32  ;;  %20781 = vmatmul.mubr.msk.f32.gmra.mrb[98].mxu0 %vm2085_vm0, %v3812_v4  ;;  %v3814_v36 = vmax.f32 %v3732_v21, 0.0 }
 0x3ab   : > { %v3813_v56 = vmax.f32 %v3727_v18, 0.0  ;;  %v20732_v55 = vpop.f32.mrb[66].mxu1 }
 0x3ac   : > { %v3742_v30 = vadd.f32 %v20732_v55, %v25775_v46  ;;  %v3736_v33 = vpop.f32.mrb[67].mxu1  ;;  %7649 = vperm.xlu1 %23430, %v25642_v34   ;;  %v25890_v13 = vpop.permute.xlu0 %5906 }
 0x3ad   : > { %v3737_v3 = vadd.f32 %v25775_v46, %v3736_v33  ;;  %20783 = vmatprep.mubr.msk.f32.mxu0 %vm2085_vm0, %v3813_v56  ;;  %v25884_v61 = vpop.permute.xlu1 %5927  ;;  %30914 = vst [vmem:[#allocation119_spill] sm:$0xff] %v25890_v13  ;;  %7682 = vperm.xlu0 %23429, %v25768_v5  }
 0x3ae   : > { %30913 = vst [vmem:[#allocation118_spill] sm:$0xff] %v25884_v61  ;;  %20784 = vmatmul.mubr.msk.f32.gmra.mrb[100].mxu0 %vm2085_vm0, %v3814_v36  ;;  %v3816_v21 = vmax.f32 %v3742_v30, 0.0 }
 0x3af   : > { %v3815_v4 = vmax.f32 %v3737_v3, 0.0  ;;  %v20735_v18 = vpop.f32.mrb[68].mxu1 }
 0x3b0   : > { %v3752_v55 = vadd.f32 %v20735_v18, %v25775_v46  ;;  %v3746_v32 = vpop.f32.mrb[69].mxu1  ;;  %7655 = vperm.xlu1 %23430, %v25658_v51   ;;  %v25900_v16 = vpop.permute.xlu0 %5912 }
 0x3b1   : > { %v3747_v33 = vadd.f32 %v25775_v46, %v3746_v32  ;;  %20786 = vmatprep.mubr.msk.f32.mxu0 %vm2085_vm0, %v3815_v4  ;;  %v25894_v56 = vpop.permute.xlu1 %5933  ;;  %30916 = vst [vmem:[#allocation121_spill] sm:$0xff] %v25900_v16  ;;  %7688 = vperm.xlu0 %23429, %v25781_v12  }
 0x3b2   : > { %30915 = vst [vmem:[#allocation120_spill] sm:$0xff] %v25894_v56  ;;  %20787 = vmatmul.mubr.msk.f32.gmra.mrb[102].mxu0 %vm2085_vm0, %v3816_v21  ;;  %v3818_v30 = vmax.f32 %v3752_v55, 0.0 }
 0x3b3   : > { %v3817_v36 = vmax.f32 %v3747_v33, 0.0  ;;  %v20738_v3 = vpop.f32.mrb[70].mxu1 }
 0x3b4   : > { %v3762_v18 = vadd.f32 %v20738_v3, %v25775_v46  ;;  %v3756_v61 = vpop.f32.mrb[71].mxu1  ;;  %7661 = vperm.xlu1 %23430, %v25674_v49   ;;  %v25910_v16 = vpop.permute.xlu0 %5918 }
 0x3b5   : > { %v3757_v32 = vadd.f32 %v25775_v46, %v3756_v61  ;;  %20789 = vmatprep.mubr.msk.f32.mxu0 %vm2085_vm0, %v3817_v36  ;;  %v25904_v4 = vpop.permute.xlu1 %5939  ;;  %30918 = vst [vmem:[#allocation123_spill] sm:$0xff] %v25910_v16  ;;  %7694 = vperm.xlu0 %23429, %v25790_v43  }
 0x3b6   : > { %30917 = vst [vmem:[#allocation122_spill] sm:$0xff] %v25904_v4  ;;  %20790 = vmatmul.mubr.msk.f32.gmra.mrb[104].mxu0 %vm2085_vm0, %v3818_v30  ;;  %v3820_v33 = vmax.f32 %v3762_v18, 0.0 }
 0x3b7   : > { %v3819_v21 = vmax.f32 %v3757_v32, 0.0  ;;  %v20741_v55 = vpop.f32.mrb[72].mxu1  ;;  %v25919_v32 = vld [vmem:[%s24916_s28 + $0xc0] sm:$0xff] }
 0x3b8   : > { %v3772_v3 = vadd.f32 %v20741_v55, %v25775_v46  ;;  %v3766_v56 = vpop.f32.mrb[73].mxu1  ;;  %7667 = vperm.xlu1 %23430, %v25688_v48   ;;  %v25922_v55 = vpop.permute.xlu0 %5924 }
 0x3b9   : > { %v3767_v61 = vadd.f32 %v25775_v46, %v3766_v56  ;;  %20792 = vmatprep.mubr.msk.f32.mxu0 %vm2085_vm0, %v3819_v21  ;;  %v25914_v36 = vpop.permute.xlu1 %5945  ;;  %30920 = vst [vmem:[#allocation125_spill] sm:$0xff] %v25922_v55  ;;  %v25930_v21 = vld [vmem:[%s24916_s28 + $0xd0] sm:$0xff] }
 0x3ba   : > { %30919 = vst [vmem:[#allocation124_spill] sm:$0xff] %v25914_v36  ;;  %20793 = vmatmul.mubr.msk.f32.gmra.mrb[106].mxu0 %vm2085_vm0, %v3820_v33  ;;  %v3822_v18 = vmax.f32 %v3772_v3, 0.0  ;;  %v25950_v55 = vld [vmem:[%s24916_s28 + $0xf0] sm:$0xff] }
 0x3bb   : > { %v3821_v30 = vmax.f32 %v3767_v61, 0.0  ;;  %v25939_v61 = vld [vmem:[%s24916_s28 + $0xe0] sm:$0xff] }
 0x3bc   : > { %7673 = vperm.xlu1 %23430, %v25919_v32   ;;  %v25935_v3 = vpop.permute.xlu0 %5930 }
 0x3bd   : > { %20795 = vmatprep.mubr.msk.f32.mxu0 %vm2085_vm0, %v3821_v30  ;;  %v25925_v56 = vpop.permute.xlu1 %5951  ;;  %30923 = vst [vmem:[#allocation128_spill] sm:$0xff] %v25935_v3 }
 0x3be   : > { %30921 = vst [vmem:[#allocation126_spill] sm:$0xff] %v25925_v56  ;;  %20796 = vmatmul.mubr.msk.f32.gmra.mrb[108].mxu0 %vm2085_vm0, %v3822_v18  ;;  %v23645_v56 = vmov 5  }
 0x3bf   : > { %23432 = vset.pattern.permute.xlu0 %v23645_v56 }
 0x3c0   : > { %7679 = vperm.xlu1 %23430, %v25930_v21   ;;  %v25942_v30 = vpop.permute.xlu0 %5936  ;;  %8471 = vperm.xlu0 %23432, %v25548_v40  }
 0x3c1   : > { %v25933_v33 = vpop.permute.xlu1 %5957  ;;  %30924 = vst [vmem:[#allocation129_spill] sm:$0xff] %v25942_v30 }
 0x3c2   : > { %30922 = vst [vmem:[#allocation127_spill] sm:$0xff] %v25933_v33 }
 0x3c4   : > { %7685 = vperm.xlu1 %23430, %v25939_v61   ;;  %v25953_v16 = vpop.permute.xlu0 %5942  ;;  %8480 = vperm.xlu0 %23432, %v25556_v28  }
 0x3c6   : > { %v20744_v18 = vpop.f32.mrb[74].mxu1  ;;  %v25944_v36 = vpop.permute.xlu1 %6734 }
 0x3c7   : > { %v3782_v4 = vadd.f32 %v20744_v18, %v25775_v46  ;;  %v3776_v33 = vpop.f32.mrb[75].mxu1 }
 0x3c8   : > { %v3777_v3 = vadd.f32 %v25775_v46, %v3776_v33  ;;  %7691 = vperm.xlu1 %23430, %v25950_v55   ;;  %v25961_v40 = vpop.permute.xlu0 %5948  ;;  %8486 = vperm.xlu0 %23432, %v25567_v15  }
 0x3c9   : > { %v3824_v43 = vmax.f32 %v3782_v4, 0.0 }
 0x3ca   : > { %v3823_v13 = vmax.f32 %v3777_v3, 0.0  ;;  %v25955_v30 = vpop.permute.xlu1 %6740 }
 0x3cc   : > { %20798 = vmatprep.mubr.msk.f32.mxu0 %vm2085_vm0, %v3823_v13  ;;  %23431 = vset.pattern.permute.xlu1 %v23645_v56  ;;  %v25967_v3 = vpop.permute.xlu0 %5954 }
 0x3cd   : > { %20799 = vmatmul.mubr.msk.f32.gmra.mrb[110].mxu0 %vm2085_vm0, %v3824_v43  ;;  %8468 = vperm.xlu1 %23431, %v25575_v29  }
 0x3ce   : > { %v25963_v33 = vpop.permute.xlu1 %6743  ;;  %8492 = vperm.xlu0 %23432, %v25582_v19   ;;  %v30926_v19 = vmov 0.0  }
 0x3cf   : > { %30925 = vst [vmem:[#allocation130_spill] sm:$0xff] %v25963_v33  ;;  %v17958_v25 = vsel %vm4807_vm4, 1.0, %v30926_v19  ;;  %v17957_v44 = vsel %vm4806_vm5, 1.0, %v30926_v19  ;;  %v17960_v8 = vsel %vm4809_vm7, 1.0, %v30926_v19  ;;  %v17962_v9 = vsel %vm4811_vm9, 1.0, %v30926_v19 }
 0x3d0   : > { %v17968_v10 = vsel %vm4817_vm15, 1.0, %v30926_v19  ;;  %v17970_v2 = vsel %vm4819_vm2, 1.0, %v30926_v19  ;;  %vm4821_vm4 = vcmp.eq.s32.totalorder %v25480_v23, %v30882_v50  ;;  %vm4822_vm5 = vcmp.eq.s32.totalorder %v25470_v35, %v30882_v50  ;;  %v30928_v35 = vld [vmem:[#allocation67_spill] sm:$0xff] }
 0x3d1   : > { %v20747_v18 = vpop.f32.mrb[76].mxu1  ;;  %8474 = vperm.xlu1 %23431, %v25589_v7   ;;  %v25979_v7 = vpop.permute.xlu0 %5960  ;;  %vm4824_vm7 = vcmp.eq.s32.totalorder %v30928_v35, %v30882_v50 }
 0x3d2   : > { %v3792_v28 = vadd.f32 %v20747_v18, %v25775_v46  ;;  %v3786_v4 = vpop.f32.mrb[77].mxu1  ;;  %v25970_v13 = vpop.permute.xlu1 %6749  ;;  %8498 = vperm.xlu0 %23432, %v25596_v31   ;;  %v17959_v31 = vsel %vm4808_vm6, 1.0, %v30926_v19  ;;  %vm4823_vm6 = vcmp.eq.s32.totalorder %v25495_v59, %v30882_v50  ;;  %v30929_v59 = vld [vmem:[#allocation79_spill] sm:$0xff] }
 0x3d3   : > { %v3787_v43 = vadd.f32 %v25775_v46, %v3786_v4  ;;  %v17956_v46 = vsel %vm4805_vm3, 1.0, %v30926_v19  ;;  %vm4820_vm3 = vcmp.eq.s32.totalorder %v25460_v11, %v30882_v50  ;;  %v17972_v11 = vsel %vm4821_vm4, 1.0, %v30926_v19 }
 0x3d4   : > { %v3826_v15 = vmax.f32 %v3792_v28, 0.0  ;;  %v17961_v28 = vsel %vm4810_vm8, 1.0, %v30926_v19  ;;  %vm4825_vm8 = vcmp.eq.s32.totalorder %v30929_v59, %v30882_v50 }
 0x3d5   : > { %v3825_v56 = vmax.f32 %v3787_v43, 0.0  ;;  %8477 = vperm.xlu1 %23431, %v25605_v58   ;;  %v25999_v52 = vpop.permute.xlu0 %6737  ;;  %v17964_v43 = vsel %vm4813_vm11, 1.0, %v30926_v19 }
 0x3d6   : > { %v25977_v33 = vpop.permute.xlu1 %6755  ;;  %8504 = vperm.xlu0 %23432, %v25614_v26  }
 0x3d7   : > { %20801 = vmatprep.mubr.msk.f32.mxu0 %vm2085_vm0, %v3825_v56  ;;  %v17966_v56 = vsel %vm4815_vm13, 1.0, %v30926_v19 }
 0x3d8   : > { %20802 = vmatmul.mubr.msk.f32.gmra.mrb[112].mxu0 %vm2085_vm0, %v3826_v15 }
 0x3d9   : > { %20868 = vmatprep.mubr.msk.f32.mxu0 %vm2085_vm0, %v17956_v46  ;;  %8483 = vperm.xlu1 %23431, %v25621_v53   ;;  %v26015_v57 = vpop.permute.xlu0 %6746  ;;  %v5222_v46 = vld [vmem:[%s30927_s11 + $0x8] sm:$0xff] }
 0x3da   : > { %v25992_v18 = vpop.permute.xlu1 %6761  ;;  %8510 = vperm.xlu0 %23432, %v25628_v63   ;;  %20916 = vmatprep.subr.mxu1 %v5222_v46 }
 0x3db   : > { %20917 = vmatpush3.msra.mxu1 %v5222_v46 }
 0x3dc   : > { %20869 = vmatmul.mubr.msk.f32.vlgmr.msra.gmra.mrb[114].mxu0 %vm2085_vm0, %v17957_v44  ;;  %v17971_v44 = vsel %vm4820_vm3, 1.0, %v30926_v19 }
 0x3dd   : > { %20871 = vmatprep.mubr.msk.f32.mxu0 %vm2085_vm0, %v17958_v25  ;;  %22639 = vmatpush3.bf16.msra.mxu0 %v25482_v45  ;;  %v26031_v38 = vpop.permute.xlu0 %6752 }
 0x3de   : > { %22641 = vmatprep.subr.bf16.mxu0 %v25540_v22  ;;  %8489 = vperm.xlu1 %23431, %v25635_v37   ;;  %v26007_v26 = vpop.permute.xlu1 %6767 }
 0x3df   : > { %8516 = vperm.xlu0 %23432, %v25642_v34   ;;  %v17963_v34 = vsel %vm4812_vm10, 1.0, %v30926_v19 }
 0x3e0   : > { %20872 = vmatmul.mubr.msk.f32.gmra.mrb[116].mxu0 %vm2085_vm0, %v17959_v31 }
 0x3e1   : > { %20874 = vmatprep.mubr.msk.f32.mxu0 %vm2085_vm0, %v17960_v8  ;;  %22643 = vmatpush3.bf16.msra.mxu0 %v25540_v22  ;;  %v26045_v0 = vpop.permute.xlu0 %6758  ;;  %v17973_v8 = vsel %vm4822_vm5, 1.0, %v30926_v19 }
 0x3e2   : > { %22645 = vmatprep.subr.bf16.mxu0 %v25482_v45  ;;  %8495 = vperm.xlu1 %23431, %v25649_v6   ;;  %v26023_v63 = vpop.permute.xlu1 %6773 }
 0x3e3   : > { %8522 = vperm.xlu0 %23432, %v25658_v51   ;;  %v17965_v51 = vsel %vm4814_vm12, 1.0, %v30926_v19 }
 0x3e4   : > { %20875 = vmatmul.mubr.msk.f32.gmra.mrb[118].mxu0 %vm2085_vm0, %v17961_v28  ;;  %v17974_v28 = vsel %vm4823_vm6, 1.0, %v30926_v19 }
 0x3e5   : > { %20877 = vmatprep.mubr.msk.f32.mxu0 %vm2085_vm0, %v17962_v9  ;;  %v26059_v54 = vpop.permute.xlu0 %6764 }
 0x3e6   : > { %8501 = vperm.xlu1 %23431, %v25667_v41   ;;  %v26037_v4 = vpop.permute.xlu1 %6779 }
 0x3e7   : > { %8528 = vperm.xlu0 %23432, %v25674_v49   ;;  %v17967_v49 = vsel %vm4816_vm14, 1.0, %v30926_v19 }
 0x3e8   : > { %20878 = vmatmul.mubr.msk.f32.gmra.mrb[120].mxu0 %vm2085_vm0, %v17963_v34 }
 0x3e9   : > { %20880 = vmatprep.mubr.msk.f32.mxu0 %vm2085_vm0, %v17964_v43  ;;  %v26073_v15 = vpop.permute.xlu0 %6770  ;;  %v17975_v43 = vsel %vm4824_vm7, 1.0, %v30926_v19 }
 0x3ea   : > { %8507 = vperm.xlu1 %23431, %v25681_v24   ;;  %v26051_v17 = vpop.permute.xlu1 %6785 }
 0x3eb   : > { %8534 = vperm.xlu0 %23432, %v25688_v48   ;;  %v17969_v48 = vsel %vm4818_vm1, 1.0, %v30926_v19 }
 0x3ec   : > { %20881 = vmatmul.mubr.msk.f32.gmra.mrb[122].mxu0 %vm2085_vm0, %v17965_v51  ;;  %v17976_v51 = vsel %vm4825_vm8, 1.0, %v30926_v19 }
 0x3ed   : > { %20883 = vmatprep.mubr.msk.f32.mxu0 %vm2085_vm0, %v17966_v56  ;;  %v26088_v20 = vpop.permute.xlu0 %6776  ;;  %v30930_v56 = vld [vmem:[#allocation78_spill] sm:$0xff] }
 0x3ee   : > { %8513 = vperm.xlu1 %23431, %v25697_v42   ;;  %v26065_v60 = vpop.permute.xlu1 %6791  ;;  %vm4826_vm9 = vcmp.eq.s32.totalorder %v30930_v56, %v30882_v50  ;;  %v23646_v56 = vmov 6  }
 0x3ef   : > { %8540 = vperm.xlu0 %23432, %v25919_v32  }
 0x3f0   : > { %20884 = vmatmul.mubr.msk.f32.gmra.mrb[124].mxu0 %vm2085_vm0, %v17967_v49 }
 0x3f1   : > { %20886 = vmatprep.mubr.msk.f32.mxu0 %vm2085_vm0, %v17968_v10  ;;  %v26102_v31 = vpop.permute.xlu0 %6782  ;;  %v30931_v10 = vld [vmem:[#allocation68_spill] sm:$0xff] }
 0x3f2   : > { %8519 = vperm.xlu1 %23431, %v25710_v47   ;;  %v26079_v14 = vpop.permute.xlu1 %6797  ;;  %vm4827_vm10 = vcmp.eq.s32.totalorder %v30931_v10, %v30882_v50  ;;  %v30936_v10 = vld [vmem:[#allocation86_spill] sm:$0xff] }
 0x3f3   : > { %8546 = vperm.xlu0 %23432, %v25930_v21   ;;  %vm4831_vm14 = vcmp.eq.s32.totalorder %v30936_v10, %v30882_v50  ;;  %v30942_v10 = vld [vmem:[#allocation74_spill] sm:$0xff] }
 0x3f4   : > { %20887 = vmatmul.mubr.msk.f32.gmra.mrb[126].mxu0 %vm2085_vm0, %v17969_v48  ;;  %v17977_v48 = vsel %vm4826_vm9, 1.0, %v30926_v19  ;;  %vm4834_vm2 = vcmp.eq.s32.totalorder %v30942_v10, %v30882_v50  ;;  %v30946_v10 = vld [vmem:[#allocation81_spill] sm:$0xff] }
 0x3f5   : > { %20889 = vmatprep.mubr.msk.f32.mxu0 %vm2085_vm0, %v17970_v2  ;;  %v26116_v9 = vpop.permute.xlu0 %6788  ;;  %v17978_v2 = vsel %vm4827_vm10, 1.0, %v30926_v19  ;;  %vm4836_vm5 = vcmp.eq.s32.totalorder %v30946_v10, %v30882_v50  ;;  %v26214_v10 = vld [vmem:[%s24916_s28 + $0x10] sm:$0xff] }
 0x3f6   : > { %8525 = vperm.xlu1 %23431, %v25721_v1   ;;  %v26094_v25 = vpop.permute.xlu1 %6803 }
 0x3f7   : > { %8552 = vperm.xlu0 %23432, %v25939_v61  }
 0x3f8   : > { %20890 = vmatmul.mubr.msk.f32.gmra.mrb[128].mxu0 %vm2085_vm0, %v17971_v44  ;;  %v30932_v44 = vld [vmem:[#allocation83_spill] sm:$0xff] }
 0x3f9   : > { %20892 = vmatprep.mubr.msk.f32.mxu0 %vm2085_vm0, %v17972_v11  ;;  %v26130_v49 = vpop.permute.xlu0 %6794  ;;  %vm4828_vm11 = vcmp.eq.s32.totalorder %v30932_v44, %v30882_v50  ;;  %v30938_v44 = vld [vmem:[#allocation73_spill] sm:$0xff] }
 0x3fa   : > { %8531 = vperm.xlu1 %23431, %v25732_v27   ;;  %v26108_v23 = vpop.permute.xlu1 %6809  ;;  %vm4832_vm15 = vcmp.eq.s32.totalorder %v30938_v44, %v30882_v50  ;;  %v30943_v44 = vld [vmem:[#allocation92_spill] sm:$0xff] }
 0x3fb   : > { %8558 = vperm.xlu0 %23432, %v25950_v55   ;;  %vm4835_vm3 = vcmp.eq.s32.totalorder %v30943_v44, %v30882_v50  ;;  %v17987_v44 = vsel %vm4836_vm5, 1.0, %v30926_v19 }
 0x3fc   : > { %20893 = vmatmul.mubr.msk.f32.gmra.mrb[130].mxu0 %vm2085_vm0, %v17973_v8  ;;  %v30933_v8 = vld [vmem:[#allocation70_spill] sm:$0xff] }
 0x3fd   : > { %20895 = vmatprep.mubr.msk.f32.mxu0 %vm2085_vm0, %v17974_v28  ;;  %v26143_v11 = vpop.permute.xlu0 %6800  ;;  %vm4829_vm12 = vcmp.eq.s32.totalorder %v30933_v8, %v30882_v50  ;;  %v17979_v28 = vsel %vm4828_vm11, 1.0, %v30926_v19 }
 0x3fe   : > { %8537 = vperm.xlu1 %23431, %v25747_v39   ;;  %v26122_v34 = vpop.permute.xlu1 %6815  ;;  %v17980_v59 = vsel %vm4829_vm12, 1.0, %v30926_v19 }
 0x3ff   : > { %23433 = vset.pattern.permute.xlu0 %v23646_v56 }
 0x400   : > { %20896 = vmatmul.mubr.msk.f32.gmra.mrb[132].mxu0 %vm2085_vm0, %v17975_v43  ;;  %v30935_v43 = vld [vmem:[#allocation91_spill] sm:$0xff]  ;;  %9335 = vperm.xlu0 %23433, %v25575_v29   ;;  %v30940_v29 = vld [vmem:[#allocation102_spill] sm:$0xff] }
 0x401   : > { %20898 = vmatprep.mubr.msk.f32.mxu0 %vm2085_vm0, %v17976_v51  ;;  %vm4830_vm13 = vcmp.eq.s32.totalorder %v30935_v43, %v30882_v50  ;;  %v26156_v51 = vpop.permute.xlu0 %6806 }
 0x402   : > { %8543 = vperm.xlu1 %23431, %v25757_v62   ;;  %v26136_v46 = vpop.permute.xlu1 %6821 }
 0x404   : > { %20899 = vmatmul.mubr.msk.f32.gmra.mrb[134].mxu0 %vm2085_vm0, %v17977_v48  ;;  %9344 = vperm.xlu0 %23433, %v25605_v58   ;;  %v17985_v58 = vsel %vm4834_vm2, 1.0, %v30926_v19 }
 0x405   : > { %20901 = vmatprep.mubr.msk.f32.mxu0 %vm2085_vm0, %v17978_v2  ;;  %v17982_v2 = vsel %vm4831_vm14, 1.0, %v30926_v19  ;;  %v26170_v8 = vpop.permute.xlu0 %6812 }
 0x406   : > { %8549 = vperm.xlu1 %23431, %v25768_v5   ;;  %v26150_v35 = vpop.permute.xlu1 %6827  ;;  %v17981_v5 = vsel %vm4830_vm13, 1.0, %v30926_v19 }
 0x407   : > { %30934 = vst [vmem:[#allocation67_spill] sm:$0xff] %v26150_v35  ;;  %v30980_v35 = vld [vmem:[#allocation121_spill] sm:$0xff] }
 0x408   : > { %20902 = vmatmul.mubr.msk.f32.gmra.mrb[136].mxu0 %vm2085_vm0, %v17979_v28  ;;  %v30939_v28 = vld [vmem:[#allocation89_spill] sm:$0xff]  ;;  %9350 = vperm.xlu0 %23433, %v25621_v53   ;;  %vm5977_vm5 = vcmp.eq.s32.totalorder %v30980_v35, %v30882_v50 }
 0x409   : > { %20904 = vmatprep.mubr.msk.f32.mxu0 %vm2085_vm0, %v17980_v59  ;;  %vm4833_vm1 = vcmp.eq.s32.totalorder %v30939_v28, %v30882_v50  ;;  %v26194_v28 = vld [vmem:[%s24916_s28 + $0x8] sm:$0xff] }
 0x40a   : > { %8555 = vperm.xlu1 %23431, %v25781_v12   ;;  %v17983_v12 = vsel %vm4832_vm15, 1.0, %v30926_v19  ;;  %v17984_v43 = vsel %vm4833_vm1, 1.0, %v30926_v19 }
 0x40b   : > { %v26164_v48 = vpop.permute.xlu1 %7604 }
 0x40c   : > { %30937 = vst [vmem:[#allocation79_spill] sm:$0xff] %v26164_v48  ;;  %20905 = vmatmul.mubr.msk.f32.gmra.mrb[138].mxu0 %vm2085_vm0, %v17981_v5  ;;  %v26184_v5 = vpop.permute.xlu0 %6818  ;;  %9356 = vperm.xlu0 %23433, %v25635_v37  }
 0x40d   : > { %20907 = vmatprep.mubr.msk.f32.mxu0 %vm2085_vm0, %v17982_v2  ;;  %v30944_v2 = vld [vmem:[#allocation107_spill] sm:$0xff] }
 0x40e   : > { %8561 = vperm.xlu1 %23431, %v30940_v29   ;;  %vm5962_vm4 = vcmp.eq.s32.totalorder %v30944_v2, %v30882_v50  ;;  %v30948_v2 = vld [vmem:[#allocation103_spill] sm:$0xff] }
 0x40f   : > { %v26178_v59 = vpop.permute.xlu1 %7607  ;;  %vm5964_vm7 = vcmp.eq.s32.totalorder %v30948_v2, %v30882_v50  ;;  %v30951_v2 = vld [vmem:[#allocation109_spill] sm:$0xff] }
 0x410   : > { %30941 = vst [vmem:[#allocation78_spill] sm:$0xff] %v26178_v59  ;;  %20908 = vmatmul.mubr.msk.f32.gmra.mrb[140].mxu0 %vm2085_vm0, %v17983_v12  ;;  %v17986_v12 = vsel %vm4835_vm3, 1.0, %v30926_v19  ;;  %v26203_v53 = vpop.permute.xlu0 %6824  ;;  %9362 = vperm.xlu0 %23433, %v25649_v6   ;;  %vm5965_vm8 = vcmp.eq.s32.totalorder %v30951_v2, %v30882_v50 }
 0x411   : > { %20910 = vmatprep.mubr.msk.f32.mxu0 %vm2085_vm0, %v17984_v43  ;;  %v18084_v43 = vsel %vm5962_vm4, 1.0, %v30926_v19  ;;  %v18087_v6 = vsel %vm5965_vm8, 1.0, %v30926_v19 }
 0x412   : > { %23434 = vset.pattern.permute.xlu1 %v23646_v56  ;;  %v30947_v56 = vld [vmem:[#allocation101_spill] sm:$0xff] }
 0x413   : > { %9338 = vperm.xlu1 %23434, %v26194_v28   ;;  %v26197_v29 = vpop.permute.xlu1 %7613  ;;  %vm5963_vm6 = vcmp.eq.s32.totalorder %v30947_v56, %v30882_v50  ;;  %v18086_v56 = vsel %vm5964_vm7, 1.0, %v30926_v19 }
 0x414   : > { %30945 = vst [vmem:[#allocation68_spill] sm:$0xff] %v26197_v29  ;;  %20911 = vmatmul.mubr.msk.f32.gmra.mrb[142].mxu0 %vm2085_vm0, %v17985_v58  ;;  %v26220_v37 = vpop.permute.xlu0 %7601  ;;  %v30952_v29 = vld [vmem:[#allocation104_spill] sm:$0xff]  ;;  %9368 = vperm.xlu0 %23433, %v25667_v41   ;;  %v30958_v41 = vld [vmem:[#allocation113_spill] sm:$0xff] }
 0x415   : > { %20913 = vmatprep.mubr.msk.f32.mxu0 %vm2085_vm0, %v17986_v12  ;;  %30950 = vst [vmem:[#allocation70_spill] sm:$0xff] %v26220_v37  ;;  %v18085_v12 = vsel %vm5963_vm6, 1.0, %v30926_v19  ;;  %vm5966_vm9 = vcmp.eq.s32.totalorder %v30952_v29, %v30882_v50  ;;  %v30955_v29 = vld [vmem:[#allocation111_spill] sm:$0xff]  ;;  %vm5969_vm12 = vcmp.eq.s32.totalorder %v30958_v41, %v30882_v50  ;;  %v31011_v37 = vld [vmem:[#allocation129_spill] sm:$0xff] }
 0x416   : > { %v18088_v2 = vsel %vm5966_vm9, 1.0, %v30926_v19  ;;  %vm5967_vm10 = vcmp.eq.s32.totalorder %v30955_v29, %v30882_v50  ;;  %v18091_v41 = vsel %vm5969_vm12, 1.0, %v30926_v19 }
 0x417   : > { %9341 = vperm.xlu1 %23434, %v26214_v10   ;;  %v26217_v58 = vpop.permute.xlu1 %7619 }
 0x418   : > { %30949 = vst [vmem:[#allocation83_spill] sm:$0xff] %v26217_v58  ;;  %20914 = vmatmul.mubr.msk.f32.gmra.mrb[144].mxu0 %vm2085_vm0, %v17987_v44  ;;  %v26231_v58 = vld [vmem:[%s24916_s28 + $0x20] sm:$0xff]  ;;  %9374 = vperm.xlu0 %23433, %v25681_v24  }
 0x419   : > { %21024 = vmatprep.mubr.msk.f32.mxu0 %vm2085_vm0, %v18084_v43  ;;  %v26237_v43 = vpop.permute.xlu0 %7610 }
 0x41a   : > { %30954 = vst [vmem:[#allocation86_spill] sm:$0xff] %v26237_v43  ;;  %v18089_v43 = vsel %vm5967_vm10, 1.0, %v30926_v19 }
 0x41b   : > { %9347 = vperm.xlu1 %23434, %v26231_v58   ;;  %v26234_v44 = vpop.permute.xlu1 %7625 }
 0x41c   : > { %30953 = vst [vmem:[#allocation91_spill] sm:$0xff] %v26234_v44  ;;  %21025 = vmatmul.mubr.msk.f32.vlgmr.msra.gmra.mrb[146].mxu0 %vm2085_vm0, %v18085_v12  ;;  %v30956_v12 = vld [vmem:[#allocation105_spill] sm:$0xff]  ;;  %v26250_v44 = vld [vmem:[%s24916_s28 + $0x30] sm:$0xff]  ;;  %9380 = vperm.xlu0 %23433, %v25697_v42  }
 0x41d   : > { %21027 = vmatprep.mubr.msk.f32.mxu0 %vm2085_vm0, %v18086_v56  ;;  %22647 = vmatpush3.bf16.msra.mxu0 %v25482_v45  ;;  %vm5968_vm11 = vcmp.eq.s32.totalorder %v30956_v12, %v30882_v50  ;;  %v26263_v12 = vpop.permute.xlu0 %7616 }
 0x41e   : > { %22649 = vmatprep.subr.bf16.mxu0 %v25540_v22  ;;  %v18090_v29 = vsel %vm5968_vm11, 1.0, %v30926_v19  ;;  %30959 = vst [vmem:[#allocation89_spill] sm:$0xff] %v26263_v12  ;;  %v30962_v12 = vld [vmem:[#allocation115_spill] sm:$0xff] }
 0x41f   : > { %9353 = vperm.xlu1 %23434, %v26250_v44   ;;  %v26253_v56 = vpop.permute.xlu1 %7631  ;;  %vm5971_vm14 = vcmp.eq.s32.totalorder %v30962_v12, %v30882_v50 }
 0x420   : > { %30957 = vst [vmem:[#allocation73_spill] sm:$0xff] %v26253_v56  ;;  %21028 = vmatmul.mubr.msk.f32.gmra.mrb[148].mxu0 %vm2085_vm0, %v18087_v6  ;;  %v30960_v6 = vld [vmem:[#allocation106_spill] sm:$0xff]  ;;  %v26269_v56 = vld [vmem:[%s24916_s28 + $0x40] sm:$0xff]  ;;  %9386 = vperm.xlu0 %23433, %v25710_v47  }
 0x421   : > { %21030 = vmatprep.mubr.msk.f32.mxu0 %vm2085_vm0, %v18088_v2  ;;  %22651 = vmatpush3.bf16.msra.mxu0 %v25540_v22  ;;  %vm5970_vm13 = vcmp.eq.s32.totalorder %v30960_v6, %v30882_v50  ;;  %v26280_v24 = vpop.permute.xlu0 %7622  ;;  %v30964_v6 = vld [vmem:[#allocation108_spill] sm:$0xff] }
 0x422   : > { %22653 = vmatprep.subr.bf16.mxu0 %v25482_v45  ;;  %v18092_v59 = vsel %vm5970_vm13, 1.0, %v30926_v19  ;;  %30963 = vst [vmem:[#allocation74_spill] sm:$0xff] %v26280_v24  ;;  %vm5972_vm15 = vcmp.eq.s32.totalorder %v30964_v6, %v30882_v50  ;;  %v30966_v24 = vld [vmem:[#allocation117_spill] sm:$0xff]  ;;  %v30968_v6 = vld [vmem:[#allocation110_spill] sm:$0xff]  ;;  %vm5985_vm13 = vcmp.eq.s32.totalorder %v31011_v37, %v30882_v50 }
 0x423   : > { %9359 = vperm.xlu1 %23434, %v26269_v56   ;;  %v26272_v2 = vpop.permute.xlu1 %7637  ;;  %v18094_v12 = vsel %vm5972_vm15, 1.0, %v30926_v19  ;;  %vm5973_vm1 = vcmp.eq.s32.totalorder %v30966_v24, %v30882_v50  ;;  %vm5974_vm2 = vcmp.eq.s32.totalorder %v30968_v6, %v30882_v50  ;;  %v26311_v24 = vpop.f32.mrb[78].mxu1  ;;  %v31015_v37 = vld [vmem:[#allocation122_spill] sm:$0xff]  ;;  %vm5987_vm15 = vcmp.eq.s32.totalorder %v25953_v16, %v30882_v50  ;;  %v31019_v16 = vld [vmem:[#allocation124_spill] sm:$0xff] }
 0x424   : > { %30961 = vst [vmem:[#allocation102_spill] sm:$0xff] %v26272_v2  ;;  %21031 = vmatmul.mubr.msk.f32.gmra.mrb[150].mxu0 %vm2085_vm0, %v18089_v43  ;;  %v26286_v2 = vld [vmem:[%s24916_s28 + $0x50] sm:$0xff]  ;;  %30970 = vst [vmem:[#allocation101_spill] sm:$0xff] %v26311_v24  ;;  %v18096_v47 = vsel %vm5974_vm2, 1.0, %v30926_v19  ;;  %v26318_v48 = vpop.f32.mrb[79].mxu1  ;;  %9392 = vperm.xlu0 %23433, %v25721_v1   ;;  %v26337_v1 = vld [vmem:[%s30927_s11] sm:$0xff]  ;;  %vm5989_vm2 = vcmp.eq.s32.totalorder %v25961_v40, %v30882_v50 }
 0x425   : > { %21033 = vmatprep.mubr.msk.f32.mxu0 %vm2085_vm0, %v18090_v29  ;;  %v18093_v29 = vsel %vm5971_vm14, 1.0, %v30926_v19  ;;  %v26297_v42 = vpop.permute.xlu0 %7628  ;;  %30973 = vst [vmem:[#allocation109_spill] sm:$0xff] %v26318_v48  ;;  %v26329_v24 = vpop.f32.mrb[80].mxu1  ;;  %30978 = vst [vmem:[#allocation113_spill] sm:$0xff] %v26337_v1  ;;  %20966 = vmatprep.subr.mxu1 %v26337_v1  ;;  %v30987_v1 = vld [vmem:[#allocation123_spill] sm:$0xff]  ;;  %vm5986_vm14 = vcmp.eq.s32.totalorder %v31015_v37, %v30882_v50  ;;  %v31022_v40 = vld [vmem:[#allocation126_spill] sm:$0xff] }
 0x426   : > { %30967 = vst [vmem:[#allocation107_spill] sm:$0xff] %v26297_v42  ;;  %v30971_v42 = vld [vmem:[#allocation119_spill] sm:$0xff]  ;;  %30976 = vst [vmem:[#allocation111_spill] sm:$0xff] %v26329_v24  ;;  %vm5979_vm7 = vcmp.eq.s32.totalorder %v30987_v1, %v30882_v50 }
 0x427   : > { %9365 = vperm.xlu1 %23434, %v26286_v2   ;;  %v26289_v43 = vpop.permute.xlu1 %7643  ;;  %vm5975_vm3 = vcmp.eq.s32.totalorder %v30971_v42, %v30882_v50  ;;  %v26332_v42 = vpop.f32.mrb[81].mxu1 }
 0x428   : > { %30965 = vst [vmem:[#allocation92_spill] sm:$0xff] %v26289_v43  ;;  %21034 = vmatmul.mubr.msk.f32.gmra.mrb[152].mxu0 %vm2085_vm0, %v18091_v41  ;;  %v26303_v43 = vld [vmem:[%s24916_s28 + $0x60] sm:$0xff]  ;;  %30977 = vst [vmem:[#allocation105_spill] sm:$0xff] %v26332_v42  ;;  %v18097_v48 = vsel %vm5975_vm3, 1.0, %v30926_v19  ;;  %9398 = vperm.xlu0 %23433, %v25732_v27   ;;  %vm5990_vm3 = vcmp.eq.s32.totalorder %v31022_v40, %v30882_v50  ;;  %v31025_v40 = vld [vmem:[#allocation127_spill] sm:$0xff] }
 0x429   : > { %21036 = vmatprep.mubr.msk.f32.mxu0 %vm2085_vm0, %v18092_v59  ;;  %v18095_v59 = vsel %vm5973_vm1, 1.0, %v30926_v19  ;;  %v26316_v6 = vpop.permute.xlu0 %7634  ;;  %vm5988_vm1 = vcmp.eq.s32.totalorder %v31019_v16, %v30882_v50  ;;  %v18111_v16 = vsel %vm5989_vm2, 1.0, %v30926_v19  ;;  %vm6839_vm2 = vcmp.eq.s32.totalorder %v26059_v54, %v30882_v50 }
 0x42a   : > { %30972 = vst [vmem:[#allocation103_spill] sm:$0xff] %v26316_v6 }
 0x42b   : > { %9371 = vperm.xlu1 %23434, %v26303_v43   ;;  %v26306_v41 = vpop.permute.xlu1 %7649 }
 0x42c   : > { %30969 = vst [vmem:[#allocation81_spill] sm:$0xff] %v26306_v41  ;;  %21037 = vmatmul.mubr.msk.f32.gmra.mrb[154].mxu0 %vm2085_vm0, %v18093_v29  ;;  %v30974_v29 = vld [vmem:[#allocation112_spill] sm:$0xff]  ;;  %v26324_v41 = vld [vmem:[%s24916_s28 + $0x70] sm:$0xff]  ;;  %9404 = vperm.xlu0 %23433, %v25747_v39  }
 0x42d   : > { %21039 = vmatprep.mubr.msk.f32.mxu0 %vm2085_vm0, %v18094_v12  ;;  %vm5976_vm4 = vcmp.eq.s32.totalorder %v30974_v29, %v30882_v50  ;;  %v26339_v29 = vpop.f32.mrb[82].mxu1  ;;  %v26345_v24 = vpop.permute.xlu0 %7640 }
 0x42e   : > { %30979 = vst [vmem:[#allocation106_spill] sm:$0xff] %v26339_v29  ;;  %v18098_v6 = vsel %vm5976_vm4, 1.0, %v30926_v19  ;;  %30981 = vst [vmem:[#allocation115_spill] sm:$0xff] %v26345_v24  ;;  %v26356_v42 = vpop.f32.mrb[83].mxu1  ;;  %vm5991_vm4 = vcmp.eq.s32.totalorder %v25967_v3, %v30882_v50 }
 0x42f   : > { %9377 = vperm.xlu1 %23434, %v26324_v41   ;;  %v26327_v12 = vpop.permute.xlu1 %7655  ;;  %30984 = vst [vmem:[#allocation117_spill] sm:$0xff] %v26356_v42  ;;  %v26359_v35 = vpop.f32.mrb[84].mxu1  ;;  %v30995_v42 = vld [vmem:[#allocation125_spill] sm:$0xff]  ;;  %v18113_v3 = vsel %vm5991_vm4, 1.0, %v30926_v19  ;;  %vm6841_vm4 = vcmp.eq.s32.totalorder %v26073_v15, %v30882_v50 }
 0x430   : > { %30975 = vst [vmem:[#allocation104_spill] sm:$0xff] %v26327_v12  ;;  %21040 = vmatmul.mubr.msk.f32.gmra.mrb[156].mxu0 %vm2085_vm0, %v18095_v59  ;;  %v30982_v59 = vld [vmem:[#allocation114_spill] sm:$0xff]  ;;  %30985 = vst [vmem:[#allocation110_spill] sm:$0xff] %v26359_v35  ;;  %v18099_v12 = vsel %vm5977_vm5, 1.0, %v30926_v19  ;;  %v26363_v27 = vpop.f32.mrb[85].mxu1  ;;  %vm5981_vm9 = vcmp.eq.s32.totalorder %v30995_v42, %v30882_v50  ;;  %9410 = vperm.xlu0 %23433, %v25757_v62   ;;  %vm5992_vm5 = vcmp.eq.s32.totalorder %v31025_v40, %v30882_v50 }
 0x431   : > { %21042 = vmatprep.mubr.msk.f32.mxu0 %vm2085_vm0, %v18096_v47  ;;  %vm5978_vm6 = vcmp.eq.s32.totalorder %v30982_v59, %v30882_v50  ;;  %v26351_v47 = vld [vmem:[%s24916_s28 + $0x80] sm:$0xff]  ;;  %30986 = vst [vmem:[#allocation119_spill] sm:$0xff] %v26363_v27  ;;  %v26368_v24 = vpop.permute.xlu0 %7646  ;;  %v26376_v35 = vld [vmem:[%s24916_s28 + $0x90] sm:$0xff]  ;;  %v18114_v40 = vsel %vm5992_vm5, 1.0, %v30926_v19  ;;  %vm6842_vm5 = vcmp.eq.s32.totalorder %v26023_v63, %v30882_v50 }
 0x432   : > { %v18100_v59 = vsel %vm5978_vm6, 1.0, %v30926_v19  ;;  %30988 = vst [vmem:[#allocation112_spill] sm:$0xff] %v26368_v24  ;;  %v31001_v42 = vld [vmem:[#allocation118_spill] sm:$0xff]  ;;  %vm5993_vm6 = vcmp.eq.s32.totalorder %v25979_v7, %v30882_v50  ;;  %v18193_v63 = vsel %vm6842_vm5, 1.0, %v30926_v19  ;;  %vm6856_vm5 = vcmp.eq.s32.totalorder %v26122_v34, %v30882_v50 }
 0x433   : > { %9383 = vperm.xlu1 %23434, %v26351_v47   ;;  %v26354_v29 = vpop.permute.xlu1 %7661  ;;  %vm5982_vm10 = vcmp.eq.s32.totalorder %v31001_v42, %v30882_v50  ;;  %v18207_v34 = vsel %vm6856_vm5, 1.0, %v30926_v19 }
 0x434   : > { %30983 = vst [vmem:[#allocation108_spill] sm:$0xff] %v26354_v29  ;;  %21043 = vmatmul.mubr.msk.f32.gmra.mrb[158].mxu0 %vm2085_vm0, %v18097_v48  ;;  %v26370_v29 = vpop.f32.mrb[86].mxu1  ;;  %v30990_v48 = vld [vmem:[#allocation116_spill] sm:$0xff] }
 0x435   : > { %21045 = vmatprep.mubr.msk.f32.mxu0 %vm2085_vm0, %v18098_v6  ;;  %30989 = vst [vmem:[#allocation121_spill] sm:$0xff] %v26370_v29  ;;  %vm5980_vm8 = vcmp.eq.s32.totalorder %v30990_v48, %v30882_v50  ;;  %v26381_v27 = vpop.f32.mrb[87].mxu1  ;;  %v18101_v29 = vsel %vm5979_vm7, 1.0, %v30926_v19  ;;  %v26393_v24 = vpop.permute.xlu0 %7652  ;;  %vm6829_vm7 = vcmp.eq.s32.totalorder %v25944_v36, %v30882_v50 }
 0x436   : > { %30992 = vst [vmem:[#allocation123_spill] sm:$0xff] %v26381_v27  ;;  %v26384_v1 = vpop.f32.mrb[88].mxu1  ;;  %v18102_v48 = vsel %vm5980_vm8, 1.0, %v30926_v19  ;;  %30996 = vst [vmem:[#allocation125_spill] sm:$0xff] %v26393_v24  ;;  %v31003_v27 = vld [vmem:[#allocation128_spill] sm:$0xff]  ;;  %v18180_v36 = vsel %vm6829_vm7, 1.0, %v30926_v19  ;;  %vm6830_vm8 = vcmp.eq.s32.totalorder %v25999_v52, %v30882_v50  ;;  %vm6844_vm7 = vcmp.eq.s32.totalorder %v26037_v4, %v30882_v50 }
 0x437   : > { %9389 = vperm.xlu1 %23434, %v26376_v35   ;;  %v26379_v6 = vpop.permute.xlu1 %7667  ;;  %30993 = vst [vmem:[#allocation116_spill] sm:$0xff] %v26384_v1  ;;  %v26388_v39 = vpop.f32.mrb[89].mxu1  ;;  %vm5983_vm11 = vcmp.eq.s32.totalorder %v31003_v27, %v30882_v50  ;;  %v18181_v52 = vsel %vm6830_vm8, 1.0, %v30926_v19  ;;  %vm6845_vm8 = vcmp.eq.s32.totalorder %v26102_v31, %v30882_v50  ;;  %v18195_v4 = vsel %vm6844_vm7, 1.0, %v30926_v19 }
 0x438   : > { %30991 = vst [vmem:[#allocation114_spill] sm:$0xff] %v26379_v6  ;;  %21046 = vmatmul.mubr.msk.f32.gmra.mrb[160].mxu0 %vm2085_vm0, %v18099_v12  ;;  %30994 = vst [vmem:[#allocation131_spill] sm:$0xff] %v26388_v39  ;;  %v26395_v6 = vpop.f32.mrb[90].mxu1  ;;  %v26399_v12 = vld [vmem:[%s24916_s28 + $0xa0] sm:$0xff]  ;;  %vm6858_vm7 = vcmp.eq.s32.totalorder %v26136_v46, %v30882_v50 }
 0x439   : > { %21048 = vmatprep.mubr.msk.f32.mxu0 %vm2085_vm0, %v18100_v59  ;;  %30997 = vst [vmem:[#allocation132_spill] sm:$0xff] %v26395_v6  ;;  %v26404_v1 = vpop.f32.mrb[91].mxu1  ;;  %v18103_v6 = vsel %vm5981_vm9, 1.0, %v30926_v19  ;;  %v26417_v24 = vpop.permute.xlu0 %7658  ;;  %vm6831_vm9 = vcmp.eq.s32.totalorder %v25955_v30, %v30882_v50  ;;  %v26568_v30 = vld [vmem:[%s24916_s28 + $0x18] sm:$0xff]  ;;  %v18209_v46 = vsel %vm6858_vm7, 1.0, %v30926_v19  ;;  %vm5223_vm7 = vcmask 64512  }
 0x43a   : > { %30999 = vst [vmem:[#allocation134_spill] sm:$0xff] %v26404_v1  ;;  %v26407_v39 = vpop.f32.mrb[92].mxu1  ;;  %31004 = vst [vmem:[#allocation128_spill] sm:$0xff] %v26417_v24  ;;  %v26422_v1 = vld [vmem:[%s24916_s28 + $0xd8] sm:$0xff] }
 0x43b   : > { %9395 = vperm.xlu1 %23434, %v26399_v12   ;;  %v26402_v59 = vpop.permute.xlu1 %7673  ;;  %31000 = vst [vmem:[#allocation135_spill] sm:$0xff] %v26407_v39  ;;  %v26413_v62 = vpop.f32.mrb[93].mxu1  ;;  %9416 = vperm.xlu0 %23433, %v26422_v1   ;;  %v18104_v39 = vsel %vm5982_vm10, 1.0, %v30926_v19 }
 0x43c   : > { %30998 = vst [vmem:[#allocation133_spill] sm:$0xff] %v26402_v59  ;;  %21049 = vmatmul.mubr.msk.f32.gmra.mrb[162].mxu0 %vm2085_vm0, %v18101_v29  ;;  %31002 = vst [vmem:[#allocation118_spill] sm:$0xff] %v26413_v62  ;;  %v26419_v59 = vpop.f32.mrb[94].mxu1  ;;  %v26426_v29 = vld [vmem:[%s24916_s28 + $0xb0] sm:$0xff]  ;;  %v18105_v62 = vsel %vm5983_vm11, 1.0, %v30926_v19  ;;  %vm6833_vm11 = vcmp.eq.s32.totalorder %v26015_v57, %v30882_v50 }
 0x43d   : > { %21051 = vmatprep.mubr.msk.f32.mxu0 %vm2085_vm0, %v18102_v48  ;;  %31005 = vst [vmem:[#allocation136_spill] sm:$0xff] %v26419_v59  ;;  %v26431_v48 = vpop.f32.mrb[95].mxu1  ;;  %v31009_v59 = vld [vmem:[#allocation120_spill] sm:$0xff] }
 0x43e   : > { %31007 = vst [vmem:[#allocation138_spill] sm:$0xff] %v26431_v48  ;;  %v26435_v27 = vpop.f32.mrb[96].mxu1  ;;  %vm5984_vm12 = vcmp.eq.s32.totalorder %v31009_v59, %v30882_v50  ;;  %v26445_v48 = vpop.permute.xlu0 %7664 }
 0x43f   : > { %9401 = vperm.xlu1 %23434, %v26426_v29   ;;  %v26429_v42 = vpop.permute.xlu1 %7679  ;;  %31008 = vst [vmem:[#allocation139_spill] sm:$0xff] %v26435_v27  ;;  %v26441_v24 = vpop.f32.mrb[97].mxu1  ;;  %v18106_v27 = vsel %vm5984_vm12, 1.0, %v30926_v19  ;;  %vm6834_vm12 = vcmp.eq.s32.totalorder %v25970_v13, %v30882_v50 }
 0x440   : > { %31006 = vst [vmem:[#allocation137_spill] sm:$0xff] %v26429_v42  ;;  %21052 = vmatmul.mubr.msk.f32.gmra.mrb[164].mxu0 %vm2085_vm0, %v18103_v6  ;;  %31010 = vst [vmem:[#allocation120_spill] sm:$0xff] %v26441_v24  ;;  %v26450_v6 = vld [vmem:[%s24916_s28 + $0xe8] sm:$0xff]  ;;  %v18185_v13 = vsel %vm6834_vm12, 1.0, %v30926_v19  ;;  %vm6849_vm12 = vcmp.eq.s32.totalorder %v26130_v49, %v30882_v50 }
 0x441   : > { %21054 = vmatprep.mubr.msk.f32.mxu0 %vm2085_vm0, %v18104_v39  ;;  %9422 = vperm.xlu0 %23433, %v26450_v6  }
 0x442   : > { %v26447_v42 = vpop.f32.mrb[98].mxu1 }
 0x443   : > { %31012 = vst [vmem:[#allocation129_spill] sm:$0xff] %v26447_v42  ;;  %9407 = vperm.xlu1 %23434, %v25919_v32   ;;  %v26454_v59 = vpop.permute.xlu1 %7685  ;;  %v26456_v39 = vpop.f32.mrb[99].mxu1  ;;  %v18107_v42 = vsel %vm5985_vm13, 1.0, %v30926_v19  ;;  %vm6835_vm13 = vcmp.eq.s32.totalorder %v26031_v38, %v30882_v50 }
 0x444   : > { %31013 = vst [vmem:[#allocation140_spill] sm:$0xff] %v26454_v59  ;;  %31014 = vst [vmem:[#allocation141_spill] sm:$0xff] %v26456_v39  ;;  %21055 = vmatmul.mubr.msk.f32.gmra.mrb[166].mxu0 %vm2085_vm0, %v18105_v62  ;;  %v26468_v32 = vpop.permute.xlu0 %7670  ;;  %v26471_v59 = vld [vmem:[%s24916_s28 + $0xf8] sm:$0xff] }
 0x445   : > { %21057 = vmatprep.mubr.msk.f32.mxu0 %vm2085_vm0, %v18106_v27  ;;  %9428 = vperm.xlu0 %23433, %v26471_v59   ;;  %v18108_v27 = vsel %vm5986_vm14, 1.0, %v30926_v19  ;;  %vm6836_vm14 = vcmp.eq.s32.totalorder %v25977_v33, %v30882_v50 }
 0x446   : > { %v26466_v24 = vpop.f32.mrb[100].mxu1  ;;  %v18187_v33 = vsel %vm6836_vm14, 1.0, %v30926_v19  ;;  %vm6850_vm14 = vcmp.eq.s32.totalorder %v26079_v14, %v30882_v50 }
 0x447   : > { %31016 = vst [vmem:[#allocation122_spill] sm:$0xff] %v26466_v24  ;;  %9413 = vperm.xlu1 %23434, %v25930_v21   ;;  %v26475_v62 = vpop.permute.xlu1 %7691  ;;  %v26477_v37 = vpop.f32.mrb[101].mxu1  ;;  %v18109_v24 = vsel %vm5987_vm15, 1.0, %v30926_v19  ;;  %vm6837_vm15 = vcmp.eq.s32.totalorder %v26045_v0, %v30882_v50  ;;  %v18201_v14 = vsel %vm6850_vm14, 1.0, %v30926_v19 }
 0x448   : > { %31017 = vst [vmem:[#allocation142_spill] sm:$0xff] %v26475_v62  ;;  %31018 = vst [vmem:[#allocation143_spill] sm:$0xff] %v26477_v37  ;;  %21058 = vmatmul.mubr.msk.f32.gmra.mrb[168].mxu0 %vm2085_vm0, %v18107_v42  ;;  %v26489_v21 = vpop.permute.xlu0 %7676  ;;  %v23647_v62 = vmov 7   ;;  %v18110_v42 = vsel %vm5988_vm1, 1.0, %v30926_v19  ;;  %vm6838_vm1 = vcmp.eq.s32.totalorder %v25992_v18, %v30882_v50 }
 0x449   : > { %21060 = vmatprep.mubr.msk.f32.mxu0 %vm2085_vm0, %v18108_v27  ;;  %23436 = vset.pattern.permute.xlu0 %v23647_v62  ;;  %v18189_v18 = vsel %vm6838_vm1, 1.0, %v30926_v19  ;;  %vm6852_vm1 = vcmp.eq.s32.totalorder %v26094_v25, %v30882_v50 }
 0x44a   : > { %v26487_v39 = vpop.f32.mrb[102].mxu1  ;;  %10205 = vperm.xlu0 %23436, %v26194_v28   ;;  %v18203_v25 = vsel %vm6852_vm1, 1.0, %v30926_v19 }
 0x44b   : > { %31020 = vst [vmem:[#allocation124_spill] sm:$0xff] %v26487_v39  ;;  %9419 = vperm.xlu1 %23434, %v25939_v61   ;;  %v26492_v37 = vpop.f32.mrb[103].mxu1 }
 0x44c   : > { %31021 = vst [vmem:[#allocation144_spill] sm:$0xff] %v26492_v37  ;;  %21061 = vmatmul.mubr.msk.f32.gmra.mrb[170].mxu0 %vm2085_vm0, %v18109_v24  ;;  %v26497_v27 = vpop.permute.xlu1 %8468  ;;  %v26507_v39 = vpop.permute.xlu0 %7682  ;;  %v18112_v24 = vsel %vm5990_vm3, 1.0, %v30926_v19  ;;  %vm6840_vm3 = vcmp.eq.s32.totalorder %v26007_v26, %v30882_v50 }
 0x44d   : > { %21063 = vmatprep.mubr.msk.f32.mxu0 %vm2085_vm0, %v18110_v42  ;;  %v18191_v26 = vsel %vm6840_vm3, 1.0, %v30926_v19  ;;  %vm6854_vm3 = vcmp.eq.s32.totalorder %v26108_v23, %v30882_v50 }
 0x44e   : > { %v26505_v61 = vpop.f32.mrb[104].mxu1  ;;  %10214 = vperm.xlu0 %23436, %v26231_v58   ;;  %v18205_v23 = vsel %vm6854_vm3, 1.0, %v30926_v19 }
 0x44f   : > { %31023 = vst [vmem:[#allocation126_spill] sm:$0xff] %v26505_v61  ;;  %9425 = vperm.xlu1 %23434, %v25950_v55   ;;  %v26510_v37 = vpop.f32.mrb[105].mxu1 }
 0x450   : > { %31024 = vst [vmem:[#allocation145_spill] sm:$0xff] %v26510_v37  ;;  %21064 = vmatmul.mubr.msk.f32.gmra.mrb[172].mxu0 %vm2085_vm0, %v18111_v16  ;;  %v26515_v42 = vpop.permute.xlu1 %8474  ;;  %v26525_v61 = vpop.permute.xlu0 %7688  ;;  %v31030_v37 = vld [vmem:[#allocation130_spill] sm:$0xff] }
 0x451   : > { %21066 = vmatprep.mubr.msk.f32.mxu0 %vm2085_vm0, %v18112_v24  ;;  %v26535_v24 = vld [vmem:[%s24916_s28] sm:$0xff]  ;;  %vm6832_vm10 = vcmp.eq.s32.totalorder %v31030_v37, %v30882_v50 }
 0x452   : > { %v26523_v55 = vpop.f32.mrb[106].mxu1  ;;  %10220 = vperm.xlu0 %23436, %v26250_v44  }
 0x453   : > { %31026 = vst [vmem:[#allocation127_spill] sm:$0xff] %v26523_v55  ;;  %23435 = vset.pattern.permute.xlu1 %v23647_v62  ;;  %v26529_v16 = vpop.f32.mrb[107].mxu1  ;;  %v18115_v55 = vsel %vm5993_vm6, 1.0, %v30926_v19  ;;  %vm6843_vm6 = vcmp.eq.s32.totalorder %v26088_v20, %v30882_v50 }
 0x454   : > { %31027 = vst [vmem:[#allocation146_spill] sm:$0xff] %v26529_v16  ;;  %21067 = vmatmul.mubr.msk.f32.gmra.mrb[174].mxu0 %vm2085_vm0, %v18113_v3  ;;  %10202 = vperm.xlu1 %23435, %v26535_v24   ;;  %v26538_v7 = vpop.permute.xlu1 %8477  ;;  %v26547_v16 = vpop.permute.xlu0 %7694 }
 0x455   : > { %21069 = vmatprep.mubr.msk.f32.mxu0 %vm2085_vm0, %v18114_v40 }
 0x456   : > { %v26545_v62 = vpop.f32.mrb[108].mxu1  ;;  %10226 = vperm.xlu0 %23436, %v26269_v56  }
 0x457   : > { %31028 = vst [vmem:[#allocation147_spill] sm:$0xff] %v26545_v62  ;;  %v26551_v3 = vpop.f32.mrb[109].mxu1  ;;  %v18182_v62 = vsel %vm6831_vm9, 1.0, %v30926_v19  ;;  %vm6846_vm9 = vcmp.eq.s32.totalorder %v26051_v17, %v30882_v50 }
 0x458   : > { %31029 = vst [vmem:[#allocation148_spill] sm:$0xff] %v26551_v3  ;;  %21070 = vmatmul.mubr.msk.f32.gmra.mrb[176].mxu0 %vm2085_vm0, %v18115_v55  ;;  %10208 = vperm.xlu1 %23435, %v26214_v10   ;;  %v26556_v40 = vpop.permute.xlu1 %8483  ;;  %v26571_v55 = vpop.permute.xlu0 %8471 }
 0x459   : > { %21130 = vmatprep.mubr.msk.f32.mxu0 %vm2085_vm0, %v18180_v36  ;;  %v18183_v36 = vsel %vm6832_vm10, 1.0, %v30926_v19  ;;  %vm6847_vm10 = vcmp.eq.s32.totalorder %v26116_v9, %v30882_v50 }
 0x45a   : > { %10232 = vperm.xlu0 %23436, %v26286_v2  }
 0x45c   : > { %21131 = vmatmul.mubr.msk.f32.vlgmr.msra.gmra.mrb[178].mxu0 %vm2085_vm0, %v18181_v52  ;;  %10211 = vperm.xlu1 %23435, %v26568_v30   ;;  %v18184_v52 = vsel %vm6833_vm11, 1.0, %v30926_v19  ;;  %vm6848_vm11 = vcmp.eq.s32.totalorder %v26065_v60, %v30882_v50 }
 0x45d   : > { %v26574_v3 = vpop.f32.mrb[82].mxu0  ;;  %21133 = vmatprep.mubr.msk.f32.mxu0 %vm2085_vm0, %v18182_v62  ;;  %22655 = vmatpush3.bf16.msra.mxu0 %v25482_v45  ;;  %v26578_v57 = vpop.permute.xlu1 %8489  ;;  %v26591_v62 = vld [vmem:[%s24916_s28 + $0x28] sm:$0xff] }
 0x45e   : > { %31031 = vst [vmem:[#allocation130_spill] sm:$0xff] %v26574_v3  ;;  %31032 = vst [vmem:[#allocation149_spill] sm:$0xff] %v26578_v57  ;;  %v26582_v37 = vpop.f32.mrb[83].mxu0  ;;  %22657 = vmatprep.subr.bf16.mxu0 %v25540_v22  ;;  %10238 = vperm.xlu0 %23436, %v26303_v43   ;;  %v26594_v3 = vpop.permute.xlu0 %8480  ;;  %v18186_v57 = vsel %vm6835_vm13, 1.0, %v30926_v19  ;;  %vm6851_vm13 = vcmp.eq.s32.totalorder %v26143_v11, %v30882_v50 }
 0x45f   : > { %31033 = vst [vmem:[#allocation150_spill] sm:$0xff] %v26582_v37 }
 0x460   : > { %21134 = vmatmul.mubr.msk.f32.gmra.mrb[180].mxu0 %vm2085_vm0, %v18183_v36  ;;  %10217 = vperm.xlu1 %23435, %v26591_v62  }
 0x461   : > { %v26597_v37 = vpop.f32.mrb[84].mxu0  ;;  %21136 = vmatprep.mubr.msk.f32.mxu0 %vm2085_vm0, %v18184_v52  ;;  %22659 = vmatpush3.bf16.msra.mxu0 %v25540_v22  ;;  %v26601_v38 = vpop.permute.xlu1 %8495  ;;  %v26614_v52 = vld [vmem:[%s24916_s28 + $0x38] sm:$0xff] }
 0x462   : > { %31034 = vst [vmem:[#allocation151_spill] sm:$0xff] %v26597_v37  ;;  %31035 = vst [vmem:[#allocation152_spill] sm:$0xff] %v26601_v38  ;;  %v26605_v36 = vpop.f32.mrb[85].mxu0  ;;  %22661 = vmatprep.subr.bf16.mxu0 %v25482_v45  ;;  %10244 = vperm.xlu0 %23436, %v26324_v41   ;;  %v26617_v37 = vpop.permute.xlu0 %8486 }
 0x463   : > { %31036 = vst [vmem:[#allocation153_spill] sm:$0xff] %v26605_v36 }
 0x464   : > { %21137 = vmatmul.mubr.msk.f32.gmra.mrb[182].mxu0 %vm2085_vm0, %v18185_v13  ;;  %10223 = vperm.xlu1 %23435, %v26614_v52   ;;  %v18188_v13 = vsel %vm6837_vm15, 1.0, %v30926_v19  ;;  %vm6853_vm15 = vcmp.eq.s32.totalorder %v26156_v51, %v30882_v50 }
 0x465   : > { %v26620_v36 = vpop.f32.mrb[86].mxu0  ;;  %21139 = vmatprep.mubr.msk.f32.mxu0 %vm2085_vm0, %v18186_v57  ;;  %v26623_v38 = vpop.permute.xlu1 %8501 }
 0x466   : > { %31037 = vst [vmem:[#allocation154_spill] sm:$0xff] %v26620_v36  ;;  %31038 = vst [vmem:[#allocation155_spill] sm:$0xff] %v26623_v38  ;;  %v26627_v0 = vpop.f32.mrb[87].mxu0  ;;  %10250 = vperm.xlu0 %23436, %v26351_v47   ;;  %v26635_v36 = vld [vmem:[%s24916_s28 + $0x48] sm:$0xff]  ;;  %v26638_v57 = vpop.permute.xlu0 %8492 }
 0x467   : > { %31039 = vst [vmem:[#allocation156_spill] sm:$0xff] %v26627_v0 }
 0x468   : > { %21140 = vmatmul.mubr.msk.f32.gmra.mrb[184].mxu0 %vm2085_vm0, %v18187_v33  ;;  %10229 = vperm.xlu1 %23435, %v26635_v36   ;;  %v18190_v33 = vsel %vm6839_vm2, 1.0, %v30926_v19  ;;  %vm6855_vm2 = vcmp.eq.s32.totalorder %v26170_v8, %v30882_v50 }
 0x469   : > { %v26641_v38 = vpop.f32.mrb[88].mxu0  ;;  %21142 = vmatprep.mubr.msk.f32.mxu0 %vm2085_vm0, %v18188_v13  ;;  %v26644_v0 = vpop.permute.xlu1 %8507  ;;  %v18206_v8 = vsel %vm6855_vm2, 1.0, %v30926_v19 }
 0x46a   : > { %31040 = vst [vmem:[#allocation157_spill] sm:$0xff] %v26641_v38  ;;  %31041 = vst [vmem:[#allocation158_spill] sm:$0xff] %v26644_v0  ;;  %v26648_v54 = vpop.f32.mrb[89].mxu0  ;;  %10256 = vperm.xlu0 %23436, %v26376_v35   ;;  %v26656_v38 = vld [vmem:[%s24916_s28 + $0x58] sm:$0xff]  ;;  %v26659_v13 = vpop.permute.xlu0 %8498 }
 0x46b   : > { %31042 = vst [vmem:[#allocation159_spill] sm:$0xff] %v26648_v54 }
 0x46c   : > { %21143 = vmatmul.mubr.msk.f32.gmra.mrb[186].mxu0 %vm2085_vm0, %v18189_v18  ;;  %10235 = vperm.xlu1 %23435, %v26656_v38   ;;  %v18192_v18 = vsel %vm6841_vm4, 1.0, %v30926_v19  ;;  %vm6857_vm4 = vcmp.eq.s32.totalorder %v26184_v5, %v30882_v50 }
 0x46d   : > { %v26662_v0 = vpop.f32.mrb[90].mxu0  ;;  %21145 = vmatprep.mubr.msk.f32.mxu0 %vm2085_vm0, %v18190_v33  ;;  %v26665_v54 = vpop.permute.xlu1 %8513 }
 0x46e   : > { %31043 = vst [vmem:[#allocation160_spill] sm:$0xff] %v26662_v0  ;;  %31044 = vst [vmem:[#allocation161_spill] sm:$0xff] %v26665_v54  ;;  %v26669_v15 = vpop.f32.mrb[91].mxu0  ;;  %10262 = vperm.xlu0 %23436, %v26399_v12   ;;  %v26677_v0 = vld [vmem:[%s24916_s28 + $0x68] sm:$0xff]  ;;  %v26680_v33 = vpop.permute.xlu0 %8504 }
 0x46f   : > { %31045 = vst [vmem:[#allocation162_spill] sm:$0xff] %v26669_v15  ;;  %31046 = vst [vmem:[#allocation163_spill] sm:$0xff] %v26680_v33  ;;  %v18200_v33 = vsel %vm6849_vm12, 1.0, %v30926_v19 }
 0x470   : > { %21146 = vmatmul.mubr.msk.f32.gmra.mrb[188].mxu0 %vm2085_vm0, %v18191_v26  ;;  %10241 = vperm.xlu1 %23435, %v26677_v0   ;;  %v18194_v26 = vsel %vm6843_vm6, 1.0, %v30926_v19  ;;  %vm6859_vm6 = vcmp.eq.s32.totalorder %v26203_v53, %v30882_v50  ;;  %v31078_v53 = vld [vmem:[#allocation70_spill] sm:$0xff] }
 0x471   : > { %v26683_v54 = vpop.f32.mrb[92].mxu0  ;;  %21148 = vmatprep.mubr.msk.f32.mxu0 %vm2085_vm0, %v18192_v18  ;;  %v26686_v15 = vpop.permute.xlu1 %8519 }
 0x472   : > { %31047 = vst [vmem:[#allocation164_spill] sm:$0xff] %v26683_v54  ;;  %31048 = vst [vmem:[#allocation165_spill] sm:$0xff] %v26686_v15  ;;  %v26690_v20 = vpop.f32.mrb[93].mxu0  ;;  %10268 = vperm.xlu0 %23436, %v26426_v29   ;;  %v26698_v54 = vld [vmem:[%s24916_s28 + $0x78] sm:$0xff]  ;;  %v26701_v18 = vpop.permute.xlu0 %8510 }
 0x473   : > { %31049 = vst [vmem:[#allocation166_spill] sm:$0xff] %v26690_v20  ;;  %31050 = vst [vmem:[#allocation167_spill] sm:$0xff] %v26701_v18  ;;  %v26717_v18 = vld [vmem:[%s24916_s28 + $0xc0] sm:$0xff] }
 0x474   : > { %21149 = vmatmul.mubr.msk.f32.gmra.mrb[190].mxu0 %vm2085_vm0, %v18193_v63  ;;  %10247 = vperm.xlu1 %23435, %v26698_v54   ;;  %v18196_v63 = vsel %vm6845_vm8, 1.0, %v30926_v19  ;;  %vm7696_vm8 = vcmp.eq.s32.totalorder %v31078_v53, %v30882_v50 }
 0x475   : > { %v26704_v20 = vpop.f32.mrb[94].mxu0  ;;  %21151 = vmatprep.mubr.msk.f32.mxu0 %vm2085_vm0, %v18194_v26  ;;  %v26707_v15 = vpop.permute.xlu1 %8525  ;;  %v26722_v26 = vld [vmem:[%s24916_s28 + $0x88] sm:$0xff] }
 0x476   : > { %31051 = vst [vmem:[#allocation168_spill] sm:$0xff] %v26704_v20  ;;  %31052 = vst [vmem:[#allocation169_spill] sm:$0xff] %v26707_v15  ;;  %v26711_v31 = vpop.f32.mrb[95].mxu0  ;;  %10274 = vperm.xlu0 %23436, %v26717_v18   ;;  %v26725_v17 = vpop.permute.xlu0 %8516  ;;  %v18197_v20 = vsel %vm6846_vm9, 1.0, %v30926_v19 }
 0x477   : > { %31053 = vst [vmem:[#allocation170_spill] sm:$0xff] %v26711_v31  ;;  %31054 = vst [vmem:[#allocation171_spill] sm:$0xff] %v26725_v17  ;;  %v26741_v17 = vld [vmem:[%s24916_s28 + $0xd0] sm:$0xff] }
 0x478   : > { %21152 = vmatmul.mubr.msk.f32.gmra.mrb[192].mxu0 %vm2085_vm0, %v18195_v4  ;;  %10253 = vperm.xlu1 %23435, %v26722_v26   ;;  %v18198_v4 = vsel %vm6847_vm10, 1.0, %v30926_v19 }
 0x479   : > { %v26728_v31 = vpop.f32.mrb[96].mxu0  ;;  %21154 = vmatprep.mubr.msk.f32.mxu0 %vm2085_vm0, %v18196_v63  ;;  %v26731_v9 = vpop.permute.xlu1 %8531  ;;  %v26746_v63 = vld [vmem:[%s24916_s28 + $0x98] sm:$0xff] }
 0x47a   : > { %31055 = vst [vmem:[#allocation172_spill] sm:$0xff] %v26728_v31  ;;  %31056 = vst [vmem:[#allocation173_spill] sm:$0xff] %v26731_v9  ;;  %v26735_v15 = vpop.f32.mrb[97].mxu0  ;;  %10280 = vperm.xlu0 %23436, %v26741_v17   ;;  %v26749_v60 = vpop.permute.xlu0 %8522  ;;  %v18199_v31 = vsel %vm6848_vm11, 1.0, %v30926_v19 }
 0x47b   : > { %31057 = vst [vmem:[#allocation174_spill] sm:$0xff] %v26735_v15  ;;  %31058 = vst [vmem:[#allocation175_spill] sm:$0xff] %v26749_v60  ;;  %v18202_v60 = vsel %vm6851_vm13, 1.0, %v30926_v19 }
 0x47c   : > { %21155 = vmatmul.mubr.msk.f32.gmra.mrb[194].mxu0 %vm2085_vm0, %v18197_v20  ;;  %10259 = vperm.xlu1 %23435, %v26746_v63   ;;  %v26763_v20 = vld [vmem:[%s24916_s28 + $0xe0] sm:$0xff] }
 0x47d   : > { %v26752_v15 = vpop.f32.mrb[98].mxu0  ;;  %21157 = vmatprep.mubr.msk.f32.mxu0 %vm2085_vm0, %v18198_v4  ;;  %v26755_v49 = vpop.permute.xlu1 %8537  ;;  %v26770_v4 = vld [vmem:[%s24916_s28 + $0xa8] sm:$0xff] }
 0x47e   : > { %31059 = vst [vmem:[#allocation176_spill] sm:$0xff] %v26752_v15  ;;  %31060 = vst [vmem:[#allocation177_spill] sm:$0xff] %v26755_v49  ;;  %v26757_v9 = vpop.f32.mrb[99].mxu0  ;;  %10286 = vperm.xlu0 %23436, %v26763_v20   ;;  %v26773_v15 = vpop.permute.xlu0 %8528 }
 0x47f   : > { %31061 = vst [vmem:[#allocation178_spill] sm:$0xff] %v26757_v9  ;;  %31062 = vst [vmem:[#allocation179_spill] sm:$0xff] %v26773_v15  ;;  %v18204_v15 = vsel %vm6853_vm15, 1.0, %v30926_v19 }
 0x480   : > { %21158 = vmatmul.mubr.msk.f32.gmra.mrb[196].mxu0 %vm2085_vm0, %v18199_v31  ;;  %10265 = vperm.xlu1 %23435, %v26770_v4   ;;  %v26787_v31 = vld [vmem:[%s24916_s28 + $0xf0] sm:$0xff] }
 0x481   : > { %v26775_v9 = vpop.f32.mrb[100].mxu0  ;;  %21160 = vmatprep.mubr.msk.f32.mxu0 %vm2085_vm0, %v18200_v33  ;;  %v26778_v11 = vpop.permute.xlu1 %8543  ;;  %v26794_v33 = vld [vmem:[%s24916_s28 + $0xb8] sm:$0xff] }
 0x482   : > { %31063 = vst [vmem:[#allocation180_spill] sm:$0xff] %v26775_v9  ;;  %31064 = vst [vmem:[#allocation181_spill] sm:$0xff] %v26778_v11  ;;  %v26780_v49 = vpop.f32.mrb[101].mxu0  ;;  %10292 = vperm.xlu0 %23436, %v26787_v31   ;;  %v26797_v9 = vpop.permute.xlu0 %8534 }
 0x483   : > { %31065 = vst [vmem:[#allocation182_spill] sm:$0xff] %v26780_v49 }
 0x484   : > { %21161 = vmatmul.mubr.msk.f32.gmra.mrb[198].mxu0 %vm2085_vm0, %v18201_v14  ;;  %10271 = vperm.xlu1 %23435, %v26794_v33   ;;  %v26814_v14 = vld [vmem:[%s24916_s28 + $0xc8] sm:$0xff] }
 0x485   : > { %v26799_v49 = vpop.f32.mrb[102].mxu0  ;;  %21163 = vmatprep.mubr.msk.f32.mxu0 %vm2085_vm0, %v18202_v60  ;;  %v26802_v51 = vpop.permute.xlu1 %8549 }
 0x486   : > { %31066 = vst [vmem:[#allocation183_spill] sm:$0xff] %v26799_v49  ;;  %31067 = vst [vmem:[#allocation184_spill] sm:$0xff] %v26802_v51  ;;  %v26804_v11 = vpop.f32.mrb[103].mxu0  ;;  %v26817_v60 = vpop.permute.xlu0 %8540 }
 0x487   : > { %31068 = vst [vmem:[#allocation185_spill] sm:$0xff] %v26804_v11 }
 0x488   : > { %21164 = vmatmul.mubr.msk.f32.gmra.mrb[200].mxu0 %vm2085_vm0, %v18203_v25  ;;  %10277 = vperm.xlu1 %23435, %v26814_v14  }
 0x489   : > { %v26819_v49 = vpop.f32.mrb[104].mxu0  ;;  %21166 = vmatprep.mubr.msk.f32.mxu0 %vm2085_vm0, %v18204_v15  ;;  %v26822_v11 = vpop.permute.xlu1 %8555 }
 0x48a   : > { %31069 = vst [vmem:[#allocation186_spill] sm:$0xff] %v26819_v49  ;;  %31070 = vst [vmem:[#allocation187_spill] sm:$0xff] %v26822_v11  ;;  %v26824_v51 = vpop.f32.mrb[105].mxu0  ;;  %v26834_v25 = vpop.permute.xlu0 %8546  ;;  %v23648_v49 = vmov 8   ;;  %v18208_v11 = vsel %vm6857_vm4, 1.0, %v30926_v19 }
 0x48b   : > { %31071 = vst [vmem:[#allocation188_spill] sm:$0xff] %v26824_v51  ;;  %23437 = vset.pattern.permute.xlu0 %v23648_v49 }
 0x48c   : > { %21167 = vmatmul.mubr.msk.f32.gmra.mrb[202].mxu0 %vm2085_vm0, %v18205_v23  ;;  %10283 = vperm.xlu1 %23435, %v26422_v1  }
 0x48d   : > { %v26836_v15 = vpop.f32.mrb[106].mxu0  ;;  %21169 = vmatprep.mubr.msk.f32.mxu0 %vm2085_vm0, %v18206_v8  ;;  %v26842_v5 = vpop.permute.xlu1 %8561  ;;  %11069 = vperm.xlu0 %23437, %v26535_v24  }
 0x48e   : > { %31072 = vst [vmem:[#allocation189_spill] sm:$0xff] %v26836_v15  ;;  %v26839_v51 = vpop.f32.mrb[107].mxu0  ;;  %31074 = vst [vmem:[#allocation191_spill] sm:$0xff] %v26842_v5  ;;  %v26852_v8 = vpop.permute.xlu0 %8552 }
 0x48f   : > { %31073 = vst [vmem:[#allocation190_spill] sm:$0xff] %v26839_v51  ;;  %v18210_v51 = vsel %vm6859_vm6, 1.0, %v30926_v19 }
 0x490   : > { %21170 = vmatmul.mubr.msk.f32.gmra.mrb[204].mxu0 %vm2085_vm0, %v18207_v34  ;;  %10289 = vperm.xlu1 %23435, %v26450_v6   ;;  %v31079_v34 = vld [vmem:[#allocation67_spill] sm:$0xff] }
 0x491   : > { %v26854_v23 = vpop.f32.mrb[108].mxu0  ;;  %21172 = vmatprep.mubr.msk.f32.mxu0 %vm2085_vm0, %v18208_v11  ;;  %11078 = vperm.xlu0 %23437, %v26568_v30   ;;  %vm6860_vm9 = vcmp.eq.s32.totalorder %v31079_v34, %v30882_v50  ;;  %v31083_v34 = vld [vmem:[#allocation78_spill] sm:$0xff] }
 0x492   : > { %31075 = vst [vmem:[#allocation192_spill] sm:$0xff] %v26854_v23  ;;  %v26857_v15 = vpop.f32.mrb[109].mxu0  ;;  %v26860_v5 = vpop.permute.xlu1 %9338  ;;  %v31081_v23 = vld [vmem:[#allocation79_spill] sm:$0xff]  ;;  %v18211_v53 = vsel %vm6860_vm9, 1.0, %v30926_v19  ;;  %vm7698_vm11 = vcmp.eq.s32.totalorder %v31083_v34, %v30882_v50 }
 0x493   : > { %31076 = vst [vmem:[#allocation193_spill] sm:$0xff] %v26857_v15  ;;  %31077 = vst [vmem:[#allocation194_spill] sm:$0xff] %v26860_v5  ;;  %v26870_v11 = vpop.permute.xlu0 %8558  ;;  %vm7697_vm10 = vcmp.eq.s32.totalorder %v31081_v23, %v30882_v50  ;;  %v18276_v15 = vsel %vm7696_vm8, 1.0, %v30926_v19  ;;  %v18278_v23 = vsel %vm7698_vm11, 1.0, %v30926_v19 }
 0x494   : > { %21173 = vmatmul.mubr.msk.f32.gmra.mrb[206].mxu0 %vm2085_vm0, %v18209_v46  ;;  %10295 = vperm.xlu1 %23435, %v26471_v59   ;;  %31080 = vst [vmem:[#allocation70_spill] sm:$0xff] %v26870_v11 }
 0x495   : > { %21175 = vmatprep.mubr.msk.f32.mxu0 %vm2085_vm0, %v18210_v51  ;;  %11084 = vperm.xlu0 %23437, %v26591_v62   ;;  %v18277_v51 = vsel %vm7697_vm10, 1.0, %v30926_v19 }
 0x496   : > { %v26876_v5 = vpop.permute.xlu1 %9341 }
 0x497   : > { %31082 = vst [vmem:[#allocation67_spill] sm:$0xff] %v26876_v5  ;;  %v26883_v46 = vpop.permute.xlu0 %9335  ;;  %v31084_v5 = vld [vmem:[#allocation86_spill] sm:$0xff] }
 0x498   : > { %21176 = vmatmul.mubr.msk.f32.gmra.mrb[208].mxu0 %vm2085_vm0, %v18211_v53  ;;  %23438 = vset.pattern.permute.xlu1 %v23648_v49  ;;  %vm7699_vm12 = vcmp.eq.s32.totalorder %v31084_v5, %v30882_v50  ;;  %v31086_v53 = vld [vmem:[#allocation68_spill] sm:$0xff]  ;;  %v31087_v5 = vld [vmem:[#allocation89_spill] sm:$0xff] }
 0x499   : > { %21236 = vmatprep.mubr.msk.f32.mxu0 %vm2085_vm0, %v18276_v15  ;;  %11072 = vperm.xlu1 %23438, %v26194_v28   ;;  %vm7700_vm13 = vcmp.eq.s32.totalorder %v31086_v53, %v30882_v50  ;;  %v18279_v15 = vsel %vm7699_vm12, 1.0, %v30926_v19  ;;  %vm7701_vm14 = vcmp.eq.s32.totalorder %v31087_v5, %v30882_v50 }
 0x49a   : > { %v26891_v11 = vpop.permute.xlu1 %9347  ;;  %11090 = vperm.xlu0 %23437, %v26614_v52   ;;  %v18280_v28 = vsel %vm7700_vm13, 1.0, %v30926_v19  ;;  %v18281_v5 = vsel %vm7701_vm14, 1.0, %v30926_v19 }
 0x49b   : > { %31085 = vst [vmem:[#allocation79_spill] sm:$0xff] %v26891_v11  ;;  %v26897_v49 = vpop.permute.xlu0 %9344 }
 0x49c   : > { %21237 = vmatmul.mubr.msk.f32.vlgmr.msra.gmra.mrb[210].mxu0 %vm2085_vm0, %v18277_v51  ;;  %v31089_v51 = vld [vmem:[#allocation83_spill] sm:$0xff] }
 0x49d   : > { %21239 = vmatprep.mubr.msk.f32.mxu0 %vm2085_vm0, %v18278_v23  ;;  %22663 = vmatpush3.bf16.msra.mxu0 %v25482_v45  ;;  %vm7702_vm15 = vcmp.eq.s32.totalorder %v31089_v51, %v30882_v50  ;;  %v31092_v51 = vld [vmem:[#allocation74_spill] sm:$0xff] }
 0x49e   : > { %22665 = vmatprep.subr.bf16.mxu0 %v25540_v22  ;;  %11075 = vperm.xlu1 %23438, %v26214_v10   ;;  %v26907_v34 = vpop.permute.xlu1 %9353  ;;  %v18282_v10 = vsel %vm7702_vm15, 1.0, %v30926_v19  ;;  %vm7703_vm1 = vcmp.eq.s32.totalorder %v31092_v51, %v30882_v50 }
 0x49f   : > { %31088 = vst [vmem:[#allocation78_spill] sm:$0xff] %v26907_v34  ;;  %11096 = vperm.xlu0 %23437, %v26635_v36   ;;  %v26915_v23 = vpop.permute.xlu0 %9350  ;;  %v31095_v34 = vld [vmem:[#allocation107_spill] sm:$0xff] }
 0x4a0   : > { %v26912_v53 = vpop.f32.mrb[110].mxu0  ;;  %21240 = vmatmul.mubr.msk.f32.gmra.mrb[212].mxu0 %vm2085_vm0, %v18279_v15  ;;  %vm7705_vm3 = vcmp.eq.s32.totalorder %v31095_v34, %v30882_v50  ;;  %v31099_v34 = vld [vmem:[#allocation103_spill] sm:$0xff] }
 0x4a1   : > { %31090 = vst [vmem:[#allocation86_spill] sm:$0xff] %v26912_v53  ;;  %v26917_v11 = vpop.f32.mrb[111].mxu0  ;;  %21242 = vmatprep.mubr.msk.f32.mxu0 %vm2085_vm0, %v18280_v28  ;;  %22667 = vmatpush3.bf16.msra.mxu0 %v25540_v22  ;;  %v31094_v53 = vld [vmem:[#allocation91_spill] sm:$0xff]  ;;  %vm7707_vm5 = vcmp.eq.s32.totalorder %v31099_v34, %v30882_v50 }
 0x4a2   : > { %31091 = vst [vmem:[#allocation68_spill] sm:$0xff] %v26917_v11  ;;  %22669 = vmatprep.subr.bf16.mxu0 %v25482_v45  ;;  %11081 = vperm.xlu1 %23438, %v26231_v58   ;;  %v26927_v15 = vpop.permute.xlu1 %9359  ;;  %vm7704_vm2 = vcmp.eq.s32.totalorder %v31094_v53, %v30882_v50  ;;  %v18283_v11 = vsel %vm7703_vm1, 1.0, %v30926_v19  ;;  %v31097_v53 = vld [vmem:[#allocation73_spill] sm:$0xff]  ;;  %v31104_v34 = vld [vmem:[#allocation115_spill] sm:$0xff]  ;;  %vm7717_vm1 = vcmp.eq.s32.totalorder %v26445_v48, %v30882_v50 }
 0x4a3   : > { %31093 = vst [vmem:[#allocation89_spill] sm:$0xff] %v26927_v15  ;;  %11102 = vperm.xlu0 %23437, %v26656_v38   ;;  %v26933_v28 = vpop.permute.xlu0 %9356  ;;  %v18284_v51 = vsel %vm7704_vm2, 1.0, %v30926_v19  ;;  %vm7706_vm4 = vcmp.eq.s32.totalorder %v31097_v53, %v30882_v50  ;;  %v31101_v53 = vld [vmem:[#allocation102_spill] sm:$0xff]  ;;  %vm7709_vm8 = vcmp.eq.s32.totalorder %v31104_v34, %v30882_v50 }
 0x4a4   : > { %21243 = vmatmul.mubr.msk.f32.gmra.mrb[214].mxu0 %vm2085_vm0, %v18281_v5  ;;  %v18286_v15 = vsel %vm7706_vm4, 1.0, %v30926_v19  ;;  %vm7708_vm6 = vcmp.eq.s32.totalorder %v31101_v53, %v30882_v50 }
 0x4a5   : > { %21245 = vmatprep.mubr.msk.f32.mxu0 %vm2085_vm0, %v18282_v10  ;;  %v18285_v10 = vsel %vm7705_vm3, 1.0, %v30926_v19  ;;  %vm7719_vm3 = vcmp.eq.s32.totalorder %v26468_v32, %v30882_v50 }
 0x4a6   : > { %11087 = vperm.xlu1 %23438, %v26250_v44   ;;  %v26941_v58 = vpop.permute.xlu1 %9365  ;;  %v18299_v32 = vsel %vm7719_vm3, 1.0, %v30926_v19  ;;  %vm8568_vm3 = vcmp.eq.s32.totalorder %v26556_v40, %v30882_v50 }
 0x4a7   : > { %31096 = vst [vmem:[#allocation83_spill] sm:$0xff] %v26941_v58  ;;  %11108 = vperm.xlu0 %23437, %v26677_v0   ;;  %v26947_v5 = vpop.permute.xlu0 %9362 }
 0x4a8   : > { %21246 = vmatmul.mubr.msk.f32.gmra.mrb[216].mxu0 %vm2085_vm0, %v18283_v11  ;;  %31098 = vst [vmem:[#allocation74_spill] sm:$0xff] %v26947_v5  ;;  %v18287_v5 = vsel %vm7707_vm5, 1.0, %v30926_v19  ;;  %vm7721_vm5 = vcmp.eq.s32.totalorder %v26489_v21, %v30882_v50 }
 0x4a9   : > { %21248 = vmatprep.mubr.msk.f32.mxu0 %vm2085_vm0, %v18284_v51 }
 0x4aa   : > { %11093 = vperm.xlu1 %23438, %v26269_v56   ;;  %v26955_v44 = vpop.permute.xlu1 %9371  ;;  %v18288_v56 = vsel %vm7708_vm6, 1.0, %v30926_v19 }
 0x4ab   : > { %31100 = vst [vmem:[#allocation91_spill] sm:$0xff] %v26955_v44  ;;  %v26959_v58 = vpop.f32.mrb[112].mxu0  ;;  %11114 = vperm.xlu0 %23437, %v26698_v54   ;;  %v26965_v51 = vpop.permute.xlu0 %9368  ;;  %v18289_v44 = vsel %vm7709_vm8, 1.0, %v30926_v19  ;;  %vm7723_vm8 = vcmp.eq.s32.totalorder %v26507_v39, %v30882_v50 }
 0x4ac   : > { %31102 = vst [vmem:[#allocation107_spill] sm:$0xff] %v26959_v58  ;;  %v26962_v11 = vpop.f32.mrb[113].mxu0  ;;  %21249 = vmatmul.mubr.msk.f32.gmra.mrb[218].mxu0 %vm2085_vm0, %v18285_v10  ;;  %v31106_v58 = vld [vmem:[#allocation92_spill] sm:$0xff]  ;;  %v18303_v39 = vsel %vm7723_vm8, 1.0, %v30926_v19 }
 0x4ad   : > { %31103 = vst [vmem:[#allocation73_spill] sm:$0xff] %v26962_v11  ;;  %21251 = vmatprep.mubr.msk.f32.mxu0 %vm2085_vm0, %v18286_v15  ;;  %vm7710_vm9 = vcmp.eq.s32.totalorder %v31106_v58, %v30882_v50  ;;  %v31108_v58 = vld [vmem:[#allocation112_spill] sm:$0xff] }
 0x4ae   : > { %11099 = vperm.xlu1 %23438, %v26286_v2   ;;  %v26973_v53 = vpop.permute.xlu1 %9377  ;;  %v26985_v2 = vld [vmem:[%s30927_s11 + $0x10] sm:$0xff]  ;;  %v18290_v34 = vsel %vm7710_vm9, 1.0, %v30926_v19  ;;  %vm7711_vm10 = vcmp.eq.s32.totalorder %v31108_v58, %v30882_v50  ;;  %v31112_v58 = vld [vmem:[#allocation125_spill] sm:$0xff] }
 0x4af   : > { %31105 = vst [vmem:[#allocation103_spill] sm:$0xff] %v26973_v53  ;;  %v20870_v10 = vpop.f32.mrb[114].mxu0  ;;  %11120 = vperm.xlu0 %23437, %v26722_v26   ;;  %v26979_v15 = vpop.permute.xlu0 %9374  ;;  %v31110_v53 = vld [vmem:[#allocation81_spill] sm:$0xff]  ;;  %vm7713_vm12 = vcmp.eq.s32.totalorder %v31112_v58, %v30882_v50  ;;  %v31115_v58 = vld [vmem:[#allocation128_spill] sm:$0xff] }
 0x4b0   : > { %v5063_v11 = vpop.f32.mrb[115].mxu0  ;;  %21252 = vmatmul.mubr.msk.f32.gmra.mrb[220].mxu0 %vm2085_vm0, %v18287_v5  ;;  %31107 = vst [vmem:[#allocation102_spill] sm:$0xff] %v26979_v15  ;;  %vm7712_vm11 = vcmp.eq.s32.totalorder %v31110_v53, %v30882_v50  ;;  %vm7715_vm14 = vcmp.eq.s32.totalorder %v31115_v58, %v30882_v50 }
 0x4b1   : > { %20918 = vmatprep.mubr.msk.f32.mxu1 %vm5223_vm7, %v5063_v11  ;;  %21254 = vmatprep.mubr.msk.f32.mxu0 %vm2085_vm0, %v18288_v56  ;;  %v31111_v11 = vld [vmem:[#allocation113_spill] sm:$0xff]  ;;  %v18292_v53 = vsel %vm7712_vm11, 1.0, %v30926_v19 }
 0x4b2   : > { %20919 = vmatmul.mubr.msk.f32.vlgmr.msra.gmra.mrb[110].mxu1 %vm5223_vm7, %v20870_v10  ;;  %11105 = vperm.xlu1 %23438, %v26303_v43   ;;  %v26992_v5 = vpop.permute.xlu1 %9383  ;;  %v18291_v43 = vsel %vm7711_vm10, 1.0, %v30926_v19  ;;  %vm7725_vm10 = vcmp.eq.s32.totalorder %v26525_v61, %v30882_v50 }
 0x4b3   : > { %31109 = vst [vmem:[#allocation115_spill] sm:$0xff] %v26992_v5  ;;  %20967 = vmatpush3.msra.mxu1 %v31111_v11  ;;  %v20873_v15 = vpop.f32.mrb[116].mxu0  ;;  %11126 = vperm.xlu0 %23437, %v26746_v63   ;;  %v27000_v10 = vpop.permute.xlu0 %9380  ;;  %v31114_v11 = vld [vmem:[#allocation104_spill] sm:$0xff]  ;;  %v18305_v61 = vsel %vm7725_vm10, 1.0, %v30926_v19 }
 0x4b4   : > { %v5073_v56 = vpop.f32.mrb[117].mxu0  ;;  %21255 = vmatmul.mubr.msk.f32.gmra.mrb[222].mxu0 %vm2085_vm0, %v18289_v44  ;;  %21072 = vmatprep.subr.mxu1 %v26985_v2  ;;  %vm7714_vm13 = vcmp.eq.s32.totalorder %v31114_v11, %v30882_v50 }
 0x4b5   : > { %20921 = vmatprep.mubr.msk.f32.mxu1 %vm5223_vm7, %v5073_v56  ;;  %21257 = vmatprep.mubr.msk.f32.mxu0 %vm2085_vm0, %v18290_v34 }
 0x4b6   : > { %20922 = vmatmul.mubr.msk.f32.gmra.mrb[112].mxu1 %vm5223_vm7, %v20873_v15  ;;  %11111 = vperm.xlu1 %23438, %v26324_v41   ;;  %v27010_v44 = vpop.permute.xlu1 %9389  ;;  %v18293_v15 = vsel %vm7713_vm12, 1.0, %v30926_v19  ;;  %v18294_v41 = vsel %vm7714_vm13, 1.0, %v30926_v19  ;;  %vm7727_vm12 = vcmp.eq.s32.totalorder %v26547_v16, %v30882_v50  ;;  %vm8563_vm13 = vcmp.eq.s32.totalorder %v26497_v27, %v30882_v50 }
 0x4b7   : > { %31113 = vst [vmem:[#allocation92_spill] sm:$0xff] %v27010_v44  ;;  %v20876_v5 = vpop.f32.mrb[118].mxu0  ;;  %11132 = vperm.xlu0 %23437, %v26770_v4   ;;  %v27016_v34 = vpop.permute.xlu0 %9386  ;;  %v18307_v16 = vsel %vm7727_vm12, 1.0, %v30926_v19  ;;  %v18372_v27 = vsel %vm8563_vm13, 1.0, %v30926_v19 }
 0x4b8   : > { %v5083_v56 = vpop.f32.mrb[119].mxu0  ;;  %21258 = vmatmul.mubr.msk.f32.gmra.mrb[224].mxu0 %vm2085_vm0, %v18291_v43  ;;  %v31116_v43 = vld [vmem:[#allocation108_spill] sm:$0xff] }
 0x4b9   : > { %20924 = vmatprep.mubr.msk.f32.mxu1 %vm5223_vm7, %v5083_v56  ;;  %21260 = vmatprep.mubr.msk.f32.mxu0 %vm2085_vm0, %v18292_v53  ;;  %vm7716_vm15 = vcmp.eq.s32.totalorder %v31116_v43, %v30882_v50 }
 0x4ba   : > { %20925 = vmatmul.mubr.msk.f32.gmra.mrb[114].mxu1 %vm5223_vm7, %v20876_v5  ;;  %11117 = vperm.xlu1 %23438, %v26351_v47   ;;  %v27026_v11 = vpop.permute.xlu1 %9395  ;;  %v18295_v5 = vsel %vm7715_vm14, 1.0, %v30926_v19  ;;  %v18296_v47 = vsel %vm7716_vm15, 1.0, %v30926_v19  ;;  %vm8564_vm14 = vcmp.eq.s32.totalorder %v26571_v55, %v30882_v50  ;;  %vm8565_vm15 = vcmp.eq.s32.totalorder %v26515_v42, %v30882_v50 }
 0x4bb   : > { %v20879_v44 = vpop.f32.mrb[120].mxu0  ;;  %11138 = vperm.xlu0 %23437, %v26794_v33   ;;  %v27032_v53 = vpop.permute.xlu0 %9392  ;;  %v18373_v55 = vsel %vm8564_vm14, 1.0, %v30926_v19 }
 0x4bc   : > { %v5093_v56 = vpop.f32.mrb[121].mxu0  ;;  %21261 = vmatmul.mubr.msk.f32.gmra.mrb[226].mxu0 %vm2085_vm0, %v18293_v15  ;;  %v31117_v15 = vld [vmem:[#allocation114_spill] sm:$0xff] }
 0x4bd   : > { %20927 = vmatprep.mubr.msk.f32.mxu1 %vm5223_vm7, %v5093_v56  ;;  %21263 = vmatprep.mubr.msk.f32.mxu0 %vm2085_vm0, %v18294_v41  ;;  %vm7718_vm2 = vcmp.eq.s32.totalorder %v31117_v15, %v30882_v50 }
 0x4be   : > { %20928 = vmatmul.mubr.msk.f32.gmra.mrb[116].mxu1 %vm5223_vm7, %v20879_v44  ;;  %11123 = vperm.xlu1 %23438, %v26376_v35   ;;  %v27042_v58 = vpop.permute.xlu1 %9401  ;;  %v18297_v44 = vsel %vm7717_vm1, 1.0, %v30926_v19  ;;  %v18298_v35 = vsel %vm7718_vm2, 1.0, %v30926_v19  ;;  %vm8566_vm1 = vcmp.eq.s32.totalorder %v26538_v7, %v30882_v50  ;;  %vm8567_vm2 = vcmp.eq.s32.totalorder %v26594_v3, %v30882_v50 }
 0x4bf   : > { %v20882_v43 = vpop.f32.mrb[122].mxu0  ;;  %11144 = vperm.xlu0 %23437, %v26814_v14   ;;  %v27048_v41 = vpop.permute.xlu0 %9398  ;;  %v18375_v7 = vsel %vm8566_vm1, 1.0, %v30926_v19 }
 0x4c0   : > { %v5103_v56 = vpop.f32.mrb[123].mxu0  ;;  %21264 = vmatmul.mubr.msk.f32.gmra.mrb[228].mxu0 %vm2085_vm0, %v18295_v5 }
 0x4c1   : > { %20930 = vmatprep.mubr.msk.f32.mxu1 %vm5223_vm7, %v5103_v56  ;;  %21266 = vmatprep.mubr.msk.f32.mxu0 %vm2085_vm0, %v18296_v47  ;;  %v31118_v47 = vld [vmem:[#allocation133_spill] sm:$0xff] }
 0x4c2   : > { %20931 = vmatmul.mubr.msk.f32.gmra.mrb[118].mxu1 %vm5223_vm7, %v20882_v43  ;;  %11129 = vperm.xlu1 %23438, %v26399_v12   ;;  %v27058_v48 = vpop.permute.xlu1 %9407  ;;  %vm7720_vm4 = vcmp.eq.s32.totalorder %v31118_v47, %v30882_v50 }
 0x4c3   : > { %v20885_v5 = vpop.f32.mrb[124].mxu0  ;;  %11150 = vperm.xlu0 %23437, %v26422_v1   ;;  %v27062_v56 = vpop.permute.xlu0 %9404  ;;  %v18300_v43 = vsel %vm7720_vm4, 1.0, %v30926_v19  ;;  %vm8569_vm4 = vcmp.eq.s32.totalorder %v26617_v37, %v30882_v50  ;;  %v18377_v37 = vsel %vm8568_vm3, 1.0, %v30926_v19 }
 0x4c4   : > { %v5113_v15 = vpop.f32.mrb[125].mxu0  ;;  %21267 = vmatmul.mubr.msk.f32.gmra.mrb[230].mxu0 %vm2085_vm0, %v18297_v44 }
 0x4c5   : > { %20933 = vmatprep.mubr.msk.f32.mxu1 %vm5223_vm7, %v5113_v15  ;;  %21269 = vmatprep.mubr.msk.f32.mxu0 %vm2085_vm0, %v18298_v35  ;;  %v31119_v15 = vld [vmem:[#allocation137_spill] sm:$0xff] }
 0x4c6   : > { %20934 = vmatmul.mubr.msk.f32.gmra.mrb[120].mxu1 %vm5223_vm7, %v20885_v5  ;;  %11135 = vperm.xlu1 %23438, %v26426_v29   ;;  %v27073_v1 = vpop.permute.xlu1 %9413  ;;  %vm7722_vm6 = vcmp.eq.s32.totalorder %v31119_v15, %v30882_v50  ;;  %v18301_v29 = vsel %vm7721_vm5, 1.0, %v30926_v19 }
 0x4c7   : > { %v20888_v12 = vpop.f32.mrb[126].mxu0  ;;  %11156 = vperm.xlu0 %23437, %v26450_v6   ;;  %v27078_v35 = vpop.permute.xlu0 %9410  ;;  %v18302_v5 = vsel %vm7722_vm6, 1.0, %v30926_v19  ;;  %vm8571_vm6 = vcmp.eq.s32.totalorder %v26638_v57, %v30882_v50 }
 0x4c8   : > { %v5123_v44 = vpop.f32.mrb[127].mxu0  ;;  %21270 = vmatmul.mubr.msk.f32.gmra.mrb[232].mxu0 %vm2085_vm0, %v18299_v32  ;;  %v31120_v32 = vld [vmem:[#allocation140_spill] sm:$0xff]  ;;  %v18380_v57 = vsel %vm8571_vm6, 1.0, %v30926_v19  ;;  %vm8585_vm6 = vcmp.eq.s32.totalorder %v26797_v9, %v30882_v50 }
 0x4c9   : > { %20936 = vmatprep.mubr.msk.f32.mxu1 %vm5223_vm7, %v5123_v44  ;;  %21272 = vmatprep.mubr.msk.f32.mxu0 %vm2085_vm0, %v18300_v43  ;;  %vm7724_vm9 = vcmp.eq.s32.totalorder %v31120_v32, %v30882_v50  ;;  %v23649_v44 = vmov 9   ;;  %v18394_v9 = vsel %vm8585_vm6, 1.0, %v30926_v19 }
 0x4ca   : > { %20937 = vmatmul.mubr.msk.f32.gmra.mrb[122].mxu1 %vm5223_vm7, %v20888_v12  ;;  %11141 = vperm.xlu1 %23438, %v26717_v18   ;;  %v27089_v6 = vpop.permute.xlu1 %9419  ;;  %v18304_v15 = vsel %vm7724_vm9, 1.0, %v30926_v19  ;;  %vm8573_vm9 = vcmp.eq.s32.totalorder %v26659_v13, %v30882_v50 }
 0x4cb   : > { %v20891_v21 = vpop.f32.mrb[128].mxu0  ;;  %11162 = vperm.xlu0 %23437, %v26471_v59   ;;  %v27099_v12 = vpop.permute.xlu0 %9416  ;;  %v18382_v13 = vsel %vm8573_vm9, 1.0, %v30926_v19 }
 0x4cc   : > { %v5133_v47 = vpop.f32.mrb[129].mxu0  ;;  %21273 = vmatmul.mubr.msk.f32.gmra.mrb[234].mxu0 %vm2085_vm0, %v18301_v29 }
 0x4cd   : > { %20939 = vmatprep.mubr.msk.f32.mxu1 %vm5223_vm7, %v5133_v47  ;;  %21275 = vmatprep.mubr.msk.f32.mxu0 %vm2085_vm0, %v18302_v5  ;;  %v27110_v5 = vld [vmem:[%s24916_s28 + $0x8] sm:$0xff] }
 0x4ce   : > { %20940 = vmatmul.mubr.msk.f32.gmra.mrb[124].mxu1 %vm5223_vm7, %v20891_v21  ;;  %11147 = vperm.xlu1 %23438, %v26741_v17   ;;  %v27105_v59 = vpop.permute.xlu1 %9425  ;;  %v31122_v21 = vld [vmem:[#allocation142_spill] sm:$0xff] }
 0x4cf   : > { %31121 = vst [vmem:[#allocation112_spill] sm:$0xff] %v27105_v59  ;;  %v20894_v43 = vpop.f32.mrb[130].mxu0  ;;  %23440 = vset.pattern.permute.xlu0 %v23649_v44  ;;  %vm7726_vm11 = vcmp.eq.s32.totalorder %v31122_v21, %v30882_v50  ;;  %v27118_v47 = vpop.permute.xlu0 %9422  ;;  %v27131_v21 = vld [vmem:[%s24916_s28 + $0x20] sm:$0xff] }
 0x4d0   : > { %v5143_v29 = vpop.f32.mrb[131].mxu0  ;;  %21276 = vmatmul.mubr.msk.f32.gmra.mrb[236].mxu0 %vm2085_vm0, %v18303_v39  ;;  %11939 = vperm.xlu0 %23440, %v27110_v5  }
 0x4d1   : > { %20942 = vmatprep.mubr.msk.f32.mxu1 %vm5223_vm7, %v5143_v29  ;;  %21278 = vmatprep.mubr.msk.f32.mxu0 %vm2085_vm0, %v18304_v15  ;;  %v18306_v29 = vsel %vm7726_vm11, 1.0, %v30926_v19 }
 0x4d2   : > { %20943 = vmatmul.mubr.msk.f32.gmra.mrb[126].mxu1 %vm5223_vm7, %v20894_v43  ;;  %11153 = vperm.xlu1 %23438, %v26763_v20  }
 0x4d3   : > { %v20897_v32 = vpop.f32.mrb[132].mxu0  ;;  %v27126_v39 = vpop.permute.xlu1 %10202 }
 0x4d4   : > { %31123 = vst [vmem:[#allocation81_spill] sm:$0xff] %v27126_v39  ;;  %v5153_v15 = vpop.f32.mrb[133].mxu0  ;;  %21279 = vmatmul.mubr.msk.f32.gmra.mrb[238].mxu0 %vm2085_vm0, %v18305_v61  ;;  %11948 = vperm.xlu0 %23440, %v27131_v21   ;;  %v27142_v43 = vpop.permute.xlu0 %9428  ;;  %v27150_v39 = vld [vmem:[%s24916_s28 + $0x30] sm:$0xff] }
 0x4d5   : > { %20945 = vmatprep.mubr.msk.f32.mxu1 %vm5223_vm7, %v5153_v15  ;;  %21281 = vmatprep.mubr.msk.f32.mxu0 %vm2085_vm0, %v18306_v29  ;;  %31124 = vst [vmem:[#allocation113_spill] sm:$0xff] %v27142_v43  ;;  %v27339_v43 = vld [vmem:[%s24916_s28 + $0xb0] sm:$0xff] }
 0x4d6   : > { %20946 = vmatmul.mubr.msk.f32.gmra.mrb[128].mxu1 %vm5223_vm7, %v20897_v32  ;;  %11159 = vperm.xlu1 %23438, %v26787_v31   ;;  %v18374_v32 = vsel %vm8565_vm15, 1.0, %v30926_v19 }
 0x4d7   : > { %v20900_v61 = vpop.f32.mrb[134].mxu0  ;;  %v27146_v15 = vpop.permute.xlu1 %10208 }
 0x4d8   : > { %31125 = vst [vmem:[#allocation125_spill] sm:$0xff] %v27146_v15  ;;  %v5163_v29 = vpop.f32.mrb[135].mxu0  ;;  %21282 = vmatmul.mubr.msk.f32.gmra.mrb[240].mxu0 %vm2085_vm0, %v18307_v16  ;;  %11954 = vperm.xlu0 %23440, %v27150_v39   ;;  %v27169_v15 = vld [vmem:[%s24916_s28 + $0x40] sm:$0xff] }
 0x4d9   : > { %20948 = vmatprep.mubr.msk.f32.mxu1 %vm5223_vm7, %v5163_v29  ;;  %21342 = vmatprep.mubr.msk.f32.mxu0 %vm2085_vm0, %v18372_v27  ;;  %v27166_v27 = vpop.permute.xlu0 %10205 }
 0x4da   : > { %20949 = vmatmul.mubr.msk.f32.gmra.mrb[130].mxu1 %vm5223_vm7, %v20900_v61  ;;  %23439 = vset.pattern.permute.xlu1 %v23649_v44  ;;  %31127 = vst [vmem:[#allocation128_spill] sm:$0xff] %v27166_v27  ;;  %v27184_v44 = vld [vmem:[%s24916_s28 + $0x10] sm:$0xff] }
 0x4db   : > { %v20903_v42 = vpop.f32.mrb[136].mxu0  ;;  %11936 = vperm.xlu1 %23439, %v26535_v24   ;;  %v27163_v16 = vpop.permute.xlu1 %10211  ;;  %v18376_v24 = vsel %vm8567_vm2, 1.0, %v30926_v19  ;;  %31128 = vst [vmem:[#allocation108_spill] sm:$0xff] %v27184_v44 }
 0x4dc   : > { %31126 = vst [vmem:[#allocation104_spill] sm:$0xff] %v27163_v16  ;;  %v5173_v29 = vpop.f32.mrb[137].mxu0  ;;  %21343 = vmatmul.mubr.msk.f32.vlgmr.msra.gmra.mrb[242].mxu0 %vm2085_vm0, %v18373_v55  ;;  %11960 = vperm.xlu0 %23440, %v27169_v15  }
 0x4dd   : > { %20951 = vmatprep.mubr.msk.f32.mxu1 %vm5223_vm7, %v5173_v29  ;;  %21345 = vmatprep.mubr.msk.f32.mxu0 %vm2085_vm0, %v18374_v32  ;;  %v27190_v40 = vpop.permute.xlu0 %10214  ;;  %v27193_v32 = vld [vmem:[%s24916_s28 + $0x50] sm:$0xff]  ;;  %v18378_v29 = vsel %vm8569_vm4, 1.0, %v30926_v19 }
 0x4de   : > { %20952 = vmatmul.mubr.msk.f32.gmra.mrb[132].mxu1 %vm5223_vm7, %v20903_v42  ;;  %22671 = vmatpush3.bf16.msra.mxu0 %v25482_v45  ;;  %31130 = vst [vmem:[#allocation133_spill] sm:$0xff] %v27190_v40  ;;  %v31131_v42 = vld [vmem:[#allocation149_spill] sm:$0xff] }
 0x4df   : > { %v20906_v3 = vpop.f32.mrb[138].mxu0  ;;  %22673 = vmatprep.subr.bf16.mxu0 %v25540_v22  ;;  %11942 = vperm.xlu1 %23439, %v27184_v44   ;;  %v27187_v61 = vpop.permute.xlu1 %10217  ;;  %vm8570_vm5 = vcmp.eq.s32.totalorder %v31131_v42, %v30882_v50 }
 0x4e0   : > { %31129 = vst [vmem:[#allocation114_spill] sm:$0xff] %v27187_v61  ;;  %v5183_v55 = vpop.f32.mrb[139].mxu0  ;;  %21346 = vmatmul.mubr.msk.f32.gmra.mrb[244].mxu0 %vm2085_vm0, %v18375_v7  ;;  %11966 = vperm.xlu0 %23440, %v27193_v32   ;;  %v18379_v61 = vsel %vm8570_vm5, 1.0, %v30926_v19 }
 0x4e1   : > { %20954 = vmatprep.mubr.msk.f32.mxu1 %vm5223_vm7, %v5183_v55  ;;  %21348 = vmatprep.mubr.msk.f32.mxu0 %vm2085_vm0, %v18376_v24  ;;  %v27211_v42 = vpop.permute.xlu0 %10220 }
 0x4e2   : > { %20955 = vmatmul.mubr.msk.f32.gmra.mrb[134].mxu1 %vm5223_vm7, %v20906_v3  ;;  %22675 = vmatpush3.bf16.msra.mxu0 %v25540_v22  ;;  %31133 = vst [vmem:[#allocation140_spill] sm:$0xff] %v27211_v42  ;;  %v27214_v3 = vld [vmem:[%s24916_s28 + $0x60] sm:$0xff] }
 0x4e3   : > { %v20909_v7 = vpop.f32.mrb[140].mxu0  ;;  %22677 = vmatprep.subr.bf16.mxu0 %v25482_v45  ;;  %11945 = vperm.xlu1 %23439, %v26568_v30   ;;  %v27208_v55 = vpop.permute.xlu1 %10223  ;;  %v31134_v30 = vld [vmem:[#allocation152_spill] sm:$0xff] }
 0x4e4   : > { %31132 = vst [vmem:[#allocation137_spill] sm:$0xff] %v27208_v55  ;;  %v5193_v24 = vpop.f32.mrb[141].mxu0  ;;  %21349 = vmatmul.mubr.msk.f32.gmra.mrb[246].mxu0 %vm2085_vm0, %v18377_v37  ;;  %11972 = vperm.xlu0 %23440, %v27214_v3   ;;  %vm8572_vm8 = vcmp.eq.s32.totalorder %v31134_v30, %v30882_v50  ;;  %v31138_v30 = vld [vmem:[#allocation163_spill] sm:$0xff] }
 0x4e5   : > { %20957 = vmatprep.mubr.msk.f32.mxu1 %vm5223_vm7, %v5193_v24  ;;  %21351 = vmatprep.mubr.msk.f32.mxu0 %vm2085_vm0, %v18378_v29  ;;  %v27230_v24 = vpop.permute.xlu0 %10226  ;;  %v27233_v29 = vld [vmem:[%s24916_s28 + $0x70] sm:$0xff]  ;;  %vm8575_vm11 = vcmp.eq.s32.totalorder %v31138_v30, %v30882_v50  ;;  %v31143_v30 = vld [vmem:[#allocation167_spill] sm:$0xff] }
 0x4e6   : > { %20958 = vmatmul.mubr.msk.f32.gmra.mrb[136].mxu1 %vm5223_vm7, %v20909_v7  ;;  %31136 = vst [vmem:[#allocation149_spill] sm:$0xff] %v27230_v24  ;;  %v18381_v7 = vsel %vm8572_vm8, 1.0, %v30926_v19  ;;  %vm8577_vm13 = vcmp.eq.s32.totalorder %v31143_v30, %v30882_v50  ;;  %v27283_v30 = vld [vmem:[%s30927_s11 + $0x18] sm:$0xff]  ;;  %vm8587_vm8 = vcmp.eq.s32.totalorder %v26817_v60, %v30882_v50 }
 0x4e7   : > { %v20912_v37 = vpop.f32.mrb[142].mxu0  ;;  %11951 = vperm.xlu1 %23439, %v26591_v62   ;;  %v27227_v55 = vpop.permute.xlu1 %10229  ;;  %v31137_v62 = vld [vmem:[#allocation155_spill] sm:$0xff]  ;;  %v18396_v60 = vsel %vm8587_vm8, 1.0, %v30926_v19  ;;  %vm9435_vm8 = vcmp.eq.s32.totalorder %v26915_v23, %v30882_v50 }
 0x4e8   : > { %31135 = vst [vmem:[#allocation142_spill] sm:$0xff] %v27227_v55  ;;  %v5203_v42 = vpop.f32.mrb[143].mxu0  ;;  %21352 = vmatmul.mubr.msk.f32.gmra.mrb[248].mxu0 %vm2085_vm0, %v18379_v61  ;;  %11978 = vperm.xlu0 %23440, %v27233_v29   ;;  %vm8574_vm10 = vcmp.eq.s32.totalorder %v31137_v62, %v30882_v50  ;;  %v31142_v62 = vld [vmem:[#allocation109_spill] sm:$0xff]  ;;  %v18473_v23 = vsel %vm9435_vm8, 1.0, %v30926_v19  ;;  %vm9449_vm8 = vcmp.eq.s32.totalorder %v27032_v53, %v30882_v50 }
 0x4e9   : > { %20960 = vmatprep.mubr.msk.f32.mxu1 %vm5223_vm7, %v5203_v42  ;;  %21354 = vmatprep.mubr.msk.f32.mxu0 %vm2085_vm0, %v18380_v57  ;;  %v27249_v42 = vpop.permute.xlu0 %10232  ;;  %v27252_v57 = vld [vmem:[%s24916_s28 + $0x80] sm:$0xff] }
 0x4ea   : > { %20961 = vmatmul.mubr.msk.f32.gmra.mrb[138].mxu1 %vm5223_vm7, %v20912_v37  ;;  %31140 = vst [vmem:[#allocation155_spill] sm:$0xff] %v27249_v42  ;;  %v18383_v37 = vsel %vm8574_vm10, 1.0, %v30926_v19  ;;  %v31149_v42 = vld [vmem:[#allocation171_spill] sm:$0xff]  ;;  %vm8589_vm10 = vcmp.eq.s32.totalorder %v26834_v25, %v30882_v50 }
 0x4eb   : > { %v20915_v61 = vpop.f32.mrb[144].mxu0  ;;  %11957 = vperm.xlu1 %23439, %v26614_v52   ;;  %v27246_v55 = vpop.permute.xlu1 %10235  ;;  %v31141_v52 = vld [vmem:[#allocation158_spill] sm:$0xff]  ;;  %vm8579_vm15 = vcmp.eq.s32.totalorder %v31149_v42, %v30882_v50  ;;  %v31152_v42 = vld [vmem:[#allocation165_spill] sm:$0xff]  ;;  %v18398_v25 = vsel %vm8589_vm10, 1.0, %v30926_v19  ;;  %vm9437_vm10 = vcmp.eq.s32.totalorder %v26933_v28, %v30882_v50 }
 0x4ec   : > { %31139 = vst [vmem:[#allocation152_spill] sm:$0xff] %v27246_v55  ;;  %v5213_v24 = vpop.f32.mrb[145].mxu0  ;;  %21355 = vmatmul.mubr.msk.f32.gmra.mrb[250].mxu0 %vm2085_vm0, %v18381_v7  ;;  %11984 = vperm.xlu0 %23440, %v27252_v57   ;;  %vm8576_vm12 = vcmp.eq.s32.totalorder %v31141_v52, %v30882_v50  ;;  %v18384_v7 = vsel %vm8575_vm11, 1.0, %v30926_v19  ;;  %vm8580_vm1 = vcmp.eq.s32.totalorder %v31152_v42, %v30882_v50  ;;  %v18475_v28 = vsel %vm9437_vm10, 1.0, %v30926_v19 }
 0x4ed   : > { %20963 = vmatprep.mubr.msk.f32.mxu1 %vm5223_vm7, %v5213_v24  ;;  %21357 = vmatprep.mubr.msk.f32.mxu0 %vm2085_vm0, %v18382_v13  ;;  %v27274_v52 = vpop.permute.xlu0 %10238  ;;  %v18389_v27 = vsel %vm8580_vm1, 1.0, %v30926_v19  ;;  %vm9430_vm1 = vcmp.eq.s32.totalorder %v26883_v46, %v30882_v50  ;;  %v31196_v46 = vld [vmem:[#allocation194_spill] sm:$0xff]  ;;  %vm9451_vm10 = vcmp.eq.s32.totalorder %v27048_v41, %v30882_v50 }
 0x4ee   : > { %20964 = vmatmul.mubr.msk.f32.gmra.mrb[140].mxu1 %vm5223_vm7, %v20915_v61  ;;  %31145 = vst [vmem:[#allocation158_spill] sm:$0xff] %v27274_v52  ;;  %v27277_v61 = vld [vmem:[%s24916_s28 + $0x90] sm:$0xff]  ;;  %v31148_v52 = vld [vmem:[#allocation105_spill] sm:$0xff]  ;;  %v18489_v41 = vsel %vm9451_vm10, 1.0, %v30926_v19 }
 0x4ef   : > { %20968 = vmatprep.mubr.msk.f32.mxu1 %vm5223_vm7, %v31142_v62  ;;  %v27266_v55 = vpop.f32.mrb[146].mxu0  ;;  %11963 = vperm.xlu1 %23439, %v26635_v36   ;;  %v27269_v24 = vpop.permute.xlu1 %10241  ;;  %v18385_v62 = vsel %vm8576_vm12, 1.0, %v30926_v19  ;;  %v31146_v36 = vld [vmem:[#allocation161_spill] sm:$0xff]  ;;  %vm8591_vm12 = vcmp.eq.s32.totalorder %v26852_v8, %v30882_v50 }
 0x4f0   : > { %31144 = vst [vmem:[#allocation163_spill] sm:$0xff] %v27269_v24  ;;  %21358 = vmatmul.mubr.msk.f32.gmra.mrb[252].mxu0 %vm2085_vm0, %v18383_v37  ;;  %v27272_v13 = vpop.f32.mrb[147].mxu0  ;;  %11990 = vperm.xlu0 %23440, %v27277_v61   ;;  %vm8578_vm14 = vcmp.eq.s32.totalorder %v31146_v36, %v30882_v50  ;;  %v31147_v24 = vld [vmem:[#allocation101_spill] sm:$0xff]  ;;  %v18386_v37 = vsel %vm8577_vm13, 1.0, %v30926_v19  ;;  %v18400_v8 = vsel %vm8591_vm12, 1.0, %v30926_v19 }
 0x4f1   : > { %21360 = vmatprep.mubr.msk.f32.mxu0 %vm2085_vm0, %v18384_v7 }
 0x4f2   : > { %20969 = vmatmul.mubr.msk.f32.vlgmr.msra.gmra.mrb[110].mxu1 %vm5223_vm7, %v31147_v24  ;;  %v27303_v24 = vpop.permute.xlu0 %10244 }
 0x4f3   : > { %21073 = vmatpush3.msra.mxu1 %v26985_v2  ;;  %20971 = vmatprep.mubr.msk.f32.mxu1 %vm5223_vm7, %v31148_v52  ;;  %v27295_v7 = vpop.f32.mrb[148].mxu0  ;;  %v27297_v40 = vpop.permute.xlu1 %10247  ;;  %31151 = vst [vmem:[#allocation167_spill] sm:$0xff] %v27303_v24  ;;  %v18387_v2 = vsel %vm8578_vm14, 1.0, %v30926_v19  ;;  %v31153_v52 = vld [vmem:[#allocation111_spill] sm:$0xff]  ;;  %v31154_v24 = vld [vmem:[#allocation117_spill] sm:$0xff] }
 0x4f4   : > { %31150 = vst [vmem:[#allocation109_spill] sm:$0xff] %v27297_v40  ;;  %21361 = vmatmul.mubr.msk.f32.gmra.mrb[254].mxu0 %vm2085_vm0, %v18385_v62  ;;  %v27300_v36 = vpop.f32.mrb[149].mxu0  ;;  %21178 = vmatprep.subr.mxu1 %v27283_v30  ;;  %v18388_v62 = vsel %vm8579_vm15, 1.0, %v30926_v19  ;;  %v27314_v40 = vld [vmem:[%s24916_s28 + $0xa0] sm:$0xff] }
 0x4f5   : > { %21363 = vmatprep.mubr.msk.f32.mxu0 %vm2085_vm0, %v18386_v37  ;;  %11969 = vperm.xlu1 %23439, %v26656_v38   ;;  %v31155_v37 = vld [vmem:[#allocation175_spill] sm:$0xff] }
 0x4f6   : > { %20972 = vmatmul.mubr.msk.f32.gmra.mrb[112].mxu1 %vm5223_vm7, %v31153_v52  ;;  %11996 = vperm.xlu0 %23440, %v27314_v40   ;;  %vm8581_vm2 = vcmp.eq.s32.totalorder %v31155_v37, %v30882_v50  ;;  %v27328_v52 = vpop.permute.xlu0 %10250  ;;  %v31159_v37 = vld [vmem:[#allocation106_spill] sm:$0xff] }
 0x4f7   : > { %20974 = vmatprep.mubr.msk.f32.mxu1 %vm5223_vm7, %v31154_v24  ;;  %v27321_v38 = vpop.f32.mrb[150].mxu0  ;;  %v27323_v16 = vpop.permute.xlu1 %10253  ;;  %31157 = vst [vmem:[#allocation101_spill] sm:$0xff] %v27328_v52  ;;  %v31158_v24 = vld [vmem:[#allocation169_spill] sm:$0xff]  ;;  %v31161_v52 = vld [vmem:[#allocation179_spill] sm:$0xff] }
 0x4f8   : > { %31156 = vst [vmem:[#allocation161_spill] sm:$0xff] %v27323_v16  ;;  %21364 = vmatmul.mubr.msk.f32.gmra.mrb[0].mxu0 %vm2085_vm0, %v18387_v2  ;;  %v27326_v42 = vpop.f32.mrb[151].mxu0  ;;  %vm8582_vm3 = vcmp.eq.s32.totalorder %v31158_v24, %v30882_v50  ;;  %v18390_v16 = vsel %vm8581_vm2, 1.0, %v30926_v19  ;;  %v31160_v2 = vld [vmem:[#allocation119_spill] sm:$0xff]  ;;  %vm8583_vm4 = vcmp.eq.s32.totalorder %v31161_v52, %v30882_v50  ;;  %v31165_v52 = vld [vmem:[#allocation110_spill] sm:$0xff] }
 0x4f9   : > { %21366 = vmatprep.mubr.msk.f32.mxu0 %vm2085_vm0, %v18388_v62  ;;  %11975 = vperm.xlu1 %23439, %v26677_v0   ;;  %v18391_v59 = vsel %vm8582_vm3, 1.0, %v30926_v19  ;;  %vm9431_vm3 = vcmp.eq.s32.totalorder %v31196_v46, %v30882_v50 }
 0x4fa   : > { %20975 = vmatmul.mubr.msk.f32.gmra.mrb[114].mxu1 %vm5223_vm7, %v31159_v37  ;;  %12002 = vperm.xlu0 %23440, %v27339_v43   ;;  %v27353_v37 = vpop.permute.xlu0 %10256 }
 0x4fb   : > { %20977 = vmatprep.mubr.msk.f32.mxu1 %vm5223_vm7, %v31160_v2  ;;  %v27346_v62 = vpop.f32.mrb[152].mxu0  ;;  %v27348_v0 = vpop.permute.xlu1 %10259  ;;  %31163 = vst [vmem:[#allocation171_spill] sm:$0xff] %v27353_v37  ;;  %v31164_v2 = vld [vmem:[#allocation173_spill] sm:$0xff] }
 0x4fc   : > { %31162 = vst [vmem:[#allocation105_spill] sm:$0xff] %v27348_v0  ;;  %21367 = vmatmul.mubr.msk.f32.gmra.mrb[2].mxu0 %vm2085_vm0, %v18389_v27  ;;  %v27351_v24 = vpop.f32.mrb[153].mxu0  ;;  %vm8584_vm5 = vcmp.eq.s32.totalorder %v31164_v2, %v30882_v50  ;;  %v18392_v0 = vsel %vm8583_vm4, 1.0, %v30926_v19  ;;  %v31166_v27 = vld [vmem:[#allocation123_spill] sm:$0xff] }
 0x4fd   : > { %21369 = vmatprep.mubr.msk.f32.mxu0 %vm2085_vm0, %v18390_v16  ;;  %11981 = vperm.xlu1 %23439, %v26698_v54  }
 0x4fe   : > { %20978 = vmatmul.mubr.msk.f32.gmra.mrb[116].mxu1 %vm5223_vm7, %v31165_v52  ;;  %12008 = vperm.xlu0 %23440, %v26717_v18   ;;  %v27375_v2 = vpop.permute.xlu0 %10262  ;;  %v18393_v52 = vsel %vm8584_vm5, 1.0, %v30926_v19  ;;  %v31169_v18 = vld [vmem:[#allocation121_spill] sm:$0xff]  ;;  %vm9433_vm5 = vcmp.eq.s32.totalorder %v26897_v49, %v30882_v50 }
 0x4ff   : > { %20980 = vmatprep.mubr.msk.f32.mxu1 %vm5223_vm7, %v31166_v27  ;;  %v27368_v37 = vpop.f32.mrb[154].mxu0  ;;  %v27370_v16 = vpop.permute.xlu1 %10265  ;;  %31168 = vst [vmem:[#allocation111_spill] sm:$0xff] %v27375_v2  ;;  %v31170_v27 = vld [vmem:[#allocation131_spill] sm:$0xff]  ;;  %v31201_v2 = vld [vmem:[#allocation141_spill] sm:$0xff]  ;;  %v18471_v49 = vsel %vm9433_vm5, 1.0, %v30926_v19  ;;  %vm9447_vm5 = vcmp.eq.s32.totalorder %v27016_v34, %v30882_v50 }
 0x500   : > { %31167 = vst [vmem:[#allocation165_spill] sm:$0xff] %v27370_v16  ;;  %21370 = vmatmul.mubr.msk.f32.gmra.mrb[4].mxu0 %vm2085_vm0, %v18391_v59  ;;  %v27373_v54 = vpop.f32.mrb[155].mxu0 }
 0x501   : > { %21372 = vmatprep.mubr.msk.f32.mxu0 %vm2085_vm0, %v18392_v0  ;;  %11987 = vperm.xlu1 %23439, %v26722_v26   ;;  %v31172_v0 = vld [vmem:[#allocation177_spill] sm:$0xff] }
 0x502   : > { %20981 = vmatmul.mubr.msk.f32.gmra.mrb[118].mxu1 %vm5223_vm7, %v31169_v18  ;;  %12014 = vperm.xlu0 %23440, %v26741_v17   ;;  %vm8586_vm9 = vcmp.eq.s32.totalorder %v31172_v0, %v30882_v50  ;;  %v27397_v18 = vpop.permute.xlu0 %10268  ;;  %v31174_v17 = vld [vmem:[#allocation116_spill] sm:$0xff]  ;;  %v31175_v0 = vld [vmem:[#allocation134_spill] sm:$0xff] }
 0x503   : > { %20983 = vmatprep.mubr.msk.f32.mxu1 %vm5223_vm7, %v31170_v27  ;;  %v27388_v59 = vpop.f32.mrb[156].mxu0  ;;  %v27390_v16 = vpop.permute.xlu1 %10271  ;;  %31173 = vst [vmem:[#allocation175_spill] sm:$0xff] %v27397_v18  ;;  %v18395_v27 = vsel %vm8586_vm9, 1.0, %v30926_v19  ;;  %v31200_v18 = vld [vmem:[#allocation67_spill] sm:$0xff] }
 0x504   : > { %31171 = vst [vmem:[#allocation117_spill] sm:$0xff] %v27390_v16  ;;  %21373 = vmatmul.mubr.msk.f32.gmra.mrb[6].mxu0 %vm2085_vm0, %v18393_v52  ;;  %v27395_v26 = vpop.f32.mrb[157].mxu0  ;;  %v31190_v16 = vld [vmem:[#allocation120_spill] sm:$0xff]  ;;  %vm9432_vm4 = vcmp.eq.s32.totalorder %v31200_v18, %v30882_v50 }
 0x505   : > { %21375 = vmatprep.mubr.msk.f32.mxu0 %vm2085_vm0, %v18394_v9  ;;  %11993 = vperm.xlu1 %23439, %v26746_v63   ;;  %v31177_v63 = vld [vmem:[#allocation181_spill] sm:$0xff]  ;;  %v18470_v18 = vsel %vm9432_vm4, 1.0, %v30926_v19 }
 0x506   : > { %20984 = vmatmul.mubr.msk.f32.gmra.mrb[120].mxu1 %vm5223_vm7, %v31174_v17  ;;  %12020 = vperm.xlu0 %23440, %v26763_v20   ;;  %vm8588_vm11 = vcmp.eq.s32.totalorder %v31177_v63, %v30882_v50  ;;  %v31178_v20 = vld [vmem:[#allocation132_spill] sm:$0xff]  ;;  %v31180_v63 = vld [vmem:[#allocation118_spill] sm:$0xff] }
 0x507   : > { %20986 = vmatprep.mubr.msk.f32.mxu1 %vm5223_vm7, %v31175_v0  ;;  %v27410_v52 = vpop.f32.mrb[158].mxu0  ;;  %v27412_v9 = vpop.permute.xlu1 %10277 }
 0x508   : > { %31176 = vst [vmem:[#allocation169_spill] sm:$0xff] %v27412_v9  ;;  %21376 = vmatmul.mubr.msk.f32.gmra.mrb[8].mxu0 %vm2085_vm0, %v18395_v27  ;;  %v27417_v17 = vpop.f32.mrb[159].mxu0  ;;  %v27424_v0 = vpop.permute.xlu0 %10274  ;;  %v18397_v9 = vsel %vm8588_vm11, 1.0, %v30926_v19  ;;  %v31182_v27 = vld [vmem:[#allocation184_spill] sm:$0xff] }
 0x509   : > { %21378 = vmatprep.mubr.msk.f32.mxu0 %vm2085_vm0, %v18396_v60  ;;  %11999 = vperm.xlu1 %23439, %v26770_v4   ;;  %31179 = vst [vmem:[#allocation106_spill] sm:$0xff] %v27424_v0  ;;  %vm8590_vm13 = vcmp.eq.s32.totalorder %v31182_v27, %v30882_v50  ;;  %v31184_v0 = vld [vmem:[#allocation138_spill] sm:$0xff] }
 0x50a   : > { %20987 = vmatmul.mubr.msk.f32.gmra.mrb[122].mxu1 %vm5223_vm7, %v31178_v20  ;;  %12026 = vperm.xlu0 %23440, %v26787_v31   ;;  %v31183_v31 = vld [vmem:[#allocation135_spill] sm:$0xff]  ;;  %v31185_v27 = vld [vmem:[#allocation70_spill] sm:$0xff] }
 0x50b   : > { %20989 = vmatprep.mubr.msk.f32.mxu1 %vm5223_vm7, %v31180_v63  ;;  %v27432_v60 = vpop.f32.mrb[160].mxu0  ;;  %v27434_v4 = vpop.permute.xlu1 %10283  ;;  %v18399_v63 = vsel %vm8590_vm13, 1.0, %v30926_v19  ;;  %vm8593_vm14 = vcmp.eq.s32.totalorder %v31185_v27, %v30882_v50 }
 0x50c   : > { %31181 = vst [vmem:[#allocation119_spill] sm:$0xff] %v27434_v4  ;;  %21379 = vmatmul.mubr.msk.f32.gmra.mrb[10].mxu0 %vm2085_vm0, %v18397_v9  ;;  %v27439_v20 = vpop.f32.mrb[161].mxu0  ;;  %v18402_v27 = vsel %vm8593_vm14, 1.0, %v30926_v19  ;;  %vm9441_vm14 = vcmp.eq.s32.totalorder %v26965_v51, %v30882_v50 }
 0x50d   : > { %21381 = vmatprep.mubr.msk.f32.mxu0 %vm2085_vm0, %v18398_v25  ;;  %12005 = vperm.xlu1 %23439, %v26794_v33   ;;  %v31187_v25 = vld [vmem:[#allocation187_spill] sm:$0xff] }
 0x50e   : > { %20990 = vmatmul.mubr.msk.f32.gmra.mrb[124].mxu1 %vm5223_vm7, %v31183_v31  ;;  %vm8592_vm15 = vcmp.eq.s32.totalorder %v31187_v25, %v30882_v50  ;;  %v27460_v31 = vpop.permute.xlu0 %10280 }
 0x50f   : > { %20992 = vmatprep.mubr.msk.f32.mxu1 %vm5223_vm7, %v31184_v0  ;;  %v27451_v9 = vpop.f32.mrb[162].mxu0  ;;  %v27453_v4 = vpop.permute.xlu1 %10289  ;;  %31188 = vst [vmem:[#allocation173_spill] sm:$0xff] %v27460_v31  ;;  %v31189_v0 = vld [vmem:[#allocation136_spill] sm:$0xff]  ;;  %v31197_v31 = vld [vmem:[#allocation139_spill] sm:$0xff] }
 0x510   : > { %31186 = vst [vmem:[#allocation179_spill] sm:$0xff] %v27453_v4  ;;  %21382 = vmatmul.mubr.msk.f32.gmra.mrb[12].mxu0 %vm2085_vm0, %v18399_v63  ;;  %v27458_v33 = vpop.f32.mrb[163].mxu0  ;;  %v18401_v4 = vsel %vm8592_vm15, 1.0, %v30926_v19 }
 0x511   : > { %21384 = vmatprep.mubr.msk.f32.mxu0 %vm2085_vm0, %v18400_v8  ;;  %12011 = vperm.xlu1 %23439, %v26814_v14   ;;  %v31192_v8 = vld [vmem:[#allocation191_spill] sm:$0xff] }
 0x512   : > { %20993 = vmatmul.mubr.msk.f32.gmra.mrb[126].mxu1 %vm5223_vm7, %v31189_v0  ;;  %vm8594_vm2 = vcmp.eq.s32.totalorder %v31192_v8, %v30882_v50  ;;  %v23650_v0 = vmov 10   ;;  %v27491_v8 = vpop.permute.xlu0 %10286 }
 0x513   : > { %20995 = vmatprep.mubr.msk.f32.mxu1 %vm5223_vm7, %v31190_v16  ;;  %v27472_v63 = vpop.f32.mrb[164].mxu0  ;;  %v27479_v25 = vpop.permute.xlu1 %10295  ;;  %23441 = vset.pattern.permute.xlu0 %v23650_v0  ;;  %v27483_v16 = vld [vmem:[%s24916_s28 + $0xd8] sm:$0xff]  ;;  %31198 = vst [vmem:[#allocation177_spill] sm:$0xff] %v27491_v8 }
 0x514   : > { %31191 = vst [vmem:[#allocation110_spill] sm:$0xff] %v27472_v63  ;;  %21385 = vmatmul.mubr.msk.f32.gmra.mrb[14].mxu0 %vm2085_vm0, %v18401_v4  ;;  %v27477_v14 = vpop.f32.mrb[165].mxu0  ;;  %31194 = vst [vmem:[#allocation121_spill] sm:$0xff] %v27479_v25  ;;  %v18468_v4 = vsel %vm9430_vm1, 1.0, %v30926_v19  ;;  %v27494_v25 = vld [vmem:[%s24916_s28] sm:$0xff]  ;;  %v18469_v63 = vsel %vm9431_vm3, 1.0, %v30926_v19  ;;  %vm9445_vm3 = vcmp.eq.s32.totalorder %v27000_v10, %v30882_v50 }
 0x515   : > { %31193 = vst [vmem:[#allocation123_spill] sm:$0xff] %v27477_v14  ;;  %21387 = vmatprep.mubr.msk.f32.mxu0 %vm2085_vm0, %v18402_v27  ;;  %31195 = vst [vmem:[#allocation131_spill] sm:$0xff] %v27483_v16  ;;  %12017 = vperm.xlu1 %23439, %v27483_v16   ;;  %v18403_v27 = vsel %vm8594_vm2, 1.0, %v30926_v19  ;;  %v31205_v14 = vld [vmem:[#allocation129_spill] sm:$0xff]  ;;  %v18483_v10 = vsel %vm9445_vm3, 1.0, %v30926_v19  ;;  %vm9459_vm3 = vcmp.eq.s32.totalorder %v27118_v47, %v30882_v50 }
 0x516   : > { %20996 = vmatmul.mubr.msk.f32.gmra.mrb[128].mxu1 %vm5223_vm7, %v31197_v31  ;;  %31199 = vst [vmem:[#allocation116_spill] sm:$0xff] %v27494_v25  ;;  %12803 = vperm.xlu0 %23441, %v27494_v25   ;;  %v27512_v25 = vld [vmem:[%s24916_s28 + $0xe8] sm:$0xff]  ;;  %v18497_v47 = vsel %vm9459_vm3, 1.0, %v30926_v19 }
 0x517   : > { %20998 = vmatprep.mubr.msk.f32.mxu1 %vm5223_vm7, %v31201_v2  ;;  %v27502_v46 = vpop.f32.mrb[166].mxu0  ;;  %31204 = vst [vmem:[#allocation132_spill] sm:$0xff] %v27512_v25  ;;  %v27521_v2 = vld [vmem:[%s24916_s28 + $0x18] sm:$0xff] }
 0x518   : > { %31202 = vst [vmem:[#allocation134_spill] sm:$0xff] %v27502_v46  ;;  %21388 = vmatmul.mubr.msk.f32.gmra.mrb[16].mxu0 %vm2085_vm0, %v18403_v27  ;;  %v27505_v31 = vpop.f32.mrb[167].mxu0  ;;  %v27507_v8 = vpop.permute.xlu1 %11072  ;;  %31206 = vst [vmem:[#allocation118_spill] sm:$0xff] %v27521_v2  ;;  %v31207_v27 = vld [vmem:[#allocation79_spill] sm:$0xff] }
 0x519   : > { %31203 = vst [vmem:[#allocation181_spill] sm:$0xff] %v27507_v8  ;;  %21448 = vmatprep.mubr.msk.f32.mxu0 %vm2085_vm0, %v18468_v4  ;;  %12023 = vperm.xlu1 %23439, %v27512_v25   ;;  %vm9434_vm6 = vcmp.eq.s32.totalorder %v31207_v27, %v30882_v50  ;;  %v31208_v4 = vld [vmem:[#allocation143_spill] sm:$0xff] }
 0x51a   : > { %20999 = vmatmul.mubr.msk.f32.gmra.mrb[130].mxu1 %vm5223_vm7, %v31205_v14  ;;  %12812 = vperm.xlu0 %23441, %v27521_v2   ;;  %v27533_v14 = vpop.permute.xlu0 %10292  ;;  %v31212_v2 = vld [vmem:[#allocation122_spill] sm:$0xff] }
 0x51b   : > { %21001 = vmatprep.mubr.msk.f32.mxu1 %vm5223_vm7, %v31208_v4  ;;  %v27528_v8 = vpop.f32.mrb[168].mxu0  ;;  %31210 = vst [vmem:[#allocation135_spill] sm:$0xff] %v27533_v14  ;;  %v18472_v4 = vsel %vm9434_vm6, 1.0, %v30926_v19  ;;  %v31214_v14 = vld [vmem:[#allocation144_spill] sm:$0xff] }
 0x51c   : > { %31209 = vst [vmem:[#allocation184_spill] sm:$0xff] %v27528_v8  ;;  %21449 = vmatmul.mubr.msk.f32.vlgmr.msra.gmra.mrb[18].mxu0 %vm2085_vm0, %v18469_v63  ;;  %v27531_v46 = vpop.f32.mrb[169].mxu0  ;;  %v31213_v63 = vld [vmem:[#allocation78_spill] sm:$0xff]  ;;  %v27553_v8 = vld [vmem:[%s24916_s28 + $0xf8] sm:$0xff] }
 0x51d   : > { %21451 = vmatprep.mubr.msk.f32.mxu0 %vm2085_vm0, %v18470_v18  ;;  %22679 = vmatpush3.bf16.msra.mxu0 %v25482_v45  ;;  %v27538_v27 = vpop.permute.xlu1 %11075  ;;  %vm9436_vm9 = vcmp.eq.s32.totalorder %v31213_v63, %v30882_v50  ;;  %31216 = vst [vmem:[#allocation187_spill] sm:$0xff] %v27553_v8 }
 0x51e   : > { %31211 = vst [vmem:[#allocation138_spill] sm:$0xff] %v27538_v27  ;;  %21002 = vmatmul.mubr.msk.f32.gmra.mrb[132].mxu1 %vm5223_vm7, %v31212_v2  ;;  %22681 = vmatprep.subr.bf16.mxu0 %v25540_v22  ;;  %v27560_v27 = vld [vmem:[%s24916_s28 + $0x28] sm:$0xff]  ;;  %v18474_v63 = vsel %vm9436_vm9, 1.0, %v30926_v19  ;;  %vm9450_vm9 = vcmp.eq.s32.totalorder %v27026_v11, %v30882_v50  ;;  %v27745_v11 = vld [vmem:[%s24916_s28 + $0x98] sm:$0xff] }
 0x51f   : > { %21004 = vmatprep.mubr.msk.f32.mxu1 %vm5223_vm7, %v31214_v14  ;;  %v27550_v18 = vpop.f32.mrb[170].mxu0  ;;  %12029 = vperm.xlu1 %23439, %v27553_v8   ;;  %31218 = vst [vmem:[#allocation120_spill] sm:$0xff] %v27560_v27 }
 0x520   : > { %31215 = vst [vmem:[#allocation70_spill] sm:$0xff] %v27550_v18  ;;  %21452 = vmatmul.mubr.msk.f32.gmra.mrb[20].mxu0 %vm2085_vm0, %v18471_v49  ;;  %v27557_v2 = vpop.f32.mrb[171].mxu0  ;;  %12818 = vperm.xlu0 %23441, %v27560_v27   ;;  %v31220_v18 = vld [vmem:[#allocation124_spill] sm:$0xff]  ;;  %v27574_v49 = vpop.permute.xlu0 %11069  ;;  %v31222_v27 = vld [vmem:[#allocation89_spill] sm:$0xff] }
 0x521   : > { %31217 = vst [vmem:[#allocation136_spill] sm:$0xff] %v27557_v2  ;;  %21454 = vmatprep.mubr.msk.f32.mxu0 %vm2085_vm0, %v18472_v4  ;;  %22683 = vmatpush3.bf16.msra.mxu0 %v25540_v22  ;;  %v27566_v14 = vpop.permute.xlu1 %11081  ;;  %31221 = vst [vmem:[#allocation194_spill] sm:$0xff] %v27574_v49  ;;  %vm9438_vm11 = vcmp.eq.s32.totalorder %v31222_v27, %v30882_v50  ;;  %v31223_v4 = vld [vmem:[#allocation145_spill] sm:$0xff]  ;;  %v27591_v27 = vld [vmem:[%s24916_s28 + $0x38] sm:$0xff] }
 0x522   : > { %31219 = vst [vmem:[#allocation191_spill] sm:$0xff] %v27566_v14  ;;  %21005 = vmatmul.mubr.msk.f32.gmra.mrb[134].mxu1 %vm5223_vm7, %v31220_v18  ;;  %22685 = vmatprep.subr.bf16.mxu0 %v25482_v45  ;;  %31226 = vst [vmem:[#allocation141_spill] sm:$0xff] %v27591_v27  ;;  %v31229_v49 = vld [vmem:[#allocation83_spill] sm:$0xff] }
 0x523   : > { %21007 = vmatprep.mubr.msk.f32.mxu1 %vm5223_vm7, %v31223_v4  ;;  %v27580_v14 = vpop.f32.mrb[172].mxu0  ;;  %23442 = vset.pattern.permute.xlu1 %v23650_v0  ;;  %v18476_v4 = vsel %vm9438_vm11, 1.0, %v30926_v19  ;;  %v31227_v0 = vld [vmem:[#allocation126_spill] sm:$0xff]  ;;  %vm9440_vm13 = vcmp.eq.s32.totalorder %v31229_v49, %v30882_v50  ;;  %v27616_v49 = vld [vmem:[%s24916_s28 + $0x48] sm:$0xff]  ;;  %vm9452_vm11 = vcmp.eq.s32.totalorder %v27042_v58, %v30882_v50 }
 0x524   : > { %31224 = vst [vmem:[#allocation139_spill] sm:$0xff] %v27580_v14  ;;  %21455 = vmatmul.mubr.msk.f32.gmra.mrb[22].mxu0 %vm2085_vm0, %v18473_v23  ;;  %v27583_v2 = vpop.f32.mrb[173].mxu0  ;;  %12806 = vperm.xlu1 %23442, %v27110_v5   ;;  %v31228_v23 = vld [vmem:[#allocation74_spill] sm:$0xff]  ;;  %31233 = vst [vmem:[#allocation143_spill] sm:$0xff] %v27616_v49  ;;  %v18490_v58 = vsel %vm9452_vm11, 1.0, %v30926_v19 }
 0x525   : > { %21457 = vmatprep.mubr.msk.f32.mxu0 %vm2085_vm0, %v18474_v63  ;;  %v27588_v18 = vpop.permute.xlu1 %11087  ;;  %12824 = vperm.xlu0 %23441, %v27591_v27   ;;  %vm9439_vm12 = vcmp.eq.s32.totalorder %v31228_v23, %v30882_v50  ;;  %v31230_v14 = vld [vmem:[#allocation146_spill] sm:$0xff]  ;;  %v27609_v27 = vpop.permute.xlu0 %11078 }
 0x526   : > { %31225 = vst [vmem:[#allocation67_spill] sm:$0xff] %v27588_v18  ;;  %21008 = vmatmul.mubr.msk.f32.gmra.mrb[136].mxu1 %vm5223_vm7, %v31227_v0  ;;  %31231 = vst [vmem:[#allocation129_spill] sm:$0xff] %v27609_v27  ;;  %v18477_v0 = vsel %vm9439_vm12, 1.0, %v30926_v19  ;;  %v31235_v27 = vld [vmem:[#allocation91_spill] sm:$0xff]  ;;  %vm9453_vm12 = vcmp.eq.s32.totalorder %v27062_v56, %v30882_v50 }
 0x527   : > { %21010 = vmatprep.mubr.msk.f32.mxu1 %vm5223_vm7, %v31230_v14  ;;  %v27603_v63 = vpop.f32.mrb[174].mxu0  ;;  %v18478_v14 = vsel %vm9440_vm13, 1.0, %v30926_v19  ;;  %vm9442_vm15 = vcmp.eq.s32.totalorder %v31235_v27, %v30882_v50  ;;  %v31240_v27 = vld [vmem:[#allocation147_spill] sm:$0xff]  ;;  %vm9454_vm13 = vcmp.eq.s32.totalorder %v27058_v48, %v30882_v50 }
 0x528   : > { %21458 = vmatmul.mubr.msk.f32.gmra.mrb[24].mxu0 %vm2085_vm0, %v18475_v28  ;;  %v27606_v18 = vpop.f32.mrb[175].mxu0  ;;  %12809 = vperm.xlu1 %23442, %v27184_v44   ;;  %v31234_v28 = vld [vmem:[#allocation127_spill] sm:$0xff]  ;;  %v31236_v44 = vld [vmem:[#allocation148_spill] sm:$0xff]  ;;  %v18492_v56 = vsel %vm9454_vm13, 1.0, %v30926_v19 }
 0x529   : > { %21460 = vmatprep.mubr.msk.f32.mxu0 %vm2085_vm0, %v18476_v4  ;;  %v27613_v23 = vpop.permute.xlu1 %11093  ;;  %12830 = vperm.xlu0 %23441, %v27616_v49   ;;  %v18479_v49 = vsel %vm9441_vm14, 1.0, %v30926_v19  ;;  %vm9455_vm14 = vcmp.eq.s32.totalorder %v27078_v35, %v30882_v50 }
 0x52a   : > { %31232 = vst [vmem:[#allocation79_spill] sm:$0xff] %v27613_v23  ;;  %21011 = vmatmul.mubr.msk.f32.gmra.mrb[138].mxu1 %vm5223_vm7, %v31234_v28  ;;  %v27639_v28 = vld [vmem:[%s24916_s28 + $0x58] sm:$0xff]  ;;  %v18493_v35 = vsel %vm9455_vm14, 1.0, %v30926_v19 }
 0x52b   : > { %21013 = vmatprep.mubr.msk.f32.mxu1 %vm5223_vm7, %v31236_v44  ;;  %v27628_v4 = vpop.f32.mrb[176].mxu0  ;;  %31239 = vst [vmem:[#allocation144_spill] sm:$0xff] %v27639_v28  ;;  %v18480_v44 = vsel %vm9442_vm15, 1.0, %v30926_v19  ;;  %vm9456_vm15 = vcmp.eq.s32.totalorder %v27073_v1, %v30882_v50 }
 0x52c   : > { %31237 = vst [vmem:[#allocation122_spill] sm:$0xff] %v27628_v4  ;;  %21461 = vmatmul.mubr.msk.f32.gmra.mrb[26].mxu0 %vm2085_vm0, %v18477_v0  ;;  %v27631_v23 = vpop.f32.mrb[177].mxu0  ;;  %12815 = vperm.xlu1 %23442, %v27131_v21   ;;  %v31241_v0 = vld [vmem:[#allocation102_spill] sm:$0xff]  ;;  %v27647_v4 = vpop.permute.xlu0 %11084 }
 0x52d   : > { %21463 = vmatprep.mubr.msk.f32.mxu0 %vm2085_vm0, %v18478_v14  ;;  %v27636_v51 = vpop.permute.xlu1 %11099  ;;  %12836 = vperm.xlu0 %23441, %v27639_v28   ;;  %vm9443_vm1 = vcmp.eq.s32.totalorder %v31241_v0, %v30882_v50  ;;  %31242 = vst [vmem:[#allocation124_spill] sm:$0xff] %v27647_v4  ;;  %v31243_v14 = vld [vmem:[#allocation103_spill] sm:$0xff]  ;;  %v27662_v0 = vld [vmem:[%s30927_s11 + $0x20] sm:$0xff] }
 0x52e   : > { %31238 = vst [vmem:[#allocation78_spill] sm:$0xff] %v27636_v51  ;;  %21014 = vmatmul.mubr.msk.f32.gmra.mrb[140].mxu1 %vm5223_vm7, %v31240_v27  ;;  %vm9444_vm2 = vcmp.eq.s32.totalorder %v31243_v14, %v30882_v50  ;;  %v18481_v27 = vsel %vm9443_vm1, 1.0, %v30926_v19  ;;  %v27667_v14 = vld [vmem:[%s24916_s28 + $0x68] sm:$0xff]  ;;  %vm9457_vm1 = vcmp.eq.s32.totalorder %v27099_v12, %v30882_v50 }
 0x52f   : > { %21074 = vmatprep.mubr.msk.f32.mxu1 %vm5223_vm7, %v27272_v13  ;;  %v27653_v51 = vpop.f32.mrb[178].mxu0  ;;  %v18482_v13 = vsel %vm9444_vm2, 1.0, %v30926_v19  ;;  %vm9458_vm2 = vcmp.eq.s32.totalorder %v27089_v6, %v30882_v50  ;;  %v18495_v12 = vsel %vm9457_vm1, 1.0, %v30926_v19 }
 0x530   : > { %21464 = vmatmul.mubr.msk.f32.gmra.mrb[28].mxu0 %vm2085_vm0, %v18479_v49  ;;  %v27656_v28 = vpop.f32.mrb[179].mxu0  ;;  %12821 = vperm.xlu1 %23442, %v27150_v39   ;;  %v31245_v49 = vld [vmem:[#allocation115_spill] sm:$0xff] }
 0x531   : > { %21466 = vmatprep.mubr.msk.f32.mxu0 %vm2085_vm0, %v18480_v44  ;;  %v27664_v4 = vpop.permute.xlu1 %11105  ;;  %12842 = vperm.xlu0 %23441, %v27667_v14   ;;  %vm9446_vm4 = vcmp.eq.s32.totalorder %v31245_v49, %v30882_v50  ;;  %v31247_v49 = vld [vmem:[#allocation92_spill] sm:$0xff] }
 0x532   : > { %31244 = vst [vmem:[#allocation89_spill] sm:$0xff] %v27664_v4  ;;  %21075 = vmatmul.mubr.msk.f32.vlgmr.msra.gmra.mrb[110].mxu1 %vm5223_vm7, %v27266_v55  ;;  %v27686_v55 = vpop.permute.xlu0 %11090  ;;  %vm9448_vm6 = vcmp.eq.s32.totalorder %v31247_v49, %v30882_v50 }
 0x533   : > { %21179 = vmatpush3.msra.mxu1 %v27283_v30  ;;  %21077 = vmatprep.mubr.msk.f32.mxu1 %vm5223_vm7, %v27300_v36  ;;  %v27680_v44 = vpop.f32.mrb[180].mxu0  ;;  %v18484_v36 = vsel %vm9446_vm4, 1.0, %v30926_v19  ;;  %v18486_v34 = vsel %vm9448_vm6, 1.0, %v30926_v19 }
 0x534   : > { %21467 = vmatmul.mubr.msk.f32.gmra.mrb[30].mxu0 %vm2085_vm0, %v18481_v27  ;;  %v27683_v4 = vpop.f32.mrb[181].mxu0  ;;  %21284 = vmatprep.subr.mxu1 %v27662_v0  ;;  %v27699_v27 = vld [vmem:[%s24916_s28 + $0x78] sm:$0xff] }
 0x535   : > { %21469 = vmatprep.mubr.msk.f32.mxu0 %vm2085_vm0, %v18482_v13  ;;  %12827 = vperm.xlu1 %23442, %v27169_v15   ;;  %v27691_v30 = vpop.permute.xlu1 %11111 }
 0x536   : > { %31246 = vst [vmem:[#allocation145_spill] sm:$0xff] %v27691_v30  ;;  %21078 = vmatmul.mubr.msk.f32.gmra.mrb[112].mxu1 %vm5223_vm7, %v27295_v7  ;;  %12848 = vperm.xlu0 %23441, %v27699_v27   ;;  %v18485_v7 = vsel %vm9447_vm5, 1.0, %v30926_v19 }
 0x537   : > { %21080 = vmatprep.mubr.msk.f32.mxu1 %vm5223_vm7, %v27326_v42  ;;  %v27706_v13 = vpop.f32.mrb[182].mxu0  ;;  %v27719_v42 = vpop.permute.xlu0 %11096 }
 0x538   : > { %21470 = vmatmul.mubr.msk.f32.gmra.mrb[32].mxu0 %vm2085_vm0, %v18483_v10  ;;  %v27709_v30 = vpop.f32.mrb[183].mxu0  ;;  %31248 = vst [vmem:[#allocation126_spill] sm:$0xff] %v27719_v42  ;;  %v27722_v10 = vld [vmem:[%s24916_s28 + $0x88] sm:$0xff]  ;;  %v18488_v42 = vsel %vm9450_vm9, 1.0, %v30926_v19 }
 0x539   : > { %21472 = vmatprep.mubr.msk.f32.mxu0 %vm2085_vm0, %v18484_v36  ;;  %12833 = vperm.xlu1 %23442, %v27193_v32   ;;  %v27731_v49 = vpop.permute.xlu1 %11117 }
 0x53a   : > { %21081 = vmatmul.mubr.msk.f32.gmra.mrb[114].mxu1 %vm5223_vm7, %v27321_v38  ;;  %12854 = vperm.xlu0 %23441, %v27722_v10   ;;  %31249 = vst [vmem:[#allocation74_spill] sm:$0xff] %v27731_v49  ;;  %v18487_v38 = vsel %vm9449_vm8, 1.0, %v30926_v19 }
 0x53b   : > { %21083 = vmatprep.mubr.msk.f32.mxu1 %vm5223_vm7, %v27351_v24  ;;  %v27729_v36 = vpop.f32.mrb[184].mxu0 }
 0x53c   : > { %21473 = vmatmul.mubr.msk.f32.gmra.mrb[34].mxu0 %vm2085_vm0, %v18485_v7  ;;  %v27734_v53 = vpop.f32.mrb[185].mxu0 }
 0x53d   : > { %21475 = vmatprep.mubr.msk.f32.mxu0 %vm2085_vm0, %v18486_v34  ;;  %12839 = vperm.xlu1 %23442, %v27214_v3   ;;  %v27762_v34 = vpop.permute.xlu1 %11123 }
 0x53e   : > { %21084 = vmatmul.mubr.msk.f32.gmra.mrb[116].mxu1 %vm5223_vm7, %v27346_v62  ;;  %12860 = vperm.xlu0 %23441, %v27745_v11   ;;  %v27757_v62 = vpop.permute.xlu0 %11102  ;;  %31251 = vst [vmem:[#allocation146_spill] sm:$0xff] %v27762_v34 }
 0x53f   : > { %21086 = vmatprep.mubr.msk.f32.mxu1 %vm5223_vm7, %v27373_v54  ;;  %v27752_v24 = vpop.f32.mrb[186].mxu0  ;;  %31250 = vst [vmem:[#allocation83_spill] sm:$0xff] %v27757_v62  ;;  %v27770_v54 = vld [vmem:[%s24916_s28 + $0xa8] sm:$0xff]  ;;  %v31273_v62 = vld [vmem:[#allocation136_spill] sm:$0xff] }
 0x540   : > { %21476 = vmatmul.mubr.msk.f32.gmra.mrb[36].mxu0 %vm2085_vm0, %v18487_v38  ;;  %v27755_v7 = vpop.f32.mrb[187].mxu0 }
 0x541   : > { %21478 = vmatprep.mubr.msk.f32.mxu0 %vm2085_vm0, %v18488_v42  ;;  %12845 = vperm.xlu1 %23442, %v27233_v29  }
 0x542   : > { %21087 = vmatmul.mubr.msk.f32.gmra.mrb[118].mxu1 %vm5223_vm7, %v27368_v37  ;;  %12866 = vperm.xlu0 %23441, %v27770_v54   ;;  %v18491_v37 = vsel %vm9453_vm12, 1.0, %v30926_v19  ;;  %v27790_v48 = vpop.permute.xlu0 %11108 }
 0x543   : > { %21089 = vmatprep.mubr.msk.f32.mxu1 %vm5223_vm7, %v27395_v26  ;;  %v27777_v42 = vpop.f32.mrb[188].mxu0  ;;  %31252 = vst [vmem:[#allocation127_spill] sm:$0xff] %v27790_v48  ;;  %v27793_v26 = vld [vmem:[%s24916_s28 + $0xb8] sm:$0xff]  ;;  %v27900_v48 = vld [vmem:[%s24916_s28 + $0xd0] sm:$0xff] }
 0x544   : > { %21479 = vmatmul.mubr.msk.f32.gmra.mrb[38].mxu0 %vm2085_vm0, %v18489_v41  ;;  %v27780_v38 = vpop.f32.mrb[189].mxu0 }
 0x545   : > { %21481 = vmatprep.mubr.msk.f32.mxu0 %vm2085_vm0, %v18490_v58  ;;  %12851 = vperm.xlu1 %23442, %v27252_v57   ;;  %v27800_v58 = vpop.permute.xlu1 %11129 }
 0x546   : > { %21090 = vmatmul.mubr.msk.f32.gmra.mrb[120].mxu1 %vm5223_vm7, %v27388_v59  ;;  %12872 = vperm.xlu0 %23441, %v27793_v26   ;;  %31253 = vst [vmem:[#allocation91_spill] sm:$0xff] %v27800_v58  ;;  %v27826_v58 = vpop.permute.xlu0 %11114 }
 0x547   : > { %21092 = vmatprep.mubr.msk.f32.mxu1 %vm5223_vm7, %v27417_v17  ;;  %v27798_v41 = vpop.f32.mrb[190].mxu0  ;;  %v27815_v17 = vld [vmem:[%s24916_s28 + $0xc8] sm:$0xff]  ;;  %31254 = vst [vmem:[#allocation148_spill] sm:$0xff] %v27826_v58 }
 0x548   : > { %21482 = vmatmul.mubr.msk.f32.gmra.mrb[40].mxu0 %vm2085_vm0, %v18491_v37  ;;  %v27803_v59 = vpop.f32.mrb[191].mxu0  ;;  %v18494_v37 = vsel %vm9456_vm15, 1.0, %v30926_v19 }
 0x549   : > { %21484 = vmatprep.mubr.msk.f32.mxu0 %vm2085_vm0, %v18492_v56  ;;  %12857 = vperm.xlu1 %23442, %v27277_v61  }
 0x54a   : > { %21093 = vmatmul.mubr.msk.f32.gmra.mrb[122].mxu1 %vm5223_vm7, %v27410_v52  ;;  %12878 = vperm.xlu0 %23441, %v27815_v17   ;;  %v27832_v52 = vpop.permute.xlu1 %11135 }
 0x54b   : > { %21095 = vmatprep.mubr.msk.f32.mxu1 %vm5223_vm7, %v27439_v20  ;;  %v27820_v1 = vpop.f32.mrb[192].mxu0  ;;  %31255 = vst [vmem:[#allocation147_spill] sm:$0xff] %v27832_v52  ;;  %v18496_v20 = vsel %vm9458_vm2, 1.0, %v30926_v19 }
 0x54c   : > { %21485 = vmatmul.mubr.msk.f32.gmra.mrb[42].mxu0 %vm2085_vm0, %v18493_v35  ;;  %v27824_v56 = vpop.f32.mrb[193].mxu0 }
 0x54d   : > { %21487 = vmatprep.mubr.msk.f32.mxu0 %vm2085_vm0, %v18494_v37  ;;  %12863 = vperm.xlu1 %23442, %v27314_v40   ;;  %v31256_v37 = vld [vmem:[#allocation112_spill] sm:$0xff] }
 0x54e   : > { %21096 = vmatmul.mubr.msk.f32.gmra.mrb[124].mxu1 %vm5223_vm7, %v27432_v60  ;;  %12884 = vperm.xlu0 %23441, %v27483_v16   ;;  %vm9460_vm4 = vcmp.eq.s32.totalorder %v31256_v37, %v30882_v50  ;;  %v31257_v60 = vld [vmem:[#allocation113_spill] sm:$0xff]  ;;  %v31260_v37 = vld [vmem:[#allocation123_spill] sm:$0xff]  ;;  %v27866_v52 = vpop.permute.xlu1 %11141 }
 0x54f   : > { %21098 = vmatprep.mubr.msk.f32.mxu1 %vm5223_vm7, %v27458_v33  ;;  %v27842_v6 = vpop.f32.mrb[194].mxu0  ;;  %vm9461_vm5 = vcmp.eq.s32.totalorder %v31257_v60, %v30882_v50  ;;  %v27857_v33 = vpop.permute.xlu0 %11120  ;;  %31261 = vst [vmem:[#allocation103_spill] sm:$0xff] %v27866_v52  ;;  %v18498_v34 = vsel %vm9460_vm4, 1.0, %v30926_v19  ;;  %v31263_v52 = vld [vmem:[#allocation128_spill] sm:$0xff] }
 0x550   : > { %21488 = vmatmul.mubr.msk.f32.gmra.mrb[44].mxu0 %vm2085_vm0, %v18495_v12  ;;  %v27846_v35 = vpop.f32.mrb[195].mxu0  ;;  %31258 = vst [vmem:[#allocation102_spill] sm:$0xff] %v27857_v33  ;;  %v31259_v12 = vld [vmem:[#allocation81_spill] sm:$0xff]  ;;  %v18499_v60 = vsel %vm9461_vm5, 1.0, %v30926_v19  ;;  %v27875_v33 = vld [vmem:[%s24916_s28 + $0xc0] sm:$0xff]  ;;  %vm10298_vm8 = vcmp.eq.s32.totalorder %v31263_v52, %v30882_v50 }
 0x551   : > { %21490 = vmatprep.mubr.msk.f32.mxu0 %vm2085_vm0, %v18496_v20  ;;  %12869 = vperm.xlu1 %23442, %v27339_v43   ;;  %vm10297_vm6 = vcmp.eq.s32.totalorder %v31259_v12, %v30882_v50 }
 0x552   : > { %21099 = vmatmul.mubr.msk.f32.gmra.mrb[126].mxu1 %vm5223_vm7, %v27451_v9  ;;  %12890 = vperm.xlu0 %23441, %v27512_v25   ;;  %v18564_v12 = vsel %vm10297_vm6, 1.0, %v30926_v19  ;;  %v27897_v52 = vpop.permute.xlu1 %11147 }
 0x553   : > { %21101 = vmatprep.mubr.msk.f32.mxu1 %vm5223_vm7, %v31260_v37  ;;  %v27864_v20 = vpop.f32.mrb[196].mxu0  ;;  %v31262_v37 = vld [vmem:[#allocation110_spill] sm:$0xff]  ;;  %v27893_v58 = vpop.permute.xlu0 %11126  ;;  %31266 = vst [vmem:[#allocation92_spill] sm:$0xff] %v27897_v52  ;;  %v31269_v52 = vld [vmem:[#allocation133_spill] sm:$0xff] }
 0x554   : > { %v27869_v9 = vpop.f32.mrb[197].mxu0  ;;  %21491 = vmatmul.mubr.msk.f32.gmra.mrb[46].mxu0 %vm2085_vm0, %v18497_v47  ;;  %v31264_v47 = vld [vmem:[#allocation125_spill] sm:$0xff]  ;;  %31265 = vst [vmem:[#allocation115_spill] sm:$0xff] %v27893_v58  ;;  %vm10301_vm11 = vcmp.eq.s32.totalorder %v31269_v52, %v30882_v50 }
 0x555   : > { %21493 = vmatprep.mubr.msk.f32.mxu0 %vm2085_vm0, %v18498_v34  ;;  %12875 = vperm.xlu1 %23442, %v27875_v33   ;;  %vm10299_vm9 = vcmp.eq.s32.totalorder %v31264_v47, %v30882_v50  ;;  %v31267_v47 = vld [vmem:[#allocation104_spill] sm:$0xff]  ;;  %v18568_v52 = vsel %vm10301_vm11, 1.0, %v30926_v19 }
 0x556   : > { %21102 = vmatmul.mubr.msk.f32.gmra.mrb[128].mxu1 %vm5223_vm7, %v31262_v37  ;;  %12896 = vperm.xlu0 %23441, %v27553_v8   ;;  %v18565_v37 = vsel %vm10298_vm8, 1.0, %v30926_v19  ;;  %vm10300_vm10 = vcmp.eq.s32.totalorder %v31267_v47, %v30882_v50  ;;  %v31268_v8 = vld [vmem:[#allocation134_spill] sm:$0xff]  ;;  %v27935_v25 = vpop.permute.xlu1 %11153 }
 0x557   : > { %21104 = vmatprep.mubr.msk.f32.mxu1 %vm5223_vm7, %v27505_v31  ;;  %v27888_v34 = vpop.f32.mrb[198].mxu0  ;;  %v18566_v31 = vsel %vm10299_vm9, 1.0, %v30926_v19  ;;  %v18567_v47 = vsel %vm10300_vm10, 1.0, %v30926_v19  ;;  %31275 = vst [vmem:[#allocation113_spill] sm:$0xff] %v27935_v25  ;;  %v31277_v25 = vld [vmem:[#allocation70_spill] sm:$0xff] }
 0x558   : > { %v27890_v49 = vpop.f32.mrb[199].mxu0  ;;  %21494 = vmatmul.mubr.msk.f32.gmra.mrb[48].mxu0 %vm2085_vm0, %v18499_v60  ;;  %v23651_v60 = vmov 11  }
 0x559   : > { %21554 = vmatprep.mubr.msk.f32.mxu0 %vm2085_vm0, %v18564_v12  ;;  %12881 = vperm.xlu1 %23442, %v27900_v48  }
 0x55a   : > { %21105 = vmatmul.mubr.msk.f32.gmra.mrb[130].mxu1 %vm5223_vm7, %v31268_v8  ;;  %23444 = vset.pattern.permute.xlu0 %v23651_v60  ;;  %v31270_v8 = vld [vmem:[#allocation114_spill] sm:$0xff] }
 0x55b   : > { %21107 = vmatprep.mubr.msk.f32.mxu1 %vm5223_vm7, %v27531_v46  ;;  %v27910_v12 = vpop.f32.mrb[200].mxu0  ;;  %13673 = vperm.xlu0 %23444, %v27110_v5   ;;  %vm10302_vm12 = vcmp.eq.s32.totalorder %v31270_v8, %v30882_v50  ;;  %v31271_v46 = vld [vmem:[#allocation184_spill] sm:$0xff]  ;;  %v27927_v5 = vpop.permute.xlu0 %11132 }
 0x55c   : > { %v27915_v58 = vpop.f32.mrb[201].mxu0  ;;  %21555 = vmatmul.mubr.msk.f32.vlgmr.msra.gmra.mrb[50].mxu0 %vm2085_vm0, %v18565_v37  ;;  %31272 = vst [vmem:[#allocation112_spill] sm:$0xff] %v27927_v5  ;;  %v27938_v8 = vld [vmem:[%s24916_s28 + $0xe0] sm:$0xff] }
 0x55d   : > { %21557 = vmatprep.mubr.msk.f32.mxu0 %vm2085_vm0, %v18566_v31  ;;  %22687 = vmatpush3.bf16.msra.mxu0 %v25482_v45  ;;  %v31274_v31 = vld [vmem:[#allocation140_spill] sm:$0xff] }
 0x55e   : > { %21108 = vmatmul.mubr.msk.f32.gmra.mrb[132].mxu1 %vm5223_vm7, %v31271_v46  ;;  %22689 = vmatprep.subr.bf16.mxu0 %v25540_v22  ;;  %vm10303_vm13 = vcmp.eq.s32.totalorder %v31274_v31, %v30882_v50  ;;  %v31276_v31 = vld [vmem:[#allocation137_spill] sm:$0xff] }
 0x55f   : > { %21110 = vmatprep.mubr.msk.f32.mxu1 %vm5223_vm7, %v31273_v62  ;;  %v27931_v37 = vpop.f32.mrb[202].mxu0  ;;  %12887 = vperm.xlu1 %23442, %v27938_v8   ;;  %v18569_v62 = vsel %vm10302_vm12, 1.0, %v30926_v19  ;;  %vm10304_vm14 = vcmp.eq.s32.totalorder %v31276_v31, %v30882_v50  ;;  %v18570_v5 = vsel %vm10303_vm13, 1.0, %v30926_v19 }
 0x560   : > { %v27941_v46 = vpop.f32.mrb[203].mxu0  ;;  %21558 = vmatmul.mubr.msk.f32.gmra.mrb[52].mxu0 %vm2085_vm0, %v18567_v47  ;;  %13682 = vperm.xlu0 %23444, %v27131_v21   ;;  %v31279_v47 = vld [vmem:[#allocation149_spill] sm:$0xff]  ;;  %v18571_v16 = vsel %vm10304_vm14, 1.0, %v30926_v19 }
 0x561   : > { %21560 = vmatprep.mubr.msk.f32.mxu0 %vm2085_vm0, %v18568_v52  ;;  %22691 = vmatpush3.bf16.msra.mxu0 %v25540_v22  ;;  %vm10305_vm15 = vcmp.eq.s32.totalorder %v31279_v47, %v30882_v50  ;;  %v27961_v52 = vld [vmem:[%s24916_s28 + $0xf0] sm:$0xff]  ;;  %s31377_s28 = sld [smem:[#allocation20_spill]] }
 0x562   : > { %21111 = vmatmul.mubr.msk.f32.gmra.mrb[134].mxu1 %vm5223_vm7, %v31277_v25  ;;  %22693 = vmatprep.subr.bf16.mxu0 %v25482_v45  ;;  %v27967_v25 = vpop.permute.xlu0 %11138  ;;  %v31282_v47 = vld [vmem:[#allocation142_spill] sm:$0xff] }
 0x563   : > { %21113 = vmatprep.mubr.msk.f32.mxu1 %vm5223_vm7, %v27583_v2  ;;  %v27956_v21 = vpop.f32.mrb[204].mxu0  ;;  %12893 = vperm.xlu1 %23442, %v27961_v52   ;;  %v27972_v2 = vpop.permute.xlu1 %11159  ;;  %vm10306_vm1 = vcmp.eq.s32.totalorder %v31282_v47, %v30882_v50 }
 0x564   : > { %31278 = vst [vmem:[#allocation81_spill] sm:$0xff] %v27956_v21  ;;  %v27964_v31 = vpop.f32.mrb[205].mxu0  ;;  %21561 = vmatmul.mubr.msk.f32.gmra.mrb[54].mxu0 %vm2085_vm0, %v18569_v62  ;;  %13688 = vperm.xlu0 %23444, %v27150_v39   ;;  %31281 = vst [vmem:[#allocation110_spill] sm:$0xff] %v27972_v2  ;;  %v31283_v21 = vld [vmem:[#allocation139_spill] sm:$0xff]  ;;  %v31285_v2 = vld [vmem:[#allocation116_spill] sm:$0xff]  ;;  %v18573_v47 = vsel %vm10306_vm1, 1.0, %v30926_v19 }
 0x565   : > { %31280 = vst [vmem:[#allocation123_spill] sm:$0xff] %v27964_v31  ;;  %21563 = vmatprep.mubr.msk.f32.mxu0 %vm2085_vm0, %v18570_v5  ;;  %v18572_v31 = vsel %vm10305_vm15, 1.0, %v30926_v19  ;;  %v31284_v39 = vld [vmem:[#allocation155_spill] sm:$0xff] }
 0x566   : > { %21114 = vmatmul.mubr.msk.f32.gmra.mrb[136].mxu1 %vm5223_vm7, %v31283_v21  ;;  %vm10307_vm2 = vcmp.eq.s32.totalorder %v31284_v39, %v30882_v50  ;;  %v27997_v21 = vpop.permute.xlu0 %11144  ;;  %v31289_v39 = vld [vmem:[#allocation108_spill] sm:$0xff] }
 0x567   : > { %21116 = vmatprep.mubr.msk.f32.mxu1 %vm5223_vm7, %v27606_v18  ;;  %v27981_v62 = vpop.f32.mrb[206].mxu0  ;;  %23443 = vset.pattern.permute.xlu1 %v23651_v60  ;;  %v31286_v18 = vld [vmem:[#allocation152_spill] sm:$0xff]  ;;  %v18574_v60 = vsel %vm10307_vm2, 1.0, %v30926_v19 }
 0x568   : > { %v27985_v5 = vpop.f32.mrb[207].mxu0  ;;  %21564 = vmatmul.mubr.msk.f32.gmra.mrb[56].mxu0 %vm2085_vm0, %v18571_v16  ;;  %13670 = vperm.xlu1 %23443, %v31285_v2   ;;  %vm10308_vm3 = vcmp.eq.s32.totalorder %v31286_v18, %v30882_v50  ;;  %v31287_v2 = vld [vmem:[#allocation158_spill] sm:$0xff] }
 0x569   : > { %21566 = vmatprep.mubr.msk.f32.mxu0 %vm2085_vm0, %v18572_v31  ;;  %13694 = vperm.xlu0 %23444, %v27169_v15   ;;  %vm10309_vm4 = vcmp.eq.s32.totalorder %v31287_v2, %v30882_v50  ;;  %v28005_v31 = vpop.permute.xlu1 %11936  ;;  %v31291_v18 = vld [vmem:[#allocation122_spill] sm:$0xff] }
 0x56a   : > { %21117 = vmatmul.mubr.msk.f32.gmra.mrb[138].mxu1 %vm5223_vm7, %v27603_v63  ;;  %31288 = vst [vmem:[#allocation128_spill] sm:$0xff] %v28005_v31  ;;  %v18575_v63 = vsel %vm10308_vm3, 1.0, %v30926_v19  ;;  %v18576_v2 = vsel %vm10309_vm4, 1.0, %v30926_v19  ;;  %v28034_v31 = vld [vmem:[%s30927_s11 + $0x28] sm:$0xff] }
 0x56b   : > { %21119 = vmatprep.mubr.msk.f32.mxu1 %vm5223_vm7, %v27631_v23  ;;  %v28001_v16 = vpop.f32.mrb[208].mxu0  ;;  %v31290_v23 = vld [vmem:[#allocation163_spill] sm:$0xff] }
 0x56c   : > { %v28007_v15 = vpop.f32.mrb[209].mxu0  ;;  %21567 = vmatmul.mubr.msk.f32.gmra.mrb[58].mxu0 %vm2085_vm0, %v18573_v47  ;;  %13676 = vperm.xlu1 %23443, %v31289_v39   ;;  %vm10310_vm5 = vcmp.eq.s32.totalorder %v31290_v23, %v30882_v50  ;;  %v31292_v47 = vld [vmem:[#allocation167_spill] sm:$0xff]  ;;  %v31293_v23 = vld [vmem:[#allocation118_spill] sm:$0xff] }
 0x56d   : > { %21569 = vmatprep.mubr.msk.f32.mxu0 %vm2085_vm0, %v18574_v60  ;;  %13700 = vperm.xlu0 %23444, %v27193_v32   ;;  %vm10311_vm6 = vcmp.eq.s32.totalorder %v31292_v47, %v30882_v50  ;;  %v28028_v32 = vpop.permute.xlu0 %11150  ;;  %v31295_v47 = vld [vmem:[#allocation109_spill] sm:$0xff] }
 0x56e   : > { %21120 = vmatmul.mubr.msk.f32.gmra.mrb[140].mxu1 %vm5223_vm7, %v31291_v18  ;;  %v18577_v18 = vsel %vm10310_vm5, 1.0, %v30926_v19  ;;  %vm10312_vm8 = vcmp.eq.s32.totalorder %v31295_v47, %v30882_v50  ;;  %v31297_v47 = vld [vmem:[#allocation120_spill] sm:$0xff] }
 0x56f   : > { %21180 = vmatprep.mubr.msk.f32.mxu1 %vm5223_vm7, %v27656_v28  ;;  %v28023_v39 = vpop.f32.mrb[210].mxu0  ;;  %v28036_v28 = vpop.permute.xlu1 %11942 }
 0x570   : > { %21570 = vmatmul.mubr.msk.f32.gmra.mrb[60].mxu0 %vm2085_vm0, %v18575_v63  ;;  %v28026_v60 = vpop.f32.mrb[211].mxu0  ;;  %13679 = vperm.xlu1 %23443, %v31293_v23   ;;  %31294 = vst [vmem:[#allocation125_spill] sm:$0xff] %v28036_v28  ;;  %v18578_v63 = vsel %vm10311_vm6, 1.0, %v30926_v19  ;;  %v31300_v28 = vld [vmem:[#allocation141_spill] sm:$0xff] }
 0x571   : > { %21572 = vmatprep.mubr.msk.f32.mxu0 %vm2085_vm0, %v18576_v2  ;;  %13706 = vperm.xlu0 %23444, %v27214_v3   ;;  %v31296_v2 = vld [vmem:[#allocation101_spill] sm:$0xff] }
 0x572   : > { %21181 = vmatmul.mubr.msk.f32.vlgmr.msra.gmra.mrb[110].mxu1 %vm5223_vm7, %v27653_v51  ;;  %vm10313_vm9 = vcmp.eq.s32.totalorder %v31296_v2, %v30882_v50  ;;  %v18579_v51 = vsel %vm10312_vm8, 1.0, %v30926_v19  ;;  %v28063_v2 = vpop.permute.xlu0 %11156 }
 0x573   : > { %21285 = vmatpush3.msra.mxu1 %v27662_v0  ;;  %21183 = vmatprep.mubr.msk.f32.mxu1 %vm5223_vm7, %v27683_v4  ;;  %v28049_v23 = vpop.f32.mrb[212].mxu0  ;;  %v31298_v0 = vld [vmem:[#allocation161_spill] sm:$0xff]  ;;  %v18580_v4 = vsel %vm10313_vm9, 1.0, %v30926_v19 }
 0x574   : > { %21573 = vmatmul.mubr.msk.f32.gmra.mrb[62].mxu0 %vm2085_vm0, %v18577_v18  ;;  %v28052_v3 = vpop.f32.mrb[213].mxu0  ;;  %21390 = vmatprep.subr.mxu1 %v28034_v31  ;;  %vm10314_vm10 = vcmp.eq.s32.totalorder %v31298_v0, %v30882_v50  ;;  %v31299_v18 = vld [vmem:[#allocation171_spill] sm:$0xff] }
 0x575   : > { %21575 = vmatprep.mubr.msk.f32.mxu0 %vm2085_vm0, %v18578_v63  ;;  %13685 = vperm.xlu1 %23443, %v31297_v47   ;;  %vm10315_vm11 = vcmp.eq.s32.totalorder %v31299_v18, %v30882_v50  ;;  %v28072_v47 = vpop.permute.xlu1 %11945 }
 0x576   : > { %21184 = vmatmul.mubr.msk.f32.gmra.mrb[112].mxu1 %vm5223_vm7, %v27680_v44  ;;  %13712 = vperm.xlu0 %23444, %v27233_v29   ;;  %v18581_v44 = vsel %vm10314_vm10, 1.0, %v30926_v19  ;;  %v31301_v29 = vld [vmem:[#allocation105_spill] sm:$0xff] }
 0x577   : > { %21186 = vmatprep.mubr.msk.f32.mxu1 %vm5223_vm7, %v27709_v30  ;;  %v28070_v63 = vpop.f32.mrb[214].mxu0  ;;  %vm10316_vm12 = vcmp.eq.s32.totalorder %v31301_v29, %v30882_v50  ;;  %v18582_v30 = vsel %vm10315_vm11, 1.0, %v30926_v19 }
 0x578   : > { %21576 = vmatmul.mubr.msk.f32.gmra.mrb[64].mxu0 %vm2085_vm0, %v18579_v51  ;;  %v28075_v0 = vpop.f32.mrb[215].mxu0  ;;  %v31302_v51 = vld [vmem:[#allocation111_spill] sm:$0xff] }
 0x579   : > { %21578 = vmatprep.mubr.msk.f32.mxu0 %vm2085_vm0, %v18580_v4  ;;  %13691 = vperm.xlu1 %23443, %v31300_v28   ;;  %vm10317_vm13 = vcmp.eq.s32.totalorder %v31302_v51, %v30882_v50  ;;  %v28095_v4 = vpop.permute.xlu0 %11162  ;;  %v28099_v29 = vpop.permute.xlu1 %11951  ;;  %v31305_v51 = vld [vmem:[#allocation175_spill] sm:$0xff] }
 0x57a   : > { %21187 = vmatmul.mubr.msk.f32.gmra.mrb[114].mxu1 %vm5223_vm7, %v27706_v13  ;;  %13718 = vperm.xlu0 %23444, %v27252_v57   ;;  %v18583_v13 = vsel %vm10316_vm12, 1.0, %v30926_v19  ;;  %v31303_v57 = vld [vmem:[#allocation143_spill] sm:$0xff]  ;;  %vm10319_vm15 = vcmp.eq.s32.totalorder %v31305_v51, %v30882_v50 }
 0x57b   : > { %21189 = vmatprep.mubr.msk.f32.mxu1 %vm5223_vm7, %v27734_v53  ;;  %v28090_v18 = vpop.f32.mrb[216].mxu0  ;;  %v31304_v53 = vld [vmem:[#allocation165_spill] sm:$0xff] }
 0x57c   : > { %21579 = vmatmul.mubr.msk.f32.gmra.mrb[66].mxu0 %vm2085_vm0, %v18581_v44  ;;  %v28093_v28 = vpop.f32.mrb[217].mxu0  ;;  %vm10318_vm14 = vcmp.eq.s32.totalorder %v31304_v53, %v30882_v50  ;;  %v18584_v44 = vsel %vm10317_vm13, 1.0, %v30926_v19 }
 0x57d   : > { %21581 = vmatprep.mubr.msk.f32.mxu0 %vm2085_vm0, %v18582_v30  ;;  %13697 = vperm.xlu1 %23443, %v31303_v57   ;;  %v18585_v53 = vsel %vm10318_vm14, 1.0, %v30926_v19  ;;  %v28125_v51 = vpop.permute.xlu0 %11939 }
 0x57e   : > { %21190 = vmatmul.mubr.msk.f32.gmra.mrb[116].mxu1 %vm5223_vm7, %v27729_v36  ;;  %13724 = vperm.xlu0 %23444, %v27277_v61   ;;  %v31306_v36 = vld [vmem:[#allocation144_spill] sm:$0xff]  ;;  %v31307_v61 = vld [vmem:[#allocation117_spill] sm:$0xff] }
 0x57f   : > { %21192 = vmatprep.mubr.msk.f32.mxu1 %vm5223_vm7, %v27755_v7  ;;  %v28112_v30 = vpop.f32.mrb[218].mxu0  ;;  %vm10320_vm1 = vcmp.eq.s32.totalorder %v31307_v61, %v30882_v50  ;;  %v18586_v7 = vsel %vm10319_vm15, 1.0, %v30926_v19 }
 0x580   : > { %21582 = vmatmul.mubr.msk.f32.gmra.mrb[68].mxu0 %vm2085_vm0, %v18583_v13  ;;  %v28115_v57 = vpop.f32.mrb[219].mxu0  ;;  %v31308_v13 = vld [vmem:[#allocation106_spill] sm:$0xff] }
 0x581   : > { %21584 = vmatprep.mubr.msk.f32.mxu0 %vm2085_vm0, %v18584_v44  ;;  %13703 = vperm.xlu1 %23443, %v31306_v36   ;;  %vm10321_vm2 = vcmp.eq.s32.totalorder %v31308_v13, %v30882_v50  ;;  %v28134_v36 = vpop.permute.xlu1 %11957  ;;  %v28147_v13 = vpop.permute.xlu0 %11948 }
 0x582   : > { %21193 = vmatmul.mubr.msk.f32.gmra.mrb[118].mxu1 %vm5223_vm7, %v27752_v24  ;;  %13730 = vperm.xlu0 %23444, %v27314_v40   ;;  %v18587_v24 = vsel %vm10320_vm1, 1.0, %v30926_v19  ;;  %v31309_v40 = vld [vmem:[#allocation169_spill] sm:$0xff] }
 0x583   : > { %21195 = vmatprep.mubr.msk.f32.mxu1 %vm5223_vm7, %v27780_v38  ;;  %v28132_v44 = vpop.f32.mrb[220].mxu0  ;;  %vm10322_vm3 = vcmp.eq.s32.totalorder %v31309_v40, %v30882_v50  ;;  %v18588_v38 = vsel %vm10321_vm2, 1.0, %v30926_v19 }
 0x584   : > { %21585 = vmatmul.mubr.msk.f32.gmra.mrb[70].mxu0 %vm2085_vm0, %v18585_v53  ;;  %v28137_v61 = vpop.f32.mrb[221].mxu0  ;;  %v31310_v53 = vld [vmem:[#allocation173_spill] sm:$0xff] }
 0x585   : > { %21587 = vmatprep.mubr.msk.f32.mxu0 %vm2085_vm0, %v18586_v7  ;;  %13709 = vperm.xlu1 %23443, %v27667_v14   ;;  %vm10323_vm4 = vcmp.eq.s32.totalorder %v31310_v53, %v30882_v50  ;;  %v28161_v40 = vpop.permute.xlu1 %11963  ;;  %v31313_v53 = vld [vmem:[#allocation135_spill] sm:$0xff] }
 0x586   : > { %21196 = vmatmul.mubr.msk.f32.gmra.mrb[120].mxu1 %vm5223_vm7, %v27777_v42  ;;  %13736 = vperm.xlu0 %23444, %v27339_v43   ;;  %v18589_v42 = vsel %vm10322_vm3, 1.0, %v30926_v19  ;;  %v18590_v43 = vsel %vm10323_vm4, 1.0, %v30926_v19  ;;  %vm10327_vm8 = vcmp.eq.s32.totalorder %v31313_v53, %v30882_v50  ;;  %vm11171_vm3 = vcmp.eq.s32.totalorder %v27686_v55, %v30882_v50 }
 0x587   : > { %21198 = vmatprep.mubr.msk.f32.mxu1 %vm5223_vm7, %v27803_v59  ;;  %v28154_v7 = vpop.f32.mrb[222].mxu0  ;;  %v31311_v59 = vld [vmem:[#allocation177_spill] sm:$0xff]  ;;  %v18667_v55 = vsel %vm11171_vm3, 1.0, %v30926_v19 }
 0x588   : > { %21588 = vmatmul.mubr.msk.f32.gmra.mrb[72].mxu0 %vm2085_vm0, %v18587_v24  ;;  %v28157_v14 = vpop.f32.mrb[223].mxu0  ;;  %vm10325_vm5 = vcmp.eq.s32.totalorder %v31311_v59, %v30882_v50 }
 0x589   : > { %21590 = vmatprep.mubr.msk.f32.mxu0 %vm2085_vm0, %v18588_v38  ;;  %13715 = vperm.xlu1 %23443, %v27699_v27   ;;  %v31312_v38 = vld [vmem:[#allocation119_spill] sm:$0xff] }
 0x58a   : > { %21199 = vmatmul.mubr.msk.f32.gmra.mrb[122].mxu1 %vm5223_vm7, %v27798_v41  ;;  %13742 = vperm.xlu0 %23444, %v27875_v33   ;;  %vm10324_vm6 = vcmp.eq.s32.totalorder %v31312_v38, %v30882_v50  ;;  %v28179_v41 = vpop.permute.xlu0 %11954  ;;  %v31315_v38 = vld [vmem:[#allocation194_spill] sm:$0xff] }
 0x58b   : > { %21201 = vmatprep.mubr.msk.f32.mxu1 %vm5223_vm7, %v27824_v56  ;;  %v28172_v24 = vpop.f32.mrb[224].mxu0  ;;  %v18592_v56 = vsel %vm10325_vm5, 1.0, %v30926_v19  ;;  %v18591_v33 = vsel %vm10324_vm6, 1.0, %v30926_v19  ;;  %vm11164_vm10 = vcmp.eq.s32.totalorder %v31315_v38, %v30882_v50  ;;  %v31320_v38 = vld [vmem:[#allocation191_spill] sm:$0xff] }
 0x58c   : > { %21591 = vmatmul.mubr.msk.f32.gmra.mrb[74].mxu0 %vm2085_vm0, %v18589_v42  ;;  %v28177_v27 = vpop.f32.mrb[225].mxu0  ;;  %vm11168_vm15 = vcmp.eq.s32.totalorder %v31320_v38, %v30882_v50 }
 0x58d   : > { %21593 = vmatprep.mubr.msk.f32.mxu0 %vm2085_vm0, %v18590_v43  ;;  %13721 = vperm.xlu1 %23443, %v27722_v10   ;;  %v28194_v43 = vpop.permute.xlu1 %11969  ;;  %v31314_v10 = vld [vmem:[#allocation179_spill] sm:$0xff] }
 0x58e   : > { %21202 = vmatmul.mubr.msk.f32.gmra.mrb[124].mxu1 %vm5223_vm7, %v27820_v1  ;;  %13748 = vperm.xlu0 %23444, %v27900_v48   ;;  %vm10326_vm9 = vcmp.eq.s32.totalorder %v31314_v10, %v30882_v50  ;;  %v18594_v48 = vsel %vm10327_vm8, 1.0, %v30926_v19  ;;  %v31318_v10 = vld [vmem:[#allocation138_spill] sm:$0xff] }
 0x58f   : > { %21204 = vmatprep.mubr.msk.f32.mxu1 %vm5223_vm7, %v27846_v35  ;;  %v28192_v42 = vpop.f32.mrb[226].mxu0  ;;  %v28206_v35 = vpop.permute.xlu0 %11960  ;;  %v18593_v59 = vsel %vm10326_vm9, 1.0, %v30926_v19  ;;  %vm11166_vm13 = vcmp.eq.s32.totalorder %v31318_v10, %v30882_v50  ;;  %v31323_v10 = vld [vmem:[#allocation67_spill] sm:$0xff] }
 0x590   : > { %21594 = vmatmul.mubr.msk.f32.gmra.mrb[76].mxu0 %vm2085_vm0, %v18591_v33  ;;  %v28199_v1 = vpop.f32.mrb[227].mxu0  ;;  %v18660_v33 = vsel %vm11164_vm10, 1.0, %v30926_v19  ;;  %vm11170_vm2 = vcmp.eq.s32.totalorder %v31323_v10, %v30882_v50 }
 0x591   : > { %21596 = vmatprep.mubr.msk.f32.mxu0 %vm2085_vm0, %v18592_v56  ;;  %13727 = vperm.xlu1 %23443, %v27745_v11   ;;  %v31316_v11 = vld [vmem:[#allocation121_spill] sm:$0xff]  ;;  %v18666_v38 = vsel %vm11170_vm2, 1.0, %v30926_v19 }
 0x592   : > { %21205 = vmatmul.mubr.msk.f32.gmra.mrb[126].mxu1 %vm5223_vm7, %v27842_v6  ;;  %13754 = vperm.xlu0 %23444, %v27938_v8   ;;  %vm10328_vm11 = vcmp.eq.s32.totalorder %v31316_v11, %v30882_v50  ;;  %v28222_v8 = vpop.permute.xlu1 %11975 }
 0x593   : > { %21207 = vmatprep.mubr.msk.f32.mxu1 %vm5223_vm7, %v27869_v9  ;;  %v28214_v56 = vpop.f32.mrb[228].mxu0  ;;  %v31317_v9 = vld [vmem:[#allocation181_spill] sm:$0xff]  ;;  %v18595_v53 = vsel %vm10328_vm11, 1.0, %v30926_v19 }
 0x594   : > { %21597 = vmatmul.mubr.msk.f32.gmra.mrb[78].mxu0 %vm2085_vm0, %v18593_v59  ;;  %v28219_v6 = vpop.f32.mrb[229].mxu0  ;;  %vm11165_vm12 = vcmp.eq.s32.totalorder %v31317_v9, %v30882_v50  ;;  %v28241_v59 = vpop.permute.xlu0 %11966 }
 0x595   : > { %21599 = vmatprep.mubr.msk.f32.mxu0 %vm2085_vm0, %v18594_v48  ;;  %13733 = vperm.xlu1 %23443, %v27770_v54  }
 0x596   : > { %21208 = vmatmul.mubr.msk.f32.gmra.mrb[128].mxu1 %vm5223_vm7, %v27864_v20  ;;  %13760 = vperm.xlu0 %23444, %v27961_v52   ;;  %v18661_v20 = vsel %vm11165_vm12, 1.0, %v30926_v19  ;;  %v18662_v52 = vsel %vm11166_vm13, 1.0, %v30926_v19  ;;  %v28257_v9 = vpop.permute.xlu1 %11981 }
 0x597   : > { %21210 = vmatprep.mubr.msk.f32.mxu1 %vm5223_vm7, %v27890_v49  ;;  %v28236_v48 = vpop.f32.mrb[230].mxu0  ;;  %v31319_v49 = vld [vmem:[#allocation129_spill] sm:$0xff]  ;;  %31321 = vst [vmem:[#allocation104_spill] sm:$0xff] %v28257_v9  ;;  %v31332_v9 = vld [vmem:[#allocation132_spill] sm:$0xff] }
 0x598   : > { %21600 = vmatmul.mubr.msk.f32.gmra.mrb[80].mxu0 %vm2085_vm0, %v18595_v53  ;;  %v28239_v54 = vpop.f32.mrb[231].mxu0  ;;  %vm11167_vm14 = vcmp.eq.s32.totalorder %v31319_v49, %v30882_v50  ;;  %v28271_v53 = vpop.permute.xlu0 %11972 }
 0x599   : > { %21660 = vmatprep.mubr.msk.f32.mxu0 %vm2085_vm0, %v18660_v33  ;;  %13739 = vperm.xlu1 %23443, %v27793_v26   ;;  %v18663_v33 = vsel %vm11167_vm14, 1.0, %v30926_v19 }
 0x59a   : > { %21211 = vmatmul.mubr.msk.f32.gmra.mrb[130].mxu1 %vm5223_vm7, %v27888_v34  ;;  %v18664_v34 = vsel %vm11168_vm15, 1.0, %v30926_v19  ;;  %v28286_v49 = vpop.permute.xlu1 %11987 }
 0x59b   : > { %21213 = vmatprep.mubr.msk.f32.mxu1 %vm5223_vm7, %v27915_v58  ;;  %v28255_v11 = vpop.f32.mrb[232].mxu0  ;;  %v31322_v58 = vld [vmem:[#allocation124_spill] sm:$0xff]  ;;  %31324 = vst [vmem:[#allocation134_spill] sm:$0xff] %v28286_v49 }
 0x59c   : > { %21661 = vmatmul.mubr.msk.f32.vlgmr.msra.gmra.mrb[82].mxu0 %vm2085_vm0, %v18661_v20  ;;  %v28260_v26 = vpop.f32.mrb[233].mxu0  ;;  %vm11169_vm1 = vcmp.eq.s32.totalorder %v31322_v58, %v30882_v50 }
 0x59d   : > { %21663 = vmatprep.mubr.msk.f32.mxu0 %vm2085_vm0, %v18662_v52  ;;  %22695 = vmatpush3.bf16.msra.mxu0 %v25482_v45  ;;  %v18665_v52 = vsel %vm11169_vm1, 1.0, %v30926_v19 }
 0x59e   : > { %21214 = vmatmul.mubr.msk.f32.gmra.mrb[132].mxu1 %vm5223_vm7, %v27910_v12  ;;  %22697 = vmatprep.subr.bf16.mxu0 %v25540_v22  ;;  %v28319_v49 = vpop.permute.xlu1 %11993 }
 0x59f   : > { %21216 = vmatprep.mubr.msk.f32.mxu1 %vm5223_vm7, %v27941_v46  ;;  %v28277_v20 = vpop.f32.mrb[234].mxu0  ;;  %13745 = vperm.xlu1 %23443, %v27815_v17   ;;  %v31325_v17 = vld [vmem:[#allocation79_spill] sm:$0xff]  ;;  %31331 = vst [vmem:[#allocation133_spill] sm:$0xff] %v28319_v49 }
 0x5a0   : > { %21664 = vmatmul.mubr.msk.f32.gmra.mrb[84].mxu0 %vm2085_vm0, %v18663_v33  ;;  %v28281_v12 = vpop.f32.mrb[235].mxu0  ;;  %vm11172_vm4 = vcmp.eq.s32.totalorder %v31325_v17, %v30882_v50  ;;  %v31326_v46 = vld [vmem:[#allocation123_spill] sm:$0xff]  ;;  %v31328_v17 = vld [vmem:[#allocation81_spill] sm:$0xff] }
 0x5a1   : > { %21666 = vmatprep.mubr.msk.f32.mxu0 %vm2085_vm0, %v18664_v34  ;;  %22699 = vmatpush3.bf16.msra.mxu0 %v25540_v22  ;;  %v31327_v34 = vld [vmem:[#allocation131_spill] sm:$0xff]  ;;  %v18668_v10 = vsel %vm11172_vm4, 1.0, %v30926_v19 }
 0x5a2   : > { %21217 = vmatmul.mubr.msk.f32.gmra.mrb[134].mxu1 %vm5223_vm7, %v27931_v37  ;;  %22701 = vmatprep.subr.bf16.mxu0 %v25482_v45  ;;  %v28304_v37 = vpop.permute.xlu0 %11978  ;;  %v31336_v49 = vld [vmem:[#allocation187_spill] sm:$0xff] }
 0x5a3   : > { %21219 = vmatprep.mubr.msk.f32.mxu1 %vm5223_vm7, %v31326_v46  ;;  %v28298_v33 = vpop.f32.mrb[236].mxu0  ;;  %13751 = vperm.xlu1 %23443, %v31327_v34   ;;  %v31329_v46 = vld [vmem:[#allocation126_spill] sm:$0xff] }
 0x5a4   : > { %21667 = vmatmul.mubr.msk.f32.gmra.mrb[86].mxu0 %vm2085_vm0, %v18665_v52  ;;  %v28302_v58 = vpop.f32.mrb[237].mxu0  ;;  %vm11173_vm5 = vcmp.eq.s32.totalorder %v31329_v46, %v30882_v50  ;;  %v31330_v34 = vld [vmem:[#allocation78_spill] sm:$0xff] }
 0x5a5   : > { %21669 = vmatprep.mubr.msk.f32.mxu0 %vm2085_vm0, %v18666_v38  ;;  %vm11174_vm6 = vcmp.eq.s32.totalorder %v31330_v34, %v30882_v50 }
 0x5a6   : > { %21220 = vmatmul.mubr.msk.f32.gmra.mrb[136].mxu1 %vm5223_vm7, %v31328_v17  ;;  %v18669_v17 = vsel %vm11173_vm5, 1.0, %v30926_v19  ;;  %v18670_v46 = vsel %vm11174_vm6, 1.0, %v30926_v19  ;;  %v28332_v34 = vpop.permute.xlu0 %11984  ;;  %vm11187_vm5 = vcmp.eq.s32.totalorder %v27967_v25, %v30882_v50 }
 0x5a7   : > { %21222 = vmatprep.mubr.msk.f32.mxu1 %vm5223_vm7, %v27985_v5  ;;  %v28317_v52 = vpop.f32.mrb[238].mxu0  ;;  %13757 = vperm.xlu1 %23443, %v31332_v9   ;;  %v31333_v5 = vld [vmem:[#allocation83_spill] sm:$0xff]  ;;  %31334 = vst [vmem:[#allocation114_spill] sm:$0xff] %v28332_v34  ;;  %v31335_v9 = vld [vmem:[#allocation89_spill] sm:$0xff] }
 0x5a8   : > { %21670 = vmatmul.mubr.msk.f32.gmra.mrb[88].mxu0 %vm2085_vm0, %v18667_v55  ;;  %v28323_v38 = vpop.f32.mrb[239].mxu0  ;;  %vm11175_vm8 = vcmp.eq.s32.totalorder %v31333_v5, %v30882_v50  ;;  %vm11176_vm9 = vcmp.eq.s32.totalorder %v31335_v9, %v30882_v50  ;;  %v28346_v5 = vpop.permute.xlu1 %11999 }
 0x5a9   : > { %21672 = vmatprep.mubr.msk.f32.mxu0 %vm2085_vm0, %v18668_v10  ;;  %31337 = vst [vmem:[#allocation184_spill] sm:$0xff] %v28346_v5  ;;  %v18672_v9 = vsel %vm11176_vm9, 1.0, %v30926_v19 }
 0x5aa   : > { %21223 = vmatmul.mubr.msk.f32.gmra.mrb[138].mxu1 %vm5223_vm7, %v27981_v62  ;;  %v18671_v62 = vsel %vm11175_vm8, 1.0, %v30926_v19  ;;  %v28362_v5 = vpop.permute.xlu0 %11990  ;;  %vm11189_vm8 = vcmp.eq.s32.totalorder %v27997_v21, %v30882_v50 }
 0x5ab   : > { %21225 = vmatprep.mubr.msk.f32.mxu1 %vm5223_vm7, %v28007_v15  ;;  %v28338_v55 = vpop.f32.mrb[240].mxu0  ;;  %13763 = vperm.xlu1 %23443, %v31336_v49   ;;  %v31338_v15 = vld [vmem:[#allocation127_spill] sm:$0xff]  ;;  %v31339_v49 = vld [vmem:[#allocation145_spill] sm:$0xff]  ;;  %31340 = vst [vmem:[#allocation136_spill] sm:$0xff] %v28362_v5 }
 0x5ac   : > { %21673 = vmatmul.mubr.msk.f32.gmra.mrb[90].mxu0 %vm2085_vm0, %v18669_v17  ;;  %v28342_v10 = vpop.f32.mrb[241].mxu0  ;;  %vm11177_vm10 = vcmp.eq.s32.totalorder %v31338_v15, %v30882_v50  ;;  %vm11178_vm11 = vcmp.eq.s32.totalorder %v31339_v49, %v30882_v50 }
 0x5ad   : > { %21675 = vmatprep.mubr.msk.f32.mxu0 %vm2085_vm0, %v18670_v46  ;;  %v18673_v34 = vsel %vm11177_vm10, 1.0, %v30926_v19  ;;  %v18674_v15 = vsel %vm11178_vm11, 1.0, %v30926_v19  ;;  %vm11191_vm10 = vcmp.eq.s32.totalorder %v28028_v32, %v30882_v50 }
 0x5ae   : > { %21226 = vmatmul.mubr.msk.f32.gmra.mrb[140].mxu1 %vm5223_vm7, %v28001_v16  ;;  %v28367_v16 = vld [vmem:[%s30927_s11 + $0x30] sm:$0xff] }
 0x5af   : > { %21286 = vmatprep.mubr.msk.f32.mxu1 %vm5223_vm7, %v28026_v60  ;;  %v28357_v17 = vpop.f32.mrb[242].mxu0  ;;  %v31341_v60 = vld [vmem:[#allocation148_spill] sm:$0xff] }
 0x5b0   : > { %21676 = vmatmul.mubr.msk.f32.gmra.mrb[92].mxu0 %vm2085_vm0, %v18671_v62  ;;  %v28360_v46 = vpop.f32.mrb[243].mxu0  ;;  %vm11179_vm12 = vcmp.eq.s32.totalorder %v31341_v60, %v30882_v50  ;;  %v31342_v62 = vld [vmem:[#allocation74_spill] sm:$0xff] }
 0x5b1   : > { %21678 = vmatprep.mubr.msk.f32.mxu0 %vm2085_vm0, %v18672_v9  ;;  %vm11180_vm13 = vcmp.eq.s32.totalorder %v31342_v62, %v30882_v50  ;;  %v28381_v9 = vpop.permute.xlu1 %12005 }
 0x5b2   : > { %21287 = vmatmul.mubr.msk.f32.vlgmr.msra.gmra.mrb[110].mxu1 %vm5223_vm7, %v28023_v39  ;;  %31343 = vst [vmem:[#allocation140_spill] sm:$0xff] %v28381_v9  ;;  %v18675_v39 = vsel %vm11179_vm12, 1.0, %v30926_v19  ;;  %v18676_v60 = vsel %vm11180_vm13, 1.0, %v30926_v19  ;;  %vm11193_vm12 = vcmp.eq.s32.totalorder %v28063_v2, %v30882_v50 }
 0x5b3   : > { %21391 = vmatpush3.msra.mxu1 %v28034_v31  ;;  %21289 = vmatprep.mubr.msk.f32.mxu1 %vm5223_vm7, %v28052_v3  ;;  %v28379_v49 = vpop.f32.mrb[244].mxu0  ;;  %v31344_v31 = vld [vmem:[#allocation102_spill] sm:$0xff]  ;;  %v28394_v3 = vpop.permute.xlu0 %11996  ;;  %v18689_v2 = vsel %vm11193_vm12, 1.0, %v30926_v19  ;;  %vm12042_vm12 = vcmp.eq.s32.totalorder %v28194_v43, %v30882_v50 }
 0x5b4   : > { %21679 = vmatmul.mubr.msk.f32.gmra.mrb[94].mxu0 %vm2085_vm0, %v18673_v34  ;;  %v28384_v5 = vpop.f32.mrb[245].mxu0  ;;  %21496 = vmatprep.subr.mxu1 %v28367_v16  ;;  %vm11181_vm14 = vcmp.eq.s32.totalorder %v31344_v31, %v30882_v50  ;;  %31345 = vst [vmem:[#allocation137_spill] sm:$0xff] %v28394_v3  ;;  %v31346_v34 = vld [vmem:[#allocation146_spill] sm:$0xff]  ;;  %v18767_v43 = vsel %vm12042_vm12, 1.0, %v30926_v19 }
 0x5b5   : > { %21681 = vmatprep.mubr.msk.f32.mxu0 %vm2085_vm0, %v18674_v15  ;;  %vm11182_vm15 = vcmp.eq.s32.totalorder %v31346_v34, %v30882_v50  ;;  %v18677_v9 = vsel %vm11181_vm14, 1.0, %v30926_v19  ;;  %v31348_v34 = vld [vmem:[#allocation115_spill] sm:$0xff]  ;;  %vm11195_vm14 = vcmp.eq.s32.totalorder %v28095_v4, %v30882_v50 }
 0x5b6   : > { %21290 = vmatmul.mubr.msk.f32.gmra.mrb[112].mxu1 %vm5223_vm7, %v28049_v23  ;;  %v28407_v23 = vpop.permute.xlu1 %12011  ;;  %v18678_v31 = vsel %vm11182_vm15, 1.0, %v30926_v19  ;;  %vm11183_vm1 = vcmp.eq.s32.totalorder %v31348_v34, %v30882_v50  ;;  %v31351_v34 = vld [vmem:[#allocation112_spill] sm:$0xff]  ;;  %v18691_v4 = vsel %vm11195_vm14, 1.0, %v30926_v19  ;;  %vm12044_vm14 = vcmp.eq.s32.totalorder %v28222_v8, %v30882_v50  ;;  %v28674_v8 = vld [vmem:[%s30927_s11 + $0x38] sm:$0xff] }
 0x5b7   : > { %21292 = vmatprep.mubr.msk.f32.mxu1 %vm5223_vm7, %v28075_v0  ;;  %v28400_v62 = vpop.f32.mrb[246].mxu0  ;;  %31347 = vst [vmem:[#allocation70_spill] sm:$0xff] %v28407_v23  ;;  %v31349_v0 = vld [vmem:[#allocation91_spill] sm:$0xff]  ;;  %v28423_v23 = vpop.permute.xlu0 %12002  ;;  %v18679_v3 = vsel %vm11183_vm1, 1.0, %v30926_v19  ;;  %vm11185_vm3 = vcmp.eq.s32.totalorder %v31351_v34, %v30882_v50  ;;  %vm12032_vm1 = vcmp.eq.s32.totalorder %v28125_v51, %v30882_v50 }
 0x5b8   : > { %21682 = vmatmul.mubr.msk.f32.gmra.mrb[96].mxu0 %vm2085_vm0, %v18675_v39  ;;  %v28403_v15 = vpop.f32.mrb[247].mxu0  ;;  %vm11184_vm2 = vcmp.eq.s32.totalorder %v31349_v0, %v30882_v50  ;;  %31350 = vst [vmem:[#allocation149_spill] sm:$0xff] %v28423_v23  ;;  %v18681_v23 = vsel %vm11185_vm3, 1.0, %v30926_v19  ;;  %v31353_v34 = vld [vmem:[#allocation103_spill] sm:$0xff]  ;;  %vm12034_vm3 = vcmp.eq.s32.totalorder %v28072_v47, %v30882_v50 }
 0x5b9   : > { %21684 = vmatprep.mubr.msk.f32.mxu0 %vm2085_vm0, %v18676_v60  ;;  %vm11188_vm6 = vcmp.eq.s32.totalorder %v31353_v34, %v30882_v50  ;;  %v18759_v47 = vsel %vm12034_vm3, 1.0, %v30926_v19 }
 0x5ba   : > { %21293 = vmatmul.mubr.msk.f32.gmra.mrb[114].mxu1 %vm5223_vm7, %v28070_v63  ;;  %v18680_v63 = vsel %vm11184_vm2, 1.0, %v30926_v19  ;;  %v28438_v0 = vpop.permute.xlu1 %12017  ;;  %v18684_v25 = vsel %vm11188_vm6, 1.0, %v30926_v19  ;;  %vm12037_vm6 = vcmp.eq.s32.totalorder %v28179_v41, %v30882_v50 }
 0x5bb   : > { %21295 = vmatprep.mubr.msk.f32.mxu1 %vm5223_vm7, %v28093_v28  ;;  %v28418_v39 = vpop.f32.mrb[248].mxu0  ;;  %v31352_v28 = vld [vmem:[#allocation147_spill] sm:$0xff]  ;;  %v18762_v41 = vsel %vm12037_vm6, 1.0, %v30926_v19 }
 0x5bc   : > { %21685 = vmatmul.mubr.msk.f32.gmra.mrb[98].mxu0 %vm2085_vm0, %v18677_v9  ;;  %v28421_v60 = vpop.f32.mrb[249].mxu0  ;;  %vm11186_vm4 = vcmp.eq.s32.totalorder %v31352_v28, %v30882_v50  ;;  %v18683_v28 = vsel %vm11187_vm5, 1.0, %v30926_v19  ;;  %vm12036_vm5 = vcmp.eq.s32.totalorder %v28099_v29, %v30882_v50 }
 0x5bd   : > { %21687 = vmatprep.mubr.msk.f32.mxu0 %vm2085_vm0, %v18678_v31 }
 0x5be   : > { %21296 = vmatmul.mubr.msk.f32.gmra.mrb[116].mxu1 %vm5223_vm7, %v28090_v18  ;;  %v18682_v18 = vsel %vm11186_vm4, 1.0, %v30926_v19  ;;  %vm12035_vm4 = vcmp.eq.s32.totalorder %v28147_v13, %v30882_v50 }
 0x5bf   : > { %21298 = vmatprep.mubr.msk.f32.mxu1 %vm5223_vm7, %v28115_v57  ;;  %v28436_v9 = vpop.f32.mrb[250].mxu0  ;;  %v28450_v57 = vpop.permute.xlu0 %12008  ;;  %v18760_v13 = vsel %vm12035_vm4, 1.0, %v30926_v19 }
 0x5c0   : > { %21688 = vmatmul.mubr.msk.f32.gmra.mrb[100].mxu0 %vm2085_vm0, %v18679_v3  ;;  %v28441_v31 = vpop.f32.mrb[251].mxu0 }
 0x5c1   : > { %21690 = vmatprep.mubr.msk.f32.mxu0 %vm2085_vm0, %v18680_v63 }
 0x5c2   : > { %21299 = vmatmul.mubr.msk.f32.gmra.mrb[118].mxu1 %vm5223_vm7, %v28112_v30  ;;  %v28463_v30 = vpop.permute.xlu1 %12023 }
 0x5c3   : > { %21301 = vmatprep.mubr.msk.f32.mxu1 %vm5223_vm7, %v28137_v61  ;;  %v28456_v3 = vpop.f32.mrb[252].mxu0  ;;  %31354 = vst [vmem:[#allocation142_spill] sm:$0xff] %v28463_v30  ;;  %v31355_v61 = vld [vmem:[#allocation92_spill] sm:$0xff]  ;;  %v28479_v34 = vpop.permute.xlu0 %12014  ;;  %v18685_v30 = vsel %vm11189_vm8, 1.0, %v30926_v19  ;;  %vm12038_vm8 = vcmp.eq.s32.totalorder %v28134_v36, %v30882_v50 }
 0x5c4   : > { %21691 = vmatmul.mubr.msk.f32.gmra.mrb[102].mxu0 %vm2085_vm0, %v18681_v23  ;;  %v28459_v63 = vpop.f32.mrb[253].mxu0  ;;  %vm11190_vm9 = vcmp.eq.s32.totalorder %v31355_v61, %v30882_v50  ;;  %v18687_v61 = vsel %vm11191_vm10, 1.0, %v30926_v19  ;;  %v18763_v36 = vsel %vm12038_vm8, 1.0, %v30926_v19  ;;  %vm12040_vm10 = vcmp.eq.s32.totalorder %v28161_v40, %v30882_v50 }
 0x5c5   : > { %21693 = vmatprep.mubr.msk.f32.mxu0 %vm2085_vm0, %v18682_v18  ;;  %v18686_v21 = vsel %vm11190_vm9, 1.0, %v30926_v19  ;;  %vm12039_vm9 = vcmp.eq.s32.totalorder %v28206_v35, %v30882_v50  ;;  %v18765_v40 = vsel %vm12040_vm10, 1.0, %v30926_v19 }
 0x5c6   : > { %21302 = vmatmul.mubr.msk.f32.gmra.mrb[120].mxu1 %vm5223_vm7, %v28132_v44  ;;  %v31356_v44 = vld [vmem:[#allocation113_spill] sm:$0xff] }
 0x5c7   : > { %21304 = vmatprep.mubr.msk.f32.mxu1 %vm5223_vm7, %v28157_v14  ;;  %v28474_v23 = vpop.f32.mrb[254].mxu0  ;;  %vm11192_vm11 = vcmp.eq.s32.totalorder %v31356_v44, %v30882_v50  ;;  %v31357_v44 = vld [vmem:[#allocation110_spill] sm:$0xff] }
 0x5c8   : > { %21694 = vmatmul.mubr.msk.f32.gmra.mrb[104].mxu0 %vm2085_vm0, %v18683_v28  ;;  %v28477_v18 = vpop.f32.mrb[255].mxu0  ;;  %v28494_v28 = vpop.permute.xlu1 %12029  ;;  %v18688_v32 = vsel %vm11192_vm11, 1.0, %v30926_v19  ;;  %vm11194_vm13 = vcmp.eq.s32.totalorder %v31357_v44, %v30882_v50  ;;  %vm12041_vm11 = vcmp.eq.s32.totalorder %v28241_v59, %v30882_v50 }
 0x5c9   : > { %21696 = vmatprep.mubr.msk.f32.mxu0 %vm2085_vm0, %v18684_v25 }
 0x5ca   : > { %21305 = vmatmul.mubr.msk.f32.gmra.mrb[122].mxu1 %vm5223_vm7, %v28154_v7  ;;  %v28506_v7 = vpop.permute.xlu0 %12020 }
 0x5cb   : > { %21307 = vmatprep.mubr.msk.f32.mxu1 %vm5223_vm7, %v28177_v27  ;;  %v28492_v14 = vpop.f32.mrb[0].mxu0 }
 0x5cc   : > { %21697 = vmatmul.mubr.msk.f32.gmra.mrb[106].mxu0 %vm2085_vm0, %v18685_v30  ;;  %v28497_v25 = vpop.f32.mrb[1].mxu0  ;;  %v28512_v30 = vpop.permute.xlu1 %12806 }
 0x5cd   : > { %21699 = vmatprep.mubr.msk.f32.mxu0 %vm2085_vm0, %v18686_v21 }
 0x5ce   : > { %21308 = vmatmul.mubr.msk.f32.gmra.mrb[124].mxu1 %vm5223_vm7, %v28172_v24  ;;  %v31358_v24 = vld [vmem:[#allocation128_spill] sm:$0xff]  ;;  %v28535_v44 = vpop.permute.xlu0 %12026 }
 0x5cf   : > { %21310 = vmatprep.mubr.msk.f32.mxu1 %vm5223_vm7, %v28199_v1  ;;  %v28510_v27 = vpop.f32.mrb[2].mxu0  ;;  %vm12031_vm15 = vcmp.eq.s32.totalorder %v31358_v24, %v30882_v50 }
 0x5d0   : > { %21700 = vmatmul.mubr.msk.f32.gmra.mrb[108].mxu0 %vm2085_vm0, %v18687_v61  ;;  %v28515_v21 = vpop.f32.mrb[3].mxu0  ;;  %v18690_v61 = vsel %vm11194_vm13, 1.0, %v30926_v19  ;;  %v18756_v24 = vsel %vm12031_vm15, 1.0, %v30926_v19  ;;  %vm12043_vm13 = vcmp.eq.s32.totalorder %v28271_v53, %v30882_v50  ;;  %vm12045_vm15 = vcmp.eq.s32.totalorder %v28304_v37, %v30882_v50 }
 0x5d1   : > { %21702 = vmatprep.mubr.msk.f32.mxu0 %vm2085_vm0, %v18688_v32  ;;  %v18768_v53 = vsel %vm12043_vm13, 1.0, %v30926_v19  ;;  %v18770_v37 = vsel %vm12045_vm15, 1.0, %v30926_v19  ;;  %vm12057_vm13 = vcmp.eq.s32.totalorder %v28479_v34, %v30882_v50  ;;  %vm12059_vm15 = vcmp.eq.s32.totalorder %v28506_v7, %v30882_v50 }
 0x5d2   : > { %21311 = vmatmul.mubr.msk.f32.gmra.mrb[126].mxu1 %vm5223_vm7, %v28192_v42  ;;  %v28539_v42 = vpop.permute.xlu1 %12809  ;;  %v28562_v51 = vpop.permute.xlu0 %12803 }
 0x5d3   : > { %21313 = vmatprep.mubr.msk.f32.mxu1 %vm5223_vm7, %v28219_v6  ;;  %v28529_v1 = vpop.f32.mrb[4].mxu0  ;;  %31359 = vst [vmem:[#allocation139_spill] sm:$0xff] %v28539_v42  ;;  %v31360_v6 = vld [vmem:[#allocation125_spill] sm:$0xff]  ;;  %v18757_v42 = vsel %vm12032_vm1, 1.0, %v30926_v19 }
 0x5d4   : > { %21703 = vmatmul.mubr.msk.f32.gmra.mrb[110].mxu0 %vm2085_vm0, %v18689_v2  ;;  %v28533_v32 = vpop.f32.mrb[5].mxu0  ;;  %vm12033_vm2 = vcmp.eq.s32.totalorder %v31360_v6, %v30882_v50 }
 0x5d5   : > { %21705 = vmatprep.mubr.msk.f32.mxu0 %vm2085_vm0, %v18690_v61 }
 0x5d6   : > { %21314 = vmatmul.mubr.msk.f32.gmra.mrb[128].mxu1 %vm5223_vm7, %v28214_v56  ;;  %v18758_v56 = vsel %vm12033_vm2, 1.0, %v30926_v19  ;;  %v28593_v29 = vpop.permute.xlu0 %12812 }
 0x5d7   : > { %21316 = vmatprep.mubr.msk.f32.mxu1 %vm5223_vm7, %v28239_v54  ;;  %v28550_v2 = vpop.f32.mrb[6].mxu0 }
 0x5d8   : > { %21706 = vmatmul.mubr.msk.f32.gmra.mrb[112].mxu0 %vm2085_vm0, %v18691_v4  ;;  %v28553_v61 = vpop.f32.mrb[7].mxu0  ;;  %v28570_v4 = vpop.permute.xlu1 %12815 }
 0x5d9   : > { %21766 = vmatprep.mubr.msk.f32.mxu0 %vm2085_vm0, %v18756_v24 }
 0x5da   : > { %21317 = vmatmul.mubr.msk.f32.gmra.mrb[130].mxu1 %vm5223_vm7, %v28236_v48 }
 0x5db   : > { %21319 = vmatprep.mubr.msk.f32.mxu1 %vm5223_vm7, %v28260_v26  ;;  %v28566_v54 = vpop.f32.mrb[8].mxu0 }
 0x5dc   : > { %v28572_v24 = vpop.f32.mrb[9].mxu0  ;;  %21767 = vmatmul.mubr.msk.f32.vlgmr.msra.gmra.mrb[114].mxu0 %vm2085_vm0, %v18757_v42  ;;  %v28598_v42 = vpop.permute.xlu1 %12821 }
 0x5dd   : > { %21769 = vmatprep.mubr.msk.f32.mxu0 %vm2085_vm0, %v18758_v56  ;;  %22703 = vmatpush3.bf16.msra.mxu0 %v25482_v45 }
 0x5de   : > { %21320 = vmatmul.mubr.msk.f32.gmra.mrb[132].mxu1 %vm5223_vm7, %v28255_v11  ;;  %22705 = vmatprep.subr.bf16.mxu0 %v25540_v22  ;;  %v18761_v11 = vsel %vm12036_vm5, 1.0, %v30926_v19 }
 0x5df   : > { %21322 = vmatprep.mubr.msk.f32.mxu1 %vm5223_vm7, %v28281_v12  ;;  %v28586_v48 = vpop.f32.mrb[10].mxu0 }
 0x5e0   : > { %v28590_v26 = vpop.f32.mrb[11].mxu0  ;;  %21770 = vmatmul.mubr.msk.f32.gmra.mrb[116].mxu0 %vm2085_vm0, %v18759_v47  ;;  %v28630_v56 = vpop.permute.xlu1 %12827 }
 0x5e1   : > { %21772 = vmatprep.mubr.msk.f32.mxu0 %vm2085_vm0, %v18760_v13  ;;  %22707 = vmatpush3.bf16.msra.mxu0 %v25540_v22 }
 0x5e2   : > { %21323 = vmatmul.mubr.msk.f32.gmra.mrb[134].mxu1 %vm5223_vm7, %v28277_v20  ;;  %22709 = vmatprep.subr.bf16.mxu0 %v25482_v45  ;;  %v18764_v20 = vsel %vm12039_vm9, 1.0, %v30926_v19 }
 0x5e3   : > { %21325 = vmatprep.mubr.msk.f32.mxu1 %vm5223_vm7, %v28302_v58  ;;  %v28608_v12 = vpop.f32.mrb[12].mxu0  ;;  %v28622_v58 = vpop.permute.xlu0 %12818 }
 0x5e4   : > { %v28612_v6 = vpop.f32.mrb[13].mxu0  ;;  %21773 = vmatmul.mubr.msk.f32.gmra.mrb[118].mxu0 %vm2085_vm0, %v18761_v11 }
 0x5e5   : > { %21775 = vmatprep.mubr.msk.f32.mxu0 %vm2085_vm0, %v18762_v41  ;;  %v18769_v41 = vsel %vm12044_vm14, 1.0, %v30926_v19  ;;  %vm12058_vm14 = vcmp.eq.s32.totalorder %v28438_v0, %v30882_v50 }
 0x5e6   : > { %21326 = vmatmul.mubr.msk.f32.gmra.mrb[136].mxu1 %vm5223_vm7, %v28298_v33  ;;  %v18766_v33 = vsel %vm12041_vm11, 1.0, %v30926_v19  ;;  %vm12055_vm11 = vcmp.eq.s32.totalorder %v28450_v57, %v30882_v50 }
 0x5e7   : > { %21328 = vmatprep.mubr.msk.f32.mxu1 %vm5223_vm7, %v28323_v38  ;;  %v28626_v35 = vpop.f32.mrb[14].mxu0  ;;  %v28651_v13 = vpop.permute.xlu0 %12824  ;;  %v18780_v57 = vsel %vm12055_vm11, 1.0, %v30926_v19  ;;  %vm12904_vm11 = vcmp.eq.s32.totalorder %v28598_v42, %v30882_v50 }
 0x5e8   : > { %v28632_v47 = vpop.f32.mrb[15].mxu0  ;;  %21776 = vmatmul.mubr.msk.f32.gmra.mrb[120].mxu0 %vm2085_vm0, %v18763_v36  ;;  %v31362_v36 = vld [vmem:[#allocation114_spill] sm:$0xff] }
 0x5e9   : > { %21778 = vmatprep.mubr.msk.f32.mxu0 %vm2085_vm0, %v18764_v20  ;;  %vm12047_vm2 = vcmp.eq.s32.totalorder %v31362_v36, %v30882_v50  ;;  %v31365_v36 = vld [vmem:[#allocation133_spill] sm:$0xff] }
 0x5ea   : > { %21329 = vmatmul.mubr.msk.f32.gmra.mrb[138].mxu1 %vm5223_vm7, %v28317_v52  ;;  %v28655_v52 = vpop.permute.xlu1 %12833  ;;  %vm12050_vm5 = vcmp.eq.s32.totalorder %v31365_v36, %v30882_v50 }
 0x5eb   : > { %21331 = vmatprep.mubr.msk.f32.mxu1 %vm5223_vm7, %v28342_v10  ;;  %v28644_v59 = vpop.f32.mrb[16].mxu0 }
 0x5ec   : > { %v28648_v38 = vpop.f32.mrb[17].mxu0  ;;  %21779 = vmatmul.mubr.msk.f32.gmra.mrb[122].mxu0 %vm2085_vm0, %v18765_v40 }
 0x5ed   : > { %21781 = vmatprep.mubr.msk.f32.mxu0 %vm2085_vm0, %v18766_v33 }
 0x5ee   : > { %21332 = vmatmul.mubr.msk.f32.gmra.mrb[140].mxu1 %vm5223_vm7, %v28338_v55  ;;  %v31361_v55 = vld [vmem:[#allocation104_spill] sm:$0xff]  ;;  %v28690_v40 = vpop.permute.xlu1 %12839 }
 0x5ef   : > { %21392 = vmatprep.mubr.msk.f32.mxu1 %vm5223_vm7, %v28360_v46  ;;  %v28666_v10 = vpop.f32.mrb[18].mxu0  ;;  %vm12046_vm1 = vcmp.eq.s32.totalorder %v31361_v55, %v30882_v50  ;;  %v28681_v46 = vpop.permute.xlu0 %12830 }
 0x5f0   : > { %21782 = vmatmul.mubr.msk.f32.gmra.mrb[124].mxu0 %vm2085_vm0, %v18767_v43  ;;  %v28669_v11 = vpop.f32.mrb[19].mxu0  ;;  %v31364_v43 = vld [vmem:[#allocation136_spill] sm:$0xff] }
 0x5f1   : > { %21784 = vmatprep.mubr.msk.f32.mxu0 %vm2085_vm0, %v18768_v53  ;;  %vm12049_vm4 = vcmp.eq.s32.totalorder %v31364_v43, %v30882_v50  ;;  %v18775_v43 = vsel %vm12050_vm5, 1.0, %v30926_v19  ;;  %vm12899_vm5 = vcmp.eq.s32.totalorder %v28512_v30, %v30882_v50 }
 0x5f2   : > { %21393 = vmatmul.mubr.msk.f32.vlgmr.msra.gmra.mrb[110].mxu1 %vm5223_vm7, %v28357_v17  ;;  %v18771_v17 = vsel %vm12046_vm1, 1.0, %v30926_v19  ;;  %vm12061_vm1 = vcmp.eq.s32.totalorder %v28535_v44, %v30882_v50 }
 0x5f3   : > { %21497 = vmatpush3.msra.mxu1 %v28367_v16  ;;  %21395 = vmatprep.mubr.msk.f32.mxu1 %vm5223_vm7, %v28384_v5  ;;  %v28688_v20 = vpop.f32.mrb[20].mxu0  ;;  %v31363_v16 = vld [vmem:[#allocation134_spill] sm:$0xff]  ;;  %v18772_v5 = vsel %vm12047_vm2, 1.0, %v30926_v19  ;;  %v28712_v55 = vpop.permute.xlu0 %12836 }
 0x5f4   : > { %21785 = vmatmul.mubr.msk.f32.gmra.mrb[126].mxu0 %vm2085_vm0, %v18769_v41  ;;  %v28693_v33 = vpop.f32.mrb[21].mxu0  ;;  %21602 = vmatprep.subr.mxu1 %v28674_v8  ;;  %vm12048_vm3 = vcmp.eq.s32.totalorder %v31363_v16, %v30882_v50 }
 0x5f5   : > { %21787 = vmatprep.mubr.msk.f32.mxu0 %vm2085_vm0, %v18770_v37  ;;  %v18773_v37 = vsel %vm12048_vm3, 1.0, %v30926_v19  ;;  %vm12898_vm3 = vcmp.eq.s32.totalorder %v28562_v51, %v30882_v50 }
 0x5f6   : > { %21396 = vmatmul.mubr.msk.f32.gmra.mrb[112].mxu1 %vm5223_vm7, %v28379_v49  ;;  %v28716_v49 = vpop.permute.xlu1 %12845 }
 0x5f7   : > { %21398 = vmatprep.mubr.msk.f32.mxu1 %vm5223_vm7, %v28403_v15  ;;  %v28707_v53 = vpop.f32.mrb[22].mxu0  ;;  %v18774_v15 = vsel %vm12049_vm4, 1.0, %v30926_v19  ;;  %v28739_v36 = vpop.permute.xlu0 %12842  ;;  %vm12062_vm4 = vcmp.eq.s32.totalorder %v28494_v28, %v30882_v50  ;;  %v31374_v28 = vld [vmem:[#allocation139_spill] sm:$0xff] }
 0x5f8   : > { %21788 = vmatmul.mubr.msk.f32.gmra.mrb[128].mxu0 %vm2085_vm0, %v18771_v17  ;;  %v28710_v41 = vpop.f32.mrb[23].mxu0  ;;  %v31366_v17 = vld [vmem:[#allocation137_spill] sm:$0xff]  ;;  %v18787_v51 = vsel %vm12062_vm4, 1.0, %v30926_v19  ;;  %vm12912_vm4 = vcmp.eq.s32.totalorder %v28716_v49, %v30882_v50 }
 0x5f9   : > { %21790 = vmatprep.mubr.msk.f32.mxu0 %vm2085_vm0, %v18772_v5  ;;  %vm12051_vm6 = vcmp.eq.s32.totalorder %v31366_v17, %v30882_v50 }
 0x5fa   : > { %21399 = vmatmul.mubr.msk.f32.gmra.mrb[114].mxu1 %vm5223_vm7, %v28400_v62  ;;  %v31368_v62 = vld [vmem:[#allocation184_spill] sm:$0xff] }
 0x5fb   : > { %21401 = vmatprep.mubr.msk.f32.mxu1 %vm5223_vm7, %v28421_v60  ;;  %v28727_v16 = vpop.f32.mrb[24].mxu0  ;;  %vm12052_vm8 = vcmp.eq.s32.totalorder %v31368_v62, %v30882_v50  ;;  %v18776_v60 = vsel %vm12051_vm6, 1.0, %v30926_v19  ;;  %v31371_v62 = vld [vmem:[#allocation140_spill] sm:$0xff]  ;;  %vm12900_vm6 = vcmp.eq.s32.totalorder %v31374_v28, %v30882_v50 }
 0x5fc   : > { %31367 = vst [vmem:[#allocation155_spill] sm:$0xff] %v28727_v16  ;;  %21791 = vmatmul.mubr.msk.f32.gmra.mrb[130].mxu0 %vm2085_vm0, %v18773_v37  ;;  %v28730_v5 = vpop.f32.mrb[25].mxu0  ;;  %v31369_v37 = vld [vmem:[#allocation149_spill] sm:$0xff]  ;;  %v28747_v16 = vpop.permute.xlu1 %12851  ;;  %vm12054_vm10 = vcmp.eq.s32.totalorder %v31371_v62, %v30882_v50 }
 0x5fd   : > { %21793 = vmatprep.mubr.msk.f32.mxu0 %vm2085_vm0, %v18774_v15  ;;  %vm12053_vm9 = vcmp.eq.s32.totalorder %v31369_v37, %v30882_v50  ;;  %v18779_v62 = vsel %vm12054_vm10, 1.0, %v30926_v19  ;;  %vm12903_vm10 = vcmp.eq.s32.totalorder %v28622_v58, %v30882_v50 }
 0x5fe   : > { %21402 = vmatmul.mubr.msk.f32.gmra.mrb[116].mxu1 %vm5223_vm7, %v28418_v39  ;;  %v18777_v39 = vsel %vm12052_vm8, 1.0, %v30926_v19  ;;  %vm12901_vm8 = vcmp.eq.s32.totalorder %v28593_v29, %v30882_v50  ;;  %v18857_v29 = vsel %vm12903_vm10, 1.0, %v30926_v19 }
 0x5ff   : > { %21404 = vmatprep.mubr.msk.f32.mxu1 %vm5223_vm7, %v28441_v31  ;;  %v28745_v17 = vpop.f32.mrb[26].mxu0  ;;  %v18778_v31 = vsel %vm12053_vm9, 1.0, %v30926_v19  ;;  %vm12902_vm9 = vcmp.eq.s32.totalorder %v28570_v4, %v30882_v50 }
 0x600   : > { %31370 = vst [vmem:[#allocation116_spill] sm:$0xff] %v28745_v17  ;;  %21794 = vmatmul.mubr.msk.f32.gmra.mrb[132].mxu0 %vm2085_vm0, %v18775_v43  ;;  %v28750_v15 = vpop.f32.mrb[27].mxu0  ;;  %v31372_v17 = vld [vmem:[#allocation70_spill] sm:$0xff] }
 0x601   : > { %21796 = vmatprep.mubr.msk.f32.mxu0 %vm2085_vm0, %v18776_v60  ;;  %v28768_v60 = vpop.permute.xlu0 %12848  ;;  %vm12056_vm12 = vcmp.eq.s32.totalorder %v31372_v17, %v30882_v50 }
 0x602   : > { %21405 = vmatmul.mubr.msk.f32.gmra.mrb[118].mxu1 %vm5223_vm7, %v28436_v9  ;;  %v28772_v9 = vpop.permute.xlu1 %12857 }
 0x603   : > { %21407 = vmatprep.mubr.msk.f32.mxu1 %vm5223_vm7, %v28459_v63  ;;  %v28763_v43 = vpop.f32.mrb[28].mxu0 }
 0x604   : > { %21797 = vmatmul.mubr.msk.f32.gmra.mrb[134].mxu0 %vm2085_vm0, %v18777_v39  ;;  %v28766_v37 = vpop.f32.mrb[29].mxu0 }
 0x605   : > { %21799 = vmatprep.mubr.msk.f32.mxu0 %vm2085_vm0, %v18778_v31  ;;  %v18781_v31 = vsel %vm12056_vm12, 1.0, %v30926_v19  ;;  %vm12905_vm12 = vcmp.eq.s32.totalorder %v28651_v13, %v30882_v50 }
 0x606   : > { %21408 = vmatmul.mubr.msk.f32.gmra.mrb[120].mxu1 %vm5223_vm7, %v28456_v3  ;;  %v18782_v3 = vsel %vm12057_vm13, 1.0, %v30926_v19  ;;  %v28803_v17 = vpop.permute.xlu1 %12863  ;;  %vm12906_vm13 = vcmp.eq.s32.totalorder %v28630_v56, %v30882_v50 }
 0x607   : > { %21410 = vmatprep.mubr.msk.f32.mxu1 %vm5223_vm7, %v28477_v18  ;;  %v28783_v63 = vpop.f32.mrb[30].mxu0  ;;  %v28795_v18 = vpop.permute.xlu0 %12854  ;;  %v18860_v13 = vsel %vm12906_vm13, 1.0, %v30926_v19 }
 0x608   : > { %21800 = vmatmul.mubr.msk.f32.gmra.mrb[136].mxu0 %vm2085_vm0, %v18779_v62  ;;  %v28786_v39 = vpop.f32.mrb[31].mxu0  ;;  %v31373_v62 = vld [vmem:[#allocation142_spill] sm:$0xff] }
 0x609   : > { %21802 = vmatprep.mubr.msk.f32.mxu0 %vm2085_vm0, %v18780_v57  ;;  %vm12060_vm2 = vcmp.eq.s32.totalorder %v31373_v62, %v30882_v50 }
 0x60a   : > { %21411 = vmatmul.mubr.msk.f32.gmra.mrb[122].mxu1 %vm5223_vm7, %v28474_v23  ;;  %v18783_v23 = vsel %vm12058_vm14, 1.0, %v30926_v19  ;;  %v18785_v44 = vsel %vm12060_vm2, 1.0, %v30926_v19  ;;  %vm12907_vm14 = vcmp.eq.s32.totalorder %v28681_v46, %v30882_v50  ;;  %vm12910_vm2 = vcmp.eq.s32.totalorder %v28690_v40, %v30882_v50 }
 0x60b   : > { %21413 = vmatprep.mubr.msk.f32.mxu1 %vm5223_vm7, %v28497_v25  ;;  %v28801_v34 = vpop.f32.mrb[32].mxu0  ;;  %v18784_v25 = vsel %vm12059_vm15, 1.0, %v30926_v19  ;;  %vm12908_vm15 = vcmp.eq.s32.totalorder %v28655_v52, %v30882_v50 }
 0x60c   : > { %21803 = vmatmul.mubr.msk.f32.gmra.mrb[138].mxu0 %vm2085_vm0, %v18781_v31  ;;  %v28806_v0 = vpop.f32.mrb[33].mxu0  ;;  %v28824_v31 = vpop.permute.xlu0 %12860  ;;  %v18862_v46 = vsel %vm12908_vm15, 1.0, %v30926_v19 }
 0x60d   : > { %21805 = vmatprep.mubr.msk.f32.mxu0 %vm2085_vm0, %v18782_v3  ;;  %vm12917_vm10 = vcmp.eq.s32.totalorder %v28824_v31, %v30882_v50 }
 0x60e   : > { %21414 = vmatmul.mubr.msk.f32.gmra.mrb[124].mxu1 %vm5223_vm7, %v28492_v14  ;;  %v28827_v14 = vpop.permute.xlu1 %12869 }
 0x60f   : > { %21416 = vmatprep.mubr.msk.f32.mxu1 %vm5223_vm7, %v28515_v21  ;;  %v28817_v7 = vpop.f32.mrb[34].mxu0  ;;  %v18786_v21 = vsel %vm12061_vm1, 1.0, %v30926_v19  ;;  %vm12909_vm1 = vcmp.eq.s32.totalorder %v28712_v55, %v30882_v50  ;;  %vm12920_vm13 = vcmp.eq.s32.totalorder %v28827_v14, %v30882_v50 }
 0x610   : > { %21806 = vmatmul.mubr.msk.f32.gmra.mrb[140].mxu0 %vm2085_vm0, %v18783_v23  ;;  %v28822_v57 = vpop.f32.mrb[35].mxu0 }
 0x611   : > { %21808 = vmatprep.mubr.msk.f32.mxu0 %vm2085_vm0, %v18784_v25 }
 0x612   : > { %21417 = vmatmul.mubr.msk.f32.gmra.mrb[126].mxu1 %vm5223_vm7, %v28510_v27  ;;  %v18852_v27 = vsel %vm12898_vm3, 1.0, %v30926_v19  ;;  %v28859_v62 = vpop.permute.xlu1 %12875  ;;  %vm12911_vm3 = vcmp.eq.s32.totalorder %v28739_v36, %v30882_v50  ;;  %v28982_v36 = vld [vmem:[%s30927_s11 + $0x40] sm:$0xff] }
 0x613   : > { %21419 = vmatprep.mubr.msk.f32.mxu1 %vm5223_vm7, %v28533_v32  ;;  %v28837_v3 = vpop.f32.mrb[36].mxu0  ;;  %v28850_v32 = vpop.permute.xlu0 %12866  ;;  %vm12922_vm15 = vcmp.eq.s32.totalorder %v28859_v62, %v30882_v50 }
 0x614   : > { %21809 = vmatmul.mubr.msk.f32.gmra.mrb[142].mxu0 %vm2085_vm0, %v18785_v44  ;;  %v28842_v23 = vpop.f32.mrb[37].mxu0 }
 0x615   : > { %21811 = vmatprep.mubr.msk.f32.mxu0 %vm2085_vm0, %v18786_v21  ;;  %v18854_v21 = vsel %vm12900_vm6, 1.0, %v30926_v19  ;;  %vm12914_vm6 = vcmp.eq.s32.totalorder %v28747_v16, %v30882_v50 }
 0x616   : > { %21420 = vmatmul.mubr.msk.f32.gmra.mrb[128].mxu1 %vm5223_vm7, %v28529_v1  ;;  %v18853_v1 = vsel %vm12899_vm5, 1.0, %v30926_v19  ;;  %vm12913_vm5 = vcmp.eq.s32.totalorder %v28768_v60, %v30882_v50 }
 0x617   : > { %21422 = vmatprep.mubr.msk.f32.mxu1 %vm5223_vm7, %v28553_v61  ;;  %v28857_v25 = vpop.f32.mrb[38].mxu0 }
 0x618   : > { %21812 = vmatmul.mubr.msk.f32.gmra.mrb[144].mxu0 %vm2085_vm0, %v18787_v51  ;;  %v28862_v30 = vpop.f32.mrb[39].mxu0  ;;  %v18855_v51 = vsel %vm12901_vm8, 1.0, %v30926_v19  ;;  %vm12915_vm8 = vcmp.eq.s32.totalorder %v28795_v18, %v30882_v50 }
 0x619   : > { %21872 = vmatprep.mubr.msk.f32.mxu0 %vm2085_vm0, %v18852_v27  ;;  %v28880_v27 = vpop.permute.xlu0 %12872 }
 0x61a   : > { %21423 = vmatmul.mubr.msk.f32.gmra.mrb[130].mxu1 %vm5223_vm7, %v28550_v2  ;;  %v28884_v2 = vpop.permute.xlu1 %12881 }
 0x61b   : > { %21425 = vmatprep.mubr.msk.f32.mxu1 %vm5223_vm7, %v28572_v24  ;;  %v28875_v61 = vpop.f32.mrb[40].mxu0  ;;  %v18856_v24 = vsel %vm12902_vm9, 1.0, %v30926_v19  ;;  %vm12916_vm9 = vcmp.eq.s32.totalorder %v28772_v9, %v30882_v50 }
 0x61c   : > { %21873 = vmatmul.mubr.msk.f32.vlgmr.msra.gmra.mrb[146].mxu0 %vm2085_vm0, %v18853_v1  ;;  %v28878_v44 = vpop.f32.mrb[41].mxu0  ;;  %v18861_v1 = vsel %vm12907_vm14, 1.0, %v30926_v19  ;;  %vm12921_vm14 = vcmp.eq.s32.totalorder %v28880_v27, %v30882_v50  ;;  %v18876_v27 = vsel %vm12922_vm15, 1.0, %v30926_v19 }
 0x61d   : > { %21875 = vmatprep.mubr.msk.f32.mxu0 %vm2085_vm0, %v18854_v21  ;;  %22711 = vmatpush3.bf16.msra.mxu0 %v25482_v45  ;;  %v18863_v21 = vsel %vm12909_vm1, 1.0, %v30926_v19 }
 0x61e   : > { %21426 = vmatmul.mubr.msk.f32.gmra.mrb[132].mxu1 %vm5223_vm7, %v28566_v54  ;;  %22713 = vmatprep.subr.bf16.mxu0 %v25540_v22  ;;  %v18858_v54 = vsel %vm12904_vm11, 1.0, %v30926_v19  ;;  %v28918_v58 = vpop.permute.xlu1 %12887  ;;  %vm12918_vm11 = vcmp.eq.s32.totalorder %v28803_v17, %v30882_v50 }
 0x61f   : > { %21428 = vmatprep.mubr.msk.f32.mxu1 %vm5223_vm7, %v28590_v26  ;;  %v28897_v4 = vpop.f32.mrb[42].mxu0  ;;  %v28910_v26 = vpop.permute.xlu0 %12878  ;;  %v18872_v31 = vsel %vm12918_vm11, 1.0, %v30926_v19 }
 0x620   : > { %21876 = vmatmul.mubr.msk.f32.gmra.mrb[148].mxu0 %vm2085_vm0, %v18855_v51  ;;  %v28900_v45 = vpop.f32.mrb[43].mxu0  ;;  %vm12923_vm1 = vcmp.eq.s32.totalorder %v28910_v26, %v30882_v50 }
 0x621   : > { %21878 = vmatprep.mubr.msk.f32.mxu0 %vm2085_vm0, %v18856_v24  ;;  %22715 = vmatpush3.bf16.msra.mxu0 %v25540_v22  ;;  %v18866_v24 = vsel %vm12912_vm4, 1.0, %v30926_v19  ;;  %vm12926_vm4 = vcmp.eq.s32.totalorder %v28918_v58, %v30882_v50 }
 0x622   : > { %21429 = vmatmul.mubr.msk.f32.gmra.mrb[134].mxu1 %vm5223_vm7, %v28586_v48  ;;  %v18859_v48 = vsel %vm12905_vm12, 1.0, %v30926_v19  ;;  %vm12919_vm12 = vcmp.eq.s32.totalorder %v28850_v32, %v30882_v50  ;;  %v18874_v32 = vsel %vm12920_vm13, 1.0, %v30926_v19 }
 0x623   : > { %21431 = vmatprep.mubr.msk.f32.mxu1 %vm5223_vm7, %v28612_v6  ;;  %v28916_v42 = vpop.f32.mrb[44].mxu0  ;;  %v28939_v28 = vpop.permute.xlu0 %12884 }
 0x624   : > { %21879 = vmatmul.mubr.msk.f32.gmra.mrb[150].mxu0 %vm2085_vm0, %v18857_v29  ;;  %v28921_v22 = vpop.f32.mrb[45].mxu0 }
 0x625   : > { %21881 = vmatprep.mubr.msk.f32.mxu0 %vm2085_vm0, %v18858_v54  ;;  %v18869_v54 = vsel %vm12915_vm8, 1.0, %v30926_v19 }
 0x626   : > { %21432 = vmatmul.mubr.msk.f32.gmra.mrb[136].mxu1 %vm5223_vm7, %v28608_v12  ;;  %v28943_v12 = vpop.permute.xlu1 %12893 }
 0x627   : > { %21434 = vmatprep.mubr.msk.f32.mxu1 %vm5223_vm7, %v28632_v47  ;;  %v28934_v6 = vpop.f32.mrb[46].mxu0 }
 0x628   : > { %21882 = vmatmul.mubr.msk.f32.gmra.mrb[152].mxu0 %vm2085_vm0, %v18859_v48  ;;  %v28937_v56 = vpop.f32.mrb[47].mxu0 }
 0x629   : > { %21884 = vmatprep.mubr.msk.f32.mxu0 %vm2085_vm0, %v18860_v13  ;;  %v31375_v13 = vld [vmem:[#allocation155_spill] sm:$0xff] }
 0x62a   : > { %21435 = vmatmul.mubr.msk.f32.gmra.mrb[138].mxu1 %vm5223_vm7, %v28626_v35  ;;  %v18864_v35 = vsel %vm12910_vm2, 1.0, %v30926_v19  ;;  %v28974_v55 = vpop.permute.xlu1 %13670  ;;  %vm12924_vm2 = vcmp.eq.s32.totalorder %v28884_v2, %v30882_v50 }
 0x62b   : > { %21437 = vmatprep.mubr.msk.f32.mxu1 %vm5223_vm7, %v28648_v38  ;;  %v28954_v47 = vpop.f32.mrb[48].mxu0  ;;  %v28966_v38 = vpop.permute.xlu0 %12890 }
 0x62c   : > { %21885 = vmatmul.mubr.msk.f32.gmra.mrb[154].mxu0 %vm2085_vm0, %v18861_v1  ;;  %v28957_v52 = vpop.f32.mrb[49].mxu0 }
 0x62d   : > { %21887 = vmatprep.mubr.msk.f32.mxu0 %vm2085_vm0, %v18862_v46  ;;  %v18873_v46 = vsel %vm12919_vm12, 1.0, %v30926_v19 }
 0x62e   : > { %21438 = vmatmul.mubr.msk.f32.gmra.mrb[140].mxu1 %vm5223_vm7, %v28644_v59  ;;  %v18865_v59 = vsel %vm12911_vm3, 1.0, %v30926_v19  ;;  %vm12925_vm3 = vcmp.eq.s32.totalorder %v28939_v28, %v30882_v50  ;;  %v18880_v28 = vsel %vm12926_vm4, 1.0, %v30926_v19 }
 0x62f   : > { %21498 = vmatprep.mubr.msk.f32.mxu1 %vm5223_vm7, %v28669_v11  ;;  %v28972_v40 = vpop.f32.mrb[50].mxu0  ;;  %v28999_v29 = vpop.permute.xlu0 %12896 }
 0x630   : > { %21888 = vmatmul.mubr.msk.f32.gmra.mrb[156].mxu0 %vm2085_vm0, %v18863_v21  ;;  %v28977_v51 = vpop.f32.mrb[51].mxu0  ;;  %vm12929_vm8 = vcmp.eq.s32.totalorder %v28999_v29, %v30882_v50 }
 0x631   : > { %21890 = vmatprep.mubr.msk.f32.mxu0 %vm2085_vm0, %v18864_v35  ;;  %v31376_v35 = vld [vmem:[#allocation116_spill] sm:$0xff] }
 0x632   : > { %21499 = vmatmul.mubr.msk.f32.vlgmr.msra.gmra.mrb[110].mxu1 %vm5223_vm7, %v28666_v10  ;;  %v18867_v10 = vsel %vm12913_vm5, 1.0, %v30926_v19  ;;  %vm12927_vm5 = vcmp.eq.s32.totalorder %v28966_v38, %v30882_v50 }
 0x633   : > { %21603 = vmatpush3.msra.mxu1 %v28674_v8  ;;  %21501 = vmatprep.mubr.msk.f32.mxu1 %vm5223_vm7, %v28693_v33  ;;  %v28994_v11 = vpop.f32.mrb[52].mxu0  ;;  %v29004_v8 = vpop.permute.xlu1 %13676  ;;  %v18868_v33 = vsel %vm12914_vm6, 1.0, %v30926_v19  ;;  %vm12928_vm6 = vcmp.eq.s32.totalorder %v28943_v12, %v30882_v50 }
 0x634   : > { %21891 = vmatmul.mubr.msk.f32.gmra.mrb[158].mxu0 %vm2085_vm0, %v18865_v59  ;;  %v28997_v49 = vpop.f32.mrb[53].mxu0  ;;  %21708 = vmatprep.subr.mxu1 %v28982_v36  ;;  %vm13767_vm11 = vcmp.eq.s32.totalorder %v29004_v8, %v30882_v50 }
 0x635   : > { %21893 = vmatprep.mubr.msk.f32.mxu0 %vm2085_vm0, %v18866_v24  ;;  %v18875_v24 = vsel %vm12921_vm14, 1.0, %v30926_v19 }
 0x636   : > { %21502 = vmatmul.mubr.msk.f32.gmra.mrb[112].mxu1 %vm5223_vm7, %v28688_v20  ;;  %v18870_v20 = vsel %vm12916_vm9, 1.0, %v30926_v19  ;;  %vm13765_vm9 = vcmp.eq.s32.totalorder %v28974_v55, %v30882_v50 }
 0x637   : > { %21504 = vmatprep.mubr.msk.f32.mxu1 %vm5223_vm7, %v28710_v41  ;;  %v29015_v16 = vpop.f32.mrb[54].mxu0  ;;  %v29027_v41 = vpop.permute.xlu0 %13673 }
 0x638   : > { %21894 = vmatmul.mubr.msk.f32.gmra.mrb[160].mxu0 %vm2085_vm0, %v18867_v10  ;;  %v29018_v60 = vpop.f32.mrb[55].mxu0  ;;  %v29035_v18 = vpop.permute.xlu1 %13679 }
 0x639   : > { %21896 = vmatprep.mubr.msk.f32.mxu0 %vm2085_vm0, %v18868_v33  ;;  %v18877_v33 = vsel %vm12923_vm1, 1.0, %v30926_v19  ;;  %vm13768_vm12 = vcmp.eq.s32.totalorder %v29035_v18, %v30882_v50 }
 0x63a   : > { %21505 = vmatmul.mubr.msk.f32.gmra.mrb[114].mxu1 %vm5223_vm7, %v28707_v53  ;;  %v18871_v53 = vsel %vm12917_vm10, 1.0, %v30926_v19  ;;  %vm13766_vm10 = vcmp.eq.s32.totalorder %v29027_v41, %v30882_v50  ;;  %v18950_v41 = vsel %vm13767_vm11, 1.0, %v30926_v19 }
 0x63b   : > { %21507 = vmatprep.mubr.msk.f32.mxu1 %vm5223_vm7, %v28730_v5  ;;  %v29033_v9 = vpop.f32.mrb[56].mxu0  ;;  %v29047_v5 = vpop.permute.xlu0 %13682 }
 0x63c   : > { %21897 = vmatmul.mubr.msk.f32.gmra.mrb[162].mxu0 %vm2085_vm0, %v18869_v54  ;;  %v29038_v48 = vpop.f32.mrb[57].mxu0  ;;  %v29060_v21 = vpop.permute.xlu1 %13685  ;;  %v18879_v54 = vsel %vm12925_vm3, 1.0, %v30926_v19  ;;  %vm13769_vm13 = vcmp.eq.s32.totalorder %v29047_v5, %v30882_v50 }
 0x63d   : > { %21899 = vmatprep.mubr.msk.f32.mxu0 %vm2085_vm0, %v18870_v20  ;;  %vm13770_vm14 = vcmp.eq.s32.totalorder %v29060_v21, %v30882_v50 }
 0x63e   : > { %21508 = vmatmul.mubr.msk.f32.gmra.mrb[116].mxu1 %vm5223_vm7, %v31375_v13  ;;  %v18949_v13 = vsel %vm13766_vm10, 1.0, %v30926_v19 }
 0x63f   : > { %21510 = vmatprep.mubr.msk.f32.mxu1 %vm5223_vm7, %v28750_v15  ;;  %v29053_v17 = vpop.f32.mrb[58].mxu0  ;;  %v29076_v59 = vpop.permute.xlu0 %13688 }
 0x640   : > { %21900 = vmatmul.mubr.msk.f32.gmra.mrb[164].mxu0 %vm2085_vm0, %v18871_v53  ;;  %v29056_v1 = vpop.f32.mrb[59].mxu0  ;;  %v29091_v62 = vpop.permute.xlu1 %13691  ;;  %v18881_v53 = vsel %vm12927_vm5, 1.0, %v30926_v19  ;;  %vm13771_vm15 = vcmp.eq.s32.totalorder %v29076_v59, %v30882_v50 }
 0x641   : > { %21902 = vmatprep.mubr.msk.f32.mxu0 %vm2085_vm0, %v18872_v31  ;;  %v18883_v31 = vsel %vm12929_vm8, 1.0, %v30926_v19  ;;  %vm13772_vm1 = vcmp.eq.s32.totalorder %v29091_v62, %v30882_v50 }
 0x642   : > { %21511 = vmatmul.mubr.msk.f32.gmra.mrb[118].mxu1 %vm5223_vm7, %v31376_v35 }
 0x643   : > { %21513 = vmatprep.mubr.msk.f32.mxu1 %vm5223_vm7, %v28766_v37  ;;  %v29071_v15 = vpop.f32.mrb[60].mxu0 }
 0x644   : > { %21903 = vmatmul.mubr.msk.f32.gmra.mrb[166].mxu0 %vm2085_vm0, %v18873_v46  ;;  %v29074_v14 = vpop.f32.mrb[61].mxu0 }
 0x645   : > { %21905 = vmatprep.mubr.msk.f32.mxu0 %vm2085_vm0, %v18874_v32  ;;  %v18951_v32 = vsel %vm13768_vm12, 1.0, %v30926_v19 }
 0x646   : > { %21514 = vmatmul.mubr.msk.f32.gmra.mrb[120].mxu1 %vm5223_vm7, %v28763_v43  ;;  %v18878_v43 = vsel %vm12924_vm2, 1.0, %v30926_v19 }
 0x647   : > { %21516 = vmatprep.mubr.msk.f32.mxu1 %vm5223_vm7, %v28786_v39  ;;  %v29089_v37 = vpop.f32.mrb[62].mxu0  ;;  %v29103_v39 = vpop.permute.xlu0 %13694 }
 0x648   : > { %21906 = vmatmul.mubr.msk.f32.gmra.mrb[168].mxu0 %vm2085_vm0, %v18875_v24  ;;  %v29094_v10 = vpop.f32.mrb[63].mxu0  ;;  %vm13773_vm2 = vcmp.eq.s32.totalorder %v29103_v39, %v30882_v50 }
 0x649   : > { %21908 = vmatprep.mubr.msk.f32.mxu0 %vm2085_vm0, %v18876_v27  ;;  %v18956_v27 = vsel %vm13773_vm2, 1.0, %v30926_v19 }
 0x64a   : > { %21517 = vmatmul.mubr.msk.f32.gmra.mrb[122].mxu1 %vm5223_vm7, %v28783_v63  ;;  %v29116_v63 = vpop.permute.xlu1 %13697 }
 0x64b   : > { %21519 = vmatprep.mubr.msk.f32.mxu1 %vm5223_vm7, %v28806_v0  ;;  %v29109_v2 = vpop.f32.mrb[64].mxu0  ;;  %v29132_v20 = vpop.permute.xlu0 %13700  ;;  %vm13774_vm3 = vcmp.eq.s32.totalorder %v29116_v63, %v30882_v50 }
 0x64c   : > { %21909 = vmatmul.mubr.msk.f32.gmra.mrb[170].mxu0 %vm2085_vm0, %v18877_v33  ;;  %v29112_v26 = vpop.f32.mrb[65].mxu0  ;;  %vm13775_vm4 = vcmp.eq.s32.totalorder %v29132_v20, %v30882_v50 }
 0x64d   : > { %21911 = vmatprep.mubr.msk.f32.mxu0 %vm2085_vm0, %v18878_v43  ;;  %v18958_v43 = vsel %vm13775_vm4, 1.0, %v30926_v19 }
 0x64e   : > { %21520 = vmatmul.mubr.msk.f32.gmra.mrb[124].mxu1 %vm5223_vm7, %v28801_v34  ;;  %v18882_v34 = vsel %vm12928_vm6, 1.0, %v30926_v19  ;;  %v29147_v12 = vpop.permute.xlu1 %13703 }
 0x64f   : > { %21522 = vmatprep.mubr.msk.f32.mxu1 %vm5223_vm7, %v28822_v57  ;;  %v29127_v0 = vpop.f32.mrb[66].mxu0  ;;  %vm13776_vm5 = vcmp.eq.s32.totalorder %v29147_v12, %v30882_v50 }
 0x650   : > { %21912 = vmatmul.mubr.msk.f32.gmra.mrb[172].mxu0 %vm2085_vm0, %v18879_v54  ;;  %v29130_v58 = vpop.f32.mrb[67].mxu0 }
 0x651   : > { %21914 = vmatprep.mubr.msk.f32.mxu0 %vm2085_vm0, %v18880_v28 }
 0x652   : > { %21523 = vmatmul.mubr.msk.f32.gmra.mrb[126].mxu1 %vm5223_vm7, %v28817_v7  ;;  %v18948_v7 = vsel %vm13765_vm9, 1.0, %v30926_v19 }
 0x653   : > { %21525 = vmatprep.mubr.msk.f32.mxu1 %vm5223_vm7, %v28842_v23  ;;  %v29145_v57 = vpop.f32.mrb[68].mxu0  ;;  %v29159_v23 = vpop.permute.xlu0 %13706 }
 0x654   : > { %21915 = vmatmul.mubr.msk.f32.gmra.mrb[174].mxu0 %vm2085_vm0, %v18881_v53  ;;  %v29150_v38 = vpop.f32.mrb[69].mxu0  ;;  %vm13777_vm6 = vcmp.eq.s32.totalorder %v29159_v23, %v30882_v50 }
 0x655   : > { %21917 = vmatprep.mubr.msk.f32.mxu0 %vm2085_vm0, %v18882_v34  ;;  %v29275_v34 = vld [vmem:[%s30927_s11 + $0x48] sm:$0xff] }
 0x656   : > { %21526 = vmatmul.mubr.msk.f32.gmra.mrb[128].mxu1 %vm5223_vm7, %v28837_v3  ;;  %v29172_v3 = vpop.permute.xlu1 %13709 }
 0x657   : > { %21528 = vmatprep.mubr.msk.f32.mxu1 %vm5223_vm7, %v28862_v30  ;;  %v29165_v55 = vpop.f32.mrb[70].mxu0  ;;  %v29188_v46 = vpop.permute.xlu0 %13712  ;;  %vm13778_vm8 = vcmp.eq.s32.totalorder %v29172_v3, %v30882_v50 }
 0x658   : > { %21918 = vmatmul.mubr.msk.f32.gmra.mrb[176].mxu0 %vm2085_vm0, %v18883_v31  ;;  %v29168_v29 = vpop.f32.mrb[71].mxu0  ;;  %vm13779_vm9 = vcmp.eq.s32.totalorder %v29188_v46, %v30882_v50 }
 0x659   : > { %21978 = vmatprep.mubr.msk.f32.mxu0 %vm2085_vm0, %v18948_v7 }
 0x65a   : > { %21529 = vmatmul.mubr.msk.f32.gmra.mrb[130].mxu1 %vm5223_vm7, %v28857_v25  ;;  %v18952_v25 = vsel %vm13769_vm13, 1.0, %v30926_v19  ;;  %v29203_v18 = vpop.permute.xlu1 %13715 }
 0x65b   : > { %21531 = vmatprep.mubr.msk.f32.mxu1 %vm5223_vm7, %v28878_v44  ;;  %v29181_v30 = vpop.f32.mrb[72].mxu0  ;;  %v13719_v21 = vpop.permute.xlu0 %13718  ;;  %vm13780_vm10 = vcmp.eq.s32.totalorder %v29203_v18, %v30882_v50 }
 0x65c   : > { %21979 = vmatmul.mubr.msk.f32.vlgmr.msra.gmra.mrb[178].mxu0 %vm2085_vm0, %v18949_v13  ;;  %v29186_v8 = vpop.f32.mrb[73].mxu0  ;;  %vm13781_vm11 = vcmp.eq.s32.totalorder %v13719_v21, %v30882_v50 }
 0x65d   : > { %21981 = vmatprep.mubr.msk.f32.mxu0 %vm2085_vm0, %v18950_v41 }
 0x65e   : > { %21532 = vmatmul.mubr.msk.f32.gmra.mrb[132].mxu1 %vm5223_vm7, %v28875_v61  ;;  %v18953_v61 = vsel %vm13770_vm14, 1.0, %v30926_v19  ;;  %v13722_v24 = vpop.permute.xlu1 %13721 }
 0x65f   : > { %21534 = vmatprep.mubr.msk.f32.mxu1 %vm5223_vm7, %v28900_v45  ;;  %v29199_v44 = vpop.f32.mrb[74].mxu0  ;;  %v18954_v45 = vsel %vm13771_vm15, 1.0, %v30926_v19  ;;  %v13725_v33 = vpop.permute.xlu0 %13724  ;;  %vm13782_vm12 = vcmp.eq.s32.totalorder %v13722_v24, %v30882_v50 }
 0x660   : > { %v29205_v5 = vpop.f32.mrb[75].mxu0  ;;  %21982 = vmatmul.mubr.msk.f32.gmra.mrb[180].mxu0 %vm2085_vm0, %v18951_v32  ;;  %vm13783_vm13 = vcmp.eq.s32.totalorder %v13725_v33, %v30882_v50  ;;  %v18965_v3 = vsel %vm13782_vm12, 1.0, %v30926_v19 }
 0x661   : > { %21984 = vmatprep.mubr.msk.f32.mxu0 %vm2085_vm0, %v18952_v25 }
 0x662   : > { %21535 = vmatmul.mubr.msk.f32.gmra.mrb[134].mxu1 %vm5223_vm7, %v28897_v4  ;;  %v18955_v4 = vsel %vm13772_vm1, 1.0, %v30926_v19  ;;  %v13728_v39 = vpop.permute.xlu1 %13727 }
 0x663   : > { %21537 = vmatprep.mubr.msk.f32.mxu1 %vm5223_vm7, %v28921_v22  ;;  %v29217_v35 = vpop.f32.mrb[76].mxu0  ;;  %v13731_v63 = vpop.permute.xlu0 %13730  ;;  %vm13784_vm14 = vcmp.eq.s32.totalorder %v13728_v39, %v30882_v50 }
 0x664   : > { %v29221_v59 = vpop.f32.mrb[77].mxu0  ;;  %21985 = vmatmul.mubr.msk.f32.gmra.mrb[182].mxu0 %vm2085_vm0, %v18953_v61  ;;  %vm13785_vm15 = vcmp.eq.s32.totalorder %v13731_v63, %v30882_v50  ;;  %v18967_v32 = vsel %vm13784_vm14, 1.0, %v30926_v19 }
 0x665   : > { %21987 = vmatprep.mubr.msk.f32.mxu0 %vm2085_vm0, %v18954_v45  ;;  %v18968_v25 = vsel %vm13785_vm15, 1.0, %v30926_v19 }
 0x666   : > { %21538 = vmatmul.mubr.msk.f32.gmra.mrb[136].mxu1 %vm5223_vm7, %v28916_v42  ;;  %v18957_v42 = vsel %vm13774_vm3, 1.0, %v30926_v19  ;;  %v13734_v53 = vpop.permute.xlu1 %13733 }
 0x667   : > { %21540 = vmatprep.mubr.msk.f32.mxu1 %vm5223_vm7, %v28937_v56  ;;  %v29233_v22 = vpop.f32.mrb[78].mxu0  ;;  %v13737_v31 = vpop.permute.xlu0 %13736  ;;  %vm13786_vm1 = vcmp.eq.s32.totalorder %v13734_v53, %v30882_v50 }
 0x668   : > { %v29237_v62 = vpop.f32.mrb[79].mxu0  ;;  %21988 = vmatmul.mubr.msk.f32.gmra.mrb[184].mxu0 %vm2085_vm0, %v18955_v4  ;;  %vm13787_vm2 = vcmp.eq.s32.totalorder %v13737_v31, %v30882_v50  ;;  %v18969_v45 = vsel %vm13786_vm1, 1.0, %v30926_v19 }
 0x669   : > { %21990 = vmatprep.mubr.msk.f32.mxu0 %vm2085_vm0, %v18956_v27 }
 0x66a   : > { %21541 = vmatmul.mubr.msk.f32.gmra.mrb[138].mxu1 %vm5223_vm7, %v28934_v6  ;;  %v18959_v6 = vsel %vm13776_vm5, 1.0, %v30926_v19 }
 0x66b   : > { %21543 = vmatprep.mubr.msk.f32.mxu1 %vm5223_vm7, %v28957_v52  ;;  %v29249_v56 = vpop.f32.mrb[80].mxu0  ;;  %v18960_v52 = vsel %vm13777_vm6, 1.0, %v30926_v19 }
 0x66c   : > { %v29253_v54 = vpop.f32.mrb[81].mxu0  ;;  %21991 = vmatmul.mubr.msk.f32.gmra.mrb[186].mxu0 %vm2085_vm0, %v18957_v42 }
 0x66d   : > { %21993 = vmatprep.mubr.msk.f32.mxu0 %vm2085_vm0, %v18958_v43 }
 0x66e   : > { %21544 = vmatmul.mubr.msk.f32.gmra.mrb[140].mxu1 %vm5223_vm7, %v28954_v47  ;;  %v18961_v47 = vsel %vm13778_vm8, 1.0, %v30926_v19 }
 0x66f   : > { %21604 = vmatprep.mubr.msk.f32.mxu1 %vm5223_vm7, %v28977_v51  ;;  %v29267_v28 = vpop.f32.mrb[82].mxu0  ;;  %v18962_v51 = vsel %vm13779_vm9, 1.0, %v30926_v19 }
 0x670   : > { %21994 = vmatmul.mubr.msk.f32.gmra.mrb[188].mxu0 %vm2085_vm0, %v18959_v6  ;;  %v29270_v20 = vpop.f32.mrb[83].mxu0 }
 0x671   : > { %21996 = vmatprep.mubr.msk.f32.mxu0 %vm2085_vm0, %v18960_v52 }
 0x672   : > { %21605 = vmatmul.mubr.msk.f32.vlgmr.msra.gmra.mrb[110].mxu1 %vm5223_vm7, %v28972_v40  ;;  %v18963_v40 = vsel %vm13780_vm10, 1.0, %v30926_v19 }
 0x673   : > { %21709 = vmatpush3.msra.mxu1 %v28982_v36  ;;  %21607 = vmatprep.mubr.msk.f32.mxu1 %vm5223_vm7, %v28997_v49  ;;  %v29286_v12 = vpop.f32.mrb[84].mxu0  ;;  %v18964_v36 = vsel %vm13781_vm11, 1.0, %v30926_v19  ;;  %v13740_v49 = vpop.permute.xlu1 %13739 }
 0x674   : > { %21997 = vmatmul.mubr.msk.f32.gmra.mrb[190].mxu0 %vm2085_vm0, %v18961_v47  ;;  %v29289_v7 = vpop.f32.mrb[85].mxu0  ;;  %21814 = vmatprep.subr.mxu1 %v29275_v34  ;;  %vm13788_vm3 = vcmp.eq.s32.totalorder %v13740_v49, %v30882_v50 }
 0x675   : > { %21999 = vmatprep.mubr.msk.f32.mxu0 %vm2085_vm0, %v18962_v51  ;;  %v18971_v24 = vsel %vm13788_vm3, 1.0, %v30926_v19 }
 0x676   : > { %21608 = vmatmul.mubr.msk.f32.gmra.mrb[112].mxu1 %vm5223_vm7, %v28994_v11  ;;  %v18966_v11 = vsel %vm13783_vm13, 1.0, %v30926_v19 }
 0x677   : > { %21610 = vmatprep.mubr.msk.f32.mxu1 %vm5223_vm7, %v29018_v60  ;;  %v29301_v23 = vpop.f32.mrb[86].mxu0  ;;  %v13743_v60 = vpop.permute.xlu0 %13742 }
 0x678   : > { %22000 = vmatmul.mubr.msk.f32.gmra.mrb[192].mxu0 %vm2085_vm0, %v18963_v40  ;;  %v29304_v13 = vpop.f32.mrb[87].mxu0  ;;  %vm13789_vm4 = vcmp.eq.s32.totalorder %v13743_v60, %v30882_v50  ;;  %v29463_v40 = vld [vmem:[%s30927_s11 + $0x50] sm:$0xff] }
 0x679   : > { %22002 = vmatprep.mubr.msk.f32.mxu0 %vm2085_vm0, %v18964_v36 }
 0x67a   : > { %21611 = vmatmul.mubr.msk.f32.gmra.mrb[114].mxu1 %vm5223_vm7, %v29015_v16  ;;  %v13746_v16 = vpop.permute.xlu1 %13745 }
 0x67b   : > { %21613 = vmatprep.mubr.msk.f32.mxu1 %vm5223_vm7, %v29038_v48  ;;  %v29315_v41 = vpop.f32.mrb[88].mxu0  ;;  %v13749_v18 = vpop.permute.xlu0 %13748  ;;  %vm13790_vm5 = vcmp.eq.s32.totalorder %v13746_v16, %v30882_v50 }
 0x67c   : > { %22003 = vmatmul.mubr.msk.f32.gmra.mrb[194].mxu0 %vm2085_vm0, %v18965_v3  ;;  %v29318_v46 = vpop.f32.mrb[89].mxu0  ;;  %vm13791_vm6 = vcmp.eq.s32.totalorder %v13749_v18, %v30882_v50  ;;  %v18973_v42 = vsel %vm13790_vm5, 1.0, %v30926_v19 }
 0x67d   : > { %22005 = vmatprep.mubr.msk.f32.mxu0 %vm2085_vm0, %v18966_v11  ;;  %v18974_v43 = vsel %vm13791_vm6, 1.0, %v30926_v19 }
 0x67e   : > { %21614 = vmatmul.mubr.msk.f32.gmra.mrb[116].mxu1 %vm5223_vm7, %v29033_v9  ;;  %v18970_v9 = vsel %vm13787_vm2, 1.0, %v30926_v19 }
 0x67f   : > { %21616 = vmatprep.mubr.msk.f32.mxu1 %vm5223_vm7, %v29056_v1  ;;  %v29329_v48 = vpop.f32.mrb[90].mxu0  ;;  %v13752_v1 = vpop.permute.xlu1 %13751 }
 0x680   : > { %22006 = vmatmul.mubr.msk.f32.gmra.mrb[196].mxu0 %vm2085_vm0, %v18967_v32  ;;  %v29332_v61 = vpop.f32.mrb[91].mxu0  ;;  %vm13792_vm8 = vcmp.eq.s32.totalorder %v13752_v1, %v30882_v50 }
 0x681   : > { %22008 = vmatprep.mubr.msk.f32.mxu0 %vm2085_vm0, %v18968_v25  ;;  %v18975_v52 = vsel %vm13792_vm8, 1.0, %v30926_v19 }
 0x682   : > { %21617 = vmatmul.mubr.msk.f32.gmra.mrb[118].mxu1 %vm5223_vm7, %v29053_v17  ;;  %v18972_v17 = vsel %vm13789_vm4, 1.0, %v30926_v19 }
 0x683   : > { %21619 = vmatprep.mubr.msk.f32.mxu1 %vm5223_vm7, %v29074_v14  ;;  %v29343_v21 = vpop.f32.mrb[92].mxu0  ;;  %v13755_v14 = vpop.permute.xlu0 %13754 }
 0x684   : > { %22009 = vmatmul.mubr.msk.f32.gmra.mrb[198].mxu0 %vm2085_vm0, %v18969_v45  ;;  %v29346_v4 = vpop.f32.mrb[93].mxu0  ;;  %vm13793_vm9 = vcmp.eq.s32.totalorder %v13755_v14, %v30882_v50 }
 0x685   : > { %22011 = vmatprep.mubr.msk.f32.mxu0 %vm2085_vm0, %v18970_v9 }
 0x686   : > { %21620 = vmatmul.mubr.msk.f32.gmra.mrb[120].mxu1 %vm5223_vm7, %v29071_v15  ;;  %v13758_v15 = vpop.permute.xlu1 %13757 }
 0x687   : > { %21622 = vmatprep.mubr.msk.f32.mxu1 %vm5223_vm7, %v29094_v10  ;;  %v29357_v27 = vpop.f32.mrb[94].mxu0  ;;  %v13761_v39 = vpop.permute.xlu0 %13760  ;;  %vm13794_vm10 = vcmp.eq.s32.totalorder %v13758_v15, %v30882_v50 }
 0x688   : > { %22012 = vmatmul.mubr.msk.f32.gmra.mrb[200].mxu0 %vm2085_vm0, %v18971_v24  ;;  %v29360_v33 = vpop.f32.mrb[95].mxu0  ;;  %vm13795_vm11 = vcmp.eq.s32.totalorder %v13761_v39, %v30882_v50  ;;  %v18977_v53 = vsel %vm13794_vm10, 1.0, %v30926_v19 }
 0x689   : > { %22014 = vmatprep.mubr.msk.f32.mxu0 %vm2085_vm0, %v18972_v17 }
 0x68a   : > { %21623 = vmatmul.mubr.msk.f32.gmra.mrb[122].mxu1 %vm5223_vm7, %v29089_v37  ;;  %v18976_v37 = vsel %vm13793_vm9, 1.0, %v30926_v19 }
 0x68b   : > { %21625 = vmatprep.mubr.msk.f32.mxu1 %vm5223_vm7, %v29112_v26  ;;  %v29371_v10 = vpop.f32.mrb[96].mxu0  ;;  %v13764_v26 = vpop.permute.xlu1 %13763 }
 0x68c   : > { %22015 = vmatmul.mubr.msk.f32.gmra.mrb[202].mxu0 %vm2085_vm0, %v18973_v42  ;;  %v29374_v6 = vpop.f32.mrb[97].mxu0  ;;  %vm13796_vm12 = vcmp.eq.s32.totalorder %v13764_v26, %v30882_v50 }
 0x68d   : > { %22017 = vmatprep.mubr.msk.f32.mxu0 %vm2085_vm0, %v18974_v43  ;;  %v18979_v31 = vsel %vm13796_vm12, 1.0, %v30926_v19 }
 0x68e   : > { %21626 = vmatmul.mubr.msk.f32.gmra.mrb[124].mxu1 %vm5223_vm7, %v29109_v2  ;;  %v18978_v2 = vsel %vm13795_vm11, 1.0, %v30926_v19 }
 0x68f   : > { %21628 = vmatprep.mubr.msk.f32.mxu1 %vm5223_vm7, %v29130_v58  ;;  %v29385_v63 = vpop.f32.mrb[98].mxu0 }
 0x690   : > { %22018 = vmatmul.mubr.msk.f32.gmra.mrb[204].mxu0 %vm2085_vm0, %v18975_v52  ;;  %v29388_v47 = vpop.f32.mrb[99].mxu0 }
 0x691   : > { %22020 = vmatprep.mubr.msk.f32.mxu0 %vm2085_vm0, %v18976_v37 }
 0x692   : > { %21629 = vmatmul.mubr.msk.f32.gmra.mrb[126].mxu1 %vm5223_vm7, %v29127_v0 }
 0x693   : > { %21631 = vmatprep.mubr.msk.f32.mxu1 %vm5223_vm7, %v29150_v38  ;;  %v29398_v58 = vpop.f32.mrb[100].mxu0 }
 0x694   : > { %22021 = vmatmul.mubr.msk.f32.gmra.mrb[206].mxu0 %vm2085_vm0, %v18977_v53  ;;  %v29401_v51 = vpop.f32.mrb[101].mxu0 }
 0x695   : > { %22023 = vmatprep.mubr.msk.f32.mxu0 %vm2085_vm0, %v18978_v2 }
 0x696   : > { %21632 = vmatmul.mubr.msk.f32.gmra.mrb[128].mxu1 %vm5223_vm7, %v29145_v57 }
 0x697   : > { %21634 = vmatprep.mubr.msk.f32.mxu1 %vm5223_vm7, %v29168_v29  ;;  %v29409_v50 = vpop.f32.mrb[102].mxu0 }
 0x698   : > { %22024 = vmatmul.mubr.msk.f32.gmra.mrb[208].mxu0 %vm2085_vm0, %v18979_v31  ;;  %v29412_v0 = vpop.f32.mrb[103].mxu0 }
 0x69a   : > { %21635 = vmatmul.mubr.msk.f32.gmra.mrb[130].mxu1 %vm5223_vm7, %v29165_v55 }
 0x69b   : > { %21637 = vmatprep.mubr.msk.f32.mxu1 %vm5223_vm7, %v29186_v8  ;;  %v29418_v19 = vpop.f32.mrb[104].mxu0 }
 0x69c   : > { %v29420_v38 = vpop.f32.mrb[105].mxu0 }
 0x69e   : > { %21638 = vmatmul.mubr.msk.f32.gmra.mrb[132].mxu1 %vm5223_vm7, %v29181_v30 }
 0x69f   : > { %21640 = vmatprep.mubr.msk.f32.mxu1 %vm5223_vm7, %v29205_v5  ;;  %v29426_v57 = vpop.f32.mrb[106].mxu0 }
 0x6a0   : > { %v29428_v29 = vpop.f32.mrb[107].mxu0 }
 0x6a2   : > { %21641 = vmatmul.mubr.msk.f32.gmra.mrb[134].mxu1 %vm5223_vm7, %v29199_v44 }
 0x6a3   : > { %21643 = vmatprep.mubr.msk.f32.mxu1 %vm5223_vm7, %v29221_v59  ;;  %v29434_v55 = vpop.f32.mrb[108].mxu0 }
 0x6a4   : > { %v29436_v8 = vpop.f32.mrb[109].mxu0 }
 0x6a6   : > { %21644 = vmatmul.mubr.msk.f32.gmra.mrb[136].mxu1 %vm5223_vm7, %v29217_v35 }
 0x6a7   : > { %21646 = vmatprep.mubr.msk.f32.mxu1 %vm5223_vm7, %v29237_v62  ;;  %v29442_v30 = vpop.f32.mrb[110].mxu0 }
 0x6a8   : > { %v29444_v5 = vpop.f32.mrb[111].mxu0 }
 0x6aa   : > { %21647 = vmatmul.mubr.msk.f32.gmra.mrb[138].mxu1 %vm5223_vm7, %v29233_v22 }
 0x6ab   : > { %21649 = vmatprep.mubr.msk.f32.mxu1 %vm5223_vm7, %v29253_v54  ;;  %v29450_v44 = vpop.f32.mrb[112].mxu0 }
 0x6ac   : > { %v29452_v59 = vpop.f32.mrb[113].mxu0 }
 0x6ae   : > { %21650 = vmatmul.mubr.msk.f32.gmra.mrb[140].mxu1 %vm5223_vm7, %v29249_v56 }
 0x6af   : > { %21710 = vmatprep.mubr.msk.f32.mxu1 %vm5223_vm7, %v29270_v20  ;;  %v29458_v35 = vpop.f32.mrb[114].mxu0 }
 0x6b0   : > { %v29460_v62 = vpop.f32.mrb[115].mxu0 }
 0x6b2   : > { %21711 = vmatmul.mubr.msk.f32.vlgmr.msra.gmra.mrb[110].mxu1 %vm5223_vm7, %v29267_v28 }
 0x6b3   : > { %21815 = vmatpush3.msra.mxu1 %v29275_v34  ;;  %21713 = vmatprep.mubr.msk.f32.mxu1 %vm5223_vm7, %v29289_v7  ;;  %v29470_v22 = vpop.f32.mrb[116].mxu0 }
 0x6b4   : > { %v29472_v56 = vpop.f32.mrb[117].mxu0  ;;  %21920 = vmatprep.subr.mxu1 %v29463_v40 }
 0x6b6   : > { %21714 = vmatmul.mubr.msk.f32.gmra.mrb[112].mxu1 %vm5223_vm7, %v29286_v12 }
 0x6b7   : > { %21716 = vmatprep.mubr.msk.f32.mxu1 %vm5223_vm7, %v29304_v13  ;;  %v29479_v54 = vpop.f32.mrb[118].mxu0 }
 0x6b8   : > { %v29481_v28 = vpop.f32.mrb[119].mxu0 }
 0x6ba   : > { %21717 = vmatmul.mubr.msk.f32.gmra.mrb[114].mxu1 %vm5223_vm7, %v29301_v23 }
 0x6bb   : > { %21719 = vmatprep.mubr.msk.f32.mxu1 %vm5223_vm7, %v29318_v46  ;;  %v29487_v20 = vpop.f32.mrb[120].mxu0 }
 0x6bc   : > { %v29489_v34 = vpop.f32.mrb[121].mxu0 }
 0x6be   : > { %21720 = vmatmul.mubr.msk.f32.gmra.mrb[116].mxu1 %vm5223_vm7, %v29315_v41 }
 0x6bf   : > { %21722 = vmatprep.mubr.msk.f32.mxu1 %vm5223_vm7, %v29332_v61  ;;  %v29495_v12 = vpop.f32.mrb[122].mxu0 }
 0x6c0   : > { %v29497_v7 = vpop.f32.mrb[123].mxu0 }
 0x6c2   : > { %21723 = vmatmul.mubr.msk.f32.gmra.mrb[118].mxu1 %vm5223_vm7, %v29329_v48 }
 0x6c3   : > { %21725 = vmatprep.mubr.msk.f32.mxu1 %vm5223_vm7, %v29346_v4  ;;  %v29503_v36 = vpop.f32.mrb[124].mxu0 }
 0x6c4   : > { %v29505_v49 = vpop.f32.mrb[125].mxu0 }
 0x6c6   : > { %21726 = vmatmul.mubr.msk.f32.gmra.mrb[120].mxu1 %vm5223_vm7, %v29343_v21 }
 0x6c7   : > { %21728 = vmatprep.mubr.msk.f32.mxu1 %vm5223_vm7, %v29360_v33  ;;  %v29511_v23 = vpop.f32.mrb[126].mxu0  ;;  %v29596_v33 = vld [vmem:[%s30927_s11 + $0x58] sm:$0xff] }
 0x6c8   : > { %v29513_v13 = vpop.f32.mrb[127].mxu0 }
 0x6ca   : > { %21729 = vmatmul.mubr.msk.f32.gmra.mrb[122].mxu1 %vm5223_vm7, %v29357_v27 }
 0x6cb   : > { %21731 = vmatprep.mubr.msk.f32.mxu1 %vm5223_vm7, %v29374_v6  ;;  %v29519_v3 = vpop.f32.mrb[128].mxu0 }
 0x6cc   : > { %v29521_v11 = vpop.f32.mrb[129].mxu0 }
 0x6ce   : > { %21732 = vmatmul.mubr.msk.f32.gmra.mrb[124].mxu1 %vm5223_vm7, %v29371_v10 }
 0x6cf   : > { %21734 = vmatprep.mubr.msk.f32.mxu1 %vm5223_vm7, %v29388_v47  ;;  %v29527_v60 = vpop.f32.mrb[130].mxu0 }
 0x6d0   : > { %v29529_v41 = vpop.f32.mrb[131].mxu0 }
 0x6d2   : > { %21735 = vmatmul.mubr.msk.f32.gmra.mrb[126].mxu1 %vm5223_vm7, %v29385_v63 }
 0x6d3   : > { %21737 = vmatprep.mubr.msk.f32.mxu1 %vm5223_vm7, %v29401_v51  ;;  %v29535_v46 = vpop.f32.mrb[132].mxu0 }
 0x6d4   : > { %v29537_v32 = vpop.f32.mrb[133].mxu0 }
 0x6d6   : > { %21738 = vmatmul.mubr.msk.f32.gmra.mrb[128].mxu1 %vm5223_vm7, %v29398_v58 }
 0x6d7   : > { %21740 = vmatprep.mubr.msk.f32.mxu1 %vm5223_vm7, %v29412_v0  ;;  %v29543_v16 = vpop.f32.mrb[134].mxu0 }
 0x6d8   : > { %v29545_v25 = vpop.f32.mrb[135].mxu0 }
 0x6da   : > { %21741 = vmatmul.mubr.msk.f32.gmra.mrb[130].mxu1 %vm5223_vm7, %v29409_v50 }
 0x6db   : > { %21743 = vmatprep.mubr.msk.f32.mxu1 %vm5223_vm7, %v29420_v38  ;;  %v29551_v48 = vpop.f32.mrb[136].mxu0 }
 0x6dc   : > { %v29553_v18 = vpop.f32.mrb[137].mxu0 }
 0x6de   : > { %21744 = vmatmul.mubr.msk.f32.gmra.mrb[132].mxu1 %vm5223_vm7, %v29418_v19 }
 0x6df   : > { %21746 = vmatprep.mubr.msk.f32.mxu1 %vm5223_vm7, %v29428_v29  ;;  %v29559_v61 = vpop.f32.mrb[138].mxu0 }
 0x6e0   : > { %v29561_v45 = vpop.f32.mrb[139].mxu0 }
 0x6e2   : > { %21747 = vmatmul.mubr.msk.f32.gmra.mrb[134].mxu1 %vm5223_vm7, %v29426_v57 }
 0x6e3   : > { %21749 = vmatprep.mubr.msk.f32.mxu1 %vm5223_vm7, %v29436_v8  ;;  %v29567_v9 = vpop.f32.mrb[140].mxu0 }
 0x6e4   : > { %v29569_v1 = vpop.f32.mrb[141].mxu0 }
 0x6e6   : > { %21750 = vmatmul.mubr.msk.f32.gmra.mrb[136].mxu1 %vm5223_vm7, %v29434_v55 }
 0x6e7   : > { %21752 = vmatprep.mubr.msk.f32.mxu1 %vm5223_vm7, %v29444_v5  ;;  %v29575_v21 = vpop.f32.mrb[142].mxu0 }
 0x6e8   : > { %v29577_v4 = vpop.f32.mrb[143].mxu0 }
 0x6ea   : > { %21753 = vmatmul.mubr.msk.f32.gmra.mrb[138].mxu1 %vm5223_vm7, %v29442_v30 }
 0x6eb   : > { %21755 = vmatprep.mubr.msk.f32.mxu1 %vm5223_vm7, %v29452_v59  ;;  %v29583_v24 = vpop.f32.mrb[144].mxu0 }
 0x6ec   : > { %v29585_v17 = vpop.f32.mrb[145].mxu0 }
 0x6ee   : > { %21756 = vmatmul.mubr.msk.f32.gmra.mrb[140].mxu1 %vm5223_vm7, %v29450_v44 }
 0x6ef   : > { %21816 = vmatprep.mubr.msk.f32.mxu1 %vm5223_vm7, %v29460_v62  ;;  %v29591_v14 = vpop.f32.mrb[146].mxu0 }
 0x6f0   : > { %v29593_v27 = vpop.f32.mrb[147].mxu0 }
 0x6f2   : > { %21817 = vmatmul.mubr.msk.f32.vlgmr.msra.gmra.mrb[110].mxu1 %vm5223_vm7, %v29458_v35 }
 0x6f3   : > { %21921 = vmatpush3.msra.mxu1 %v29463_v40  ;;  %21819 = vmatprep.mubr.msk.f32.mxu1 %vm5223_vm7, %v29472_v56  ;;  %v29603_v42 = vpop.f32.mrb[148].mxu0  ;;  %v15307_v40 = vld [vmem:[%s31377_s28 + $0x20] sm:$0xff] }
 0x6f4   : > { %v29605_v15 = vpop.f32.mrb[149].mxu0  ;;  %22026 = vmatprep.subr.mxu1 %v29596_v33 }
 0x6f6   : > { %21820 = vmatmul.mubr.msk.f32.gmra.mrb[112].mxu1 %vm5223_vm7, %v29470_v22  ;;  %v15308_v22 = vld [vmem:[%s31377_s28 + $0x28] sm:$0xff] }
 0x6f7   : > { %21822 = vmatprep.mubr.msk.f32.mxu1 %vm5223_vm7, %v29481_v28  ;;  %v29612_v43 = vpop.f32.mrb[150].mxu0  ;;  %v29730_v28 = vpack.c.bf16 %v15308_v22, %v15307_v40  ;;  %v31385_v40 = vld [vmem:[#allocation57_spill] sm:$0xff] }
 0x6f8   : > { %v29614_v10 = vpop.f32.mrb[151].mxu0 }
 0x6fa   : > { %21823 = vmatmul.mubr.msk.f32.gmra.mrb[114].mxu1 %vm5223_vm7, %v29479_v54 }
 0x6fb   : > { %21825 = vmatprep.mubr.msk.f32.mxu1 %vm5223_vm7, %v29489_v34  ;;  %v29620_v39 = vpop.f32.mrb[152].mxu0 }
 0x6fc   : > { %v29622_v6 = vpop.f32.mrb[153].mxu0 }
 0x6fe   : > { %21826 = vmatmul.mubr.msk.f32.gmra.mrb[116].mxu1 %vm5223_vm7, %v29487_v20 }
 0x6ff   : > { %21828 = vmatprep.mubr.msk.f32.mxu1 %vm5223_vm7, %v29497_v7  ;;  %v29628_v52 = vpop.f32.mrb[154].mxu0 }
 0x700   : > { %v29630_v37 = vpop.f32.mrb[155].mxu0 }
 0x702   : > { %21829 = vmatmul.mubr.msk.f32.gmra.mrb[118].mxu1 %vm5223_vm7, %v29495_v12 }
 0x703   : > { %21831 = vmatprep.mubr.msk.f32.mxu1 %vm5223_vm7, %v29505_v49  ;;  %v29636_v26 = vpop.f32.mrb[156].mxu0 }
 0x704   : > { %v29638_v63 = vpop.f32.mrb[157].mxu0 }
 0x706   : > { %21832 = vmatmul.mubr.msk.f32.gmra.mrb[120].mxu1 %vm5223_vm7, %v29503_v36 }
 0x707   : > { %21834 = vmatprep.mubr.msk.f32.mxu1 %vm5223_vm7, %v29513_v13  ;;  %v29644_v47 = vpop.f32.mrb[158].mxu0 }
 0x708   : > { %v29646_v53 = vpop.f32.mrb[159].mxu0 }
 0x70a   : > { %21835 = vmatmul.mubr.msk.f32.gmra.mrb[122].mxu1 %vm5223_vm7, %v29511_v23 }
 0x70b   : > { %21837 = vmatprep.mubr.msk.f32.mxu1 %vm5223_vm7, %v29521_v11  ;;  %v29652_v2 = vpop.f32.mrb[160].mxu0 }
 0x70c   : > { %v29654_v58 = vpop.f32.mrb[161].mxu0 }
 0x70e   : > { %21838 = vmatmul.mubr.msk.f32.gmra.mrb[124].mxu1 %vm5223_vm7, %v29519_v3 }
 0x70f   : > { %21840 = vmatprep.mubr.msk.f32.mxu1 %vm5223_vm7, %v29529_v41  ;;  %v29660_v51 = vpop.f32.mrb[162].mxu0 }
 0x710   : > { %v29662_v31 = vpop.f32.mrb[163].mxu0 }
 0x712   : > { %21841 = vmatmul.mubr.msk.f32.gmra.mrb[126].mxu1 %vm5223_vm7, %v29527_v60 }
 0x713   : > { %21843 = vmatprep.mubr.msk.f32.mxu1 %vm5223_vm7, %v29537_v32  ;;  %v29668_v50 = vpop.f32.mrb[164].mxu0 }
 0x714   : > { %v29670_v0 = vpop.f32.mrb[165].mxu0 }
 0x716   : > { %21844 = vmatmul.mubr.msk.f32.gmra.mrb[128].mxu1 %vm5223_vm7, %v29535_v46 }
 0x717   : > { %21846 = vmatprep.mubr.msk.f32.mxu1 %vm5223_vm7, %v29545_v25  ;;  %v29676_v19 = vpop.f32.mrb[166].mxu0 }
 0x718   : > { %v29678_v38 = vpop.f32.mrb[167].mxu0 }
 0x71a   : > { %21847 = vmatmul.mubr.msk.f32.gmra.mrb[130].mxu1 %vm5223_vm7, %v29543_v16 }
 0x71b   : > { %21849 = vmatprep.mubr.msk.f32.mxu1 %vm5223_vm7, %v29553_v18  ;;  %v29684_v57 = vpop.f32.mrb[168].mxu0 }
 0x71c   : > { %v29686_v29 = vpop.f32.mrb[169].mxu0 }
 0x71e   : > { %21850 = vmatmul.mubr.msk.f32.gmra.mrb[132].mxu1 %vm5223_vm7, %v29551_v48 }
 0x71f   : > { %21852 = vmatprep.mubr.msk.f32.mxu1 %vm5223_vm7, %v29561_v45  ;;  %v29692_v55 = vpop.f32.mrb[170].mxu0 }
 0x720   : > { %v29694_v8 = vpop.f32.mrb[171].mxu0 }
 0x722   : > { %21853 = vmatmul.mubr.msk.f32.gmra.mrb[134].mxu1 %vm5223_vm7, %v29559_v61 }
 0x723   : > { %21855 = vmatprep.mubr.msk.f32.mxu1 %vm5223_vm7, %v29569_v1  ;;  %v29700_v30 = vpop.f32.mrb[172].mxu0 }
 0x724   : > { %v29702_v5 = vpop.f32.mrb[173].mxu0 }
 0x726   : > { %21856 = vmatmul.mubr.msk.f32.gmra.mrb[136].mxu1 %vm5223_vm7, %v29567_v9 }
 0x727   : > { %21858 = vmatprep.mubr.msk.f32.mxu1 %vm5223_vm7, %v29577_v4  ;;  %v29708_v44 = vpop.f32.mrb[174].mxu0 }
 0x728   : > { %v29710_v59 = vpop.f32.mrb[175].mxu0 }
 0x72a   : > { %21859 = vmatmul.mubr.msk.f32.gmra.mrb[138].mxu1 %vm5223_vm7, %v29575_v21 }
 0x72b   : > { %21861 = vmatprep.mubr.msk.f32.mxu1 %vm5223_vm7, %v29585_v17  ;;  %v29716_v35 = vpop.f32.mrb[176].mxu0 }
 0x72c   : > { %v29718_v62 = vpop.f32.mrb[177].mxu0 }
 0x72e   : > { %21862 = vmatmul.mubr.msk.f32.gmra.mrb[140].mxu1 %vm5223_vm7, %v29583_v24 }
 0x72f   : > { %21922 = vmatprep.mubr.msk.f32.mxu1 %vm5223_vm7, %v29593_v27  ;;  %v29726_v56 = vpop.f32.mrb[178].mxu0 }
 0x730   : > { %v29728_v54 = vpop.f32.mrb[179].mxu0 }
 0x732   : > { %21923 = vmatmul.mubr.msk.f32.vlgmr.msra.gmra.mrb[110].mxu1 %vm5223_vm7, %v29591_v14 }
 0x733   : > { %22027 = vmatpush3.msra.mxu1 %v29596_v33  ;;  %21925 = vmatprep.mubr.msk.f32.mxu1 %vm5223_vm7, %v29605_v15  ;;  %v29737_v20 = vpop.f32.mrb[180].mxu0  ;;  %v15309_v15 = vld [vmem:[%s31377_s28 + $0x30] sm:$0xff] }
 0x734   : > { %v29739_v34 = vpop.f32.mrb[181].mxu0  ;;  %22733 = vmatprep.subr.bf16.mxu1 %v29730_v28 }
 0x736   : > { %21926 = vmatmul.mubr.msk.f32.gmra.mrb[112].mxu1 %vm5223_vm7, %v29603_v42 }
 0x737   : > { %21928 = vmatprep.mubr.msk.f32.mxu1 %vm5223_vm7, %v29614_v10  ;;  %v29746_v12 = vpop.f32.mrb[182].mxu0 }
 0x738   : > { %v29748_v7 = vpop.f32.mrb[183].mxu0 }
 0x73a   : > { %21929 = vmatmul.mubr.msk.f32.gmra.mrb[114].mxu1 %vm5223_vm7, %v29612_v43  ;;  %v15310_v43 = vld [vmem:[%s31377_s28 + $0x38] sm:$0xff] }
 0x73b   : > { %21931 = vmatprep.mubr.msk.f32.mxu1 %vm5223_vm7, %v29622_v6  ;;  %v29754_v36 = vpop.f32.mrb[184].mxu0  ;;  %v22736_v10 = vpack.c.bf16 %v15310_v43, %v15309_v15  ;;  %v15304_v6 = vld [vmem:[%s31377_s28 + $0x8] sm:$0xff]  ;;  %v31403_v43 = vld [vmem:[#allocation94_spill] sm:$0xff] }
 0x73c   : > { %v29756_v49 = vpop.f32.mrb[185].mxu0 }
 0x73e   : > { %21932 = vmatmul.mubr.msk.f32.gmra.mrb[116].mxu1 %vm5223_vm7, %v29620_v39  ;;  %v15303_v39 = vld [vmem:[%s31377_s28] sm:$0xff] }
 0x73f   : > { %21934 = vmatprep.mubr.msk.f32.mxu1 %vm5223_vm7, %v29630_v37  ;;  %v29762_v23 = vpop.f32.mrb[186].mxu0  ;;  %v14607_v37 = vld [vmem:[%s31378_s1] sm:$0xff] }
 0x740   : > { %v29764_v13 = vpop.f32.mrb[187].mxu0 }
 0x742   : > { %21935 = vmatmul.mubr.msk.f32.gmra.mrb[118].mxu1 %vm5223_vm7, %v29628_v52  ;;  %v22740_v52 = vpack.c.bf16 %v15304_v6, %v15303_v39  ;;  %v31404_v39 = vld [vmem:[#allocation93_spill] sm:$0xff] }
 0x743   : > { %21937 = vmatprep.mubr.msk.f32.mxu1 %vm5223_vm7, %v29638_v63  ;;  %v29770_v3 = vpop.f32.mrb[188].mxu0 }
 0x744   : > { %v14073_v11 = vpop.f32.mrb[189].mxu0 }
 0x746   : > { %21938 = vmatmul.mubr.msk.f32.gmra.mrb[120].mxu1 %vm5223_vm7, %v29636_v26  ;;  %v14608_v26 = vld [vmem:[%s31378_s1 + $0x8] sm:$0xff] }
 0x747   : > { %21940 = vmatprep.mubr.msk.f32.mxu1 %vm5223_vm7, %v29646_v53  ;;  %v21998_v60 = vpop.f32.mrb[190].mxu0  ;;  %v22716_v63 = vpack.c.bf16 %v14608_v26, %v14607_v37  ;;  %v14609_v53 = vld [vmem:[%s31378_s1 + $0x10] sm:$0xff]  ;;  %v31406_v26 = vld [vmem:[#allocation24_spill] sm:$0xff] }
 0x748   : > { %v14083_v41 = vpop.f32.mrb[191].mxu0 }
 0x749   : > { %22717 = vmatprep.subr.bf16.mxu0 %v22716_v63 }
 0x74a   : > { %21941 = vmatmul.mubr.msk.f32.gmra.mrb[122].mxu1 %vm5223_vm7, %v29644_v47  ;;  %22719 = vmatpush3.bf16.msra.mxu0 %v22716_v63  ;;  %v29868_v47 = vld [vmem:[%s31379_s3] ss:$0 sm:$0xff]  ;;  %s31414_s3 = sld [smem:[#allocation18_spill]] }
 0x74b   : > { %21943 = vmatprep.mubr.msk.f32.mxu1 %vm5223_vm7, %v29654_v58  ;;  %v29780_v46 = vpop.f32.mrb[192].mxu0  ;;  %v2638_v22 = vadd.f32 %v31385_v40, %v29868_v47  ;;  %v2733_v6 = vadd.f32 %v29868_v47, %v31404_v39  ;;  %v2743_v63 = vadd.f32 %v29868_v47, %v31406_v26  ;;  %v31419_v40 = vld [vmem:[#allocation31_spill] sm:$0xff] }
 0x74c   : > { %v14093_v32 = vpop.f32.mrb[193].mxu0 }
 0x74e   : > { %21944 = vmatmul.mubr.msk.f32.gmra.mrb[124].mxu1 %vm5223_vm7, %v29652_v2  ;;  %v14610_v2 = vld [vmem:[%s31378_s1 + $0x18] sm:$0xff]  ;;  %s31428_s1 = sld [smem:[#allocation13_spill]] }
 0x74f   : > { %21946 = vmatprep.mubr.msk.f32.mxu1 %vm5223_vm7, %v29662_v31  ;;  %v29786_v16 = vpop.f32.mrb[194].mxu0  ;;  %v22720_v58 = vpack.c.bf16 %v14610_v2, %v14609_v53  ;;  %v31407_v53 = vld [vmem:[#allocation95_spill] sm:$0xff] }
 0x750   : > { %v14103_v25 = vpop.f32.mrb[195].mxu0  ;;  %v2748_v2 = vadd.f32 %v31407_v53, %v29868_v47 }
 0x751   : > { %22721 = vmatprep.subr.bf16.mxu0 %v22720_v58 }
 0x752   : > { %21947 = vmatmul.mubr.msk.f32.gmra.mrb[126].mxu1 %vm5223_vm7, %v29660_v51  ;;  %v31380_v51 = vld [vmem:[#allocation58_spill] sm:$0xff]  ;;  %22723 = vmatpush3.bf16.msra.mxu0 %v22720_v58 }
 0x753   : > { %21949 = vmatprep.mubr.msk.f32.mxu1 %vm5223_vm7, %v29670_v0  ;;  %v22007_v48 = vpop.f32.mrb[196].mxu0  ;;  %v2613_v31 = vadd.f32 %v29868_v47, %v31380_v51  ;;  %v15306_v0 = vld [vmem:[%s31377_s28 + $0x18] sm:$0xff]  ;;  %v31408_v58 = vld [vmem:[#allocation98_spill] sm:$0xff] }
 0x754   : > { %v14113_v18 = vpop.f32.mrb[197].mxu0  ;;  %v2753_v51 = vadd.f32 %v29868_v47, %v31408_v58 }
 0x756   : > { %21950 = vmatmul.mubr.msk.f32.gmra.mrb[128].mxu1 %vm5223_vm7, %v29668_v50  ;;  %v15305_v50 = vld [vmem:[%s31377_s28 + $0x10] sm:$0xff] }
 0x757   : > { %21952 = vmatprep.mubr.msk.f32.mxu1 %vm5223_vm7, %v29678_v38  ;;  %v22010_v61 = vpop.f32.mrb[198].mxu0 }
 0x758   : > { %v14123_v45 = vpop.f32.mrb[199].mxu0 }
 0x75a   : > { %21953 = vmatmul.mubr.msk.f32.gmra.mrb[130].mxu1 %vm5223_vm7, %v29676_v19  ;;  %v31381_v19 = vld [vmem:[#allocation60_spill] sm:$0xff] }
 0x75b   : > { %21955 = vmatprep.mubr.msk.f32.mxu1 %vm5223_vm7, %v29686_v29  ;;  %v22013_v9 = vpop.f32.mrb[200].mxu0  ;;  %v2618_v38 = vadd.f32 %v31381_v19, %v29868_v47  ;;  %v31382_v29 = vld [vmem:[#allocation63_spill] sm:$0xff] }
 0x75c   : > { %v14133_v1 = vpop.f32.mrb[201].mxu0 }
 0x75e   : > { %21956 = vmatmul.mubr.msk.f32.gmra.mrb[132].mxu1 %vm5223_vm7, %v29684_v57  ;;  %v22744_v57 = vpack.c.bf16 %v15306_v0, %v15305_v50  ;;  %v31410_v0 = vld [vmem:[#allocation100_spill] sm:$0xff] }
 0x75f   : > { %21958 = vmatprep.mubr.msk.f32.mxu1 %vm5223_vm7, %v29694_v8  ;;  %v22016_v21 = vpop.f32.mrb[202].mxu0  ;;  %v15953_v8 = vld [vmem:[%s31377_s28 + $0x40] sm:$0xff]  ;;  %v2763_v19 = vadd.f32 %v29868_v47, %v31410_v0 }
 0x760   : > { %v14143_v4 = vpop.f32.mrb[203].mxu0 }
 0x762   : > { %21959 = vmatmul.mubr.msk.f32.gmra.mrb[134].mxu1 %vm5223_vm7, %v29692_v55  ;;  %v2623_v55 = vadd.f32 %v29868_v47, %v31382_v29  ;;  %v15955_v29 = vld [vmem:[%s31377_s28 + $0x50] sm:$0xff] }
 0x763   : > { %21961 = vmatprep.mubr.msk.f32.mxu1 %vm5223_vm7, %v29702_v5  ;;  %v22019_v24 = vpop.f32.mrb[204].mxu0  ;;  %v31383_v5 = vld [vmem:[#allocation71_spill] sm:$0xff] }
 0x764   : > { %v14153_v17 = vpop.f32.mrb[205].mxu0 }
 0x766   : > { %21962 = vmatmul.mubr.msk.f32.gmra.mrb[136].mxu1 %vm5223_vm7, %v29700_v30  ;;  %v15954_v30 = vld [vmem:[%s31377_s28 + $0x48] sm:$0xff] }
 0x767   : > { %21964 = vmatprep.mubr.msk.f32.mxu1 %vm5223_vm7, %v29710_v59  ;;  %v22022_v14 = vpop.f32.mrb[206].mxu0  ;;  %v29890_v59 = vpack.c.bf16 %v15954_v30, %v15953_v8  ;;  %v31412_v8 = vld [vmem:[#allocation25_spill] sm:$0xff] }
 0x768   : > { %v14163_v27 = vpop.f32.mrb[207].mxu0 }
 0x76a   : > { %21965 = vmatmul.mubr.msk.f32.gmra.mrb[138].mxu1 %vm5223_vm7, %v29708_v44  ;;  %v2628_v44 = vadd.f32 %v31383_v5, %v29868_v47  ;;  %v31413_v5 = vld [vmem:[#allocation26_spill] sm:$0xff] }
 0x76b   : > { %21967 = vmatprep.mubr.msk.f32.mxu1 %vm5223_vm7, %v29718_v62  ;;  %v22025_v33 = vpop.f32.mrb[208].mxu0 }
 0x76c   : > { %v14173_v42 = vpop.f32.mrb[209].mxu0 }
 0x76e   : > { %21968 = vmatmul.mubr.msk.f32.gmra.mrb[140].mxu1 %vm5223_vm7, %v29716_v35  ;;  %v31384_v35 = vld [vmem:[#allocation72_spill] sm:$0xff] }
 0x76f   : > { %22028 = vmatprep.mubr.msk.f32.mxu1 %vm5223_vm7, %v29728_v54  ;;  %v2633_v62 = vadd.f32 %v29868_v47, %v31384_v35  ;;  %v31417_v35 = vld [vmem:[#allocation29_spill] sm:$0xff] }
 0x772   : > { %22029 = vmatmul.mubr.msk.f32.vlgmr.msra.gmra.mrb[110].mxu1 %vm5223_vm7, %v29726_v56  ;;  %v31386_v56 = vld [vmem:[#allocation59_spill] sm:$0xff] }
 0x773   : > { %22031 = vmatprep.mubr.msk.f32.mxu1 %vm5223_vm7, %v29739_v34  ;;  %22735 = vmatpush3.bf16.msra.mxu1 %v29730_v28  ;;  %v2643_v54 = vadd.f32 %v29868_v47, %v31386_v56  ;;  %v31387_v28 = vld [vmem:[#allocation62_spill] sm:$0xff]  ;;  %v31388_v34 = vld [vmem:[#allocation61_spill] sm:$0xff] }
 0x774   : > { %22737 = vmatprep.subr.bf16.mxu1 %v22736_v10  ;;  %v31421_v56 = vld [vmem:[#allocation33_spill] sm:$0xff] }
 0x776   : > { %22032 = vmatmul.mubr.msk.f32.gmra.mrb[112].mxu1 %vm5223_vm7, %v29737_v20  ;;  %v2648_v20 = vadd.f32 %v31387_v28, %v29868_v47  ;;  %v31424_v28 = vld [vmem:[#allocation36_spill] sm:$0xff] }
 0x777   : > { %22034 = vmatprep.mubr.msk.f32.mxu1 %vm5223_vm7, %v29748_v7  ;;  %22739 = vmatpush3.bf16.msra.mxu1 %v22736_v10  ;;  %v31389_v7 = vld [vmem:[#allocation66_spill] sm:$0xff]  ;;  %v2728_v10 = vadd.f32 %v31403_v43, %v29868_v47 }
 0x778   : > { %22741 = vmatprep.subr.bf16.mxu1 %v22740_v52 }
 0x77a   : > { %22035 = vmatmul.mubr.msk.f32.gmra.mrb[114].mxu1 %vm5223_vm7, %v29746_v12  ;;  %v2653_v12 = vadd.f32 %v29868_v47, %v31388_v34  ;;  %v14971_v34 = vld [vmem:[%s31414_s3] sm:$0xff] }
 0x77b   : > { %22037 = vmatprep.mubr.msk.f32.mxu1 %vm5223_vm7, %v29756_v49  ;;  %v31390_v49 = vld [vmem:[#allocation76_spill] sm:$0xff] }
 0x77e   : > { %22038 = vmatmul.mubr.msk.f32.gmra.mrb[116].mxu1 %vm5223_vm7, %v29754_v36  ;;  %v2658_v36 = vadd.f32 %v31389_v7, %v29868_v47 }
 0x77f   : > { %22040 = vmatprep.mubr.msk.f32.mxu1 %vm5223_vm7, %v29764_v13  ;;  %v31391_v13 = vld [vmem:[#allocation64_spill] sm:$0xff] }
 0x782   : > { %22041 = vmatmul.mubr.msk.f32.gmra.mrb[118].mxu1 %vm5223_vm7, %v29762_v23  ;;  %v2663_v23 = vadd.f32 %v29868_v47, %v31390_v49  ;;  %v31427_v49 = vld [vmem:[#allocation39_spill] sm:$0xff] }
 0x783   : > { %22043 = vmatprep.mubr.msk.f32.mxu1 %vm5223_vm7, %v14073_v11  ;;  %v31392_v11 = vld [vmem:[#allocation65_spill] sm:$0xff] }
 0x786   : > { %22044 = vmatmul.mubr.msk.f32.gmra.mrb[120].mxu1 %vm5223_vm7, %v29770_v3  ;;  %v2668_v3 = vadd.f32 %v31391_v13, %v29868_v47  ;;  %v31430_v13 = vld [vmem:[#allocation41_spill] sm:$0xff] }
 0x787   : > { %22046 = vmatprep.mubr.msk.f32.mxu1 %vm5223_vm7, %v14083_v41  ;;  %v31393_v41 = vld [vmem:[#allocation88_spill] sm:$0xff] }
 0x78a   : > { %22047 = vmatmul.mubr.msk.f32.gmra.mrb[122].mxu1 %vm5223_vm7, %v21998_v60  ;;  %v2673_v60 = vadd.f32 %v29868_v47, %v31392_v11  ;;  %v31432_v11 = vld [vmem:[#allocation43_spill] sm:$0xff] }
 0x78b   : > { %22049 = vmatprep.mubr.msk.f32.mxu1 %vm5223_vm7, %v14093_v32  ;;  %v31394_v32 = vld [vmem:[#allocation69_spill] sm:$0xff] }
 0x78e   : > { %22050 = vmatmul.mubr.msk.f32.gmra.mrb[124].mxu1 %vm5223_vm7, %v29780_v46  ;;  %v2678_v46 = vadd.f32 %v31393_v41, %v29868_v47  ;;  %v31434_v41 = vld [vmem:[#allocation45_spill] sm:$0xff] }
 0x78f   : > { %22052 = vmatprep.mubr.msk.f32.mxu1 %vm5223_vm7, %v14103_v25  ;;  %v31395_v25 = vld [vmem:[#allocation75_spill] sm:$0xff] }
 0x792   : > { %22053 = vmatmul.mubr.msk.f32.gmra.mrb[126].mxu1 %vm5223_vm7, %v29786_v16  ;;  %v2683_v16 = vadd.f32 %v29868_v47, %v31394_v32  ;;  %v31436_v32 = vld [vmem:[#allocation47_spill] sm:$0xff] }
 0x793   : > { %22055 = vmatprep.mubr.msk.f32.mxu1 %vm5223_vm7, %v14113_v18  ;;  %v31396_v18 = vld [vmem:[#allocation96_spill] sm:$0xff] }
 0x796   : > { %22056 = vmatmul.mubr.msk.f32.gmra.mrb[128].mxu1 %vm5223_vm7, %v22007_v48  ;;  %v2688_v48 = vadd.f32 %v31395_v25, %v29868_v47  ;;  %v31438_v25 = vld [vmem:[#allocation49_spill] sm:$0xff] }
 0x797   : > { %22058 = vmatprep.mubr.msk.f32.mxu1 %vm5223_vm7, %v14123_v45  ;;  %v31397_v45 = vld [vmem:[#allocation82_spill] sm:$0xff] }
 0x79a   : > { %22059 = vmatmul.mubr.msk.f32.gmra.mrb[130].mxu1 %vm5223_vm7, %v22010_v61  ;;  %v2693_v61 = vadd.f32 %v29868_v47, %v31396_v18  ;;  %v31440_v18 = vld [vmem:[#allocation51_spill] sm:$0xff] }
 0x79b   : > { %22061 = vmatprep.mubr.msk.f32.mxu1 %vm5223_vm7, %v14133_v1  ;;  %v31398_v1 = vld [vmem:[#allocation80_spill] sm:$0xff] }
 0x79e   : > { %22062 = vmatmul.mubr.msk.f32.gmra.mrb[132].mxu1 %vm5223_vm7, %v22013_v9  ;;  %v2698_v9 = vadd.f32 %v31397_v45, %v29868_v47  ;;  %v31442_v45 = vld [vmem:[#allocation53_spill] sm:$0xff] }
 0x79f   : > { %22064 = vmatprep.mubr.msk.f32.mxu1 %vm5223_vm7, %v14143_v4  ;;  %v31399_v4 = vld [vmem:[#allocation77_spill] sm:$0xff] }
 0x7a2   : > { %22065 = vmatmul.mubr.msk.f32.gmra.mrb[134].mxu1 %vm5223_vm7, %v22016_v21  ;;  %v2703_v21 = vadd.f32 %v29868_v47, %v31398_v1  ;;  %v31443_v1 = vld [vmem:[#allocation54_spill] sm:$0xff] }
 0x7a3   : > { %22067 = vmatprep.mubr.msk.f32.mxu1 %vm5223_vm7, %v14153_v17  ;;  %v31400_v17 = vld [vmem:[#allocation84_spill] sm:$0xff] }
 0x7a6   : > { %22068 = vmatmul.mubr.msk.f32.gmra.mrb[136].mxu1 %vm5223_vm7, %v22019_v24  ;;  %v2708_v24 = vadd.f32 %v31399_v4, %v29868_v47  ;;  %v31445_v4 = vld [vmem:[#allocation150_spill] sm:$0xff] }
 0x7a7   : > { %22070 = vmatprep.mubr.msk.f32.mxu1 %vm5223_vm7, %v14163_v27  ;;  %v31401_v27 = vld [vmem:[#allocation85_spill] sm:$0xff] }
 0x7aa   : > { %22071 = vmatmul.mubr.msk.f32.gmra.mrb[138].mxu1 %vm5223_vm7, %v22022_v14  ;;  %v2713_v14 = vadd.f32 %v29868_v47, %v31400_v17  ;;  %v31446_v17 = vld [vmem:[#allocation56_spill] sm:$0xff] }
 0x7ab   : > { %22073 = vmatprep.mubr.msk.f32.mxu1 %vm5223_vm7, %v14173_v42  ;;  %v31402_v42 = vld [vmem:[#allocation87_spill] sm:$0xff] }
 0x7ac   : > { %v2723_v15 = vadd.f32 %v29868_v47, %v31402_v42 }
 0x7ae   : > { %22074 = vmatmul.mubr.msk.f32.gmra.mrb[140].mxu1 %vm5223_vm7, %v22025_v33  ;;  %v2718_v33 = vadd.f32 %v31401_v27, %v29868_v47  ;;  %vm16753_vm7 = vcmask 523264  }
 0x7af   : > { %22196 = vmatprep.mubr.msk.f32.mxu1 %vm2085_vm0, %v2613_v31  ;;  %v31409_v31 = vld [vmem:[#allocation97_spill] sm:$0xff] }
 0x7b0   : > { %v2758_v50 = vadd.f32 %v31409_v31, %v29868_v47 }
 0x7b2   : > { %22197 = vmatmul.mubr.msk.f32.vlgmr.msra.gmra.mrb[142].mxu1 %vm2085_vm0, %v2618_v38  ;;  %v31411_v38 = vld [vmem:[#allocation99_spill] sm:$0xff] }
 0x7b3   : > { %22199 = vmatprep.mubr.msk.f32.mxu1 %vm2085_vm0, %v2623_v55  ;;  %22743 = vmatpush3.bf16.msra.mxu1 %v22740_v52  ;;  %v31405_v52 = vld [vmem:[#allocation90_spill] sm:$0xff]  ;;  %v15956_v55 = vld [vmem:[%s31377_s28 + $0x58] sm:$0xff] }
 0x7b4   : > { %22745 = vmatprep.subr.bf16.mxu1 %v22744_v57  ;;  %v2738_v37 = vadd.f32 %v31405_v52, %v29868_v47  ;;  %v22752_v30 = vpack.c.bf16 %v15956_v55, %v15955_v29  ;;  %v31459_v29 = vld [vmem:[#allocation170_spill] sm:$0xff] }
 0x7b6   : > { %22200 = vmatmul.mubr.msk.f32.gmra.mrb[144].mxu1 %vm2085_vm0, %v2628_v44  ;;  %v31415_v44 = vld [vmem:[#allocation27_spill] sm:$0xff] }
 0x7b7   : > { %22202 = vmatprep.mubr.msk.f32.mxu1 %vm2085_vm0, %v2633_v62  ;;  %22747 = vmatpush3.bf16.msra.mxu1 %v22744_v57  ;;  %v2768_v57 = vadd.f32 %v31411_v38, %v29868_v47  ;;  %v31416_v47 = vld [vmem:[#allocation28_spill] sm:$0xff]  ;;  %v31418_v62 = vld [vmem:[#allocation30_spill] sm:$0xff] }
 0x7b8   : > { %22749 = vmatprep.subr.bf16.mxu1 %v29890_v59  ;;  %v31458_v38 = vld [vmem:[#allocation164_spill] sm:$0xff] }
 0x7ba   : > { %22203 = vmatmul.mubr.msk.f32.gmra.mrb[146].mxu1 %vm2085_vm0, %v2638_v22  ;;  %v31420_v22 = vld [vmem:[#allocation32_spill] sm:$0xff] }
 0x7bb   : > { %22205 = vmatprep.mubr.msk.f32.mxu1 %vm2085_vm0, %v2643_v54  ;;  %v31423_v54 = vld [vmem:[#allocation35_spill] sm:$0xff] }
 0x7be   : > { %22206 = vmatmul.mubr.msk.f32.gmra.mrb[148].mxu1 %vm2085_vm0, %v2648_v20  ;;  %v31425_v20 = vld [vmem:[#allocation37_spill] sm:$0xff] }
 0x7bf   : > { %22208 = vmatprep.mubr.msk.f32.mxu1 %vm2085_vm0, %v2653_v12  ;;  %v14972_v12 = vld [vmem:[%s31414_s3 + $0x8] sm:$0xff] }
 0x7c0   : > { %v30009_v7 = vpack.c.bf16 %v14972_v12, %v14971_v34 }
 0x7c2   : > { %22209 = vmatmul.mubr.msk.f32.gmra.mrb[150].mxu1 %vm2085_vm0, %v2658_v36  ;;  %v31426_v36 = vld [vmem:[#allocation38_spill] sm:$0xff]  ;;  %22725 = vmatprep.subr.bf16.mxu0 %v30009_v7 }
 0x7c3   : > { %22211 = vmatprep.mubr.msk.f32.mxu1 %vm2085_vm0, %v2663_v23  ;;  %v31429_v23 = vld [vmem:[#allocation40_spill] sm:$0xff] }
 0x7c6   : > { %22212 = vmatmul.mubr.msk.f32.gmra.mrb[152].mxu1 %vm2085_vm0, %v2668_v3  ;;  %v31431_v3 = vld [vmem:[#allocation42_spill] sm:$0xff] }
 0x7c7   : > { %22214 = vmatprep.mubr.msk.f32.mxu1 %vm2085_vm0, %v2673_v60  ;;  %v31433_v60 = vld [vmem:[#allocation44_spill] sm:$0xff] }
 0x7ca   : > { %22215 = vmatmul.mubr.msk.f32.gmra.mrb[154].mxu1 %vm2085_vm0, %v2678_v46  ;;  %v31435_v46 = vld [vmem:[#allocation46_spill] sm:$0xff] }
 0x7cb   : > { %22217 = vmatprep.mubr.msk.f32.mxu1 %vm2085_vm0, %v2683_v16  ;;  %v31437_v16 = vld [vmem:[#allocation48_spill] sm:$0xff] }
 0x7ce   : > { %22218 = vmatmul.mubr.msk.f32.gmra.mrb[156].mxu1 %vm2085_vm0, %v2688_v48  ;;  %v31439_v48 = vld [vmem:[#allocation50_spill] sm:$0xff] }
 0x7cf   : > { %22220 = vmatprep.mubr.msk.f32.mxu1 %vm2085_vm0, %v2693_v61  ;;  %v31441_v61 = vld [vmem:[#allocation52_spill] sm:$0xff] }
 0x7d2   : > { %22221 = vmatmul.mubr.msk.f32.gmra.mrb[158].mxu1 %vm2085_vm0, %v2698_v9  ;;  %v30045_v9 = vld [vmem:[%s31428_s1] ss:$0 sm:$0xff]  ;;  %s31451_s1 = sld [smem:[#allocation15_spill]] }
 0x7d3   : > { %22223 = vmatprep.mubr.msk.f32.mxu1 %vm2085_vm0, %v2703_v21  ;;  %v31444_v21 = vld [vmem:[#allocation55_spill] sm:$0xff]  ;;  %v4061_v55 = vadd.f32 %v30045_v9, %v31459_v29 }
 0x7d6   : > { %22224 = vmatmul.mubr.msk.f32.gmra.mrb[160].mxu1 %vm2085_vm0, %v2708_v24  ;;  %v4001_v24 = vadd.f32 %v30045_v9, %v31445_v4 }
 0x7d7   : > { %22226 = vmatprep.mubr.msk.f32.mxu1 %vm2085_vm0, %v2713_v14  ;;  %v31447_v14 = vld [vmem:[#allocation130_spill] sm:$0xff] }
 0x7d8   : > { %v4006_v27 = vadd.f32 %v31447_v14, %v30045_v9 }
 0x7da   : > { %22227 = vmatmul.mubr.msk.f32.gmra.mrb[162].mxu1 %vm2085_vm0, %v2718_v33  ;;  %v31448_v33 = vld [vmem:[#allocation153_spill] sm:$0xff] }
 0x7db   : > { %22229 = vmatprep.mubr.msk.f32.mxu1 %vm2085_vm0, %v2723_v15  ;;  %v4011_v42 = vadd.f32 %v30045_v9, %v31448_v33  ;;  %v31449_v15 = vld [vmem:[#allocation151_spill] sm:$0xff] }
 0x7dc   : > { %v4016_v43 = vadd.f32 %v31449_v15, %v30045_v9 }
 0x7de   : > { %22230 = vmatmul.mubr.msk.f32.gmra.mrb[164].mxu1 %vm2085_vm0, %v2728_v10  ;;  %v31450_v10 = vld [vmem:[#allocation156_spill] sm:$0xff] }
 0x7df   : > { %22232 = vmatprep.mubr.msk.f32.mxu1 %vm2085_vm0, %v2733_v6  ;;  %v4021_v39 = vadd.f32 %v30045_v9, %v31450_v10  ;;  %v31452_v6 = vld [vmem:[#allocation154_spill] sm:$0xff] }
 0x7e0   : > { %v4026_v52 = vadd.f32 %v31452_v6, %v30045_v9 }
 0x7e2   : > { %22233 = vmatmul.mubr.msk.f32.gmra.mrb[166].mxu1 %vm2085_vm0, %v2738_v37  ;;  %v31453_v37 = vld [vmem:[#allocation159_spill] sm:$0xff] }
 0x7e3   : > { %22235 = vmatprep.mubr.msk.f32.mxu1 %vm2085_vm0, %v2743_v63  ;;  %v4031_v26 = vadd.f32 %v30045_v9, %v31453_v37  ;;  %v31454_v63 = vld [vmem:[#allocation157_spill] sm:$0xff] }
 0x7e4   : > { %v4036_v53 = vadd.f32 %v31454_v63, %v30045_v9 }
 0x7e6   : > { %22236 = vmatmul.mubr.msk.f32.gmra.mrb[168].mxu1 %vm2085_vm0, %v2748_v2  ;;  %v31455_v2 = vld [vmem:[#allocation162_spill] sm:$0xff] }
 0x7e7   : > { %22238 = vmatprep.mubr.msk.f32.mxu1 %vm2085_vm0, %v2753_v51  ;;  %v4041_v58 = vadd.f32 %v30045_v9, %v31455_v2  ;;  %v31456_v51 = vld [vmem:[#allocation160_spill] sm:$0xff] }
 0x7e8   : > { %v4046_v31 = vadd.f32 %v31456_v51, %v30045_v9 }
 0x7ea   : > { %22239 = vmatmul.mubr.msk.f32.gmra.mrb[170].mxu1 %vm2085_vm0, %v2758_v50  ;;  %v31457_v50 = vld [vmem:[#allocation166_spill] sm:$0xff] }
 0x7eb   : > { %22241 = vmatprep.mubr.msk.f32.mxu1 %vm2085_vm0, %v2763_v19  ;;  %v4051_v0 = vadd.f32 %v30045_v9, %v31457_v50  ;;  %v30087_v19 = vld [vmem:[%s31451_s1] ss:$0 sm:$0xff]  ;;  %s31479_s1 = sld [smem:[#allocation17_spill]] }
 0x7ee   : > { %22242 = vmatmul.mubr.msk.f32.gmra.mrb[172].mxu1 %vm2085_vm0, %v2768_v57  ;;  %v4056_v57 = vadd.f32 %v31458_v38, %v30045_v9 }
 0x7ef   : > { %22252 = vmatprep.mubr.msk.f32.mxu1 %vm2085_vm0, %v31412_v8 }
 0x7f2   : > { %22253 = vmatmul.mubr.msk.f32.vlgmr.msra.gmra.mrb[142].mxu1 %vm2085_vm0, %v31413_v5 }
 0x7f3   : > { %22255 = vmatprep.mubr.msk.f32.mxu1 %vm2085_vm0, %v31415_v44  ;;  %22751 = vmatpush3.bf16.msra.mxu1 %v29890_v59  ;;  %v31422_v59 = vld [vmem:[#allocation34_spill] sm:$0xff] }
 0x7f4   : > { %22753 = vmatprep.subr.bf16.mxu1 %v22752_v30 }
 0x7f6   : > { %22256 = vmatmul.mubr.msk.f32.gmra.mrb[144].mxu1 %vm2085_vm0, %v31416_v47  ;;  %v14973_v47 = vld [vmem:[%s31414_s3 + $0x10] sm:$0xff] }
 0x7f7   : > { %22258 = vmatprep.mubr.msk.f32.mxu1 %vm2085_vm0, %v31417_v35  ;;  %22755 = vmatpush3.bf16.msra.mxu1 %v22752_v30  ;;  %v14974_v35 = vld [vmem:[%s31414_s3 + $0x18] sm:$0xff]  ;;  %s31481_s3 = sld [smem:[#allocation19_spill]] }
 0x7f8   : > { %v22728_v12 = vpack.c.bf16 %v14974_v35, %v14973_v47  ;;  %v31472_v35 = vld [vmem:[#allocation189_spill] sm:$0xff] }
 0x7fa   : > { %22259 = vmatmul.mubr.msk.f32.gmra.mrb[146].mxu1 %vm2085_vm0, %v31418_v62  ;;  %v31460_v62 = vld [vmem:[#allocation168_spill] sm:$0xff] }
 0x7fb   : > { %22261 = vmatprep.mubr.msk.f32.mxu1 %vm2085_vm0, %v31419_v40  ;;  %v4066_v40 = vadd.f32 %v31460_v62, %v30045_v9  ;;  %v4126_v62 = vadd.f32 %v31472_v35, %v30045_v9 }
 0x7fe   : > { %22262 = vmatmul.mubr.msk.f32.gmra.mrb[148].mxu1 %vm2085_vm0, %v31420_v22  ;;  %v31461_v22 = vld [vmem:[#allocation174_spill] sm:$0xff] }
 0x7ff   : > { %22264 = vmatprep.mubr.msk.f32.mxu1 %vm2085_vm0, %v31421_v56  ;;  %v4071_v56 = vadd.f32 %v30045_v9, %v31461_v22 }
 0x802   : > { %22265 = vmatmul.mubr.msk.f32.gmra.mrb[150].mxu1 %vm2085_vm0, %v31422_v59 }
 0x803   : > { %22267 = vmatprep.mubr.msk.f32.mxu1 %vm2085_vm0, %v31423_v54 }
 0x806   : > { %22268 = vmatmul.mubr.msk.f32.gmra.mrb[152].mxu1 %vm2085_vm0, %v31424_v28 }
 0x807   : > { %22270 = vmatprep.mubr.msk.f32.mxu1 %vm2085_vm0, %v31425_v20 }
 0x80a   : > { %22271 = vmatmul.mubr.msk.f32.gmra.mrb[154].mxu1 %vm2085_vm0, %v31426_v36 }
 0x80b   : > { %22273 = vmatprep.mubr.msk.f32.mxu1 %vm2085_vm0, %v31427_v49  ;;  %v31462_v49 = vld [vmem:[#allocation172_spill] sm:$0xff] }
 0x80e   : > { %22274 = vmatmul.mubr.msk.f32.gmra.mrb[156].mxu1 %vm2085_vm0, %v31429_v23  ;;  %v4076_v23 = vadd.f32 %v31462_v49, %v30045_v9  ;;  %v31475_v49 = vld [vmem:[#allocation68_spill] sm:$0xff] }
 0x80f   : > { %22276 = vmatprep.mubr.msk.f32.mxu1 %vm2085_vm0, %v31430_v13  ;;  %v31463_v13 = vld [vmem:[#allocation178_spill] sm:$0xff] }
 0x812   : > { %22277 = vmatmul.mubr.msk.f32.gmra.mrb[158].mxu1 %vm2085_vm0, %v31431_v3  ;;  %v4081_v3 = vadd.f32 %v30045_v9, %v31463_v13 }
 0x813   : > { %22279 = vmatprep.mubr.msk.f32.mxu1 %vm2085_vm0, %v31432_v11 }
 0x816   : > { %22280 = vmatmul.mubr.msk.f32.gmra.mrb[160].mxu1 %vm2085_vm0, %v31433_v60 }
 0x817   : > { %22282 = vmatprep.mubr.msk.f32.mxu1 %vm2085_vm0, %v31434_v41 }
 0x81a   : > { %22283 = vmatmul.mubr.msk.f32.gmra.mrb[162].mxu1 %vm2085_vm0, %v31435_v46 }
 0x81b   : > { %22285 = vmatprep.mubr.msk.f32.mxu1 %vm2085_vm0, %v31436_v32 }
 0x81e   : > { %22286 = vmatmul.mubr.msk.f32.gmra.mrb[164].mxu1 %vm2085_vm0, %v31437_v16 }
 0x81f   : > { %22288 = vmatprep.mubr.msk.f32.mxu1 %vm2085_vm0, %v31438_v25  ;;  %v31464_v25 = vld [vmem:[#allocation176_spill] sm:$0xff] }
 0x822   : > { %22289 = vmatmul.mubr.msk.f32.gmra.mrb[166].mxu1 %vm2085_vm0, %v31439_v48  ;;  %v4086_v48 = vadd.f32 %v31464_v25, %v30045_v9  ;;  %v31477_v25 = vld [vmem:[#allocation73_spill] sm:$0xff] }
 0x823   : > { %22291 = vmatprep.mubr.msk.f32.mxu1 %vm2085_vm0, %v31440_v18  ;;  %v31465_v18 = vld [vmem:[#allocation182_spill] sm:$0xff] }
 0x826   : > { %22292 = vmatmul.mubr.msk.f32.gmra.mrb[168].mxu1 %vm2085_vm0, %v31441_v61 }
 0x827   : > { %22294 = vmatprep.mubr.msk.f32.mxu1 %vm2085_vm0, %v31442_v45 }
 0x82a   : > { %22295 = vmatmul.mubr.msk.f32.gmra.mrb[170].mxu1 %vm2085_vm0, %v31443_v1 }
 0x82b   : > { %22297 = vmatprep.mubr.msk.f32.mxu1 %vm2085_vm0, %v31444_v21 }
 0x82e   : > { %22298 = vmatmul.mubr.msk.f32.gmra.mrb[172].mxu1 %vm2085_vm0, %v31446_v17  ;;  %v31466_v17 = vld [vmem:[#allocation180_spill] sm:$0xff] }
 0x82f   : > { %22308 = vmatprep.mubr.msk.f32.mxu1 %vm2085_vm0, %v4001_v24  ;;  %v4096_v14 = vadd.f32 %v31466_v17, %v30045_v9 }
 0x832   : > { %22309 = vmatmul.mubr.msk.f32.vlgmr.msra.gmra.mrb[142].mxu1 %vm2085_vm0, %v4006_v27  ;;  %v31467_v27 = vld [vmem:[#allocation185_spill] sm:$0xff] }
 0x833   : > { %22311 = vmatprep.mubr.msk.f32.mxu1 %vm2085_vm0, %v4011_v42  ;;  %v4101_v33 = vadd.f32 %v30045_v9, %v31467_v27 }
 0x836   : > { %22312 = vmatmul.mubr.msk.f32.gmra.mrb[144].mxu1 %vm2085_vm0, %v4016_v43 }
 0x837   : > { %22314 = vmatprep.mubr.msk.f32.mxu1 %vm2085_vm0, %v4021_v39 }
 0x83a   : > { %22315 = vmatmul.mubr.msk.f32.gmra.mrb[146].mxu1 %vm2085_vm0, %v4026_v52  ;;  %v31468_v52 = vld [vmem:[#allocation183_spill] sm:$0xff] }
 0x83b   : > { %22317 = vmatprep.mubr.msk.f32.mxu1 %vm2085_vm0, %v4031_v26  ;;  %v4106_v37 = vadd.f32 %v31468_v52, %v30045_v9  ;;  %v31469_v26 = vld [vmem:[#allocation188_spill] sm:$0xff] }
 0x83c   : > { %v4111_v63 = vadd.f32 %v30045_v9, %v31469_v26 }
 0x83e   : > { %22318 = vmatmul.mubr.msk.f32.gmra.mrb[148].mxu1 %vm2085_vm0, %v4036_v53 }
 0x83f   : > { %22320 = vmatprep.mubr.msk.f32.mxu1 %vm2085_vm0, %v4041_v58 }
 0x842   : > { %22321 = vmatmul.mubr.msk.f32.gmra.mrb[150].mxu1 %vm2085_vm0, %v4046_v31 }
 0x843   : > { %22323 = vmatprep.mubr.msk.f32.mxu1 %vm2085_vm0, %v4051_v0  ;;  %v31470_v0 = vld [vmem:[#allocation186_spill] sm:$0xff] }
 0x844   : > { %v4116_v38 = vadd.f32 %v31470_v0, %v30045_v9 }
 0x845   : > { %v22030_v8 = vpop.f32.mrb[110].mxu1 }
 0x846   : > { %v14544_v30 = vadd.f32 %v22030_v8, %v30087_v19  ;;  %v14345_v5 = vpop.f32.mrb[111].mxu1  ;;  %22324 = vmatmul.mubr.msk.f32.gmra.mrb[152].mxu1 %vm2085_vm0, %v4056_v57  ;;  %v31471_v57 = vld [vmem:[#allocation190_spill] sm:$0xff] }
 0x847   : > { %v14543_v44 = vadd.f32 %v30087_v19, %v14345_v5  ;;  %22326 = vmatprep.mubr.msk.f32.mxu1 %vm2085_vm0, %v4061_v55  ;;  %v4121_v29 = vadd.f32 %v30045_v9, %v31471_v57 }
 0x848   : > { %v14576_v28 = vmax.f32 %v14544_v30, 0.0 }
 0x849   : > { %v14575_v59 = vmax.f32 %v14543_v44, 0.0  ;;  %v22033_v54 = vpop.f32.mrb[112].mxu1 }
 0x84a   : > { %v14546_v20 = vadd.f32 %v22033_v54, %v30087_v19  ;;  %v14355_v34 = vpop.f32.mrb[113].mxu1  ;;  %22327 = vmatmul.mubr.msk.f32.gmra.mrb[154].mxu1 %vm2085_vm0, %v4066_v40  ;;  %v31473_v40 = vld [vmem:[#allocation193_spill] sm:$0xff] }
 0x84b   : > { %v14545_v36 = vadd.f32 %v30087_v19, %v14355_v34  ;;  %22084 = vmatprep.mubr.msk.f32.mxu0 %vm2085_vm0, %v14575_v59  ;;  %22329 = vmatprep.mubr.msk.f32.mxu1 %vm2085_vm0, %v4071_v56  ;;  %v4131_v22 = vadd.f32 %v30045_v9, %v31473_v40 }
 0x84c   : > { %22085 = vmatmul.mubr.msk.f32.vlgmr.msra.gmra.mrb[210].mxu0 %vm2085_vm0, %v14576_v28  ;;  %v14578_v41 = vmax.f32 %v14546_v20, 0.0 }
 0x84d   : > { %v14577_v11 = vmax.f32 %v14545_v36, 0.0  ;;  %v22036_v60 = vpop.f32.mrb[114].mxu1  ;;  %22727 = vmatpush3.bf16.msra.mxu0 %v30009_v7  ;;  %v4091_v7 = vadd.f32 %v30045_v9, %v31465_v18 }
 0x84e   : > { %v14548_v46 = vadd.f32 %v22036_v60, %v30087_v19  ;;  %v14365_v32 = vpop.f32.mrb[115].mxu1  ;;  %22330 = vmatmul.mubr.msk.f32.gmra.mrb[156].mxu1 %vm2085_vm0, %v4076_v23  ;;  %22729 = vmatprep.subr.bf16.mxu0 %v22728_v12  ;;  %v4141_v23 = vadd.f32 %v30045_v9, %v31475_v49 }
 0x84f   : > { %v14547_v16 = vadd.f32 %v30087_v19, %v14365_v32  ;;  %22087 = vmatprep.mubr.msk.f32.mxu0 %vm2085_vm0, %v14577_v11  ;;  %22332 = vmatprep.mubr.msk.f32.mxu1 %vm2085_vm0, %v4081_v3  ;;  %v31476_v32 = vld [vmem:[#allocation86_spill] sm:$0xff] }
 0x850   : > { %22088 = vmatmul.mubr.msk.f32.gmra.mrb[212].mxu0 %vm2085_vm0, %v14578_v41  ;;  %v14580_v1 = vmax.f32 %v14548_v46, 0.0 }
 0x851   : > { %v14579_v61 = vmax.f32 %v14547_v16, 0.0  ;;  %v22039_v45 = vpop.f32.mrb[116].mxu1  ;;  %22731 = vmatpush3.bf16.msra.mxu0 %v22728_v12  ;;  %v31474_v12 = vld [vmem:[#allocation192_spill] sm:$0xff]  ;;  %v4146_v16 = vadd.f32 %v31476_v32, %v30045_v9 }
 0x852   : > { %v14550_v21 = vadd.f32 %v22039_v45, %v30087_v19  ;;  %v14375_v4 = vpop.f32.mrb[117].mxu1  ;;  %22333 = vmatmul.mubr.msk.f32.gmra.mrb[158].mxu1 %vm2085_vm0, %v4086_v48  ;;  %v4136_v36 = vadd.f32 %v31474_v12, %v30045_v9  ;;  %v4151_v48 = vadd.f32 %v30045_v9, %v31477_v25 }
 0x853   : > { %v14549_v24 = vadd.f32 %v30087_v19, %v14375_v4  ;;  %22090 = vmatprep.mubr.msk.f32.mxu0 %vm2085_vm0, %v14579_v61  ;;  %22335 = vmatprep.mubr.msk.f32.mxu1 %vm2085_vm0, %v4091_v7  ;;  %v31478_v4 = vld [vmem:[#allocation107_spill] sm:$0xff] }
 0x854   : > { %22091 = vmatmul.mubr.msk.f32.gmra.mrb[214].mxu0 %vm2085_vm0, %v14580_v1  ;;  %v14582_v43 = vmax.f32 %v14550_v21, 0.0 }
 0x855   : > { %v14581_v42 = vmax.f32 %v14549_v24, 0.0  ;;  %v22042_v15 = vpop.f32.mrb[118].mxu1  ;;  %v4156_v24 = vadd.f32 %v31478_v4, %v30045_v9 }
 0x856   : > { %v14552_v10 = vadd.f32 %v22042_v15, %v30087_v19  ;;  %v14385_v39 = vpop.f32.mrb[119].mxu1  ;;  %22336 = vmatmul.mubr.msk.f32.gmra.mrb[160].mxu1 %vm2085_vm0, %v4096_v14 }
 0x857   : > { %v14551_v6 = vadd.f32 %v30087_v19, %v14385_v39  ;;  %22093 = vmatprep.mubr.msk.f32.mxu0 %vm2085_vm0, %v14581_v42  ;;  %22338 = vmatprep.mubr.msk.f32.mxu1 %vm2085_vm0, %v4101_v33 }
 0x858   : > { %22094 = vmatmul.mubr.msk.f32.gmra.mrb[216].mxu0 %vm2085_vm0, %v14582_v43  ;;  %v14584_v58 = vmax.f32 %v14552_v10, 0.0 }
 0x859   : > { %v14583_v53 = vmax.f32 %v14551_v6, 0.0  ;;  %v22045_v2 = vpop.f32.mrb[120].mxu1 }
 0x85a   : > { %v14554_v51 = vadd.f32 %v22045_v2, %v30087_v19  ;;  %v14395_v31 = vpop.f32.mrb[121].mxu1  ;;  %22339 = vmatmul.mubr.msk.f32.gmra.mrb[162].mxu1 %vm2085_vm0, %v4106_v37 }
 0x85b   : > { %v14553_v50 = vadd.f32 %v30087_v19, %v14395_v31  ;;  %22096 = vmatprep.mubr.msk.f32.mxu0 %vm2085_vm0, %v14583_v53  ;;  %22341 = vmatprep.mubr.msk.f32.mxu1 %vm2085_vm0, %v4111_v63 }
 0x85c   : > { %22097 = vmatmul.mubr.msk.f32.gmra.mrb[218].mxu0 %vm2085_vm0, %v14584_v58  ;;  %v14586_v30 = vmax.f32 %v14554_v51, 0.0 }
 0x85d   : > { %v14585_v55 = vmax.f32 %v14553_v50, 0.0  ;;  %v22048_v8 = vpop.f32.mrb[122].mxu1 }
 0x85e   : > { %v14556_v5 = vadd.f32 %v22048_v8, %v30087_v19  ;;  %v14405_v44 = vpop.f32.mrb[123].mxu1  ;;  %22342 = vmatmul.mubr.msk.f32.gmra.mrb[164].mxu1 %vm2085_vm0, %v4116_v38 }
 0x85f   : > { %v14555_v47 = vadd.f32 %v30087_v19, %v14405_v44  ;;  %22099 = vmatprep.mubr.msk.f32.mxu0 %vm2085_vm0, %v14585_v55  ;;  %22344 = vmatprep.mubr.msk.f32.mxu1 %vm2085_vm0, %v4121_v29 }
 0x860   : > { %22100 = vmatmul.mubr.msk.f32.gmra.mrb[220].mxu0 %vm2085_vm0, %v14586_v30  ;;  %v14588_v54 = vmax.f32 %v14556_v5, 0.0 }
 0x861   : > { %v14587_v56 = vmax.f32 %v14555_v47, 0.0  ;;  %v22051_v59 = vpop.f32.mrb[124].mxu1 }
 0x862   : > { %v14558_v28 = vadd.f32 %v22051_v59, %v30087_v19  ;;  %v14415_v20 = vpop.f32.mrb[125].mxu1  ;;  %22345 = vmatmul.mubr.msk.f32.gmra.mrb[166].mxu1 %vm2085_vm0, %v4126_v62 }
 0x863   : > { %v14557_v34 = vadd.f32 %v30087_v19, %v14415_v20  ;;  %22102 = vmatprep.mubr.msk.f32.mxu0 %vm2085_vm0, %v14587_v56  ;;  %22347 = vmatprep.mubr.msk.f32.mxu1 %vm2085_vm0, %v4131_v22  ;;  %v16311_v20 = vld [vmem:[%s31377_s28 + $0x68] sm:$0xff] }
 0x864   : > { %22103 = vmatmul.mubr.msk.f32.gmra.mrb[222].mxu0 %vm2085_vm0, %v14588_v54  ;;  %v14590_v11 = vmax.f32 %v14558_v28, 0.0  ;;  %v16310_v28 = vld [vmem:[%s31377_s28 + $0x60] sm:$0xff] }
 0x865   : > { %v14589_v13 = vmax.f32 %v14557_v34, 0.0  ;;  %v22054_v3 = vpop.f32.mrb[126].mxu1  ;;  %v16312_v34 = vld [vmem:[%s31377_s28 + $0x70] sm:$0xff]  ;;  %v22756_v12 = vpack.c.bf16 %v16311_v20, %v16310_v28 }
 0x866   : > { %v14560_v60 = vadd.f32 %v22054_v3, %v30087_v19  ;;  %v14425_v41 = vpop.f32.mrb[127].mxu1  ;;  %22348 = vmatmul.mubr.msk.f32.gmra.mrb[168].mxu1 %vm2085_vm0, %v4136_v36  ;;  %v16313_v36 = vld [vmem:[%s31377_s28 + $0x78] sm:$0xff] }
 0x867   : > { %v14559_v46 = vadd.f32 %v30087_v19, %v14425_v41  ;;  %22105 = vmatprep.mubr.msk.f32.mxu0 %vm2085_vm0, %v14589_v13  ;;  %22350 = vmatprep.mubr.msk.f32.mxu1 %vm2085_vm0, %v4141_v23  ;;  %v22760_v49 = vpack.c.bf16 %v16313_v36, %v16312_v34 }
 0x868   : > { %22106 = vmatmul.mubr.msk.f32.gmra.mrb[224].mxu0 %vm2085_vm0, %v14590_v11  ;;  %v14592_v61 = vmax.f32 %v14560_v60, 0.0  ;;  %22757 = vmatprep.subr.bf16.mxu1 %v22756_v12 }
 0x869   : > { %v14591_v18 = vmax.f32 %v14559_v46, 0.0  ;;  %v22057_v7 = vpop.f32.mrb[128].mxu1  ;;  %22759 = vmatpush3.bf16.msra.mxu1 %v22756_v12 }
 0x86a   : > { %v14562_v45 = vadd.f32 %v22057_v7, %v30087_v19  ;;  %v14435_v1 = vpop.f32.mrb[129].mxu1  ;;  %22351 = vmatmul.mubr.msk.f32.gmra.mrb[170].mxu1 %vm2085_vm0, %v4146_v16  ;;  %22761 = vmatprep.subr.bf16.mxu1 %v22760_v49 }
 0x86b   : > { %v14561_v21 = vadd.f32 %v30087_v19, %v14435_v1  ;;  %22108 = vmatprep.mubr.msk.f32.mxu0 %vm2085_vm0, %v14591_v18  ;;  %22353 = vmatprep.mubr.msk.f32.mxu1 %vm2085_vm0, %v4151_v48 }
 0x86c   : > { %22109 = vmatmul.mubr.msk.f32.gmra.mrb[226].mxu0 %vm2085_vm0, %v14592_v61  ;;  %v14594_v27 = vmax.f32 %v14562_v45, 0.0 }
 0x86d   : > { %v14593_v17 = vmax.f32 %v14561_v21, 0.0  ;;  %v22060_v14 = vpop.f32.mrb[130].mxu1  ;;  %22763 = vmatpush3.bf16.msra.mxu1 %v22760_v49 }
 0x86e   : > { %v14564_v33 = vadd.f32 %v22060_v14, %v30087_v19  ;;  %v14445_v42 = vpop.f32.mrb[131].mxu1  ;;  %22354 = vmatmul.mubr.msk.f32.gmra.mrb[172].mxu1 %vm2085_vm0, %v4156_v24 }
 0x86f   : > { %v14563_v15 = vadd.f32 %v30087_v19, %v14445_v42  ;;  %22111 = vmatprep.mubr.msk.f32.mxu0 %vm2085_vm0, %v14593_v17 }
 0x870   : > { %22112 = vmatmul.mubr.msk.f32.gmra.mrb[228].mxu0 %vm2085_vm0, %v14594_v27  ;;  %v14596_v39 = vmax.f32 %v14564_v33, 0.0 }
 0x871   : > { %v14595_v43 = vmax.f32 %v14563_v15, 0.0  ;;  %v22063_v10 = vpop.f32.mrb[132].mxu1 }
 0x872   : > { %v14566_v9 = vadd.f32 %v22063_v10, %v30087_v19  ;;  %v14455_v6 = vpop.f32.mrb[133].mxu1 }
 0x873   : > { %v14565_v52 = vadd.f32 %v30087_v19, %v14455_v6  ;;  %22114 = vmatprep.mubr.msk.f32.mxu0 %vm2085_vm0, %v14595_v43 }
 0x874   : > { %22115 = vmatmul.mubr.msk.f32.gmra.mrb[230].mxu0 %vm2085_vm0, %v14596_v39  ;;  %v14598_v63 = vmax.f32 %v14566_v9, 0.0 }
 0x875   : > { %v14597_v37 = vmax.f32 %v14565_v52, 0.0  ;;  %v22066_v26 = vpop.f32.mrb[134].mxu1 }
 0x876   : > { %v14568_v53 = vadd.f32 %v22066_v26, %v30087_v19  ;;  %v14465_v2 = vpop.f32.mrb[135].mxu1 }
 0x877   : > { %v14567_v58 = vadd.f32 %v30087_v19, %v14465_v2  ;;  %22117 = vmatprep.mubr.msk.f32.mxu0 %vm2085_vm0, %v14597_v37 }
 0x878   : > { %22118 = vmatmul.mubr.msk.f32.gmra.mrb[232].mxu0 %vm2085_vm0, %v14598_v63  ;;  %v14600_v50 = vmax.f32 %v14568_v53, 0.0 }
 0x879   : > { %v14599_v51 = vmax.f32 %v14567_v58, 0.0  ;;  %v22069_v31 = vpop.f32.mrb[136].mxu1 }
 0x87a   : > { %v14570_v0 = vadd.f32 %v22069_v31, %v30087_v19  ;;  %v14475_v38 = vpop.f32.mrb[137].mxu1 }
 0x87b   : > { %v14569_v57 = vadd.f32 %v30087_v19, %v14475_v38  ;;  %22120 = vmatprep.mubr.msk.f32.mxu0 %vm2085_vm0, %v14599_v51 }
 0x87c   : > { %22121 = vmatmul.mubr.msk.f32.gmra.mrb[234].mxu0 %vm2085_vm0, %v14600_v50  ;;  %v14602_v8 = vmax.f32 %v14570_v0, 0.0 }
 0x87d   : > { %v14601_v29 = vmax.f32 %v14569_v57, 0.0  ;;  %v22072_v55 = vpop.f32.mrb[138].mxu1 }
 0x87e   : > { %v14572_v30 = vadd.f32 %v22072_v55, %v30087_v19  ;;  %v14485_v5 = vpop.f32.mrb[139].mxu1 }
 0x87f   : > { %v14571_v44 = vadd.f32 %v30087_v19, %v14485_v5  ;;  %22123 = vmatprep.mubr.msk.f32.mxu0 %vm2085_vm0, %v14601_v29 }
 0x880   : > { %22124 = vmatmul.mubr.msk.f32.gmra.mrb[236].mxu0 %vm2085_vm0, %v14602_v8  ;;  %v14604_v62 = vmax.f32 %v14572_v30, 0.0 }
 0x881   : > { %v14603_v47 = vmax.f32 %v14571_v44, 0.0  ;;  %v22075_v35 = vpop.f32.mrb[140].mxu1 }
 0x882   : > { %v14574_v40 = vadd.f32 %v22075_v35, %v30087_v19  ;;  %v14495_v22 = vpop.f32.mrb[141].mxu1 }
 0x883   : > { %v14573_v56 = vadd.f32 %v30087_v19, %v14495_v22  ;;  %22126 = vmatprep.mubr.msk.f32.mxu0 %vm2085_vm0, %v14603_v47  ;;  %v30224_v19 = vld [vmem:[%s31479_s1] ss:$0 sm:$0xff]  ;;  %s31480_s1 = sld [smem:[#allocation22_spill]] }
 0x884   : > { %22127 = vmatmul.mubr.msk.f32.gmra.mrb[238].mxu0 %vm2085_vm0, %v14604_v62  ;;  %v14606_v54 = vmax.f32 %v14574_v40, 0.0 }
 0x885   : > { %v14605_v59 = vmax.f32 %v14573_v56, 0.0 }
 0x887   : > { %22129 = vmatprep.mubr.msk.f32.mxu0 %vm2085_vm0, %v14605_v59 }
 0x888   : > { %22130 = vmatmul.mubr.msk.f32.gmra.mrb[240].mxu0 %vm2085_vm0, %v14606_v54 }
 0x91f   : > { %v22086_v23 = vpop.f32.mrb[210].mxu0 }
 0x920   : > { %v14786_v13 = vadd.f32 %v22086_v23, %v30224_v19  ;;  %v14780_v3 = vpop.f32.mrb[211].mxu0 }
 0x921   : > { %v14781_v11 = vadd.f32 %v30224_v19, %v14780_v3 }
 0x922   : > { %v14940_v46 = vmax.f32 %v14786_v13, 0.0 }
 0x923   : > { %v14939_v60 = vmax.f32 %v14781_v11, 0.0  ;;  %v22089_v41 = vpop.f32.mrb[212].mxu0 }
 0x924   : > { %v14796_v32 = vadd.f32 %v22089_v41, %v30224_v19  ;;  %v14790_v16 = vpop.f32.mrb[213].mxu0 }
 0x925   : > { %v14791_v25 = vadd.f32 %v30224_v19, %v14790_v16  ;;  %22140 = vmatprep.mubr.msk.f32.mxu0 %vm2085_vm0, %v14939_v60 }
 0x926   : > { %22141 = vmatmul.mubr.msk.f32.vlgmr.msra.gmra.mrb[242].mxu0 %vm2085_vm0, %v14940_v46  ;;  %v14942_v7 = vmax.f32 %v14796_v32, 0.0 }
 0x927   : > { %v14941_v48 = vmax.f32 %v14791_v25, 0.0  ;;  %v22092_v18 = vpop.f32.mrb[214].mxu0 }
 0x928   : > { %v14806_v61 = vadd.f32 %v22092_v18, %v30224_v19  ;;  %v14800_v45 = vpop.f32.mrb[215].mxu0 }
 0x929   : > { %v14801_v1 = vadd.f32 %v30224_v19, %v14800_v45  ;;  %22143 = vmatprep.mubr.msk.f32.mxu0 %vm2085_vm0, %v14941_v48 }
 0x92a   : > { %22144 = vmatmul.mubr.msk.f32.gmra.mrb[244].mxu0 %vm2085_vm0, %v14942_v7  ;;  %v14944_v24 = vmax.f32 %v14806_v61, 0.0 }
 0x92b   : > { %v14943_v21 = vmax.f32 %v14801_v1, 0.0  ;;  %v22095_v4 = vpop.f32.mrb[216].mxu0 }
 0x92c   : > { %v14816_v17 = vadd.f32 %v22095_v4, %v30224_v19  ;;  %v14810_v14 = vpop.f32.mrb[217].mxu0 }
 0x92d   : > { %v14811_v27 = vadd.f32 %v30224_v19, %v14810_v14  ;;  %22146 = vmatprep.mubr.msk.f32.mxu0 %vm2085_vm0, %v14943_v21 }
 0x92e   : > { %22147 = vmatmul.mubr.msk.f32.gmra.mrb[246].mxu0 %vm2085_vm0, %v14944_v24  ;;  %v14946_v15 = vmax.f32 %v14816_v17, 0.0 }
 0x92f   : > { %v14945_v33 = vmax.f32 %v14811_v27, 0.0  ;;  %v22098_v42 = vpop.f32.mrb[218].mxu0 }
 0x930   : > { %v14826_v43 = vadd.f32 %v22098_v42, %v30224_v19  ;;  %v14820_v10 = vpop.f32.mrb[219].mxu0 }
 0x931   : > { %v14821_v39 = vadd.f32 %v30224_v19, %v14820_v10  ;;  %22149 = vmatprep.mubr.msk.f32.mxu0 %vm2085_vm0, %v14945_v33 }
 0x932   : > { %22150 = vmatmul.mubr.msk.f32.gmra.mrb[248].mxu0 %vm2085_vm0, %v14946_v15  ;;  %v14948_v52 = vmax.f32 %v14826_v43, 0.0 }
 0x933   : > { %v14947_v9 = vmax.f32 %v14821_v39, 0.0  ;;  %v22101_v6 = vpop.f32.mrb[220].mxu0 }
 0x934   : > { %v14836_v37 = vadd.f32 %v22101_v6, %v30224_v19  ;;  %v14830_v26 = vpop.f32.mrb[221].mxu0 }
 0x935   : > { %v14831_v63 = vadd.f32 %v30224_v19, %v14830_v26  ;;  %22152 = vmatprep.mubr.msk.f32.mxu0 %vm2085_vm0, %v14947_v9 }
 0x936   : > { %22153 = vmatmul.mubr.msk.f32.gmra.mrb[250].mxu0 %vm2085_vm0, %v14948_v52  ;;  %v14950_v58 = vmax.f32 %v14836_v37, 0.0 }
 0x937   : > { %v14949_v53 = vmax.f32 %v14831_v63, 0.0  ;;  %v22104_v2 = vpop.f32.mrb[222].mxu0  ;;  %v16738_v63 = vld [vmem:[%s31480_s1] sm:$0xff] }
 0x938   : > { %v14846_v51 = vadd.f32 %v22104_v2, %v30224_v19  ;;  %v14840_v31 = vpop.f32.mrb[223].mxu0  ;;  %v16740_v2 = vld [vmem:[%s31480_s1 + $0x10] sm:$0xff] }
 0x939   : > { %v14841_v50 = vadd.f32 %v30224_v19, %v14840_v31  ;;  %22155 = vmatprep.mubr.msk.f32.mxu0 %vm2085_vm0, %v14949_v53  ;;  %v16739_v53 = vld [vmem:[%s31480_s1 + $0x8] sm:$0xff] }
 0x93a   : > { %22156 = vmatmul.mubr.msk.f32.gmra.mrb[252].mxu0 %vm2085_vm0, %v14950_v58  ;;  %v14952_v57 = vmax.f32 %v14846_v51, 0.0  ;;  %v22764_v58 = vpack.c.bf16 %v16739_v53, %v16738_v63  ;;  %v16741_v51 = vld [vmem:[%s31480_s1 + $0x18] sm:$0xff] }
 0x93b   : > { %v14951_v0 = vmax.f32 %v14841_v50, 0.0  ;;  %v22107_v38 = vpop.f32.mrb[224].mxu0  ;;  %v22768_v31 = vpack.c.bf16 %v16741_v51, %v16740_v2  ;;  %v16743_v50 = vld [vmem:[%s31480_s1 + $0x28] sm:$0xff] }
 0x93c   : > { %v14856_v29 = vadd.f32 %v22107_v38, %v30224_v19  ;;  %v14850_v55 = vpop.f32.mrb[225].mxu0  ;;  %22765 = vmatprep.subr.bf16.mxu0 %v22764_v58  ;;  %v16744_v38 = vld [vmem:[%s31480_s1 + $0x30] sm:$0xff] }
 0x93d   : > { %v14851_v8 = vadd.f32 %v30224_v19, %v14850_v55  ;;  %22158 = vmatprep.mubr.msk.f32.mxu0 %vm2085_vm0, %v14951_v0  ;;  %22767 = vmatpush3.bf16.msra.mxu0 %v22764_v58  ;;  %v30299_v55 = vld [vmem:[%s31481_s3] ss:$0 sm:$0xff]  ;;  %s31482_s3 = sld [smem:[#allocation21_spill]] }
 0x93e   : > { %22159 = vmatmul.mubr.msk.f32.gmra.mrb[254].mxu0 %vm2085_vm0, %v14952_v57  ;;  %v14954_v44 = vmax.f32 %v14856_v29, 0.0  ;;  %22769 = vmatprep.subr.bf16.mxu0 %v22768_v31  ;;  %v16745_v57 = vld [vmem:[%s31480_s1 + $0x38] sm:$0xff] }
 0x93f   : > { %v14953_v30 = vmax.f32 %v14851_v8, 0.0  ;;  %v22110_v5 = vpop.f32.mrb[226].mxu0  ;;  %v22776_v29 = vpack.c.bf16 %v16745_v57, %v16744_v38 }
 0x940   : > { %v14866_v47 = vadd.f32 %v22110_v5, %v30224_v19  ;;  %v14860_v35 = vpop.f32.mrb[227].mxu0 }
 0x941   : > { %v14861_v62 = vadd.f32 %v30224_v19, %v14860_v35  ;;  %22161 = vmatprep.mubr.msk.f32.mxu0 %vm2085_vm0, %v14953_v30  ;;  %22771 = vmatpush3.bf16.msra.mxu0 %v22768_v31 }
 0x942   : > { %22162 = vmatmul.mubr.msk.f32.gmra.mrb[0].mxu0 %vm2085_vm0, %v14954_v44  ;;  %v14956_v56 = vmax.f32 %v14866_v47, 0.0 }
 0x943   : > { %v14955_v40 = vmax.f32 %v14861_v62, 0.0  ;;  %v22113_v22 = vpop.f32.mrb[228].mxu0 }
 0x944   : > { %v14876_v59 = vadd.f32 %v22113_v22, %v30224_v19  ;;  %v14870_v54 = vpop.f32.mrb[229].mxu0 }
 0x945   : > { %v14871_v28 = vadd.f32 %v30224_v19, %v14870_v54  ;;  %22164 = vmatprep.mubr.msk.f32.mxu0 %vm2085_vm0, %v14955_v40 }
 0x946   : > { %22165 = vmatmul.mubr.msk.f32.gmra.mrb[2].mxu0 %vm2085_vm0, %v14956_v56  ;;  %v14958_v12 = vmax.f32 %v14876_v59, 0.0 }
 0x947   : > { %v14957_v20 = vmax.f32 %v14871_v28, 0.0  ;;  %v22116_v34 = vpop.f32.mrb[230].mxu0 }
 0x948   : > { %v14886_v36 = vadd.f32 %v22116_v34, %v30224_v19  ;;  %v14880_v49 = vpop.f32.mrb[231].mxu0 }
 0x949   : > { %v14881_v23 = vadd.f32 %v30224_v19, %v14880_v49  ;;  %22167 = vmatprep.mubr.msk.f32.mxu0 %vm2085_vm0, %v14957_v20 }
 0x94a   : > { %22168 = vmatmul.mubr.msk.f32.gmra.mrb[4].mxu0 %vm2085_vm0, %v14958_v12  ;;  %v14960_v11 = vmax.f32 %v14886_v36, 0.0 }
 0x94b   : > { %v14959_v13 = vmax.f32 %v14881_v23, 0.0  ;;  %v22119_v3 = vpop.f32.mrb[232].mxu0 }
 0x94c   : > { %v14896_v60 = vadd.f32 %v22119_v3, %v30224_v19  ;;  %v14890_v41 = vpop.f32.mrb[233].mxu0 }
 0x94d   : > { %v14891_v46 = vadd.f32 %v30224_v19, %v14890_v41  ;;  %22170 = vmatprep.mubr.msk.f32.mxu0 %vm2085_vm0, %v14959_v13 }
 0x94e   : > { %22171 = vmatmul.mubr.msk.f32.gmra.mrb[6].mxu0 %vm2085_vm0, %v14960_v11  ;;  %v14962_v25 = vmax.f32 %v14896_v60, 0.0 }
 0x94f   : > { %v14961_v32 = vmax.f32 %v14891_v46, 0.0  ;;  %v22122_v16 = vpop.f32.mrb[234].mxu0 }
 0x950   : > { %v14906_v48 = vadd.f32 %v22122_v16, %v30224_v19  ;;  %v14900_v18 = vpop.f32.mrb[235].mxu0 }
 0x951   : > { %v14901_v7 = vadd.f32 %v30224_v19, %v14900_v18  ;;  %22173 = vmatprep.mubr.msk.f32.mxu0 %vm2085_vm0, %v14961_v32 }
 0x952   : > { %22174 = vmatmul.mubr.msk.f32.gmra.mrb[8].mxu0 %vm2085_vm0, %v14962_v25  ;;  %v14964_v1 = vmax.f32 %v14906_v48, 0.0 }
 0x953   : > { %v14963_v61 = vmax.f32 %v14901_v7, 0.0  ;;  %v22125_v45 = vpop.f32.mrb[236].mxu0 }
 0x954   : > { %v14916_v21 = vadd.f32 %v22125_v45, %v30224_v19  ;;  %v14910_v4 = vpop.f32.mrb[237].mxu0 }
 0x955   : > { %v14911_v24 = vadd.f32 %v30224_v19, %v14910_v4  ;;  %22176 = vmatprep.mubr.msk.f32.mxu0 %vm2085_vm0, %v14963_v61 }
 0x956   : > { %22177 = vmatmul.mubr.msk.f32.gmra.mrb[10].mxu0 %vm2085_vm0, %v14964_v1  ;;  %v14966_v27 = vmax.f32 %v14916_v21, 0.0 }
 0x957   : > { %v14965_v17 = vmax.f32 %v14911_v24, 0.0  ;;  %v22128_v14 = vpop.f32.mrb[238].mxu0 }
 0x958   : > { %v14926_v33 = vadd.f32 %v22128_v14, %v30224_v19  ;;  %v14920_v42 = vpop.f32.mrb[239].mxu0 }
 0x959   : > { %v14921_v15 = vadd.f32 %v30224_v19, %v14920_v42  ;;  %22179 = vmatprep.mubr.msk.f32.mxu0 %vm2085_vm0, %v14965_v17 }
 0x95a   : > { %22180 = vmatmul.mubr.msk.f32.gmra.mrb[12].mxu0 %vm2085_vm0, %v14966_v27  ;;  %v14968_v39 = vmax.f32 %v14926_v33, 0.0 }
 0x95b   : > { %v14967_v43 = vmax.f32 %v14921_v15, 0.0  ;;  %v22131_v10 = vpop.f32.mrb[240].mxu0 }
 0x95c   : > { %v14936_v9 = vadd.f32 %v22131_v10, %v30224_v19  ;;  %v14930_v6 = vpop.f32.mrb[241].mxu0 }
 0x95d   : > { %v14931_v52 = vadd.f32 %v30224_v19, %v14930_v6  ;;  %22182 = vmatprep.mubr.msk.f32.mxu0 %vm2085_vm0, %v14967_v43  ;;  %v16742_v19 = vld [vmem:[%s31480_s1 + $0x20] sm:$0xff] }
 0x95e   : > { %22183 = vmatmul.mubr.msk.f32.gmra.mrb[14].mxu0 %vm2085_vm0, %v14968_v39  ;;  %v14970_v26 = vmax.f32 %v14936_v9, 0.0  ;;  %v22772_v0 = vpack.c.bf16 %v16743_v50, %v16742_v19 }
 0x95f   : > { %v14969_v37 = vmax.f32 %v14931_v52, 0.0 }
 0x960   : > { %22773 = vmatprep.subr.bf16.mxu0 %v22772_v0 }
 0x961   : > { %22185 = vmatprep.mubr.msk.f32.mxu0 %vm2085_vm0, %v14969_v37  ;;  %22775 = vmatpush3.bf16.msra.mxu0 %v22772_v0 }
 0x962   : > { %22186 = vmatmul.mubr.msk.f32.gmra.mrb[16].mxu0 %vm2085_vm0, %v14970_v26  ;;  %22777 = vmatprep.subr.bf16.mxu0 %v22776_v29 }
 0x965   : > { %22779 = vmatpush3.bf16.msra.mxu0 %v22776_v29 }
 0x9f9   : > { %v22142_v8 = vpop.f32.mrb[242].mxu0 }
 0x9fa   : > { %v15144_v30 = vpop.f32.mrb[243].mxu0  ;;  %v15150_v44 = vadd.f32 %v22142_v8, %v30299_v55 }
 0x9fb   : > { %v15145_v5 = vadd.f32 %v30299_v55, %v15144_v30  ;;  %v17107_v30 = vld [vmem:[%s23803_s25] sm:$0xff] }
 0x9fd   : > { %v22145_v47 = vpop.f32.mrb[244].mxu0  ;;  %22364 = vmatprep.mubr.msk.f32.mxu1 %vm2085_vm0, %v15145_v5  ;;  %v17108_v5 = vld [vmem:[%s23803_s25 + $0x8] sm:$0xff] }
 0x9fe   : > { %v15154_v35 = vpop.f32.mrb[245].mxu0  ;;  %22365 = vmatmul.mubr.msk.f32.vlgmr.msra.gmra.mrb[142].mxu1 %vm2085_vm0, %v15150_v44  ;;  %v15160_v40 = vadd.f32 %v22145_v47, %v30299_v55  ;;  %v22780_v44 = vpack.c.bf16 %v17108_v5, %v17107_v30  ;;  %v30368_v47 = vld [vmem:[%s31482_s3] ss:$0 sm:$0xff]  ;;  %s30700_s3 = sand.u32 1, %s23597_s16  }
 0x9ff   : > { %v15155_v62 = vadd.f32 %v30299_v55, %v15154_v35  ;;  %s17621_s1 = sshll.u32 %s30700_s3, 8 }
 0xa00   : > { %22781 = vmatprep.subr.bf16.mxu0 %v22780_v44  ;;  %s30515_s5 = scalar_lea.vmem [#allocation2], %s17621_s1  ;;  %s19311_s1 = sshll.u32 %s23836_s0, 12 }
 0xa01   : > { %v22148_v22 = vpop.f32.mrb[246].mxu0  ;;  %22367 = vmatprep.mubr.msk.f32.mxu1 %vm2085_vm0, %v15155_v62  ;;  %s17489_s3 = sshll.u32 %s30515_s5, 4  ;;  %s30588_s0 = scalar_lea.sflag [#allocation3], %s31484_s6  ;;  %s30581_s3 = int_to_ptr.vmem [resolvable:$true] %s17489_s3 }
 0xa02   : > { %v15164_v56 = vpop.f32.mrb[247].mxu0  ;;  %22368 = vmatmul.mubr.msk.f32.gmra.mrb[144].mxu1 %vm2085_vm0, %v15160_v40  ;;  %v15170_v54 = vadd.f32 %v22148_v22, %v30299_v55  ;;  %s23543_s8 = scalar_lea.vmem %s30581_s3, 4096 }
 0xa03   : > { %v15165_v59 = vadd.f32 %v30299_v55, %v15164_v56  ;;  %v17109_v56 = vld [vmem:[%s23803_s25 + $0x10] sm:$0xff]  ;;  %p23544_p11 = scmp.ne.s32.totalorder %s30581_s3, %s23543_s8 }
 0xa05   : > { %v22151_v28 = vpop.f32.mrb[248].mxu0  ;;  %22370 = vmatprep.mubr.msk.f32.mxu1 %vm2085_vm0, %v15165_v59  ;;  %p23545_p12 = pnand %p23544_p11, %p23853_p5 }
 0xa06   : > { %v15174_v20 = vpop.f32.mrb[249].mxu0  ;;  %22371 = vmatmul.mubr.msk.f32.gmra.mrb[146].mxu1 %vm2085_vm0, %v15170_v54  ;;  %v15180_v12 = vadd.f32 %v22151_v28, %v30299_v55 }
 0xa07   : > { %v15175_v34 = vadd.f32 %v30299_v55, %v15174_v20  ;;  %p23546_p13 = pneg %p23545_p12 }
 0xa09   : > { %v22154_v36 = vpop.f32.mrb[250].mxu0  ;;  %22373 = vmatprep.mubr.msk.f32.mxu1 %vm2085_vm0, %v15175_v34 }
 0xa0a   : > { %v15184_v49 = vpop.f32.mrb[251].mxu0  ;;  %22374 = vmatmul.mubr.msk.f32.gmra.mrb[148].mxu1 %vm2085_vm0, %v15180_v12  ;;  %v15190_v13 = vadd.f32 %v22154_v36, %v30299_v55 }
 0xa0b   : > { %v15185_v23 = vadd.f32 %v30299_v55, %v15184_v49  ;;  %v17111_v49 = vld [vmem:[%s23803_s25 + $0x20] sm:$0xff] }
 0xa0d   : > { %v22157_v3 = vpop.f32.mrb[252].mxu0  ;;  %22376 = vmatprep.mubr.msk.f32.mxu1 %vm2085_vm0, %v15185_v23  ;;  %v17112_v23 = vld [vmem:[%s23803_s25 + $0x28] sm:$0xff] }
 0xa0e   : > { %v15194_v11 = vpop.f32.mrb[253].mxu0  ;;  %22377 = vmatmul.mubr.msk.f32.gmra.mrb[150].mxu1 %vm2085_vm0, %v15190_v13  ;;  %v15200_v41 = vadd.f32 %v22157_v3, %v30299_v55 }
 0xa0f   : > { %v15195_v60 = vadd.f32 %v30299_v55, %v15194_v11 }
 0xa11   : > { %v22160_v46 = vpop.f32.mrb[254].mxu0  ;;  %22379 = vmatprep.mubr.msk.f32.mxu1 %vm2085_vm0, %v15195_v60 }
 0xa12   : > { %v15204_v32 = vpop.f32.mrb[255].mxu0  ;;  %22380 = vmatmul.mubr.msk.f32.gmra.mrb[152].mxu1 %vm2085_vm0, %v15200_v41  ;;  %v15210_v25 = vadd.f32 %v22160_v46, %v30299_v55  ;;  %v22788_v46 = vpack.c.bf16 %v17112_v23, %v17111_v49 }
 0xa13   : > { %v15205_v16 = vadd.f32 %v30299_v55, %v15204_v32 }
 0xa15   : > { %v22163_v48 = vpop.f32.mrb[0].mxu0  ;;  %22382 = vmatprep.mubr.msk.f32.mxu1 %vm2085_vm0, %v15205_v16  ;;  %v17113_v16 = vld [vmem:[%s23803_s25 + $0x30] sm:$0xff] }
 0xa16   : > { %v15214_v18 = vpop.f32.mrb[1].mxu0  ;;  %22383 = vmatmul.mubr.msk.f32.gmra.mrb[154].mxu1 %vm2085_vm0, %v15210_v25  ;;  %v15220_v61 = vadd.f32 %v22163_v48, %v30299_v55  ;;  %v17114_v25 = vld [vmem:[%s23803_s25 + $0x38] sm:$0xff] }
 0xa17   : > { %v15215_v7 = vadd.f32 %v30299_v55, %v15214_v18 }
 0xa19   : > { %v22166_v45 = vpop.f32.mrb[2].mxu0  ;;  %22385 = vmatprep.mubr.msk.f32.mxu1 %vm2085_vm0, %v15215_v7 }
 0xa1a   : > { %v15224_v1 = vpop.f32.mrb[3].mxu0  ;;  %22386 = vmatmul.mubr.msk.f32.gmra.mrb[156].mxu1 %vm2085_vm0, %v15220_v61  ;;  %v15230_v4 = vadd.f32 %v22166_v45, %v30299_v55 }
 0xa1b   : > { %v15225_v21 = vadd.f32 %v30299_v55, %v15224_v1  ;;  %v22792_v1 = vpack.c.bf16 %v17114_v25, %v17113_v16 }
 0xa1d   : > { %v22169_v24 = vpop.f32.mrb[4].mxu0  ;;  %22388 = vmatprep.mubr.msk.f32.mxu1 %vm2085_vm0, %v15225_v21 }
 0xa1e   : > { %v15234_v17 = vpop.f32.mrb[5].mxu0  ;;  %22389 = vmatmul.mubr.msk.f32.gmra.mrb[158].mxu1 %vm2085_vm0, %v15230_v4  ;;  %v15240_v27 = vadd.f32 %v22169_v24, %v30299_v55 }
 0xa1f   : > { %v15235_v14 = vadd.f32 %v30299_v55, %v15234_v17 }
 0xa21   : > { %v22172_v33 = vpop.f32.mrb[6].mxu0  ;;  %22391 = vmatprep.mubr.msk.f32.mxu1 %vm2085_vm0, %v15235_v14 }
 0xa22   : > { %v15244_v42 = vpop.f32.mrb[7].mxu0  ;;  %22392 = vmatmul.mubr.msk.f32.gmra.mrb[160].mxu1 %vm2085_vm0, %v15240_v27  ;;  %v15250_v43 = vadd.f32 %v22172_v33, %v30299_v55 }
 0xa23   : > { %v15245_v15 = vadd.f32 %v30299_v55, %v15244_v42 }
 0xa25   : > { %v22175_v10 = vpop.f32.mrb[8].mxu0  ;;  %22394 = vmatprep.mubr.msk.f32.mxu1 %vm2085_vm0, %v15245_v15 }
 0xa26   : > { %v15254_v39 = vpop.f32.mrb[9].mxu0  ;;  %22395 = vmatmul.mubr.msk.f32.gmra.mrb[162].mxu1 %vm2085_vm0, %v15250_v43  ;;  %v15260_v6 = vadd.f32 %v22175_v10, %v30299_v55 }
 0xa27   : > { %v15255_v9 = vadd.f32 %v30299_v55, %v15254_v39 }
 0xa29   : > { %v22178_v52 = vpop.f32.mrb[10].mxu0  ;;  %22397 = vmatprep.mubr.msk.f32.mxu1 %vm2085_vm0, %v15255_v9 }
 0xa2a   : > { %v15264_v37 = vpop.f32.mrb[11].mxu0  ;;  %22398 = vmatmul.mubr.msk.f32.gmra.mrb[164].mxu1 %vm2085_vm0, %v15260_v6  ;;  %v15270_v63 = vadd.f32 %v22178_v52, %v30299_v55 }
 0xa2b   : > { %v15265_v26 = vadd.f32 %v30299_v55, %v15264_v37 }
 0xa2d   : > { %v22181_v53 = vpop.f32.mrb[12].mxu0  ;;  %22400 = vmatprep.mubr.msk.f32.mxu1 %vm2085_vm0, %v15265_v26 }
 0xa2e   : > { %v15274_v2 = vpop.f32.mrb[13].mxu0  ;;  %22401 = vmatmul.mubr.msk.f32.gmra.mrb[166].mxu1 %vm2085_vm0, %v15270_v63  ;;  %v15280_v51 = vadd.f32 %v22181_v53, %v30299_v55 }
 0xa2f   : > { %v15275_v58 = vadd.f32 %v30299_v55, %v15274_v2 }
 0xa31   : > { %v22184_v31 = vpop.f32.mrb[14].mxu0  ;;  %22403 = vmatprep.mubr.msk.f32.mxu1 %vm2085_vm0, %v15275_v58 }
 0xa32   : > { %v15284_v19 = vpop.f32.mrb[15].mxu0  ;;  %22404 = vmatmul.mubr.msk.f32.gmra.mrb[168].mxu1 %vm2085_vm0, %v15280_v51  ;;  %v15290_v0 = vadd.f32 %v22184_v31, %v30299_v55 }
 0xa33   : > { %v15285_v50 = vadd.f32 %v30299_v55, %v15284_v19 }
 0xa35   : > { %v22187_v38 = vpop.f32.mrb[16].mxu0  ;;  %22406 = vmatprep.mubr.msk.f32.mxu1 %vm2085_vm0, %v15285_v50 }
 0xa36   : > { %v15294_v57 = vpop.f32.mrb[17].mxu0  ;;  %22407 = vmatmul.mubr.msk.f32.gmra.mrb[170].mxu1 %vm2085_vm0, %v15290_v0  ;;  %v15300_v8 = vadd.f32 %v22187_v38, %v30299_v55 }
 0xa37   : > { %v15295_v29 = vadd.f32 %v30299_v55, %v15294_v57  ;;  %v17110_v55 = vld [vmem:[%s23803_s25 + $0x18] sm:$0xff] }
 0xa38   : > { %v22784_v12 = vpack.c.bf16 %v17110_v55, %v17109_v56 }
 0xa39   : > { %22409 = vmatprep.mubr.msk.f32.mxu1 %vm2085_vm0, %v15295_v29 }
 0xa3a   : > { %22410 = vmatmul.mubr.msk.f32.gmra.mrb[172].mxu1 %vm2085_vm0, %v15300_v8 }
 0xad1   : > { %v22366_v35 = vpop.f32.mrb[142].mxu1 }
 0xad2   : > { %v16675_v62 = vadd.f32 %v22366_v35, %v30368_v47  ;;  %v16476_v40 = vpop.f32.mrb[143].mxu1 }
 0xad3   : > { %v16674_v22 = vadd.f32 %v30368_v47, %v16476_v40 }
 0xad4   : > { %v16707_v28 = vmax.f32 %v16675_v62, 0.0 }
 0xad5   : > { %v16706_v59 = vmax.f32 %v16674_v22, 0.0  ;;  %v22369_v54 = vpop.f32.mrb[144].mxu1 }
 0xad6   : > { %v16677_v20 = vadd.f32 %v22369_v54, %v30368_v47  ;;  %v16486_v34 = vpop.f32.mrb[145].mxu1 }
 0xad7   : > { %v16676_v36 = vadd.f32 %v30368_v47, %v16486_v34  ;;  %22428 = vmatprep.mubr.msk.f32.mxu0 %vm16753_vm7, %v16706_v59 }
 0xad8   : > { %22429 = vmatmul.mubr.msk.f32.vlgmr.msra.gmra.mrb[18].mxu0 %vm16753_vm7, %v16707_v28  ;;  %v16709_v11 = vmax.f32 %v16677_v20, 0.0 }
 0xad9   : > { %v16708_v13 = vmax.f32 %v16676_v36, 0.0  ;;  %v22372_v3 = vpop.f32.mrb[146].mxu1  ;;  %22783 = vmatpush3.bf16.msra.mxu0 %v22780_v44 }
 0xada   : > { %v16679_v60 = vadd.f32 %v22372_v3, %v30368_v47  ;;  %v16496_v41 = vpop.f32.mrb[147].mxu1  ;;  %22785 = vmatprep.subr.bf16.mxu0 %v22784_v12 }
 0xadb   : > { %v16678_v32 = vadd.f32 %v30368_v47, %v16496_v41  ;;  %22431 = vmatprep.mubr.msk.f32.mxu0 %vm16753_vm7, %v16708_v13 }
 0xadc   : > { %22432 = vmatmul.mubr.msk.f32.gmra.mrb[20].mxu0 %vm16753_vm7, %v16709_v11  ;;  %v16711_v7 = vmax.f32 %v16679_v60, 0.0 }
 0xadd   : > { %v16710_v48 = vmax.f32 %v16678_v32, 0.0  ;;  %v22375_v18 = vpop.f32.mrb[148].mxu1  ;;  %22787 = vmatpush3.bf16.msra.mxu0 %v22784_v12 }
 0xade   : > { %v16681_v61 = vadd.f32 %v22375_v18, %v30368_v47  ;;  %v16506_v45 = vpop.f32.mrb[149].mxu1  ;;  %22789 = vmatprep.subr.bf16.mxu0 %v22788_v46 }
 0xadf   : > { %v16680_v21 = vadd.f32 %v30368_v47, %v16506_v45  ;;  %22434 = vmatprep.mubr.msk.f32.mxu0 %vm16753_vm7, %v16710_v48 }
 0xae0   : > { %22435 = vmatmul.mubr.msk.f32.gmra.mrb[22].mxu0 %vm16753_vm7, %v16711_v7  ;;  %v16713_v17 = vmax.f32 %v16681_v61, 0.0 }
 0xae1   : > { %v16712_v4 = vmax.f32 %v16680_v21, 0.0  ;;  %v22378_v24 = vpop.f32.mrb[150].mxu1  ;;  %22791 = vmatpush3.bf16.msra.mxu0 %v22788_v46 }
 0xae2   : > { %v16683_v14 = vadd.f32 %v22378_v24, %v30368_v47  ;;  %v16516_v27 = vpop.f32.mrb[151].mxu1  ;;  %22793 = vmatprep.subr.bf16.mxu0 %v22792_v1 }
 0xae3   : > { %v16682_v33 = vadd.f32 %v30368_v47, %v16516_v27  ;;  %22437 = vmatprep.mubr.msk.f32.mxu0 %vm16753_vm7, %v16712_v4 }
 0xae4   : > { %22438 = vmatmul.mubr.msk.f32.gmra.mrb[24].mxu0 %vm16753_vm7, %v16713_v17  ;;  %v16715_v43 = vmax.f32 %v16683_v14, 0.0 }
 0xae5   : > { %v16714_v42 = vmax.f32 %v16682_v33, 0.0  ;;  %v22381_v15 = vpop.f32.mrb[152].mxu1  ;;  %22795 = vmatpush3.bf16.msra.mxu0 %v22792_v1 }
 0xae6   : > { %v16685_v10 = vadd.f32 %v22381_v15, %v30368_v47  ;;  %v16526_v39 = vpop.f32.mrb[153].mxu1 }
 0xae7   : > { %v16684_v9 = vadd.f32 %v30368_v47, %v16526_v39  ;;  %22440 = vmatprep.mubr.msk.f32.mxu0 %vm16753_vm7, %v16714_v42 }
 0xae8   : > { %22441 = vmatmul.mubr.msk.f32.gmra.mrb[26].mxu0 %vm16753_vm7, %v16715_v43  ;;  %v16717_v37 = vmax.f32 %v16685_v10, 0.0 }
 0xae9   : > { %v16716_v6 = vmax.f32 %v16684_v9, 0.0  ;;  %v22384_v52 = vpop.f32.mrb[154].mxu1  ;;  %v30441_v9 = vld [vmem:[%s23798_s20] ss:$0 sm:$0xff] }
 0xaea   : > { %v16687_v26 = vadd.f32 %v22384_v52, %v30368_v47  ;;  %v16536_v63 = vpop.f32.mrb[155].mxu1 }
 0xaeb   : > { %v16686_v53 = vadd.f32 %v30368_v47, %v16536_v63  ;;  %22443 = vmatprep.mubr.msk.f32.mxu0 %vm16753_vm7, %v16716_v6 }
 0xaec   : > { %22444 = vmatmul.mubr.msk.f32.gmra.mrb[28].mxu0 %vm16753_vm7, %v16717_v37  ;;  %v16719_v51 = vmax.f32 %v16687_v26, 0.0 }
 0xaed   : > { %v16718_v2 = vmax.f32 %v16686_v53, 0.0  ;;  %v22387_v58 = vpop.f32.mrb[156].mxu1 }
 0xaee   : > { %v16689_v31 = vadd.f32 %v22387_v58, %v30368_v47  ;;  %v16546_v19 = vpop.f32.mrb[157].mxu1 }
 0xaef   : > { %v16688_v50 = vadd.f32 %v30368_v47, %v16546_v19  ;;  %22446 = vmatprep.mubr.msk.f32.mxu0 %vm16753_vm7, %v16718_v2 }
 0xaf0   : > { %22447 = vmatmul.mubr.msk.f32.gmra.mrb[30].mxu0 %vm16753_vm7, %v16719_v51  ;;  %v16721_v57 = vmax.f32 %v16689_v31, 0.0 }
 0xaf1   : > { %v16720_v0 = vmax.f32 %v16688_v50, 0.0  ;;  %v22390_v38 = vpop.f32.mrb[158].mxu1 }
 0xaf2   : > { %v16691_v29 = vadd.f32 %v22390_v38, %v30368_v47  ;;  %v16556_v8 = vpop.f32.mrb[159].mxu1 }
 0xaf3   : > { %v16690_v30 = vadd.f32 %v30368_v47, %v16556_v8  ;;  %22449 = vmatprep.mubr.msk.f32.mxu0 %vm16753_vm7, %v16720_v0 }
 0xaf4   : > { %22450 = vmatmul.mubr.msk.f32.gmra.mrb[32].mxu0 %vm16753_vm7, %v16721_v57  ;;  %v16723_v35 = vmax.f32 %v16691_v29, 0.0 }
 0xaf5   : > { %v16722_v5 = vmax.f32 %v16690_v30, 0.0  ;;  %v22393_v44 = vpop.f32.mrb[160].mxu1 }
 0xaf6   : > { %v16693_v62 = vadd.f32 %v22393_v44, %v30368_v47  ;;  %v16566_v40 = vpop.f32.mrb[161].mxu1 }
 0xaf7   : > { %v16692_v22 = vadd.f32 %v30368_v47, %v16566_v40  ;;  %22452 = vmatprep.mubr.msk.f32.mxu0 %vm16753_vm7, %v16722_v5 }
 0xaf8   : > { %22453 = vmatmul.mubr.msk.f32.gmra.mrb[34].mxu0 %vm16753_vm7, %v16723_v35  ;;  %v16725_v59 = vmax.f32 %v16693_v62, 0.0 }
 0xaf9   : > { %v16724_v56 = vmax.f32 %v16692_v22, 0.0  ;;  %v22396_v55 = vpop.f32.mrb[162].mxu1 }
 0xafa   : > { %v16695_v54 = vadd.f32 %v22396_v55, %v30368_v47  ;;  %v16576_v28 = vpop.f32.mrb[163].mxu1 }
 0xafb   : > { %v16694_v20 = vadd.f32 %v30368_v47, %v16576_v28  ;;  %22455 = vmatprep.mubr.msk.f32.mxu0 %vm16753_vm7, %v16724_v56 }
 0xafc   : > { %22456 = vmatmul.mubr.msk.f32.gmra.mrb[36].mxu0 %vm16753_vm7, %v16725_v59  ;;  %v16727_v36 = vmax.f32 %v16695_v54, 0.0 }
 0xafd   : > { %v16726_v34 = vmax.f32 %v16694_v20, 0.0  ;;  %v22399_v12 = vpop.f32.mrb[164].mxu1 }
 0xafe   : > { %v16697_v49 = vadd.f32 %v22399_v12, %v30368_v47  ;;  %v16586_v23 = vpop.f32.mrb[165].mxu1 }
 0xaff   : > { %v16696_v13 = vadd.f32 %v30368_v47, %v16586_v23  ;;  %22458 = vmatprep.mubr.msk.f32.mxu0 %vm16753_vm7, %v16726_v34 }
 0xb00   : > { %22459 = vmatmul.mubr.msk.f32.gmra.mrb[38].mxu0 %vm16753_vm7, %v16727_v36  ;;  %v16729_v60 = vmax.f32 %v16697_v49, 0.0 }
 0xb01   : > { %v16728_v3 = vmax.f32 %v16696_v13, 0.0  ;;  %v22402_v11 = vpop.f32.mrb[166].mxu1 }
 0xb02   : > { %v16699_v41 = vadd.f32 %v22402_v11, %v30368_v47  ;;  %v16596_v46 = vpop.f32.mrb[167].mxu1 }
 0xb03   : > { %v16698_v32 = vadd.f32 %v30368_v47, %v16596_v46  ;;  %22461 = vmatprep.mubr.msk.f32.mxu0 %vm16753_vm7, %v16728_v3 }
 0xb04   : > { %22462 = vmatmul.mubr.msk.f32.gmra.mrb[40].mxu0 %vm16753_vm7, %v16729_v60  ;;  %v16731_v48 = vmax.f32 %v16699_v41, 0.0 }
 0xb05   : > { %v16730_v16 = vmax.f32 %v16698_v32, 0.0  ;;  %v22405_v25 = vpop.f32.mrb[168].mxu1 }
 0xb06   : > { %v16701_v18 = vadd.f32 %v22405_v25, %v30368_v47  ;;  %v16606_v7 = vpop.f32.mrb[169].mxu1 }
 0xb07   : > { %v16700_v61 = vadd.f32 %v30368_v47, %v16606_v7  ;;  %22464 = vmatprep.mubr.msk.f32.mxu0 %vm16753_vm7, %v16730_v16 }
 0xb08   : > { %22465 = vmatmul.mubr.msk.f32.gmra.mrb[42].mxu0 %vm16753_vm7, %v16731_v48  ;;  %v16733_v21 = vmax.f32 %v16701_v18, 0.0 }
 0xb09   : > { %v16732_v45 = vmax.f32 %v16700_v61, 0.0  ;;  %v22408_v1 = vpop.f32.mrb[170].mxu1 }
 0xb0a   : > { %v16703_v4 = vadd.f32 %v22408_v1, %v30368_v47  ;;  %v16616_v24 = vpop.f32.mrb[171].mxu1 }
 0xb0b   : > { %v16702_v17 = vadd.f32 %v30368_v47, %v16616_v24  ;;  %22467 = vmatprep.mubr.msk.f32.mxu0 %vm16753_vm7, %v16732_v45 }
 0xb0c   : > { %22468 = vmatmul.mubr.msk.f32.gmra.mrb[44].mxu0 %vm16753_vm7, %v16733_v21  ;;  %v16735_v33 = vmax.f32 %v16703_v4, 0.0 }
 0xb0d   : > { %v16734_v14 = vmax.f32 %v16702_v17, 0.0  ;;  %v22411_v27 = vpop.f32.mrb[172].mxu1 }
 0xb0e   : > { %v16705_v42 = vadd.f32 %v22411_v27, %v30368_v47  ;;  %v16626_v15 = vpop.f32.mrb[173].mxu1 }
 0xb0f   : > { %v16704_v43 = vadd.f32 %v30368_v47, %v16626_v15  ;;  %22470 = vmatprep.mubr.msk.f32.mxu0 %vm16753_vm7, %v16734_v14 }
 0xb10   : > { %22471 = vmatmul.mubr.msk.f32.gmra.mrb[46].mxu0 %vm16753_vm7, %v16735_v33  ;;  %v16737_v39 = vmax.f32 %v16705_v42, 0.0 }
 0xb11   : > { %v16736_v10 = vmax.f32 %v16704_v43, 0.0 }
 0xb13   : > { %22473 = vmatprep.mubr.msk.f32.mxu0 %vm16753_vm7, %v16736_v10 }
 0xb14   : > { %22474 = vmatmul.mubr.msk.f32.gmra.mrb[48].mxu0 %vm16753_vm7, %v16737_v39 }
 0xbab   : > { %v22430_v6 = vpop.f32.mrb[18].mxu0 }
 0xbac   : > { %v16922_v52 = vadd.f32 %v22430_v6, %v30441_v9  ;;  %v16916_v37 = vpop.f32.mrb[19].mxu0 }
 0xbad   : > { %v16917_v26 = vadd.f32 %v30441_v9, %v16916_v37 }
 0xbae   : > { %v17076_v53 = vmax.f32 %v16922_v52, 0.0 }
 0xbaf   : > { %v17075_v63 = vmax.f32 %v16917_v26, 0.0  ;;  %v22433_v47 = vpop.f32.mrb[20].mxu0 }
 0xbb0   : > { %v16932_v2 = vadd.f32 %v22433_v47, %v30441_v9  ;;  %v16926_v58 = vpop.f32.mrb[21].mxu0 }
 0xbb1   : > { %v16927_v51 = vadd.f32 %v30441_v9, %v16926_v58  ;;  %22492 = vmatprep.mubr.msk.f32.mxu0 %vm16753_vm7, %v17075_v63 }
 0xbb2   : > { %22493 = vmatmul.mubr.msk.f32.vlgmr.msra.gmra.mrb[50].mxu0 %vm16753_vm7, %v17076_v53  ;;  %v17078_v50 = vmax.f32 %v16932_v2, 0.0 }
 0xbb3   : > { %v17077_v31 = vmax.f32 %v16927_v51, 0.0  ;;  %v22436_v19 = vpop.f32.mrb[22].mxu0 }
 0xbb4   : > { %v16942_v0 = vadd.f32 %v22436_v19, %v30441_v9  ;;  %v16936_v38 = vpop.f32.mrb[23].mxu0 }
 0xbb5   : > { %v16937_v57 = vadd.f32 %v30441_v9, %v16936_v38  ;;  %22495 = vmatprep.mubr.msk.f32.mxu0 %vm16753_vm7, %v17077_v31 }
 0xbb6   : > { %22496 = vmatmul.mubr.msk.f32.gmra.mrb[52].mxu0 %vm16753_vm7, %v17078_v50  ;;  %v17080_v30 = vmax.f32 %v16942_v0, 0.0 }
 0xbb7   : > { %v17079_v29 = vmax.f32 %v16937_v57, 0.0  ;;  %v22439_v8 = vpop.f32.mrb[24].mxu0 }
 0xbb8   : > { %v16952_v5 = vadd.f32 %v22439_v8, %v30441_v9  ;;  %v16946_v44 = vpop.f32.mrb[25].mxu0 }
 0xbb9   : > { %v16947_v35 = vadd.f32 %v30441_v9, %v16946_v44  ;;  %22498 = vmatprep.mubr.msk.f32.mxu0 %vm16753_vm7, %v17079_v29 }
 0xbba   : > { %22499 = vmatmul.mubr.msk.f32.gmra.mrb[54].mxu0 %vm16753_vm7, %v17080_v30  ;;  %v17082_v22 = vmax.f32 %v16952_v5, 0.0 }
 0xbbb   : > { %v17081_v62 = vmax.f32 %v16947_v35, 0.0  ;;  %v22442_v40 = vpop.f32.mrb[26].mxu0 }
 0xbbc   : > { %v16962_v56 = vadd.f32 %v22442_v40, %v30441_v9  ;;  %v16956_v55 = vpop.f32.mrb[27].mxu0 }
 0xbbd   : > { %v16957_v59 = vadd.f32 %v30441_v9, %v16956_v55  ;;  %22501 = vmatprep.mubr.msk.f32.mxu0 %vm16753_vm7, %v17081_v62 }
 0xbbe   : > { %22502 = vmatmul.mubr.msk.f32.gmra.mrb[56].mxu0 %vm16753_vm7, %v17082_v22  ;;  %v17084_v20 = vmax.f32 %v16962_v56, 0.0 }
 0xbbf   : > { %v17083_v54 = vmax.f32 %v16957_v59, 0.0  ;;  %v22445_v28 = vpop.f32.mrb[28].mxu0 }
 0xbc0   : > { %v16972_v34 = vadd.f32 %v22445_v28, %v30441_v9  ;;  %v16966_v12 = vpop.f32.mrb[29].mxu0 }
 0xbc1   : > { %v16967_v36 = vadd.f32 %v30441_v9, %v16966_v12  ;;  %22504 = vmatprep.mubr.msk.f32.mxu0 %vm16753_vm7, %v17083_v54 }
 0xbc2   : > { %22505 = vmatmul.mubr.msk.f32.gmra.mrb[58].mxu0 %vm16753_vm7, %v17084_v20  ;;  %v17086_v13 = vmax.f32 %v16972_v34, 0.0 }
 0xbc3   : > { %v17085_v49 = vmax.f32 %v16967_v36, 0.0  ;;  %v22448_v23 = vpop.f32.mrb[30].mxu0  ;;  %v30511_v36 = vld [vmem:[%s31483_s4] ss:$0 sm:$0xff]  ;;  %s30579_s4 = scalar_lea.hbm %s23813_s24, %s19311_s1  ;;  %s23547_s1 = sshll.u32 %s23652_s9, 4  ;;  %s23548_s1 = int_to_ptr.vmem [resolvable:$false] %s23547_s1 }
 0xbc4   : > { %v16982_v3 = vadd.f32 %v22448_v23, %v30441_v9  ;;  %v16976_v11 = vpop.f32.mrb[31].mxu0  ;;  %s23549_s11 = scalar_lea.vmem %s23548_s1, 8192  ;;  %p23550_p0 = scmp.lt.s32.totalorder %s30581_s3, %s23548_s1 }
 0xbc5   : > { %v16977_v60 = vadd.f32 %v30441_v9, %v16976_v11  ;;  %22507 = vmatprep.mubr.msk.f32.mxu0 %vm16753_vm7, %v17085_v49  ;;  %p23551_p1 = scmp.lt.s32.totalorder %s23549_s11, %s23543_s8 }
 0xbc6   : > { %22508 = vmatmul.mubr.msk.f32.gmra.mrb[60].mxu0 %vm16753_vm7, %v17086_v13  ;;  %v17088_v32 = vmax.f32 %v16982_v3, 0.0 }
 0xbc7   : > { %v17087_v41 = vmax.f32 %v16977_v60, 0.0  ;;  %v22451_v46 = vpop.f32.mrb[32].mxu0  ;;  %p23552_p2 = por %p23551_p1, %p23550_p0 }
 0xbc8   : > { %v16992_v16 = vadd.f32 %v22451_v46, %v30441_v9  ;;  %v16986_v25 = vpop.f32.mrb[33].mxu0 }
 0xbc9   : > { %v16987_v48 = vadd.f32 %v30441_v9, %v16986_v25  ;;  %22510 = vmatprep.mubr.msk.f32.mxu0 %vm16753_vm7, %v17087_v41  ;;  %p23553_p3 = pnand %p23552_p2, %p23546_p13 }
 0xbca   : > { %22511 = vmatmul.mubr.msk.f32.gmra.mrb[62].mxu0 %vm16753_vm7, %v17088_v32  ;;  %v17090_v61 = vmax.f32 %v16992_v16, 0.0 }
 0xbcb   : > { %v17089_v18 = vmax.f32 %v16987_v48, 0.0  ;;  %v22454_v7 = vpop.f32.mrb[34].mxu0 }
 0xbcc   : > { %v17002_v45 = vadd.f32 %v22454_v7, %v30441_v9  ;;  %v16996_v1 = vpop.f32.mrb[35].mxu0 }
 0xbcd   : > { %v16997_v21 = vadd.f32 %v30441_v9, %v16996_v1  ;;  %22513 = vmatprep.mubr.msk.f32.mxu0 %vm16753_vm7, %v17089_v18 }
 0xbce   : > { %22514 = vmatmul.mubr.msk.f32.gmra.mrb[64].mxu0 %vm16753_vm7, %v17090_v61  ;;  %v17092_v17 = vmax.f32 %v17002_v45, 0.0 }
 0xbcf   : > { %v17091_v4 = vmax.f32 %v16997_v21, 0.0  ;;  %v22457_v24 = vpop.f32.mrb[36].mxu0 }
 0xbd0   : > { %v17012_v14 = vadd.f32 %v22457_v24, %v30441_v9  ;;  %v17006_v27 = vpop.f32.mrb[37].mxu0 }
 0xbd1   : > { %v17007_v33 = vadd.f32 %v30441_v9, %v17006_v27  ;;  %22516 = vmatprep.mubr.msk.f32.mxu0 %vm16753_vm7, %v17091_v4 }
 0xbd2   : > { %22517 = vmatmul.mubr.msk.f32.gmra.mrb[66].mxu0 %vm16753_vm7, %v17092_v17  ;;  %v17094_v43 = vmax.f32 %v17012_v14, 0.0 }
 0xbd3   : > { %v17093_v42 = vmax.f32 %v17007_v33, 0.0  ;;  %v22460_v15 = vpop.f32.mrb[38].mxu0 }
 0xbd4   : > { %v17022_v10 = vadd.f32 %v22460_v15, %v30441_v9  ;;  %v17016_v39 = vpop.f32.mrb[39].mxu0 }
 0xbd5   : > { %v17017_v6 = vadd.f32 %v30441_v9, %v17016_v39  ;;  %22519 = vmatprep.mubr.msk.f32.mxu0 %vm16753_vm7, %v17093_v42 }
 0xbd6   : > { %22520 = vmatmul.mubr.msk.f32.gmra.mrb[68].mxu0 %vm16753_vm7, %v17094_v43  ;;  %v17096_v26 = vmax.f32 %v17022_v10, 0.0 }
 0xbd7   : > { %v17095_v52 = vmax.f32 %v17017_v6, 0.0  ;;  %v22463_v37 = vpop.f32.mrb[40].mxu0 }
 0xbd8   : > { %v17032_v63 = vadd.f32 %v22463_v37, %v30441_v9  ;;  %v17026_v47 = vpop.f32.mrb[41].mxu0 }
 0xbd9   : > { %v17027_v53 = vadd.f32 %v30441_v9, %v17026_v47  ;;  %22522 = vmatprep.mubr.msk.f32.mxu0 %vm16753_vm7, %v17095_v52 }
 0xbda   : > { %22523 = vmatmul.mubr.msk.f32.gmra.mrb[70].mxu0 %vm16753_vm7, %v17096_v26  ;;  %v17098_v51 = vmax.f32 %v17032_v63, 0.0 }
 0xbdb   : > { %v17097_v2 = vmax.f32 %v17027_v53, 0.0  ;;  %v22466_v58 = vpop.f32.mrb[42].mxu0 }
 0xbdc   : > { %v17042_v31 = vadd.f32 %v22466_v58, %v30441_v9  ;;  %v17036_v19 = vpop.f32.mrb[43].mxu0 }
 0xbdd   : > { %v17037_v50 = vadd.f32 %v30441_v9, %v17036_v19  ;;  %22525 = vmatprep.mubr.msk.f32.mxu0 %vm16753_vm7, %v17097_v2 }
 0xbde   : > { %22526 = vmatmul.mubr.msk.f32.gmra.mrb[72].mxu0 %vm16753_vm7, %v17098_v51  ;;  %v17100_v57 = vmax.f32 %v17042_v31, 0.0 }
 0xbdf   : > { %v17099_v0 = vmax.f32 %v17037_v50, 0.0  ;;  %v22469_v38 = vpop.f32.mrb[44].mxu0 }
 0xbe0   : > { %v17052_v29 = vadd.f32 %v22469_v38, %v30441_v9  ;;  %v17046_v8 = vpop.f32.mrb[45].mxu0 }
 0xbe1   : > { %v17047_v30 = vadd.f32 %v30441_v9, %v17046_v8  ;;  %22528 = vmatprep.mubr.msk.f32.mxu0 %vm16753_vm7, %v17099_v0 }
 0xbe2   : > { %22529 = vmatmul.mubr.msk.f32.gmra.mrb[74].mxu0 %vm16753_vm7, %v17100_v57  ;;  %v17102_v35 = vmax.f32 %v17052_v29, 0.0 }
 0xbe3   : > { %v17101_v5 = vmax.f32 %v17047_v30, 0.0  ;;  %v22472_v44 = vpop.f32.mrb[46].mxu0 }
 0xbe4   : > { %v17062_v62 = vadd.f32 %v22472_v44, %v30441_v9  ;;  %v17056_v40 = vpop.f32.mrb[47].mxu0 }
 0xbe5   : > { %v17057_v22 = vadd.f32 %v30441_v9, %v17056_v40  ;;  %22531 = vmatprep.mubr.msk.f32.mxu0 %vm16753_vm7, %v17101_v5 }
 0xbe6   : > { %22532 = vmatmul.mubr.msk.f32.gmra.mrb[76].mxu0 %vm16753_vm7, %v17102_v35  ;;  %v17104_v59 = vmax.f32 %v17062_v62, 0.0 }
 0xbe7   : > { %v17103_v56 = vmax.f32 %v17057_v22, 0.0  ;;  %v22475_v55 = vpop.f32.mrb[48].mxu0 }
 0xbe8   : > { %v17072_v54 = vadd.f32 %v22475_v55, %v30441_v9  ;;  %v17066_v28 = vpop.f32.mrb[49].mxu0 }
 0xbe9   : > { %v17067_v20 = vadd.f32 %v30441_v9, %v17066_v28  ;;  %22534 = vmatprep.mubr.msk.f32.mxu0 %vm16753_vm7, %v17103_v56 }
 0xbea   : > { %22535 = vmatmul.mubr.msk.f32.gmra.mrb[78].mxu0 %vm16753_vm7, %v17104_v59  ;;  %v17106_v12 = vmax.f32 %v17072_v54, 0.0 }
 0xbeb   : > { %v17105_v34 = vmax.f32 %v17067_v20, 0.0 }
 0xbed   : > { %22537 = vmatprep.mubr.msk.f32.mxu0 %vm16753_vm7, %v17105_v34 }
 0xbee   : > { %22538 = vmatmul.mubr.msk.f32.gmra.mrb[80].mxu0 %vm16753_vm7, %v17106_v12 }
 0xc85   : > { %v22494_v49 = vpop.f32.mrb[50].mxu0 }
 0xc86   : > { %v17290_v23 = vadd.f32 %v22494_v49, %v30511_v36  ;;  %v17284_v13 = vpop.f32.mrb[51].mxu0 }
 0xc87   : > { %v17285_v9 = vadd.f32 %v30511_v36, %v17284_v13 }
 0xc88   : > { %17444 = vst [vmem:[%s30515_s5 + $0x8] sm:$0xff] %v17290_v23 }
 0xc89   : > { %17443 = vst [vmem:[%s30515_s5] sm:$0xff] %v17285_v9  ;;  %v22497_v3 = vpop.f32.mrb[52].mxu0 }
 0xc8a   : > { %v17300_v11 = vadd.f32 %v22497_v3, %v30511_v36  ;;  %v17294_v60 = vpop.f32.mrb[53].mxu0 }
 0xc8b   : > { %v17295_v41 = vadd.f32 %v30511_v36, %v17294_v60 }
 0xc8c   : > { %17446 = vst [vmem:[%s30515_s5 + $0x18] sm:$0xff] %v17300_v11 }
 0xc8d   : > { %17445 = vst [vmem:[%s30515_s5 + $0x10] sm:$0xff] %v17295_v41  ;;  %v22500_v46 = vpop.f32.mrb[54].mxu0 }
 0xc8e   : > { %v17310_v32 = vadd.f32 %v22500_v46, %v30511_v36  ;;  %v17304_v16 = vpop.f32.mrb[55].mxu0 }
 0xc8f   : > { %v17305_v25 = vadd.f32 %v30511_v36, %v17304_v16 }
 0xc90   : > { %17448 = vst [vmem:[%s30515_s5 + $0x28] sm:$0xff] %v17310_v32 }
 0xc91   : > { %17447 = vst [vmem:[%s30515_s5 + $0x20] sm:$0xff] %v17305_v25  ;;  %v22503_v48 = vpop.f32.mrb[56].mxu0 }
 0xc92   : > { %v17320_v18 = vadd.f32 %v22503_v48, %v30511_v36  ;;  %v17314_v7 = vpop.f32.mrb[57].mxu0 }
 0xc93   : > { %v17315_v61 = vadd.f32 %v30511_v36, %v17314_v7 }
 0xc94   : > { %17450 = vst [vmem:[%s30515_s5 + $0x38] sm:$0xff] %v17320_v18 }
 0xc95   : > { %17449 = vst [vmem:[%s30515_s5 + $0x30] sm:$0xff] %v17315_v61  ;;  %v22506_v45 = vpop.f32.mrb[58].mxu0 }
 0xc96   : > { %v17330_v1 = vadd.f32 %v22506_v45, %v30511_v36  ;;  %v17324_v21 = vpop.f32.mrb[59].mxu0 }
 0xc97   : > { %v17325_v4 = vadd.f32 %v30511_v36, %v17324_v21 }
 0xc98   : > { %17452 = vst [vmem:[%s30515_s5 + $0x48] sm:$0xff] %v17330_v1 }
 0xc99   : > { %17451 = vst [vmem:[%s30515_s5 + $0x40] sm:$0xff] %v17325_v4  ;;  %v22509_v24 = vpop.f32.mrb[60].mxu0 }
 0xc9a   : > { %v17340_v17 = vadd.f32 %v22509_v24, %v30511_v36  ;;  %v17334_v14 = vpop.f32.mrb[61].mxu0 }
 0xc9b   : > { %v17335_v27 = vadd.f32 %v30511_v36, %v17334_v14 }
 0xc9c   : > { %17454 = vst [vmem:[%s30515_s5 + $0x58] sm:$0xff] %v17340_v17 }
 0xc9d   : > { %17453 = vst [vmem:[%s30515_s5 + $0x50] sm:$0xff] %v17335_v27  ;;  %v22512_v33 = vpop.f32.mrb[62].mxu0 }
 0xc9e   : > { %v17350_v42 = vadd.f32 %v22512_v33, %v30511_v36  ;;  %v17344_v15 = vpop.f32.mrb[63].mxu0 }
 0xc9f   : > { %v17345_v43 = vadd.f32 %v30511_v36, %v17344_v15 }
 0xca0   : > { %17456 = vst [vmem:[%s30515_s5 + $0x68] sm:$0xff] %v17350_v42 }
 0xca1   : > { %17455 = vst [vmem:[%s30515_s5 + $0x60] sm:$0xff] %v17345_v43  ;;  %v22515_v10 = vpop.f32.mrb[64].mxu0 }
 0xca2   : > { %v17360_v39 = vadd.f32 %v22515_v10, %v30511_v36  ;;  %v17354_v6 = vpop.f32.mrb[65].mxu0 }
 0xca3   : > { %v17355_v52 = vadd.f32 %v30511_v36, %v17354_v6 }
 0xca4   : > { %17458 = vst [vmem:[%s30515_s5 + $0x78] sm:$0xff] %v17360_v39 }
 0xca5   : > { %17457 = vst [vmem:[%s30515_s5 + $0x70] sm:$0xff] %v17355_v52  ;;  %v22518_v37 = vpop.f32.mrb[66].mxu0 }
 0xca6   : > { %v17370_v26 = vadd.f32 %v22518_v37, %v30511_v36  ;;  %v17364_v63 = vpop.f32.mrb[67].mxu0 }
 0xca7   : > { %v17365_v47 = vadd.f32 %v30511_v36, %v17364_v63 }
 0xca8   : > { %17460 = vst [vmem:[%s30515_s5 + $0x88] sm:$0xff] %v17370_v26 }
 0xca9   : > { %17459 = vst [vmem:[%s30515_s5 + $0x80] sm:$0xff] %v17365_v47  ;;  %v22521_v53 = vpop.f32.mrb[68].mxu0 }
 0xcaa   : > { %v17380_v2 = vadd.f32 %v22521_v53, %v30511_v36  ;;  %v17374_v58 = vpop.f32.mrb[69].mxu0 }
 0xcab   : > { %v17375_v51 = vadd.f32 %v30511_v36, %v17374_v58 }
 0xcac   : > { %17462 = vst [vmem:[%s30515_s5 + $0x98] sm:$0xff] %v17380_v2 }
 0xcad   : > { %17461 = vst [vmem:[%s30515_s5 + $0x90] sm:$0xff] %v17375_v51  ;;  %v22524_v31 = vpop.f32.mrb[70].mxu0 }
 0xcae   : > { %v17390_v19 = vadd.f32 %v22524_v31, %v30511_v36  ;;  %v17384_v50 = vpop.f32.mrb[71].mxu0 }
 0xcaf   : > { %v17385_v0 = vadd.f32 %v30511_v36, %v17384_v50 }
 0xcb0   : > { %17464 = vst [vmem:[%s30515_s5 + $0xa8] sm:$0xff] %v17390_v19 }
 0xcb1   : > { %17463 = vst [vmem:[%s30515_s5 + $0xa0] sm:$0xff] %v17385_v0  ;;  %v22527_v38 = vpop.f32.mrb[72].mxu0 }
 0xcb2   : > { %v17400_v57 = vadd.f32 %v22527_v38, %v30511_v36  ;;  %v17394_v29 = vpop.f32.mrb[73].mxu0 }
 0xcb3   : > { %v17395_v8 = vadd.f32 %v30511_v36, %v17394_v29 }
 0xcb4   : > { %17466 = vst [vmem:[%s30515_s5 + $0xb8] sm:$0xff] %v17400_v57 }
 0xcb5   : > { %17465 = vst [vmem:[%s30515_s5 + $0xb0] sm:$0xff] %v17395_v8  ;;  %v22530_v30 = vpop.f32.mrb[74].mxu0 }
 0xcb6   : > { %v17410_v5 = vadd.f32 %v22530_v30, %v30511_v36  ;;  %v17404_v44 = vpop.f32.mrb[75].mxu0 }
 0xcb7   : > { %v17405_v35 = vadd.f32 %v30511_v36, %v17404_v44 }
 0xcb8   : > { %17468 = vst [vmem:[%s30515_s5 + $0xc8] sm:$0xff] %v17410_v5 }
 0xcb9   : > { %17467 = vst [vmem:[%s30515_s5 + $0xc0] sm:$0xff] %v17405_v35  ;;  %v22533_v62 = vpop.f32.mrb[76].mxu0 }
 0xcba   : > { %v17420_v40 = vadd.f32 %v22533_v62, %v30511_v36  ;;  %v17414_v22 = vpop.f32.mrb[77].mxu0 }
 0xcbb   : > { %v17415_v56 = vadd.f32 %v30511_v36, %v17414_v22 }
 0xcbc   : > { %17470 = vst [vmem:[%s30515_s5 + $0xd8] sm:$0xff] %v17420_v40 }
 0xcbd   : > { %17469 = vst [vmem:[%s30515_s5 + $0xd0] sm:$0xff] %v17415_v56  ;;  %v22536_v55 = vpop.f32.mrb[78].mxu0 }
 0xcbe   : > { %v17430_v59 = vadd.f32 %v22536_v55, %v30511_v36  ;;  %v17424_v54 = vpop.f32.mrb[79].mxu0 }
 0xcbf   : > { %v17425_v28 = vadd.f32 %v30511_v36, %v17424_v54 }
 0xcc0   : > { %17472 = vst [vmem:[%s30515_s5 + $0xe8] sm:$0xff] %v17430_v59 }
 0xcc1   : > { %17471 = vst [vmem:[%s30515_s5 + $0xe0] sm:$0xff] %v17425_v28  ;;  %v22539_v20 = vpop.f32.mrb[80].mxu0 }
 0xcc2   : > { %v17440_v34 = vadd.f32 %v22539_v20, %v30511_v36  ;;  %v17434_v12 = vpop.f32.mrb[81].mxu0 }
 0xcc3   : > { %v17435_v49 = vadd.f32 %v30511_v36, %v17434_v12 }
 0xcc4   : > { %17474 = vst [vmem:[%s30515_s5 + $0xf8] sm:$0xff] %v17440_v34 }
 0xcc5   : > { %17473 = vst [vmem:[%s30515_s5 + $0xf0] sm:$0xff] %v17435_v49 }
 0xcc6   : > { %23556 = shalt.err (!%p23553_p3)
}
 0xcc7   : > { %s23557_s5 = scalar_lea.hbm %s30579_s4, 4096  ;;  %s23561_s9 = scalar_lea.hbm %s23813_s24, 8192 }
 0xcc8   : > { %p23558_p4 = scmp.ne.s32.totalorder %s30579_s4, %s23557_s5  ;;  %p23562_p9 = scmp.lt.u32.totalorder %s30579_s4, %s23813_s24 }
 0xcc9   : > { %p23563_p10 = scmp.lt.u32.totalorder %s23561_s9, %s23557_s5  ;;  %p23565_p12 = scmp.lt.u32.totalorder %s23557_s5, %s30579_s4 }
 0xcca   : > { %p23559_p7 = pnand %p23558_p4, %p23853_p5 }
 0xccb   : > { %p23564_p11 = por %p23563_p10, %p23562_p9 }
 0xccc   : > { %p23560_p8 = pneg %p23559_p7 }
 0xccd   : > { %p23566_p0 = por %p23565_p12, %p23564_p11 }
 0xccf   : > { %p23567_p13 = pnand %p23566_p0, %p23560_p8 }
 0xcd1   : > { %23570 = shalt.err (!%p23567_p13)
}
 0xcd2   : > { %s23653_s8 = smov 128   ;;  %s23654_s6 = smov 8  }
 0xcd3   : > { %23248 = dma.vmem_to_hbm [thread:$0]  (%p23853_p5), %s30581_s3, 4096, %s30579_s4, %s30588_s0, %s23653_s8, %s23653_s8, %s23654_s6  }
 0xcd4 PF: > { %p23254_p1 = scmp.ge.s32.totalorder %s23605_s22, 2  ;;  %s17504_s11 = sand.u32 1, %s23593_s15  }
 0xcd5   : > { %s17505_s1 = scalar_lea.sflag [#allocation3], %s17504_s11 }
 0xcd6   : > { %p23251_p2 = pnand %p23254_p1, %p23857_p6 }
 0xcd8   : > { %23588 = dma.done.wait (!%p23251_p2), %s17505_s1, 4096  }
 0xcd9   : > { %23590 = vsyncadd (!%p23251_p2), %s17505_s1, 4294963200  ;;  %p71_p3 = scmp.ge.s32.totalorder %s23840_s26, 4   ;;  %s31485_s15 = smov %s23597_s16 }
 0xcda   : > { %s31486_s16 = smov %s23601_s18  ;;  %s31487_s18 = smov %s23851_s2 }
 0xcdb   : > { %s31488_s22 = smov %s23840_s26  ;;  %73 = sbr.rel (!%p71_p3) target bundleno = 58 (0x3a), region = 214 }
 0xce2   :  { %17510 = vsyncpa [#allocation3], 1 }
 0xce3   :  { %17512 = vsyncpa [#allocation3 + $0x1], 1 }

</bundles_post_ra>
